<compile_context>
chip_gen: v7x
topology: tpu7x:2x2x1
jax: 0.10.0
libtpu: 0.0.40
codegen_flags: <defaults>
</compile_context>

<pallas_src>
import functools

import jax
import jax.numpy as jnp
from jax import lax
from jax.experimental import pallas as pl
from jax.experimental.pallas import tpu as pltpu


# ----------------------------------------------------------------------------
# Kernel A: 1x1-conv feature extractor + ReLU + per-pixel channel L2 norm
#           + adaptive_avg_pool2d(1) + per-feature L2 norm.  Layout [T, Cin, HW].
# ----------------------------------------------------------------------------
def feat_kernel(x_ref, w_ref, o_ref):
    # x_ref: [T, Cin, HW]  pixels of T images (spatial on lanes)
    # w_ref: [Cin, Cout, 1] 1x1-conv weight, pre-shaped so w[c] is a [Cout, 1] column
    # o_ref: [T, Cout]     pooled + L2-normalized features (bf16)
    x = x_ref[...]
    w = w_ref[...]
    T, Cin, HW = x.shape
    Cout = w.shape[1]

    if Cin <= 16:
        # Tiny-Cin VPU path (demo Cin=4): static unroll over channels, HW stays on lanes.
        acc = x[:, 0:1, :] * w[0][None]                  # [T,1,HW]*[1,Cout,1] -> [T,Cout,HW]
        for c in range(1, Cin):
            acc = acc + x[:, c:c + 1, :] * w[c][None]
        feat = jnp.maximum(acc, 0.0)                     # ReLU, [T, Cout, HW]
        # F.normalize(dim=1) on NCHW == per-pixel L2 norm over channels (sublane reduce).
        ssq = jnp.sum(feat * feat, axis=1, keepdims=True)
        feat = feat * lax.rsqrt(jnp.maximum(ssq, 1e-24))  # x/max(||x||,1e-12)
        pooled = jnp.mean(feat, axis=2)                  # adaptive_avg_pool2d(1) -> [T, Cout]
    else:
        # Large-Cin path: MXU contraction; keep channels on lanes downstream.
        feat = lax.dot_general(x, w[:, :, 0],
                               dimension_numbers=(((1,), (0,)), ((), ())),
                               preferred_element_type=jnp.float32)   # [T, HW, Cout]
        feat = jnp.maximum(feat, 0.0)
        ssq = jnp.sum(feat * feat, axis=2, keepdims=True)
        feat = feat * lax.rsqrt(jnp.maximum(ssq, 1e-24))
        pooled = jnp.mean(feat, axis=1)                  # [T, Cout]

    # F.normalize(pooled, p=2, dim=channel, eps=1e-12); VPU math stays f32, store bf16.
    vsq = jnp.sum(pooled * pooled, axis=1, keepdims=True)
    o_ref[...] = (pooled * lax.rsqrt(jnp.maximum(vsq, 1e-24))).astype(o_ref.dtype)


def _image_tile(TI, Cin, HW, Cout):
    # Fixed "good" tile, bounded by a per-step VMEM budget safe across v5e/v6e/v7x
    # (scoped defaults 16/32/32 MiB; v7x has only 64 MiB physical).  Big blocks reach
    # ~85% of HBM roofline; the ~0.35us/step grid overhead is amortized.
    hw_pad = max(HW, 128)                                # lane-padded intermediates
    row_bytes = 2 * Cin * HW * 4 + 3 * Cout * hw_pad * 4 + 2 * Cout * 4
    budget = 16 << 20
    tile = min(512, max(16, budget // max(row_bytes, 1)))
    tile = max(16, (tile // 16) * 16)                    # multiple of 16: bf16 output rows
    if tile >= TI:
        tile = ((TI + 15) // 16) * 16                    # one step covers the (padded) input
    return tile


def feature_extract(x, w):
    # x: [TI, Cin, HW] f32,  w: [Cin, Cout] f32  ->  [TI, Cout] bf16
    TI, Cin, HW = x.shape
    Cout = w.shape[1]
    tile = _image_tile(TI, Cin, HW, Cout)
    steps = pl.cdiv(TI, tile)
    TI_pad = steps * tile
    if TI_pad != TI:
        # Zero rows normalize to zero features and are sliced off below (no NaN/Inf risk).
        x = jnp.pad(x, ((0, TI_pad - TI), (0, 0), (0, 0)))
    w3 = w.reshape(Cin, Cout, 1)                         # w[c] is a column -> no in-kernel relayout
    out = pl.pallas_call(
        feat_kernel,
        out_shape=jax.ShapeDtypeStruct((TI_pad, Cout), jnp.bfloat16),
        grid=(steps,),
        in_specs=[
            pl.BlockSpec((tile, Cin, HW), lambda i: (i, 0, 0)),
            pl.BlockSpec((Cin, Cout, 1), lambda i: (0, 0, 0)),
        ],
        out_specs=pl.BlockSpec((tile, Cout), lambda i: (i, 0)),
        compiler_params=pltpu.CompilerParams(
            dimension_semantics=("parallel",),
            vmem_limit_bytes=32 << 20),
    )(x, w3)
    return out[:TI]


# ----------------------------------------------------------------------------
# Kernel B1: all-pairs patch similarity as a single MXU matmul per episode.
#            sim[(m,h), (n,w)] = sum_c f[m*P+h, c] * t[n*P+w, c]
# ----------------------------------------------------------------------------
def pair_sim_kernel(f_ref, t_ref, o_ref):
    # f_ref: [1, M*P, C] bf16 support patch features (row = m*P + h)
    # t_ref: [1, N*P, C] bf16 query   patch features (row = n*P + w)
    # o_ref: [1, M*P, N*P] f32
    o_ref[0] = lax.dot_general(
        f_ref[0], t_ref[0],
        dimension_numbers=(((1,), (1,)), ((), ())),
        preferred_element_type=jnp.float32)


def pair_sim(train, test):
    b, MP, C = train.shape
    NP = test.shape[1]
    return pl.pallas_call(
        pair_sim_kernel,
        out_shape=jax.ShapeDtypeStruct((b, MP, NP), jnp.float32),
        grid=(b,),
        in_specs=[
            pl.BlockSpec((1, MP, C), lambda i: (i, 0, 0)),
            pl.BlockSpec((1, NP, C), lambda i: (i, 0, 0)),
        ],
        out_specs=pl.BlockSpec((1, MP, NP), lambda i: (i, 0, 0)),
        compiler_params=pltpu.CompilerParams(dimension_semantics=("parallel",)),
    )(train, test)


# ----------------------------------------------------------------------------
# Kernel B2: greedy max selection with row/col elimination + beta-weighted relu sum.
#            Lane-dense layout: sim[h, w, g] with g = m*N + n on lanes.
# ----------------------------------------------------------------------------
def soc_greedy_kernel(s_ref, o_ref, *, beta):
    # s_ref: [1, P, P, G]  per-episode sim (h leading, w sublanes, pair g lanes)
    # o_ref: [1, 1, G]     greedy SOC score per (support, query) pair
    sim = s_ref[0]                                       # [P, P, G] f32
    P, _, G = sim.shape
    neg = jnp.float32(-1e30)

    h_iota = lax.broadcasted_iota(jnp.int32, (P, P, G), 0)
    w_iota = lax.broadcasted_iota(jnp.int32, (P, P, G), 1)
    idx2 = lax.broadcasted_iota(jnp.int32, (P, G), 0)    # index along the leading dim of [P, G]

    def body(_, carry):
        sim, acc, count = carry
        col_max = jnp.max(sim, axis=0)                               # [P(w), G] max over rows h
        v = jnp.max(col_max, axis=0, keepdims=True)                  # [1, G]   global max
        # w* = first maximal column; h* = first maximal row within that column
        w_star = jnp.min(jnp.where(col_max >= v, idx2, P), axis=0, keepdims=True)   # [1, G]
        colvals = jnp.max(jnp.where(w_iota == w_star[None], sim, neg), axis=1)      # [P(h), G]
        h_star = jnp.min(jnp.where(colvals >= v, idx2, P), axis=0, keepdims=True)   # [1, G]
        acc = acc + count * jnp.maximum(v[0], 0.0)                   # relu(max) * beta**i
        # carry the masked sim: eliminate row h* and column w* in one select
        sim = jnp.where((h_iota == h_star[None]) | (w_iota == w_star[None]), neg, sim)
        return sim, acc, count * beta

    acc0 = jnp.zeros((G,), jnp.float32)
    sim, acc, count = lax.fori_loop(0, P - 1, body, (sim, acc0, jnp.float32(1.0)),
                                    unroll=True)
    # single remaining entry after P-1 eliminations
    v_last = jnp.max(jnp.max(sim, axis=0), axis=0)
    acc = acc + count * jnp.maximum(v_last, 0.0)
    o_ref[0, 0, :] = acc                                             # lane-dense store


def soc_greedy(simT, beta):
    b, P, _, G = simT.shape
    kernel = functools.partial(soc_greedy_kernel, beta=float(beta))
    out = pl.pallas_call(
        kernel,
        out_shape=jax.ShapeDtypeStruct((b, 1, G), jnp.float32),
        grid=(b,),
        in_specs=[pl.BlockSpec((1, P, P, G), lambda i: (i, 0, 0, 0))],
        out_specs=pl.BlockSpec((1, 1, G), lambda i: (i, 0, 0)),
        compiler_params=pltpu.CompilerParams(dimension_semantics=("parallel",)),
    )(simT)
    return out[:, 0, :]                                              # [b, G]


# ----------------------------------------------------------------------------
# SOC forward (shot == 1 path)
# ----------------------------------------------------------------------------
def soc_forward(data, conv_w, *, way, shot, batch_size, num_patch, alpha, beta):
    # `alpha` only affects the shot > 1 support-selection branch of the reference module.
    assert shot == 1  # TODO(synk): shot > 1 greedy support-patch selection branch not implemented
    BS, P, Cin, H, W = data.shape
    assert P == num_patch
    TI = BS * P

    # Keep NCHW: pure reshape (no HBM transpose round trip); spatial H*W lands on lanes.
    x = data.reshape(TI, Cin, H * W).astype(jnp.float32)
    feats = feature_extract(x, conv_w)                   # [TI, Cout] bf16, pooled + L2 normalized
    Cout = conv_w.shape[1]

    S = BS // batch_size
    feats = feats.reshape(batch_size, S, P, Cout)        # [b, sample, patch, channel]
    ns = way * shot
    M, N = ns, S - ns

    train = feats[:, :ns].reshape(batch_size, M * P, Cout)   # [b, M*P, C] bf16 (row = m*P+h)
    test = feats[:, ns:].reshape(batch_size, N * P, Cout)    # [b, N*P, C] bf16 (row = n*P+w)

    sim = pair_sim(train, test)                              # [b, M*P, N*P] f32
    # Tiny XLA relayout (few KB..MB) to the lane-dense greedy layout [b, h, w, g=m*N+n].
    simT = sim.reshape(batch_size, M, P, N, P) \
              .transpose(0, 2, 4, 1, 3) \
              .reshape(batch_size, P, P, M * N)

    scores = soc_greedy(simT, beta).reshape(batch_size, M, N)   # [b, M, N]
    return jnp.transpose(scores, (0, 2, 1))                     # [b, N, M] classification_scores


if __name__ == "__main__":
    key = jax.random.PRNGKey(0)
    batch_size, way, shot = 2, 3, 1
    n_query = 6
    num_patch, C_in, H, W = 4, 4, 8, 8
    C_out = 16
    alpha, beta = 0.5, 0.5

    S = way * shot + n_query
    k1, k2 = jax.random.split(key)
    # data: [batch_size * S, num_patch, C_in, H, W]   (NCHW images per patch)
    data = jax.random.normal(k1, (batch_size * S, num_patch, C_in, H, W), jnp.float32)
    # deterministic feature-extractor weight (1x1 conv stand-in): [C_in, C_out]
    conv_w = jax.random.normal(k2, (C_in, C_out), jnp.float32) * 0.3

    fwd = jax.jit(functools.partial(
        soc_forward, way=way, shot=shot, batch_size=batch_size,
        num_patch=num_patch, alpha=alpha, beta=beta))
    scores = jax.block_until_ready(fwd(data, conv_w))

    assert scores.shape == (batch_size, n_query, way)
    assert bool(jnp.all(jnp.isfinite(scores)))
    print("KERNEL_OK")
</pallas_src>

<mosaic_0001>
module attributes {stable_mosaic.version = 11 : i64} {
  func.func @feat_kernel(%arg0: i32, %arg1: memref<80x4x64xf32, #tpu.memory_space<vmem>>, %arg2: memref<4x16x1xf32, #tpu.memory_space<vmem>>, %arg3: memref<80x16xbf16, #tpu.memory_space<vmem>>) attributes {dimension_semantics = [#tpu.dimension_semantics<parallel>], iteration_bounds = array<i64: 1>, scalar_prefetch = 0 : i64, scratch_operands = 0 : i64, tpu.core_type = #tpu.core_type<tc>, window_params = [{transform_indices = @transform_0, window_bounds = array<i64: 80, 4, 64>}, {pipeline_mode = #tpu.pipeline_mode<synchronous>, transform_indices = @transform_1, window_bounds = array<i64: 4, 16, 1>}, {transform_indices = @transform_2, window_bounds = array<i64: 80, 16>}]} {
    %c0 = arith.constant 0 : index
    %c0_0 = arith.constant 0 : index
    %c0_1 = arith.constant 0 : index
    %0 = vector.load %arg1[%c0, %c0_0, %c0_1] : memref<80x4x64xf32, #tpu.memory_space<vmem>>, vector<80x4x64xf32>
    %c0_2 = arith.constant 0 : index
    %c0_3 = arith.constant 0 : index
    %c0_4 = arith.constant 0 : index
    %1 = vector.load %arg2[%c0_2, %c0_3, %c0_4] : memref<4x16x1xf32, #tpu.memory_space<vmem>>, vector<4x16x1xf32>
    %2 = vector.extract_strided_slice %0 {offsets = [0, 0, 0], sizes = [80, 1, 64], strides = [1, 1, 1]} : vector<80x4x64xf32> to vector<80x1x64xf32>
    %3 = vector.extract_strided_slice %1 {offsets = [0, 0, 0], sizes = [1, 16, 1], strides = [1, 1, 1]} : vector<4x16x1xf32> to vector<1x16x1xf32>
    %4 = vector.shape_cast %3 : vector<1x16x1xf32> to vector<16x1xf32>
    %5 = vector.shape_cast %4 : vector<16x1xf32> to vector<1x16x1xf32>
    %6 = vector.broadcast %2 : vector<80x1x64xf32> to vector<80x16x64xf32>
    %7 = vector.broadcast %5 : vector<1x16x1xf32> to vector<80x16x64xf32>
    %8 = arith.mulf %6, %7 : vector<80x16x64xf32>
    %9 = vector.extract_strided_slice %0 {offsets = [0, 1, 0], sizes = [80, 1, 64], strides = [1, 1, 1]} : vector<80x4x64xf32> to vector<80x1x64xf32>
    %10 = vector.extract_strided_slice %1 {offsets = [1, 0, 0], sizes = [1, 16, 1], strides = [1, 1, 1]} : vector<4x16x1xf32> to vector<1x16x1xf32>
    %11 = vector.shape_cast %10 : vector<1x16x1xf32> to vector<16x1xf32>
    %12 = vector.shape_cast %11 : vector<16x1xf32> to vector<1x16x1xf32>
    %13 = vector.broadcast %9 : vector<80x1x64xf32> to vector<80x16x64xf32>
    %14 = vector.broadcast %12 : vector<1x16x1xf32> to vector<80x16x64xf32>
    %15 = arith.mulf %13, %14 : vector<80x16x64xf32>
    %16 = arith.addf %8, %15 : vector<80x16x64xf32>
    %17 = vector.extract_strided_slice %0 {offsets = [0, 2, 0], sizes = [80, 1, 64], strides = [1, 1, 1]} : vector<80x4x64xf32> to vector<80x1x64xf32>
    %18 = vector.extract_strided_slice %1 {offsets = [2, 0, 0], sizes = [1, 16, 1], strides = [1, 1, 1]} : vector<4x16x1xf32> to vector<1x16x1xf32>
    %19 = vector.shape_cast %18 : vector<1x16x1xf32> to vector<16x1xf32>
    %20 = vector.shape_cast %19 : vector<16x1xf32> to vector<1x16x1xf32>
    %21 = vector.broadcast %17 : vector<80x1x64xf32> to vector<80x16x64xf32>
    %22 = vector.broadcast %20 : vector<1x16x1xf32> to vector<80x16x64xf32>
    %23 = arith.mulf %21, %22 : vector<80x16x64xf32>
    %24 = arith.addf %16, %23 : vector<80x16x64xf32>
    %25 = vector.extract_strided_slice %0 {offsets = [0, 3, 0], sizes = [80, 1, 64], strides = [1, 1, 1]} : vector<80x4x64xf32> to vector<80x1x64xf32>
    %26 = vector.extract_strided_slice %1 {offsets = [3, 0, 0], sizes = [1, 16, 1], strides = [1, 1, 1]} : vector<4x16x1xf32> to vector<1x16x1xf32>
    %27 = vector.shape_cast %26 : vector<1x16x1xf32> to vector<16x1xf32>
    %28 = vector.shape_cast %27 : vector<16x1xf32> to vector<1x16x1xf32>
    %29 = vector.broadcast %25 : vector<80x1x64xf32> to vector<80x16x64xf32>
    %30 = vector.broadcast %28 : vector<1x16x1xf32> to vector<80x16x64xf32>
    %31 = arith.mulf %29, %30 : vector<80x16x64xf32>
    %32 = arith.addf %24, %31 : vector<80x16x64xf32>
    %cst = arith.constant 0.000000e+00 : f32
    %33 = vector.broadcast %cst : f32 to vector<80x16x64xf32>
    %34 = arith.maximumf %32, %33 : vector<80x16x64xf32>
    %35 = arith.mulf %34, %34 : vector<80x16x64xf32>
    %cst_5 = arith.constant dense<0.000000e+00> : vector<80x64xf32>
    %36 = vector.multi_reduction <add>, %35, %cst_5 [1] : vector<80x16x64xf32> to vector<80x64xf32>
    %37 = vector.shape_cast %36 : vector<80x64xf32> to vector<80x1x64xf32>
    %cst_6 = arith.constant 1.000000e-24 : f32
    %38 = vector.broadcast %cst_6 : f32 to vector<80x1x64xf32>
    %39 = arith.maximumf %37, %38 : vector<80x1x64xf32>
    %40 = math.rsqrt %39 : vector<80x1x64xf32>
    %41 = vector.broadcast %40 : vector<80x1x64xf32> to vector<80x16x64xf32>
    %42 = arith.mulf %34, %41 : vector<80x16x64xf32>
    %cst_7 = arith.constant dense<0.000000e+00> : vector<80x16xf32>
    %43 = vector.multi_reduction <add>, %42, %cst_7 [2] : vector<80x16x64xf32> to vector<80x16xf32>
    %cst_8 = arith.constant 6.400000e+01 : f32
    %44 = vector.broadcast %cst_8 : f32 to vector<80x16xf32>
    %45 = arith.divf %43, %44 : vector<80x16xf32>
    %46 = arith.mulf %45, %45 : vector<80x16xf32>
    %cst_9 = arith.constant dense<0.000000e+00> : vector<80xf32>
    %47 = vector.multi_reduction <add>, %46, %cst_9 [1] : vector<80x16xf32> to vector<80xf32>
    %48 = vector.shape_cast %47 : vector<80xf32> to vector<80x1xf32>
    %cst_10 = arith.constant 1.000000e-24 : f32
    %49 = vector.broadcast %cst_10 : f32 to vector<80x1xf32>
    %50 = arith.maximumf %48, %49 : vector<80x1xf32>
    %51 = math.rsqrt %50 : vector<80x1xf32>
    %52 = vector.broadcast %51 : vector<80x1xf32> to vector<80x16xf32>
    %53 = arith.mulf %45, %52 : vector<80x16xf32>
    %54 = arith.truncf %53 : vector<80x16xf32> to vector<80x16xbf16>
    %c0_11 = arith.constant 0 : index
    %c0_12 = arith.constant 0 : index
    %55 = vector.load %arg3[%c0_11, %c0_12] : memref<80x16xbf16, #tpu.memory_space<vmem>>, vector<80x16xbf16>
    tpu.vector_store %arg3[%c0_11, %c0_12], %54 {strides = array<i32>} : memref<80x16xbf16, #tpu.memory_space<vmem>>, vector<80x16xbf16>,
    return
  }
  func.func @transform_0(%arg0: i32) -> (i32, i32, i32) {
    %c0_i32 = arith.constant 0 : i32
    %c0_i32_0 = arith.constant 0 : i32
    %c0_i32_1 = arith.constant 0 : i32
    return %arg0, %c0_i32, %c0_i32_0 : i32, i32, i32
  }
  func.func @transform_1(%arg0: i32) -> (i32, i32, i32) {
    %c0_i32 = arith.constant 0 : i32
    %c0_i32_0 = arith.constant 0 : i32
    %c0_i32_1 = arith.constant 0 : i32
    %c0_i32_2 = arith.constant 0 : i32
    return %c0_i32, %c0_i32_0, %c0_i32_1 : i32, i32, i32
  }
  func.func @transform_2(%arg0: i32) -> (i32, i32) {
    %c0_i32 = arith.constant 0 : i32
    %c0_i32_0 = arith.constant 0 : i32
    return %arg0, %c0_i32 : i32, i32
  }
}

module attributes {stable_mosaic.version = 11 : i64} {
  func.func @pair_sim_kernel(%arg0: i32, %arg1: memref<1x12x16xbf16, #tpu.memory_space<vmem>>, %arg2: memref<1x24x16xbf16, #tpu.memory_space<vmem>>, %arg3: memref<1x12x24xf32, #tpu.memory_space<vmem>>) attributes {dimension_semantics = [#tpu.dimension_semantics<parallel>], iteration_bounds = array<i64: 2>, scalar_prefetch = 0 : i64, scratch_operands = 0 : i64, tpu.core_type = #tpu.core_type<tc>, window_params = [{transform_indices = @transform_0, window_bounds = array<i64: 1, 12, 16>}, {transform_indices = @transform_1, window_bounds = array<i64: 1, 24, 16>}, {transform_indices = @transform_2, window_bounds = array<i64: 1, 12, 24>}]} {
    %c0 = arith.constant 0 : index
    %c0_0 = arith.constant 0 : index
    %c0_1 = arith.constant 0 : index
    %0 = vector.load %arg1[%c0, %c0_0, %c0_1] : memref<1x12x16xbf16, #tpu.memory_space<vmem>>, vector<1x12x16xbf16>
    %1 = vector.shape_cast %0 : vector<1x12x16xbf16> to vector<12x16xbf16>
    %c0_2 = arith.constant 0 : index
    %c0_3 = arith.constant 0 : index
    %c0_4 = arith.constant 0 : index
    %2 = vector.load %arg2[%c0_2, %c0_3, %c0_4] : memref<1x24x16xbf16, #tpu.memory_space<vmem>>, vector<1x24x16xbf16>
    %3 = vector.shape_cast %2 : vector<1x24x16xbf16> to vector<24x16xbf16>
    %cst = arith.constant dense<0.000000e+00> : vector<12x24xf32>
    %4 = tpu.matmul %1, %3, %cst {dimension_numbers = #tpu.dot_dimension_numbers<[1], [1], [0], [0], [0, 0, 1, 0], [], []>} : vector<12x16xbf16>, vector<24x16xbf16>, vector<12x24xf32> -> vector<12x24xf32>
    %c0_5 = arith.constant 0 : index
    %c0_6 = arith.constant 0 : index
    %c0_7 = arith.constant 0 : index
    %5 = vector.load %arg3[%c0_5, %c0_6, %c0_7] : memref<1x12x24xf32, #tpu.memory_space<vmem>>, vector<1x12x24xf32>
    %6 = vector.shape_cast %5 : vector<1x12x24xf32> to vector<12x24xf32>
    %7 = vector.shape_cast %4 : vector<12x24xf32> to vector<1x12x24xf32>
    tpu.vector_store %arg3[%c0_5, %c0_6, %c0_7], %7 {strides = array<i32>} : memref<1x12x24xf32, #tpu.memory_space<vmem>>, vector<1x12x24xf32>,
    return
  }
  func.func @transform_0(%arg0: i32) -> (i32, i32, i32) {
    %c0_i32 = arith.constant 0 : i32
    %c0_i32_0 = arith.constant 0 : i32
    %c0_i32_1 = arith.constant 0 : i32
    return %arg0, %c0_i32, %c0_i32_0 : i32, i32, i32
  }
  func.func @transform_1(%arg0: i32) -> (i32, i32, i32) {
    %c0_i32 = arith.constant 0 : i32
    %c0_i32_0 = arith.constant 0 : i32
    %c0_i32_1 = arith.constant 0 : i32
    return %arg0, %c0_i32, %c0_i32_0 : i32, i32, i32
  }
  func.func @transform_2(%arg0: i32) -> (i32, i32, i32) {
    %c0_i32 = arith.constant 0 : i32
    %c0_i32_0 = arith.constant 0 : i32
    %c0_i32_1 = arith.constant 0 : i32
    return %arg0, %c0_i32, %c0_i32_0 : i32, i32, i32
  }
}

module attributes {stable_mosaic.version = 11 : i64} {
  func.func @soc_greedy_kernel(%arg0: i32, %arg1: memref<1x4x4x18xf32, #tpu.memory_space<vmem>>, %arg2: memref<1x1x18xf32, #tpu.memory_space<vmem>>) attributes {dimension_semantics = [#tpu.dimension_semantics<parallel>], iteration_bounds = array<i64: 2>, scalar_prefetch = 0 : i64, scratch_operands = 0 : i64, tpu.core_type = #tpu.core_type<tc>, window_params = [{transform_indices = @transform_0, window_bounds = array<i64: 1, 4, 4, 18>}, {transform_indices = @transform_1, window_bounds = array<i64: 1, 1, 18>}]} {
    %c0 = arith.constant 0 : index
    %c0_0 = arith.constant 0 : index
    %c0_1 = arith.constant 0 : index
    %c0_2 = arith.constant 0 : index
    %0 = vector.load %arg1[%c0, %c0_0, %c0_1, %c0_2] : memref<1x4x4x18xf32, #tpu.memory_space<vmem>>, vector<1x4x4x18xf32>
    %1 = vector.shape_cast %0 : vector<1x4x4x18xf32> to vector<4x4x18xf32>
    %2 = tpu.iota {dimensions = array<i32: 0>} : vector<4x4x18xi32>
    %3 = tpu.iota {dimensions = array<i32: 1>} : vector<4x4x18xi32>
    %4 = tpu.iota {dimensions = array<i32: 0>} : vector<4x18xi32>
    %cst = arith.constant 0.000000e+00 : f32
    %5 = vector.broadcast %cst : f32 to vector<18xf32>
    %cst_3 = arith.constant -1.000000e+30 : f32
    %cst_4 = arith.constant 1.000000e+00 : f32
    %c0_i32 = arith.constant 0 : i32
    %cst_5 = arith.constant dense<0xFF800000> : vector<4x18xf32>
    %6 = vector.multi_reduction <maximumf>, %1, %cst_5 [0] : vector<4x4x18xf32> to vector<4x18xf32>
    %cst_6 = arith.constant dense<0xFF800000> : vector<18xf32>
    %7 = vector.multi_reduction <maximumf>, %6, %cst_6 [0] : vector<4x18xf32> to vector<18xf32>
    %8 = vector.shape_cast %7 : vector<18xf32> to vector<1x18xf32>
    %9 = vector.broadcast %8 : vector<1x18xf32> to vector<4x18xf32>
    %10 = arith.cmpf oge, %6, %9 : vector<4x18xf32>
    %c4_i32 = arith.constant 4 : i32
    %11 = vector.broadcast %c4_i32 : i32 to vector<4x18xi32>
    %12 = arith.select %10, %4, %11 : vector<4x18xi1>, vector<4x18xi32>
    %cst_7 = arith.constant dense<2147483647> : vector<18xi32>
    %13 = vector.multi_reduction <minsi>, %12, %cst_7 [0] : vector<4x18xi32> to vector<18xi32>
    %14 = vector.shape_cast %13 : vector<18xi32> to vector<1x18xi32>
    %15 = vector.shape_cast %14 : vector<1x18xi32> to vector<1x1x18xi32>
    %16 = vector.broadcast %15 : vector<1x1x18xi32> to vector<4x4x18xi32>
    %17 = arith.cmpi eq, %3, %16 : vector<4x4x18xi32>
    %18 = vector.broadcast %cst_3 : f32 to vector<4x4x18xf32>
    %19 = arith.select %17, %1, %18 : vector<4x4x18xi1>, vector<4x4x18xf32>
    %cst_8 = arith.constant dense<0xFF800000> : vector<4x18xf32>
    %20 = vector.multi_reduction <maximumf>, %19, %cst_8 [1] : vector<4x4x18xf32> to vector<4x18xf32>
    %21 = vector.broadcast %8 : vector<1x18xf32> to vector<4x18xf32>
    %22 = arith.cmpf oge, %20, %21 : vector<4x18xf32>
    %c4_i32_9 = arith.constant 4 : i32
    %23 = vector.broadcast %c4_i32_9 : i32 to vector<4x18xi32>
    %24 = arith.select %22, %4, %23 : vector<4x18xi1>, vector<4x18xi32>
    %cst_10 = arith.constant dense<2147483647> : vector<18xi32>
    %25 = vector.multi_reduction <minsi>, %24, %cst_10 [0] : vector<4x18xi32> to vector<18xi32>
    %26 = vector.shape_cast %25 : vector<18xi32> to vector<1x18xi32>
    %27 = vector.shape_cast %8 : vector<1x18xf32> to vector<18xf32>
    %cst_11 = arith.constant 0.000000e+00 : f32
    %28 = vector.broadcast %cst_11 : f32 to vector<18xf32>
    %29 = arith.maximumf %27, %28 : vector<18xf32>
    %30 = vector.broadcast %cst_4 : f32 to vector<18xf32>
    %31 = arith.mulf %30, %29 : vector<18xf32>
    %32 = arith.addf %5, %31 : vector<18xf32>
    %33 = vector.shape_cast %26 : vector<1x18xi32> to vector<1x1x18xi32>
    %34 = vector.broadcast %33 : vector<1x1x18xi32> to vector<4x4x18xi32>
    %35 = arith.cmpi eq, %2, %34 : vector<4x4x18xi32>
    %36 = vector.shape_cast %14 : vector<1x18xi32> to vector<1x1x18xi32>
    %37 = vector.broadcast %36 : vector<1x1x18xi32> to vector<4x4x18xi32>
    %38 = arith.cmpi eq, %3, %37 : vector<4x4x18xi32>
    %39 = arith.ori %35, %38 : vector<4x4x18xi1>
    %40 = vector.broadcast %cst_3 : f32 to vector<4x4x18xf32>
    %41 = arith.select %39, %40, %1 : vector<4x4x18xi1>, vector<4x4x18xf32>
    %cst_12 = arith.constant 5.000000e-01 : f32
    %42 = arith.mulf %cst_4, %cst_12 : f32
    %c1_i32 = arith.constant 1 : i32
    %cst_13 = arith.constant dense<0xFF800000> : vector<4x18xf32>
    %43 = vector.multi_reduction <maximumf>, %41, %cst_13 [0] : vector<4x4x18xf32> to vector<4x18xf32>
    %cst_14 = arith.constant dense<0xFF800000> : vector<18xf32>
    %44 = vector.multi_reduction <maximumf>, %43, %cst_14 [0] : vector<4x18xf32> to vector<18xf32>
    %45 = vector.shape_cast %44 : vector<18xf32> to vector<1x18xf32>
    %46 = vector.broadcast %45 : vector<1x18xf32> to vector<4x18xf32>
    %47 = arith.cmpf oge, %43, %46 : vector<4x18xf32>
    %c4_i32_15 = arith.constant 4 : i32
    %48 = vector.broadcast %c4_i32_15 : i32 to vector<4x18xi32>
    %49 = arith.select %47, %4, %48 : vector<4x18xi1>, vector<4x18xi32>
    %cst_16 = arith.constant dense<2147483647> : vector<18xi32>
    %50 = vector.multi_reduction <minsi>, %49, %cst_16 [0] : vector<4x18xi32> to vector<18xi32>
    %51 = vector.shape_cast %50 : vector<18xi32> to vector<1x18xi32>
    %52 = vector.shape_cast %51 : vector<1x18xi32> to vector<1x1x18xi32>
    %53 = vector.broadcast %52 : vector<1x1x18xi32> to vector<4x4x18xi32>
    %54 = arith.cmpi eq, %3, %53 : vector<4x4x18xi32>
    %55 = vector.broadcast %cst_3 : f32 to vector<4x4x18xf32>
    %56 = arith.select %54, %41, %55 : vector<4x4x18xi1>, vector<4x4x18xf32>
    %cst_17 = arith.constant dense<0xFF800000> : vector<4x18xf32>
    %57 = vector.multi_reduction <maximumf>, %56, %cst_17 [1] : vector<4x4x18xf32> to vector<4x18xf32>
    %58 = vector.broadcast %45 : vector<1x18xf32> to vector<4x18xf32>
    %59 = arith.cmpf oge, %57, %58 : vector<4x18xf32>
    %c4_i32_18 = arith.constant 4 : i32
    %60 = vector.broadcast %c4_i32_18 : i32 to vector<4x18xi32>
    %61 = arith.select %59, %4, %60 : vector<4x18xi1>, vector<4x18xi32>
    %cst_19 = arith.constant dense<2147483647> : vector<18xi32>
    %62 = vector.multi_reduction <minsi>, %61, %cst_19 [0] : vector<4x18xi32> to vector<18xi32>
    %63 = vector.shape_cast %62 : vector<18xi32> to vector<1x18xi32>
    %64 = vector.shape_cast %45 : vector<1x18xf32> to vector<18xf32>
    %cst_20 = arith.constant 0.000000e+00 : f32
    %65 = vector.broadcast %cst_20 : f32 to vector<18xf32>
    %66 = arith.maximumf %64, %65 : vector<18xf32>
    %67 = vector.broadcast %42 : f32 to vector<18xf32>
    %68 = arith.mulf %67, %66 : vector<18xf32>
    %69 = arith.addf %32, %68 : vector<18xf32>
    %70 = vector.shape_cast %63 : vector<1x18xi32> to vector<1x1x18xi32>
    %71 = vector.broadcast %70 : vector<1x1x18xi32> to vector<4x4x18xi32>
    %72 = arith.cmpi eq, %2, %71 : vector<4x4x18xi32>
    %73 = vector.shape_cast %51 : vector<1x18xi32> to vector<1x1x18xi32>
    %74 = vector.broadcast %73 : vector<1x1x18xi32> to vector<4x4x18xi32>
    %75 = arith.cmpi eq, %3, %74 : vector<4x4x18xi32>
    %76 = arith.ori %72, %75 : vector<4x4x18xi1>
    %77 = vector.broadcast %cst_3 : f32 to vector<4x4x18xf32>
    %78 = arith.select %76, %77, %41 : vector<4x4x18xi1>, vector<4x4x18xf32>
    %cst_21 = arith.constant 5.000000e-01 : f32
    %79 = arith.mulf %42, %cst_21 : f32
    %c2_i32 = arith.constant 2 : i32
    %cst_22 = arith.constant dense<0xFF800000> : vector<4x18xf32>
    %80 = vector.multi_reduction <maximumf>, %78, %cst_22 [0] : vector<4x4x18xf32> to vector<4x18xf32>
    %cst_23 = arith.constant dense<0xFF800000> : vector<18xf32>
    %81 = vector.multi_reduction <maximumf>, %80, %cst_23 [0] : vector<4x18xf32> to vector<18xf32>
    %82 = vector.shape_cast %81 : vector<18xf32> to vector<1x18xf32>
    %83 = vector.broadcast %82 : vector<1x18xf32> to vector<4x18xf32>
    %84 = arith.cmpf oge, %80, %83 : vector<4x18xf32>
    %c4_i32_24 = arith.constant 4 : i32
    %85 = vector.broadcast %c4_i32_24 : i32 to vector<4x18xi32>
    %86 = arith.select %84, %4, %85 : vector<4x18xi1>, vector<4x18xi32>
    %cst_25 = arith.constant dense<2147483647> : vector<18xi32>
    %87 = vector.multi_reduction <minsi>, %86, %cst_25 [0] : vector<4x18xi32> to vector<18xi32>
    %88 = vector.shape_cast %87 : vector<18xi32> to vector<1x18xi32>
    %89 = vector.shape_cast %88 : vector<1x18xi32> to vector<1x1x18xi32>
    %90 = vector.broadcast %89 : vector<1x1x18xi32> to vector<4x4x18xi32>
    %91 = arith.cmpi eq, %3, %90 : vector<4x4x18xi32>
    %92 = vector.broadcast %cst_3 : f32 to vector<4x4x18xf32>
    %93 = arith.select %91, %78, %92 : vector<4x4x18xi1>, vector<4x4x18xf32>
    %cst_26 = arith.constant dense<0xFF800000> : vector<4x18xf32>
    %94 = vector.multi_reduction <maximumf>, %93, %cst_26 [1] : vector<4x4x18xf32> to vector<4x18xf32>
    %95 = vector.broadcast %82 : vector<1x18xf32> to vector<4x18xf32>
    %96 = arith.cmpf oge, %94, %95 : vector<4x18xf32>
    %c4_i32_27 = arith.constant 4 : i32
    %97 = vector.broadcast %c4_i32_27 : i32 to vector<4x18xi32>
    %98 = arith.select %96, %4, %97 : vector<4x18xi1>, vector<4x18xi32>
    %cst_28 = arith.constant dense<2147483647> : vector<18xi32>
    %99 = vector.multi_reduction <minsi>, %98, %cst_28 [0] : vector<4x18xi32> to vector<18xi32>
    %100 = vector.shape_cast %99 : vector<18xi32> to vector<1x18xi32>
    %101 = vector.shape_cast %82 : vector<1x18xf32> to vector<18xf32>
    %cst_29 = arith.constant 0.000000e+00 : f32
    %102 = vector.broadcast %cst_29 : f32 to vector<18xf32>
    %103 = arith.maximumf %101, %102 : vector<18xf32>
    %104 = vector.broadcast %79 : f32 to vector<18xf32>
    %105 = arith.mulf %104, %103 : vector<18xf32>
    %106 = arith.addf %69, %105 : vector<18xf32>
    %107 = vector.shape_cast %100 : vector<1x18xi32> to vector<1x1x18xi32>
    %108 = vector.broadcast %107 : vector<1x1x18xi32> to vector<4x4x18xi32>
    %109 = arith.cmpi eq, %2, %108 : vector<4x4x18xi32>
    %110 = vector.shape_cast %88 : vector<1x18xi32> to vector<1x1x18xi32>
    %111 = vector.broadcast %110 : vector<1x1x18xi32> to vector<4x4x18xi32>
    %112 = arith.cmpi eq, %3, %111 : vector<4x4x18xi32>
    %113 = arith.ori %109, %112 : vector<4x4x18xi1>
    %114 = vector.broadcast %cst_3 : f32 to vector<4x4x18xf32>
    %115 = arith.select %113, %114, %78 : vector<4x4x18xi1>, vector<4x4x18xf32>
    %cst_30 = arith.constant 5.000000e-01 : f32
    %116 = arith.mulf %79, %cst_30 : f32
    %cst_31 = arith.constant dense<0xFF800000> : vector<4x18xf32>
    %117 = vector.multi_reduction <maximumf>, %115, %cst_31 [0] : vector<4x4x18xf32> to vector<4x18xf32>
    %cst_32 = arith.constant dense<0xFF800000> : vector<18xf32>
    %118 = vector.multi_reduction <maximumf>, %117, %cst_32 [0] : vector<4x18xf32> to vector<18xf32>
    %cst_33 = arith.constant 0.000000e+00 : f32
    %119 = vector.broadcast %cst_33 : f32 to vector<18xf32>
    %120 = arith.maximumf %118, %119 : vector<18xf32>
    %121 = vector.broadcast %116 : f32 to vector<18xf32>
    %122 = arith.mulf %121, %120 : vector<18xf32>
    %123 = arith.addf %106, %122 : vector<18xf32>
    %c0_34 = arith.constant 0 : index
    %c0_35 = arith.constant 0 : index
    %c0_36 = arith.constant 0 : index
    %124 = vector.load %arg2[%c0_34, %c0_35, %c0_36] : memref<1x1x18xf32, #tpu.memory_space<vmem>>, vector<1x1x18xf32>
    %125 = vector.shape_cast %124 : vector<1x1x18xf32> to vector<18xf32>
    %126 = vector.shape_cast %123 : vector<18xf32> to vector<1x1x18xf32>
    tpu.vector_store %arg2[%c0_34, %c0_35, %c0_36], %126 {strides = array<i32>} : memref<1x1x18xf32, #tpu.memory_space<vmem>>, vector<1x1x18xf32>,
    return
  }
  func.func @transform_0(%arg0: i32) -> (i32, i32, i32, i32) {
    %c0_i32 = arith.constant 0 : i32
    %c0_i32_0 = arith.constant 0 : i32
    %c0_i32_1 = arith.constant 0 : i32
    %c0_i32_2 = arith.constant 0 : i32
    return %arg0, %c0_i32, %c0_i32_0, %c0_i32_1 : i32, i32, i32, i32
  }
  func.func @transform_1(%arg0: i32) -> (i32, i32, i32) {
    %c0_i32 = arith.constant 0 : i32
    %c0_i32_0 = arith.constant 0 : i32
    %c0_i32_1 = arith.constant 0 : i32
    return %arg0, %c0_i32, %c0_i32_0 : i32, i32, i32
  }
}

</mosaic_0001>

<bundles_post_ra>
// kernel: soc_forward.4
= control target key start
LH: loop header
LB: loop body
LE: loop exit
PB: predicated region body
PF: predicated region fallthrough
CT: control target
= control target key end

     0   :  { %s373_s9 = smov 0   ;;  %s393_s0 = inlined_call_operand.vmem [shape: bf16[2,12,16], index: 0, kind: input, shape index: {}]   ;;  %s394_s1 = inlined_call_operand.vmem [shape: bf16[2,24,16], index: 1, kind: input, shape index: {}]   ;;  %s395_s2 = inlined_call_operand.vmem [shape: f32[2,12,24], index: 2, kind: output, shape index: {}]  }
   0x1 LB: > { %s305_s10 = sadd.s32 4294967295, %s354_s9   ;;  %p309_p0 = scmp.ge.s32.totalorder %s354_s9, 1  ;;  %s354_s9 = sphi %s373_s9, %s12_s9  }
   0x2   : > { %p122_p1 = scmp.lt.s32.totalorder %s354_s9, 3 }
   0x4   : > { %p123_p2 = pnand %p309_p0, %p122_p1 }
   0x5   : > { %p149_p3 = scmp.lt.s32.totalorder (!%p123_p2), %s305_s10, 1  ;;  %v356_v0 = vmov (!%p123_p2), 0.0   ;;  %vm357_vm0 = vmmov (!%p123_p2), 0   ;;  %vm183_vm1 = vcmask (!%p123_p2), 130048   ;;  %vm234_vm2 = vcmask (!%p123_p2), 195584  }
   0x6   : > { %126 = sbr.rel (%p123_p2) target bundleno = 249 (0xf9), region = 28  ;;  %326 = vmatprep.subr.bf16.mxu0 (!%p123_p2), %v356_v0  ;;  %330 = vmatprep.mubr.msk.bf16.mxu0 (!%p123_p2), %vm357_vm0, %v356_v0  ;;  %vm236_vm3 = vcmask (!%p123_p2), 191488  }
   0xd   : > { %s397_s10 = smov (!%p149_p3, %s305_s10), 1 }
   0xe   : > { %s334_s11 = smul.u32 12, %s397_s10  ;;  %s321_s12 = sshll.u32 %s397_s10, 3 }
   0xf   : > { %s153_s15 = scalar_lea.vmem %s393_s0, %s321_s12  ;;  %s322_s19 = sshll.u32 %s397_s10, 4 }
  0x10   : > { %s158_s18 = scalar_lea.vmem %s394_s1, %s334_s11  ;;  %v347_v5 = vld [vmem:[%s153_s15] sm:$0x3f]   ;;  %s163_s22 = scalar_lea.vmem %s395_s2, %s322_s19 }
  0x11   : > { %v345_v1 = vld [vmem:[%s158_s18] sm:$0xff]   ;;  %v346_v3 = vld [vmem:[%s158_s18 + $0x8] ss:$0 sps:$4 sm:$0xff]  }
  0x12   : > { %v188_v2 = vsel %vm183_vm1, %v345_v1, 0  ;;  %v191_v4 = vsel %vm183_vm1, %v346_v3, 0 }
  0x13   : > { %327 = vmatpush3.bf16.xpose.msra.mxu0 %v188_v2 }
  0x14   : > { %328 = vmatprep.subr.bf16.mxu0 %v356_v0 }
  0x1b   : > { %329 = vmatpush3.bf16.xpose.msra.mxu0 %v191_v4 }
  0x22   : > { %331 = vmatmul.mubr.msk.bf16.vlgmr.msra.gmra.mrb[0].mxu0 %vm183_vm1, %v347_v5 }
  0xf5   : > { %v227_v6 = vpop.f32.mrb[0].mxu0 }
  0xf6   : > { %235 = vst.msk [vmem:[%s163_s22] sm:$0xff] %vm234_vm2, %v227_v6  ;;  %v332_v7 = vpop.f32.mrb[1].mxu0 }
  0xf7   : > { %v230_v8 = vpop.f32.mrb[2].mxu0 }
  0xf8   : > { %237 = vst.msk [vmem:[%s163_s22 + $0x8] sm:$0xf] %vm236_vm3, %v230_v8  ;;  %v333_v9 = vpop.f32.mrb[3].mxu0 }
  0xf9 PF: > { %s12_s9 = sadd.s32 1, %s354_s9  }
  0xfa   : > { %p9_p4 = scmp.ge.s32.totalorder %s12_s9, 4  }
  0xfc   :  { %11 = sbr.rel (!%p9_p4) target bundleno = 1 (0x1), region = 61 }

// kernel: squeeze.1
= control target key start
LH: loop header
LB: loop body
LE: loop exit
PB: predicated region body
PF: predicated region fallthrough
CT: control target
= control target key end

     0   :  { %vm7_vm0 = vcmask 48128   ;;  %s36_s8 = smov 116   ;;  %s56_s0 = inlined_call_operand.vmem [shape: f32[2,18], index: 0, kind: input, shape index: {}]   ;;  %s57_s1 = inlined_call_operand.vmem [shape: f32[2,3,6], index: 1, kind: output, shape index: {}]  }
   0x1   :  { %v4_v0 = vld [vmem:[%s56_s0] sm:$0x3]  ;;  %s35_s0 = smov 122  }
   0x2   :  { %5 = vst [vmem:[#allocation1] sm:$0x3] %v4_v0 }
   0x9   :  { %v9_v1 = vld [vmem:[#allocation1] sm:$0x3]  }
   0xa   :  { %v6_v2 = vld [vmem:[#allocation1] sm:$0x3]   ;;  %10 = vrot.lane.b32.xlu0 %v9_v1, %s35_s0 }
   0xb   :  { %8 = vst.msk [vmem:[#allocation0] ss:$8 sm:$0x3] %vm7_vm0, %v6_v2   ;;  %v15_v3 = vld [vmem:[#allocation1] sm:$0x3]  }
   0xe   :  { %16 = vrot.lane.b32.xlu0 %v15_v3, %s36_s8 }
  0x7c   :  { %v11_v4 = vpop.permute.xlu0 %10  }
  0x7d   :  { %14 = vst.msk [vmem:[#allocation0 + $0x1] ss:$8 sm:$0x3] %vm7_vm0, %v11_v4  }
  0x80   :  { %v17_v5 = vpop.permute.xlu0 %16  }
  0x81   :  { %20 = vst.msk [vmem:[#allocation0 + $0x2] ss:$8 sm:$0x3] %vm7_vm0, %v17_v5  }
  0x88   :  { %v24_v6 = vld [vmem:[#allocation0] sm:$0xf]  ;;  %v28_v7 = vld [vmem:[#allocation0 + $0x8] sm:$0xf] }
  0x89   :  { %26 = vst [vmem:[%s57_s1] sm:$0xf] %v24_v6  ;;  %32 = vst [vmem:[%s57_s1 + $0x4] sm:$0xf] %v28_v7 }

// kernel: soc_forward.5
= control target key start
LH: loop header
LB: loop body
LE: loop exit
PB: predicated region body
PF: predicated region fallthrough
CT: control target
= control target key end

     0   :  { %s512_s6 = smov 0   ;;  %s755_s0 = inlined_call_operand.vmem [shape: f32[2,4,4,18], index: 0, kind: input, shape index: {}]   ;;  %s756_s1 = inlined_call_operand.vmem [shape: f32[2,1,18], index: 1, kind: output, shape index: {}]  }
   0x1 LB: > { %s476_s7 = sadd.s32 4294967295, %s500_s6   ;;  %p480_p0 = scmp.ge.s32.totalorder %s500_s6, 1  ;;  %s500_s6 = sphi %s512_s6, %s11_s6  }
   0x2   : > { %p87_p1 = scmp.lt.s32.totalorder %s500_s6, 3 }
   0x4   : > { %p88_p2 = pnand %p480_p0, %p87_p1 }
   0x5   : > { %p105_p3 = scmp.lt.s32.totalorder (!%p88_p2), %s476_s7, 1  ;;  %vm119_vm0 = vcmask (!%p88_p2), 142336   ;;  %v117_v15 = vlaneseq (!%p88_p2)  ;;  %vm190_vm6 = vcmask (!%p88_p2), 139264  }
   0x6   : > { %91 = sbr.rel (%p88_p2) target bundleno = 235 (0xeb), region = 24 }
   0x7   : > { %v543_v18 = vshrl.u32 (!%p88_p2), %v117_v15, 7 }
   0x9   : > { %v572_v57 = vrot.slane (!%p88_p2), %v543_v18, 1  ;;  %v575_v58 = vrot.slane (!%p88_p2), %v543_v18, 2  ;;  %v578_v62 = vrot.slane (!%p88_p2), %v543_v18, 3 }
   0xd   : > { %s764_s7 = smov (!%p105_p3, %s476_s7), 1 }
   0xe   : > { %s485_s8 = sshll.u32 %s764_s7, 4  ;;  %s112_s14 = scalar_lea.vmem %s756_s1, %s764_s7 }
   0xf   : > { %s109_s11 = scalar_lea.vmem %s755_s0, %s485_s8 }
  0x10   : > { %v526_v0 = vld [vmem:[%s109_s11] sm:$0xf]  ;;  %v528_v1 = vld [vmem:[%s109_s11 + $0x4] sm:$0xf]  ;;  %v530_v2 = vld [vmem:[%s109_s11 + $0x8] sm:$0xf] }
  0x11   : > { %v532_v3 = vld [vmem:[%s109_s11 + $0xc] sm:$0xf]  ;;  %v120_v4 = vsel %vm119_vm0, %v526_v0, -inf  ;;  %v121_v5 = vsel %vm119_vm0, %v528_v1, -inf  ;;  %v122_v6 = vsel %vm119_vm0, %v530_v2, -inf }
  0x12   : > { %v123_v7 = vsel %vm119_vm0, %v532_v3, -inf  ;;  %v124_v8 = vmax.f32 %v120_v4, %v121_v5 }
  0x13   : > { %v125_v9 = vmax.f32 %v122_v6, %v123_v7 }
  0x15   : > { %v126_v10 = vmax.f32 %v124_v8, %v125_v9 }
  0x17   : > { %v127_v11 = vsel %vm119_vm0, %v126_v10, -inf }
  0x18   : > { %v128_v12 = vrot.slane %v127_v11, 4 }
  0x1a   : > { %v129_v13 = vmax.f32 %v127_v11, %v128_v12 }
  0x1c   : > { %v130_v14 = vrot.slane %v129_v13, 2 }
  0x1e   : > { %v131_v16 = vmax.f32 %v129_v13, %v130_v14  ;;  %v593_v13 = vsub.s32 0, %v543_v18 }
  0x20   : > { %v132_v17 = vrot.slane %v131_v16, 1 }
  0x22   : > { %v545_v19 = vmax.f32 %v131_v16, %v132_v17 }
  0x24   : > { %vm134_vm1 = vcmp.ge.f32.partialorder %v126_v10, %v545_v19 }
  0x25   : > { %v135_v20 = vsel %vm134_vm1, %v543_v18, 4 }
  0x26   : > { %v136_v21 = vsel %vm119_vm0, %v135_v20, 2147483647 }
  0x27   : > { %v137_v22 = vrot.slane %v136_v21, 4 }
  0x29   : > { %vm138_vm2 = vcmp.lt.s32.totalorder %v136_v21, %v137_v22 }
  0x2a   : > { %v139_v23 = vsel %vm138_vm2, %v136_v21, %v137_v22 }
  0x2b   : > { %v140_v24 = vrot.slane %v139_v23, 2 }
  0x2d   : > { %vm141_vm3 = vcmp.lt.s32.totalorder %v139_v23, %v140_v24 }
  0x2e   : > { %v142_v25 = vsel %vm141_vm3, %v139_v23, %v140_v24 }
  0x2f   : > { %v143_v26 = vrot.slane %v142_v25, 1 }
  0x31   : > { %vm144_vm4 = vcmp.lt.s32.totalorder %v142_v25, %v143_v26 }
  0x32   : > { %v145_v27 = vsel %vm144_vm4, %v142_v25, %v143_v26 }
  0x33   : > { %vm551_vm5 = vcmp.eq.s32.totalorder %v543_v18, %v145_v27 }
  0x34   : > { %v147_v29 = vsel %vm551_vm5, %v526_v0, -1e+30  ;;  %v148_v30 = vsel %vm551_vm5, %v528_v1, -1e+30  ;;  %v149_v31 = vsel %vm551_vm5, %v530_v2, -1e+30 }
  0x35   : > { %v150_v32 = vsel %vm551_vm5, %v532_v3, -1e+30  ;;  %v151_v33 = vsel %vm119_vm0, %v147_v29, -inf  ;;  %v158_v34 = vsel %vm119_vm0, %v148_v30, -inf  ;;  %v165_v35 = vsel %vm119_vm0, %v149_v31, -inf }
  0x36   : > { %v152_v36 = vrot.slane %v151_v33, 4  ;;  %v159_v37 = vrot.slane %v158_v34, 4  ;;  %v166_v38 = vrot.slane %v165_v35, 4  ;;  %v172_v39 = vsel %vm119_vm0, %v150_v32, -inf }
  0x37   : > { %v173_v40 = vrot.slane %v172_v39, 4 }
  0x38   : > { %v153_v41 = vmax.f32 %v151_v33, %v152_v36  ;;  %v160_v42 = vmax.f32 %v158_v34, %v159_v37  ;;  %v167_v43 = vmax.f32 %v165_v35, %v166_v38 }
  0x39   : > { %v174_v44 = vmax.f32 %v172_v39, %v173_v40 }
  0x3a   : > { %v154_v45 = vrot.slane %v153_v41, 2  ;;  %v161_v46 = vrot.slane %v160_v42, 2  ;;  %v168_v47 = vrot.slane %v167_v43, 2 }
  0x3b   : > { %v175_v48 = vrot.slane %v174_v44, 2 }
  0x3c   : > { %v155_v49 = vmax.f32 %v153_v41, %v154_v45  ;;  %v162_v50 = vmax.f32 %v160_v42, %v161_v46  ;;  %v169_v51 = vmax.f32 %v167_v43, %v168_v47 }
  0x3d   : > { %v176_v52 = vmax.f32 %v174_v44, %v175_v48 }
  0x3e   : > { %v156_v53 = vrot.slane %v155_v49, 1  ;;  %v163_v54 = vrot.slane %v162_v50, 1  ;;  %v170_v55 = vrot.slane %v169_v51, 1 }
  0x3f   : > { %v177_v56 = vrot.slane %v176_v52, 1 }
  0x40   : > { %v157_v59 = vmax.f32 %v155_v49, %v156_v53  ;;  %v164_v60 = vmax.f32 %v162_v50, %v163_v54  ;;  %v171_v61 = vmax.f32 %v169_v51, %v170_v55 }
  0x41   : > { %v178_v63 = vmax.f32 %v176_v52, %v177_v56 }
  0x42   : > { %vm179_vm7 = vcmp.ge.f32.partialorder %v157_v59, %v545_v19  ;;  %vm180_vm8 = vcmp.ge.f32.partialorder %v164_v60, %v545_v19  ;;  %vm181_vm9 = vcmp.ge.f32.partialorder %v171_v61, %v545_v19 }
  0x43   : > { %vm182_vm10 = vcmp.ge.f32.partialorder %v178_v63, %v545_v19  ;;  %v186_v4 = vsel %vm179_vm7, %v543_v18, 4  ;;  %v187_v5 = vsel %vm180_vm8, %v572_v57, 4  ;;  %v188_v6 = vsel %vm181_vm9, %v575_v58, 4 }
  0x44   : > { %v189_v7 = vsel %vm182_vm10, %v578_v62, 4  ;;  %v191_v8 = vsel %vm190_vm6, %v186_v4, 2147483647  ;;  %v192_v9 = vsel %vm190_vm6, %v187_v5, 2147483647 }
  0x45   : > { %v193_v10 = vsel %vm190_vm6, %v188_v6, 2147483647  ;;  %v194_v11 = vsel %vm190_vm6, %v189_v7, 2147483647  ;;  %vm195_vm11 = vcmp.lt.s32.totalorder %v191_v8, %v192_v9 }
  0x46   : > { %v196_v12 = vsel %vm195_vm11, %v191_v8, %v192_v9  ;;  %vm197_vm12 = vcmp.lt.s32.totalorder %v193_v10, %v194_v11 }
  0x47   : > { %v198_v14 = vsel %vm197_vm12, %v193_v10, %v194_v11 }
  0x48   : > { %vm199_vm13 = vcmp.lt.s32.totalorder %v196_v12, %v198_v14 }
  0x49   : > { %v200_v15 = vsel %vm199_vm13, %v196_v12, %v198_v14 }
  0x4a   : > { %v206_v16 = vrot.slane %v200_v15, %v593_v13 }
  0x4c   : > { %vm207_vm14 = vcmp.eq.s32.totalorder %v206_v16, 0  ;;  %vm208_vm15 = vcmp.eq.s32.totalorder %v206_v16, 1  ;;  %vm209_vm1 = vcmp.eq.s32.totalorder %v206_v16, 2  ;;  %vm210_vm2 = vcmp.eq.s32.totalorder %v206_v16, 3 }
  0x4d   : > { %vm211_vm3 = vmor %vm207_vm14, %vm551_vm5 }
  0x4e   : > { %vm212_vm4 = vmor %vm208_vm15, %vm551_vm5  ;;  %v601_v17 = vsel %vm211_vm3, -1e+30, %v526_v0 }
  0x4f   : > { %vm213_vm7 = vmor %vm209_vm1, %vm551_vm5  ;;  %v606_v20 = vsel %vm212_vm4, -1e+30, %v528_v1  ;;  %v219_v21 = vsel %vm119_vm0, %v601_v17, -inf }
  0x50   : > { %vm214_vm8 = vmor %vm210_vm2, %vm551_vm5  ;;  %v613_v22 = vsel %vm213_vm7, -1e+30, %v530_v2  ;;  %v220_v23 = vsel %vm119_vm0, %v606_v20, -inf }
  0x51   : > { %v618_v0 = vsel %vm214_vm8, -1e+30, %v532_v3  ;;  %v221_v24 = vsel %vm119_vm0, %v613_v22, -inf  ;;  %v223_v1 = vmax.f32 %v219_v21, %v220_v23  ;;  %v201_v3 = vmax.f32 %v545_v19, 0.0 }
  0x52   : > { %v222_v25 = vsel %vm119_vm0, %v618_v0, -inf }
  0x53   : > { %v224_v26 = vmax.f32 %v221_v24, %v222_v25 }
  0x55   : > { %v225_v27 = vmax.f32 %v223_v1, %v224_v26 }
  0x57   : > { %v226_v28 = vsel %vm119_vm0, %v225_v27, -inf }
  0x58   : > { %v227_v29 = vrot.slane %v226_v28, 4 }
  0x5a   : > { %v228_v2 = vmax.f32 %v226_v28, %v227_v29 }
  0x5c   : > { %v229_v30 = vrot.slane %v228_v2, 2 }
  0x5e   : > { %v230_v31 = vmax.f32 %v228_v2, %v229_v30 }
  0x60   : > { %v231_v32 = vrot.slane %v230_v31, 1 }
  0x62   : > { %v232_v33 = vmax.f32 %v230_v31, %v231_v32 }
  0x64   : > { %vm233_vm5 = vcmp.ge.f32.partialorder %v225_v27, %v232_v33  ;;  %v296_v34 = vmax.f32 %v232_v33, 0.0 }
  0x65   : > { %v234_v35 = vsel %vm233_vm5, %v543_v18, 4 }
  0x66   : > { %v235_v36 = vsel %vm119_vm0, %v234_v35, 2147483647  ;;  %v297_v37 = vmul.f32 0.5, %v296_v34 }
  0x67   : > { %v236_v38 = vrot.slane %v235_v36, 4 }
  0x68   : > { %v628_v39 = vadd.f32 %v297_v37, %v201_v3 }
  0x69   : > { %vm237_vm9 = vcmp.lt.s32.totalorder %v235_v36, %v236_v38 }
  0x6a   : > { %v238_v40 = vsel %vm237_vm9, %v235_v36, %v236_v38 }
  0x6b   : > { %v239_v41 = vrot.slane %v238_v40, 2 }
  0x6d   : > { %vm240_vm10 = vcmp.lt.s32.totalorder %v238_v40, %v239_v41 }
  0x6e   : > { %v241_v42 = vsel %vm240_vm10, %v238_v40, %v239_v41 }
  0x6f   : > { %v242_v43 = vrot.slane %v241_v42, 1 }
  0x71   : > { %vm243_vm11 = vcmp.lt.s32.totalorder %v241_v42, %v242_v43 }
  0x72   : > { %v244_v44 = vsel %vm243_vm11, %v241_v42, %v242_v43 }
  0x73   : > { %vm631_vm12 = vcmp.eq.s32.totalorder %v543_v18, %v244_v44 }
  0x74   : > { %v246_v45 = vsel %vm631_vm12, %v601_v17, -1e+30  ;;  %v247_v46 = vsel %vm631_vm12, %v606_v20, -1e+30  ;;  %v248_v47 = vsel %vm631_vm12, %v613_v22, -1e+30 }
  0x75   : > { %v249_v48 = vsel %vm631_vm12, %v618_v0, -1e+30  ;;  %v250_v49 = vsel %vm119_vm0, %v246_v45, -inf  ;;  %v257_v50 = vsel %vm119_vm0, %v247_v46, -inf  ;;  %v264_v51 = vsel %vm119_vm0, %v248_v47, -inf }
  0x76   : > { %v251_v52 = vrot.slane %v250_v49, 4  ;;  %v258_v53 = vrot.slane %v257_v50, 4  ;;  %v265_v54 = vrot.slane %v264_v51, 4  ;;  %v271_v55 = vsel %vm119_vm0, %v249_v48, -inf }
  0x77   : > { %v272_v56 = vrot.slane %v271_v55, 4 }
  0x78   : > { %v252_v59 = vmax.f32 %v250_v49, %v251_v52  ;;  %v259_v60 = vmax.f32 %v257_v50, %v258_v53  ;;  %v266_v61 = vmax.f32 %v264_v51, %v265_v54 }
  0x79   : > { %v273_v63 = vmax.f32 %v271_v55, %v272_v56 }
  0x7a   : > { %v253_v4 = vrot.slane %v252_v59, 2  ;;  %v260_v5 = vrot.slane %v259_v60, 2  ;;  %v267_v6 = vrot.slane %v266_v61, 2 }
  0x7b   : > { %v274_v7 = vrot.slane %v273_v63, 2 }
  0x7c   : > { %v254_v8 = vmax.f32 %v252_v59, %v253_v4  ;;  %v261_v9 = vmax.f32 %v259_v60, %v260_v5  ;;  %v268_v10 = vmax.f32 %v266_v61, %v267_v6 }
  0x7d   : > { %v275_v11 = vmax.f32 %v273_v63, %v274_v7 }
  0x7e   : > { %v255_v12 = vrot.slane %v254_v8, 1  ;;  %v262_v14 = vrot.slane %v261_v9, 1  ;;  %v269_v15 = vrot.slane %v268_v10, 1 }
  0x7f   : > { %v276_v16 = vrot.slane %v275_v11, 1 }
  0x80   : > { %v256_v21 = vmax.f32 %v254_v8, %v255_v12  ;;  %v263_v23 = vmax.f32 %v261_v9, %v262_v14  ;;  %v270_v24 = vmax.f32 %v268_v10, %v269_v15 }
  0x81   : > { %v277_v1 = vmax.f32 %v275_v11, %v276_v16 }
  0x82   : > { %vm278_vm13 = vcmp.ge.f32.partialorder %v256_v21, %v232_v33  ;;  %vm279_vm14 = vcmp.ge.f32.partialorder %v263_v23, %v232_v33  ;;  %vm280_vm15 = vcmp.ge.f32.partialorder %v270_v24, %v232_v33 }
  0x83   : > { %vm281_vm1 = vcmp.ge.f32.partialorder %v277_v1, %v232_v33  ;;  %v282_v25 = vsel %vm278_vm13, %v543_v18, 4  ;;  %v283_v26 = vsel %vm279_vm14, %v572_v57, 4  ;;  %v284_v27 = vsel %vm280_vm15, %v575_v58, 4 }
  0x84   : > { %v285_v28 = vsel %vm281_vm1, %v578_v62, 4  ;;  %v286_v29 = vsel %vm190_vm6, %v282_v25, 2147483647  ;;  %v287_v2 = vsel %vm190_vm6, %v283_v26, 2147483647 }
  0x85   : > { %v288_v30 = vsel %vm190_vm6, %v284_v27, 2147483647  ;;  %v289_v31 = vsel %vm190_vm6, %v285_v28, 2147483647  ;;  %vm290_vm2 = vcmp.lt.s32.totalorder %v286_v29, %v287_v2 }
  0x86   : > { %v291_v32 = vsel %vm290_vm2, %v286_v29, %v287_v2  ;;  %vm292_vm3 = vcmp.lt.s32.totalorder %v288_v30, %v289_v31 }
  0x87   : > { %v293_v33 = vsel %vm292_vm3, %v288_v30, %v289_v31 }
  0x88   : > { %vm294_vm4 = vcmp.lt.s32.totalorder %v291_v32, %v293_v33 }
  0x89   : > { %v295_v3 = vsel %vm294_vm4, %v291_v32, %v293_v33 }
  0x8a   : > { %v302_v34 = vrot.slane %v295_v3, %v593_v13 }
  0x8c   : > { %vm303_vm7 = vcmp.eq.s32.totalorder %v302_v34, 0  ;;  %vm304_vm8 = vcmp.eq.s32.totalorder %v302_v34, 1  ;;  %vm305_vm5 = vcmp.eq.s32.totalorder %v302_v34, 2  ;;  %vm306_vm9 = vcmp.eq.s32.totalorder %v302_v34, 3 }
  0x8d   : > { %vm307_vm10 = vmor %vm303_vm7, %vm631_vm12 }
  0x8e   : > { %vm308_vm11 = vmor %vm304_vm8, %vm631_vm12  ;;  %v665_v35 = vsel %vm307_vm10, -1e+30, %v601_v17 }
  0x8f   : > { %vm309_vm13 = vmor %vm305_vm5, %vm631_vm12  ;;  %v670_v36 = vsel %vm308_vm11, -1e+30, %v606_v20  ;;  %v315_v37 = vsel %vm119_vm0, %v665_v35, -inf }
  0x90   : > { %vm310_vm14 = vmor %vm306_vm9, %vm631_vm12  ;;  %v677_v38 = vsel %vm309_vm13, -1e+30, %v613_v22  ;;  %v316_v40 = vsel %vm119_vm0, %v670_v36, -inf }
  0x91   : > { %v682_v17 = vsel %vm310_vm14, -1e+30, %v618_v0  ;;  %v317_v41 = vsel %vm119_vm0, %v677_v38, -inf  ;;  %v319_v20 = vmax.f32 %v315_v37, %v316_v40 }
  0x92   : > { %v318_v42 = vsel %vm119_vm0, %v682_v17, -inf }
  0x93   : > { %v320_v43 = vmax.f32 %v317_v41, %v318_v42 }
  0x95   : > { %v321_v44 = vmax.f32 %v319_v20, %v320_v43 }
  0x97   : > { %v322_v19 = vsel %vm119_vm0, %v321_v44, -inf }
  0x98   : > { %v323_v45 = vrot.slane %v322_v19, 4 }
  0x9a   : > { %v324_v22 = vmax.f32 %v322_v19, %v323_v45 }
  0x9c   : > { %v325_v46 = vrot.slane %v324_v22, 2 }
  0x9e   : > { %v326_v47 = vmax.f32 %v324_v22, %v325_v46 }
  0xa0   : > { %v327_v48 = vrot.slane %v326_v47, 1 }
  0xa2   : > { %v689_v49 = vmax.f32 %v326_v47, %v327_v48 }
  0xa4   : > { %vm329_vm12 = vcmp.ge.f32.partialorder %v321_v44, %v689_v49 }
  0xa5   : > { %v330_v0 = vsel %vm329_vm12, %v543_v18, 4 }
  0xa6   : > { %v331_v50 = vsel %vm119_vm0, %v330_v0, 2147483647 }
  0xa7   : > { %v332_v51 = vrot.slane %v331_v50, 4 }
  0xa9   : > { %vm333_vm15 = vcmp.lt.s32.totalorder %v331_v50, %v332_v51 }
  0xaa   : > { %v334_v52 = vsel %vm333_vm15, %v331_v50, %v332_v51 }
  0xab   : > { %v335_v53 = vrot.slane %v334_v52, 2 }
  0xad   : > { %vm336_vm1 = vcmp.lt.s32.totalorder %v334_v52, %v335_v53 }
  0xae   : > { %v337_v54 = vsel %vm336_vm1, %v334_v52, %v335_v53 }
  0xaf   : > { %v338_v55 = vrot.slane %v337_v54, 1 }
  0xb1   : > { %vm339_vm2 = vcmp.lt.s32.totalorder %v337_v54, %v338_v55 }
  0xb2   : > { %v340_v56 = vsel %vm339_vm2, %v337_v54, %v338_v55 }
  0xb3   : > { %vm695_vm3 = vcmp.eq.s32.totalorder %v543_v18, %v340_v56  ;;  %v392_v56 = vmax.f32 %v689_v49, 0.0 }
  0xb4   : > { %v342_v60 = vsel %vm695_vm3, %v665_v35, -1e+30  ;;  %v343_v61 = vsel %vm695_vm3, %v670_v36, -1e+30  ;;  %v344_v63 = vsel %vm695_vm3, %v677_v38, -1e+30 }
  0xb5   : > { %v345_v4 = vsel %vm695_vm3, %v682_v17, -1e+30  ;;  %v346_v5 = vsel %vm119_vm0, %v342_v60, -inf  ;;  %v353_v6 = vsel %vm119_vm0, %v343_v61, -inf  ;;  %v360_v7 = vsel %vm119_vm0, %v344_v63, -inf }
  0xb6   : > { %v347_v8 = vrot.slane %v346_v5, 4  ;;  %v354_v9 = vrot.slane %v353_v6, 4  ;;  %v361_v10 = vrot.slane %v360_v7, 4  ;;  %v367_v11 = vsel %vm119_vm0, %v345_v4, -inf }
  0xb7   : > { %v368_v12 = vrot.slane %v367_v11, 4  ;;  %v393_v60 = vmul.f32 0.25, %v392_v56 }
  0xb8   : > { %v348_v14 = vmax.f32 %v346_v5, %v347_v8  ;;  %v355_v15 = vmax.f32 %v353_v6, %v354_v9  ;;  %v362_v16 = vmax.f32 %v360_v7, %v361_v10 }
  0xb9   : > { %v369_v21 = vmax.f32 %v367_v11, %v368_v12 }
  0xba   : > { %v349_v23 = vrot.slane %v348_v14, 2  ;;  %v356_v24 = vrot.slane %v355_v15, 2  ;;  %v363_v1 = vrot.slane %v362_v16, 2 }
  0xbb   : > { %v370_v25 = vrot.slane %v369_v21, 2 }
  0xbc   : > { %v350_v26 = vmax.f32 %v348_v14, %v349_v23  ;;  %v357_v27 = vmax.f32 %v355_v15, %v356_v24  ;;  %v364_v28 = vmax.f32 %v362_v16, %v363_v1 }
  0xbd   : > { %v371_v29 = vmax.f32 %v369_v21, %v370_v25 }
  0xbe   : > { %v351_v2 = vrot.slane %v350_v26, 1  ;;  %v358_v30 = vrot.slane %v357_v27, 1  ;;  %v365_v31 = vrot.slane %v364_v28, 1 }
  0xbf   : > { %v372_v32 = vrot.slane %v371_v29, 1 }
  0xc0   : > { %v352_v33 = vmax.f32 %v350_v26, %v351_v2  ;;  %v359_v3 = vmax.f32 %v357_v27, %v358_v30  ;;  %v366_v34 = vmax.f32 %v364_v28, %v365_v31 }
  0xc1   : > { %v373_v37 = vmax.f32 %v371_v29, %v372_v32 }
  0xc2   : > { %vm374_vm4 = vcmp.ge.f32.partialorder %v352_v33, %v689_v49  ;;  %vm375_vm7 = vcmp.ge.f32.partialorder %v359_v3, %v689_v49  ;;  %vm376_vm8 = vcmp.ge.f32.partialorder %v366_v34, %v689_v49 }
  0xc3   : > { %vm377_vm5 = vcmp.ge.f32.partialorder %v373_v37, %v689_v49  ;;  %v378_v40 = vsel %vm374_vm4, %v543_v18, 4  ;;  %v379_v41 = vsel %vm375_vm7, %v572_v57, 4  ;;  %v380_v20 = vsel %vm376_vm8, %v575_v58, 4 }
  0xc4   : > { %v381_v42 = vsel %vm377_vm5, %v578_v62, 4  ;;  %v382_v43 = vsel %vm190_vm6, %v378_v40, 2147483647  ;;  %v383_v44 = vsel %vm190_vm6, %v379_v41, 2147483647 }
  0xc5   : > { %v384_v19 = vsel %vm190_vm6, %v380_v20, 2147483647  ;;  %v385_v45 = vsel %vm190_vm6, %v381_v42, 2147483647  ;;  %vm386_vm9 = vcmp.lt.s32.totalorder %v382_v43, %v383_v44 }
  0xc6   : > { %v387_v22 = vsel %vm386_vm9, %v382_v43, %v383_v44  ;;  %vm388_vm10 = vcmp.lt.s32.totalorder %v384_v19, %v385_v45 }
  0xc7   : > { %v389_v46 = vsel %vm388_vm10, %v384_v19, %v385_v45 }
  0xc8   : > { %vm390_vm11 = vcmp.lt.s32.totalorder %v387_v22, %v389_v46 }
  0xc9   : > { %v391_v18 = vsel %vm390_vm11, %v387_v22, %v389_v46 }
  0xca   : > { %v398_v57 = vrot.slane %v391_v18, %v593_v13 }
  0xcc   : > { %vm399_vm13 = vcmp.eq.s32.totalorder %v398_v57, 0  ;;  %vm400_vm14 = vcmp.eq.s32.totalorder %v398_v57, 1  ;;  %vm401_vm12 = vcmp.eq.s32.totalorder %v398_v57, 2  ;;  %vm402_vm15 = vcmp.eq.s32.totalorder %v398_v57, 3 }
  0xcd   : > { %vm403_vm1 = vmor %vm399_vm13, %vm695_vm3 }
  0xce   : > { %vm404_vm2 = vmor %vm400_vm14, %vm695_vm3  ;;  %v407_v58 = vsel %vm403_vm1, -1e+30, %v665_v35 }
  0xcf   : > { %vm405_vm4 = vmor %vm401_vm12, %vm695_vm3  ;;  %v408_v62 = vsel %vm404_vm2, -1e+30, %v670_v36  ;;  %v411_v47 = vsel %vm119_vm0, %v407_v58, -inf }
  0xd0   : > { %vm406_vm7 = vmor %vm402_vm15, %vm695_vm3  ;;  %v409_v13 = vsel %vm405_vm4, -1e+30, %v677_v38  ;;  %v412_v48 = vsel %vm119_vm0, %v408_v62, -inf }
  0xd1   : > { %v410_v0 = vsel %vm406_vm7, -1e+30, %v682_v17  ;;  %v413_v50 = vsel %vm119_vm0, %v409_v13, -inf  ;;  %v415_v51 = vmax.f32 %v411_v47, %v412_v48  ;;  %v394_v17 = vadd.f32 %v393_v60, %v628_v39 }
  0xd2   : > { %v414_v35 = vsel %vm119_vm0, %v410_v0, -inf }
  0xd3   : > { %v416_v52 = vmax.f32 %v413_v50, %v414_v35 }
  0xd5   : > { %v417_v53 = vmax.f32 %v415_v51, %v416_v52 }
  0xd7   : > { %v418_v36 = vsel %vm119_vm0, %v417_v53, -inf }
  0xd8   : > { %v419_v54 = vrot.slane %v418_v36, 4 }
  0xda   : > { %v420_v55 = vmax.f32 %v418_v36, %v419_v54 }
  0xdc   : > { %v421_v59 = vrot.slane %v420_v55, 2 }
  0xde   : > { %v422_v38 = vmax.f32 %v420_v55, %v421_v59 }
  0xe0   : > { %v423_v61 = vrot.slane %v422_v38, 1 }
  0xe2   : > { %v424_v63 = vmax.f32 %v422_v38, %v423_v61 }
  0xe4   : > { %v425_v4 = vmax.f32 %v424_v63, 0.0 }
  0xe6   : > { %v426_v5 = vmul.f32 0.125, %v425_v4 }
  0xe8   : > { %v427_v6 = vadd.f32 %v426_v5, %v394_v17 }
  0xea   : > { %428 = vst.msk [vmem:[%s112_s14] sm:$0x1] %vm190_vm6, %v427_v6 }
  0xeb PF: > { %s11_s6 = sadd.s32 1, %s500_s6  }
  0xec   : > { %p8_p4 = scmp.ge.s32.totalorder %s11_s6, 4  }
  0xee   :  { %10 = sbr.rel (!%p8_p4) target bundleno = 1 (0x1), region = 54 }

// kernel: soc_forward.3
= control target key start
LH: loop header
LB: loop body
LE: loop exit
PB: predicated region body
PF: predicated region fallthrough
CT: control target
= control target key end

     0   :  { %v8743_v0 = vmov 0   ;;  %v99_v9 = vlaneseq  ;;  %vm2859_vm0 = vcmask 523264   ;;  %vm4872_vm1 = vcmask 130112   ;;  %s13873_s1 = inlined_call_operand.vmem [shape: f32[4,16,1], index: 1, kind: input, shape index: {}]   ;;  %s13874_s0 = inlined_call_operand.vmem [shape: f32[80,4,64], index: 0, kind: input, shape index: {}]   ;;  %s13875_s2 = inlined_call_operand.vmem [shape: bf16[80,16], index: 2, kind: output, shape index: {}]  }
   0x1   :  { %8560 = vset.pattern.permute.xlu1 %v8743_v0  ;;  %8559 = vset.pattern.permute.xlu0 %v8743_v0  ;;  %v93_v1 = vld [vmem:[%s13873_s1 + $0x10] sm:$0xff]  ;;  %v91_v2 = vld [vmem:[%s13873_s1] sm:$0xff]  ;;  %v94_v3 = vld [vmem:[%s13873_s1 + $0x18] sm:$0xff]  ;;  %vm5585_vm2 = vcmask 1041409   ;;  %vm5587_vm3 = vcmask 1042434   ;;  %vm5589_vm4 = vcmask 1043459  }
   0x2   :  { %911 = vperm.xlu1 %8560, %v93_v1   ;;  %421 = vperm.xlu0 %8559, %v91_v2   ;;  %v92_v4 = vld [vmem:[%s13873_s1 + $0x8] sm:$0xff]  ;;  %v95_v6 = vld [vmem:[%s13873_s1 + $0x20] sm:$0xff]  ;;  %v98_v7 = vld [vmem:[%s13873_s1 + $0x38] sm:$0xff]  ;;  %v8783_v10 = vshrl.u32 %v99_v9, 7  ;;  %v4862_v26 = vand.u32 127, %v99_v9  ;;  %vm5591_vm5 = vcmask 1044484  }
   0x3   :  { %v96_v5 = vld [vmem:[%s13873_s1 + $0x28] sm:$0xff]  ;;  %v97_v8 = vld [vmem:[%s13873_s1 + $0x30] sm:$0xff]  ;;  %v11_v12 = vld [vmem:[%s13874_s0] sm:$0xf]  ;;  %vm5593_vm6 = vcmask 1045509   ;;  %vm5595_vm7 = vcmask 1046534  }
   0x4   :  { %14087 = vst [vmem:[#allocation2_spill] sm:$0xff] %v8783_v10  ;;  %v8786_v11 = vsub.s32 0, %v8783_v10  ;;  %v8792_v13 = vsub.s32 1, %v8783_v10  ;;  %v8795_v14 = vsub.s32 2, %v8783_v10  ;;  %v13_v15 = vld [vmem:[%s13874_s0 + $0x8] sm:$0xf]  ;;  %v8924_v59 = vsub.s32 %v4862_v26, %v8783_v10 }
   0x5   :  { %v12_v16 = vld [vmem:[%s13874_s0 + $0x4] sm:$0xf]  ;;  %v14_v17 = vld [vmem:[%s13874_s0 + $0xc] sm:$0xf]  ;;  %v8810_v19 = vsub.s32 3, %v8783_v10  ;;  %v4867_v45 = vadd.s32 4294967288, %v4862_v26 }
   0x6   :  { %916 = vperm.xlu1 %8560, %v94_v3   ;;  %426 = vperm.xlu0 %8559, %v92_v4   ;;  %14088 = vst [vmem:[#allocation3_spill] sm:$0xff] %v8786_v11  ;;  %14089 = vst [vmem:[#allocation4_spill] sm:$0xff] %v8792_v13  ;;  %v8807_v18 = vrot.slane %v11_v12, %v8786_v11  ;;  %v15_v20 = vld [vmem:[%s13874_s0 + $0x10] sm:$0xf]  ;;  %v8816_v21 = vrot.slane %v11_v12, %v8792_v13  ;;  %v16_v29 = vld [vmem:[%s13874_s0 + $0x14] sm:$0xf] }
   0x7   :  { %14090 = vst [vmem:[#allocation5_spill] sm:$0xff] %v8795_v14  ;;  %14091 = vst [vmem:[#allocation6_spill] sm:$0xff] %v8810_v19  ;;  %v8819_v22 = vrot.slane %v13_v15, %v8786_v11  ;;  %v8822_v23 = vrot.slane %v13_v15, %v8792_v13  ;;  %v8825_v24 = vrot.slane %v12_v16, %v8786_v11  ;;  %v17_v34 = vld [vmem:[%s13874_s0 + $0x18] sm:$0xf]  ;;  %v18_v39 = vld [vmem:[%s13874_s0 + $0x1c] sm:$0xf] }
   0x8   :  { %v8828_v25 = vrot.slane %v11_v12, %v8795_v14  ;;  %v8831_v27 = vrot.slane %v12_v16, %v8792_v13  ;;  %v8834_v28 = vrot.slane %v14_v17, %v8786_v11  ;;  %v8840_v30 = vrot.slane %v13_v15, %v8795_v14  ;;  %v19_v44 = vld [vmem:[%s13874_s0 + $0x20] sm:$0xf]  ;;  %v20_v49 = vld [vmem:[%s13874_s0 + $0x24] sm:$0xf]  ;;  %v21_v58 = vld [vmem:[%s13874_s0 + $0x28] sm:$0xf] }
   0x9   :  { %v8843_v31 = vrot.slane %v12_v16, %v8795_v14  ;;  %v8846_v32 = vrot.slane %v14_v17, %v8792_v13  ;;  %v8849_v33 = vrot.slane %v15_v20, %v8786_v11  ;;  %v8855_v35 = vrot.slane %v11_v12, %v8810_v19  ;;  %14092 = vst [vmem:[#allocation7_spill] sm:$0xff] %v8924_v59  ;;  %v22_v63 = vld [vmem:[%s13874_s0 + $0x2c] sm:$0xf]  ;;  %v23_v0 = vld [vmem:[%s13874_s0 + $0x30] sm:$0xf] }
   0xa   :  { %1566 = vperm.xlu1 %8560, %v96_v5   ;;  %1561 = vperm.xlu0 %8559, %v95_v6   ;;  %v8858_v36 = vrot.slane %v13_v15, %v8810_v19  ;;  %v8861_v37 = vrot.slane %v14_v17, %v8795_v14  ;;  %v8864_v38 = vrot.slane %v15_v20, %v8792_v13  ;;  %v24_v9 = vld [vmem:[%s13874_s0 + $0x34] sm:$0xf]  ;;  %v27_v59 = vld [vmem:[%s13874_s0 + $0x40] sm:$0xf]  ;;  %vm5597_vm8 = vcmask 1047559  }
   0xb   :  { %v8870_v40 = vrot.slane %v12_v16, %v8810_v19  ;;  %v8873_v41 = vrot.slane %v14_v17, %v8810_v19  ;;  %v8876_v42 = vrot.slane %v16_v29, %v8786_v11  ;;  %v8879_v43 = vrot.slane %v16_v29, %v8792_v13 }
   0xc   :  { %v8885_v46 = vrot.slane %v15_v20, %v8795_v14  ;;  %v8888_v47 = vrot.slane %v15_v20, %v8810_v19  ;;  %v8891_v48 = vrot.slane %v17_v34, %v8786_v11  ;;  %v8897_v50 = vrot.slane %v16_v29, %v8795_v14  ;;  %v25_v20 = vld [vmem:[%s13874_s0 + $0x38] sm:$0xf] }
   0xd   :  { %v8900_v51 = vrot.slane %v16_v29, %v8810_v19  ;;  %v8903_v52 = vrot.slane %v17_v34, %v8792_v13  ;;  %v8906_v53 = vrot.slane %v18_v39, %v8786_v11  ;;  %v8909_v54 = vrot.slane %v17_v34, %v8795_v14 }
   0xe   :  { %2216 = vperm.xlu1 %8560, %v98_v7   ;;  %2211 = vperm.xlu0 %8559, %v97_v8   ;;  %v8912_v55 = vrot.slane %v17_v34, %v8810_v19  ;;  %v8915_v56 = vrot.slane %v18_v39, %v8792_v13  ;;  %v8918_v57 = vrot.slane %v19_v44, %v8786_v11  ;;  %vm5672_vm9 = vcmask 130048  }
   0xf   :  { %v8927_v60 = vrot.slane %v18_v39, %v8795_v14  ;;  %v8930_v61 = vrot.slane %v19_v44, %v8792_v13  ;;  %v8933_v62 = vrot.slane %v20_v49, %v8786_v11  ;;  %v8942_v1 = vsub.s32 %v4867_v45, %v8783_v10 }
  0x10   :  { %v8945_v2 = vrot.slane %v18_v39, %v8810_v19  ;;  %v8948_v3 = vrot.slane %v19_v44, %v8795_v14  ;;  %v8951_v4 = vrot.slane %v20_v49, %v8792_v13  ;;  %v8954_v5 = vrot.slane %v19_v44, %v8810_v19  ;;  %v26_v44 = vld [vmem:[%s13874_s0 + $0x3c] sm:$0xf] }
  0x11   :  { %14093 = vst [vmem:[#allocation8_spill] sm:$0xff] %v8942_v1  ;;  %v8957_v6 = vrot.slane %v20_v49, %v8795_v14  ;;  %v8960_v7 = vrot.slane %v21_v58, %v8786_v11  ;;  %v8963_v8 = vrot.slane %v21_v58, %v8792_v13  ;;  %v8969_v12 = vrot.slane %v20_v49, %v8810_v19 }
  0x12   :  { %14094 = vst [vmem:[#allocation9_spill] sm:$0xff] %v8951_v4  ;;  %v8972_v15 = vrot.slane %v22_v63, %v8786_v11  ;;  %v8975_v16 = vrot.slane %v22_v63, %v8792_v13  ;;  %v8978_v17 = vrot.slane %v23_v0, %v8786_v11  ;;  %v8984_v26 = vrot.slane %v21_v58, %v8795_v14 }
  0x13   :  { %14095 = vst [vmem:[#allocation10_spill] sm:$0xff] %v8957_v6  ;;  %14096 = vst [vmem:[#allocation11_spill] sm:$0xff] %v8960_v7  ;;  %v8987_v29 = vrot.slane %v21_v58, %v8810_v19  ;;  %v8990_v34 = vrot.slane %v22_v63, %v8795_v14  ;;  %v8993_v39 = vrot.slane %v23_v0, %v8792_v13  ;;  %vm8223_vm10 = vcmask 125952  }
  0x14   :  { %14097 = vst [vmem:[#allocation12_spill] sm:$0xff] %v8963_v8  ;;  %14098 = vst [vmem:[#allocation13_spill] sm:$0xff] %v8969_v12  ;;  %v8999_v45 = vrot.slane %v22_v63, %v8810_v19  ;;  %v9002_v49 = vrot.slane %v23_v0, %v8795_v14  ;;  %v9005_v10 = vrot.slane %v24_v9, %v8786_v11 }
  0x15   :  { %14099 = vst [vmem:[#allocation14_spill] sm:$0xff] %v8972_v15  ;;  %14100 = vst [vmem:[#allocation15_spill] sm:$0xff] %v8975_v16  ;;  %v9008_v58 = vrot.slane %v24_v9, %v8792_v13  ;;  %v9014_v1 = vrot.slane %v23_v0, %v8810_v19  ;;  %v9020_v63 = vrot.slane %v25_v20, %v8786_v11 }
  0x16   :  { %14101 = vst [vmem:[#allocation16_spill] sm:$0xff] %v8978_v17  ;;  %14102 = vst [vmem:[#allocation17_spill] sm:$0xff] %v8984_v26  ;;  %v9032_v17 = vrot.slane %v25_v20, %v8795_v14  ;;  %v9035_v0 = vrot.slane %v26_v44, %v8786_v11 }
  0x17   :  { %14103 = vst [vmem:[#allocation18_spill] sm:$0xff] %v8987_v29  ;;  %14104 = vst [vmem:[#allocation19_spill] sm:$0xff] %v8990_v34 }
  0x18   :  { %14105 = vst [vmem:[#allocation20_spill] sm:$0xff] %v8993_v39  ;;  %14106 = vst [vmem:[#allocation21_spill] sm:$0xff] %v8999_v45  ;;  %v9017_v39 = vrot.slane %v24_v9, %v8795_v14 }
  0x19   :  { %14107 = vst [vmem:[#allocation22_spill] sm:$0xff] %v9002_v49  ;;  %14108 = vst [vmem:[#allocation23_spill] sm:$0xff] %v9005_v10  ;;  %v9023_v49 = vrot.slane %v25_v20, %v8792_v13  ;;  %v9029_v10 = vrot.slane %v24_v9, %v8810_v19  ;;  %v9050_v9 = vrot.slane %v27_v59, %v8792_v13 }
  0x1a   :  { %14109 = vst [vmem:[#allocation24_spill] sm:$0xff] %v9008_v58  ;;  %14110 = vst [vmem:[#allocation25_spill] sm:$0xff] %v9014_v1  ;;  %v28_v58 = vld [vmem:[%s13874_s0 + $0x44] sm:$0xf]  ;;  %v9047_v1 = vrot.slane %v27_v59, %v8786_v11 }
  0x1b   :  { %14111 = vst [vmem:[#allocation26_spill] sm:$0xff] %v9017_v39  ;;  %14112 = vst [vmem:[#allocation27_spill] sm:$0xff] %v9020_v63  ;;  %v9038_v39 = vrot.slane %v26_v44, %v8792_v13  ;;  %v9041_v63 = vrot.slane %v25_v20, %v8810_v19  ;;  %v9063_v20 = vrot.slane %v28_v58, %v8786_v11 }
  0x1c   :  { %14113 = vst [vmem:[#allocation28_spill] sm:$0xff] %v9023_v49  ;;  %14114 = vst [vmem:[#allocation29_spill] sm:$0xff] %v9029_v10  ;;  %v9044_v49 = vrot.slane %v26_v44, %v8795_v14 }
  0x1d   :  { %14115 = vst [vmem:[#allocation30_spill] sm:$0xff] %v9032_v17  ;;  %14116 = vst [vmem:[#allocation31_spill] sm:$0xff] %v9035_v0  ;;  %v9057_v0 = vrot.slane %v26_v44, %v8810_v19 }
  0x1e   :  { %14117 = vst [vmem:[#allocation32_spill] sm:$0xff] %v9038_v39  ;;  %14118 = vst [vmem:[#allocation33_spill] sm:$0xff] %v9041_v63  ;;  %v9060_v39 = vrot.slane %v27_v59, %v8795_v14 }
  0x1f   :  { %14119 = vst [vmem:[#allocation34_spill] sm:$0xff] %v9044_v49  ;;  %14120 = vst [vmem:[#allocation35_spill] sm:$0xff] %v9047_v1  ;;  %v9066_v49 = vrot.slane %v28_v58, %v8792_v13 }
  0x20   :  { %14121 = vst [vmem:[#allocation36_spill] sm:$0xff] %v9050_v9  ;;  %14122 = vst [vmem:[#allocation37_spill] sm:$0xff] %v9057_v0 }
  0x21   :  { %14123 = vst [vmem:[#allocation38_spill] sm:$0xff] %v9060_v39  ;;  %14124 = vst [vmem:[#allocation39_spill] sm:$0xff] %v9063_v20 }
  0x22   :  { %14125 = vst [vmem:[#allocation40_spill] sm:$0xff] %v9066_v49 }
  0x81   :  { %v9052_v10 = vpop.permute.xlu1 %911  ;;  %v9054_v17 = vpop.permute.xlu0 %421 }
  0x82   :  { %v429_v1 = vmul.f32 %v9054_v17, %v8807_v18  ;;  %v919_v9 = vmul.f32 %v9052_v10, %v8816_v21  ;;  %v433_v63 = vmul.f32 %v9054_v17, %v8819_v22  ;;  %v923_v44 = vmul.f32 %v9052_v10, %v8822_v23 }
  0x83   :  { %v431_v59 = vmul.f32 %v9054_v17, %v8825_v24  ;;  %v921_v14 = vmul.f32 %v9052_v10, %v8831_v27  ;;  %v435_v58 = vmul.f32 %v9054_v17, %v8834_v28  ;;  %v925_v13 = vmul.f32 %v9052_v10, %v8846_v32 }
  0x84   :  { %v1079_v49 = vadd.f32 %v919_v9, %v429_v1  ;;  %v1083_v20 = vadd.f32 %v923_v44, %v433_v63  ;;  %v437_v19 = vmul.f32 %v9054_v17, %v8849_v33  ;;  %v927_v39 = vmul.f32 %v9052_v10, %v8864_v38 }
  0x85   :  { %v9088_v0 = vpop.permute.xlu1 %916  ;;  %v9090_v45 = vpop.permute.xlu0 %426  ;;  %v1081_v34 = vadd.f32 %v921_v14, %v431_v59  ;;  %v1085_v16 = vadd.f32 %v925_v13, %v435_v58  ;;  %v9094_v15 = vmul.f32 %v9054_v17, %v8876_v42  ;;  %v9098_v1 = vmul.f32 %v9052_v10, %v8879_v43 }
  0x86   :  { %v430_v63 = vmul.f32 %v9090_v45, %v8807_v18  ;;  %v920_v9 = vmul.f32 %v9088_v0, %v8816_v21  ;;  %v434_v44 = vmul.f32 %v9090_v45, %v8819_v22  ;;  %v924_v13 = vmul.f32 %v9088_v0, %v8822_v23 }
  0x87   :  { %v432_v14 = vmul.f32 %v9090_v45, %v8825_v24  ;;  %v922_v59 = vmul.f32 %v9088_v0, %v8831_v27  ;;  %v436_v58 = vmul.f32 %v9090_v45, %v8834_v28  ;;  %v926_v18 = vmul.f32 %v9088_v0, %v8846_v32 }
  0x88   :  { %v1080_v29 = vadd.f32 %v920_v9, %v430_v63  ;;  %v1084_v21 = vadd.f32 %v924_v13, %v434_v44  ;;  %v9118_v22 = vmul.f32 %v9090_v45, %v8849_v33  ;;  %v9122_v23 = vmul.f32 %v9088_v0, %v8864_v38 }
  0x89   :  { %v9124_v24 = vpop.permute.xlu1 %1566  ;;  %v9126_v26 = vpop.permute.xlu0 %1561  ;;  %v1082_v27 = vadd.f32 %v922_v59, %v432_v14  ;;  %v1086_v8 = vadd.f32 %v926_v18, %v436_v58  ;;  %v9128_v28 = vadd.f32 %v927_v39, %v437_v19  ;;  %v9132_v32 = vmul.f32 %v9090_v45, %v8876_v42 }
  0x8a   :  { %v1569_v33 = vmul.f32 %v9126_v26, %v8828_v25  ;;  %v1570_v63 = vmul.f32 %v9124_v24, %v8828_v25  ;;  %v1573_v38 = vmul.f32 %v9126_v26, %v8840_v30  ;;  %v1574_v9 = vmul.f32 %v9124_v24, %v8840_v30 }
  0x8b   :  { %v1571_v19 = vmul.f32 %v9126_v26, %v8843_v31  ;;  %v1572_v42 = vmul.f32 %v9124_v24, %v8843_v31  ;;  %v1575_v39 = vmul.f32 %v9126_v26, %v8861_v37  ;;  %v1576_v44 = vmul.f32 %v9124_v24, %v8861_v37 }
  0x8c   :  { %v1729_v25 = vadd.f32 %v1569_v33, %v1079_v49  ;;  %v1730_v13 = vadd.f32 %v1570_v63, %v1080_v29  ;;  %v1733_v14 = vadd.f32 %v1573_v38, %v1083_v20  ;;  %v1734_v59 = vadd.f32 %v1574_v9, %v1084_v21 }
  0x8d   :  { %v9150_v58 = vpop.permute.xlu1 %2216  ;;  %v9152_v30 = vpop.permute.xlu0 %2211  ;;  %v1731_v18 = vadd.f32 %v1571_v19, %v1081_v34  ;;  %v1732_v7 = vadd.f32 %v1572_v42, %v1082_v27  ;;  %v1735_v12 = vadd.f32 %v1575_v39, %v1085_v16  ;;  %v1736_v6 = vadd.f32 %v1576_v44, %v1086_v8 }
  0x8e   :  { %v2219_v31 = vmul.f32 %v9152_v30, %v8855_v35  ;;  %v2220_v4 = vmul.f32 %v9150_v58, %v8855_v35  ;;  %v2223_v37 = vmul.f32 %v9152_v30, %v8858_v36  ;;  %v2224_v29 = vmul.f32 %v9150_v58, %v8858_v36 }
  0x8f   :  { %v2221_v49 = vmul.f32 %v9152_v30, %v8870_v40  ;;  %v2222_v34 = vmul.f32 %v9150_v58, %v8870_v40  ;;  %v2225_v8 = vmul.f32 %v9152_v30, %v8873_v41  ;;  %v2226_v16 = vmul.f32 %v9150_v58, %v8873_v41 }
  0x90   :  { %v2379_v20 = vadd.f32 %v2219_v31, %v1729_v25  ;;  %v2380_v35 = vadd.f32 %v2220_v4, %v1730_v13  ;;  %v2383_v21 = vadd.f32 %v2223_v37, %v1733_v14  ;;  %v2384_v27 = vadd.f32 %v2224_v29, %v1734_v59 }
  0x91   :  { %v2381_v33 = vadd.f32 %v2221_v49, %v1731_v18  ;;  %v2382_v63 = vadd.f32 %v2222_v34, %v1732_v7  ;;  %v2385_v38 = vadd.f32 %v2225_v8, %v1735_v12  ;;  %v2386_v36 = vadd.f32 %v2226_v16, %v1736_v6 }
  0x92   :  { %v9170_v9 = vmax.f32 %v2379_v20, 0.0  ;;  %v9172_v19 = vmax.f32 %v2380_v35, 0.0  ;;  %v9174_v42 = vmax.f32 %v2383_v21, 0.0  ;;  %v9176_v40 = vmax.f32 %v2384_v27, 0.0 }
  0x93   :  { %v9178_v39 = vmax.f32 %v2381_v33, 0.0  ;;  %v9180_v44 = vmax.f32 %v2382_v63, 0.0  ;;  %v9182_v41 = vmax.f32 %v2385_v38, 0.0  ;;  %v9184_v4 = vmax.f32 %v2386_v36, 0.0 }
  0x94   :  { %v2699_v7 = vmul.f32 %v9170_v9, %v9170_v9  ;;  %v2700_v6 = vmul.f32 %v9172_v19, %v9172_v19  ;;  %v2703_v12 = vmul.f32 %v9174_v42, %v9174_v42  ;;  %v2704_v25 = vmul.f32 %v9176_v40, %v9176_v40 }
  0x95   :  { %v2701_v13 = vmul.f32 %v9178_v39, %v9178_v39  ;;  %v2702_v14 = vmul.f32 %v9180_v44, %v9180_v44  ;;  %v2705_v59 = vmul.f32 %v9182_v41, %v9182_v41  ;;  %v2706_v18 = vmul.f32 %v9184_v4, %v9184_v4 }
  0x96   :  { %v2860_v31 = vsel %vm2859_vm0, %v2699_v7, 0.0  ;;  %v2861_v37 = vsel %vm2859_vm0, %v2700_v6, 0.0  ;;  %v2878_v29 = vsel %vm2859_vm0, %v2703_v12, 0.0  ;;  %v2879_v49 = vsel %vm2859_vm0, %v2704_v25, 0.0 }
  0x97   :  { %v2862_v34 = vadd.f32 %v2861_v37, %v2860_v31  ;;  %v2880_v8 = vadd.f32 %v2879_v49, %v2878_v29  ;;  %v2869_v16 = vsel %vm2859_vm0, %v2701_v13, 0.0  ;;  %v2870_v20 = vsel %vm2859_vm0, %v2702_v14, 0.0 }
  0x98   :  { %v2871_v35 = vadd.f32 %v2870_v20, %v2869_v16  ;;  %v2887_v21 = vsel %vm2859_vm0, %v2705_v59, 0.0  ;;  %v2888_v27 = vsel %vm2859_vm0, %v2706_v18, 0.0  ;;  %v1088_v33 = vadd.f32 %v9122_v23, %v9118_v22 }
  0x99   :  { %v2863_v63 = vrot.slane %v2862_v34, 4  ;;  %v2881_v38 = vrot.slane %v2880_v8, 4  ;;  %v2889_v36 = vadd.f32 %v2888_v27, %v2887_v21  ;;  %v1577_v7 = vmul.f32 %v9126_v26, %v8885_v46 }
  0x9a   :  { %v2872_v6 = vrot.slane %v2871_v35, 4  ;;  %v1578_v12 = vmul.f32 %v9124_v24, %v8885_v46  ;;  %v2227_v25 = vmul.f32 %v9152_v30, %v8888_v47  ;;  %v2228_v13 = vmul.f32 %v9150_v58, %v8888_v47 }
  0x9b   :  { %v2864_v14 = vadd.f32 %v2863_v63, %v2862_v34  ;;  %v2882_v59 = vadd.f32 %v2881_v38, %v2880_v8  ;;  %v2890_v18 = vrot.slane %v2889_v36, 4  ;;  %v1737_v22 = vadd.f32 %v1577_v7, %v9128_v28 }
  0x9c   :  { %v2873_v23 = vadd.f32 %v2872_v6, %v2871_v35  ;;  %v1738_v31 = vadd.f32 %v1578_v12, %v1088_v33  ;;  %v930_v37 = vmul.f32 %v9088_v0, %v8879_v43  ;;  %v1089_v29 = vadd.f32 %v9098_v1, %v9094_v15 }
  0x9d   :  { %v2865_v46 = vrot.slane %v2864_v14, 2  ;;  %v2883_v49 = vrot.slane %v2882_v59, 2  ;;  %v2891_v16 = vadd.f32 %v2890_v18, %v2889_v36  ;;  %v2387_v20 = vadd.f32 %v2227_v25, %v1737_v22 }
  0x9e   :  { %v2874_v21 = vrot.slane %v2873_v23, 2  ;;  %v2388_v27 = vadd.f32 %v2228_v13, %v1738_v31  ;;  %v1090_v47 = vadd.f32 %v930_v37, %v9132_v32  ;;  %v1579_v34 = vmul.f32 %v9126_v26, %v8897_v50 }
  0x9f   :  { %v2866_v28 = vadd.f32 %v2865_v46, %v2864_v14  ;;  %v2884_v8 = vadd.f32 %v2883_v49, %v2882_v59  ;;  %v2892_v35 = vrot.slane %v2891_v16, 2  ;;  %v9228_v33 = vmax.f32 %v2387_v20, 0.0 }
  0xa0   :  { %v2875_v43 = vadd.f32 %v2874_v21, %v2873_v23  ;;  %v9230_v63 = vmax.f32 %v2388_v27, 0.0  ;;  %v1580_v15 = vmul.f32 %v9124_v24, %v8897_v50  ;;  %v1739_v1 = vadd.f32 %v1579_v34, %v1089_v29 }
  0xa1   :  { %v2867_v38 = vrot.slane %v2866_v28, 1  ;;  %v2885_v36 = vrot.slane %v2884_v8, 1  ;;  %v2893_v7 = vadd.f32 %v2892_v35, %v2891_v16  ;;  %v2707_v32 = vmul.f32 %v9228_v33, %v9228_v33 }
  0xa2   :  { %v2876_v6 = vrot.slane %v2875_v43, 1  ;;  %v2708_v12 = vmul.f32 %v9230_v63, %v9230_v63  ;;  %v1740_v25 = vadd.f32 %v1580_v15, %v1090_v47  ;;  %v2229_v13 = vmul.f32 %v9152_v30, %v8900_v51 }
  0xa3   :  { %v2868_v14 = vadd.f32 %v2867_v38, %v2866_v28  ;;  %v2886_v59 = vadd.f32 %v2885_v36, %v2884_v8  ;;  %v2894_v18 = vrot.slane %v2893_v7, 1  ;;  %v2896_v50 = vsel %vm2859_vm0, %v2707_v32, 0.0 }
  0xa4   :  { %v2877_v22 = vadd.f32 %v2876_v6, %v2875_v43  ;;  %v2897_v23 = vsel %vm2859_vm0, %v2708_v12, 0.0  ;;  %v2230_v31 = vmul.f32 %v9150_v58, %v8900_v51  ;;  %v2389_v37 = vadd.f32 %v2229_v13, %v1739_v1 }
  0xa5   :  { %v3580_v29 = vmax.f32 %v2868_v14, 1e-24  ;;  %v3582_v46 = vmax.f32 %v2886_v59, 1e-24  ;;  %v2895_v49 = vadd.f32 %v2894_v18, %v2893_v7  ;;  %v2898_v16 = vadd.f32 %v2897_v23, %v2896_v50 }
  0xa6   :  { %v3581_v20 = vmax.f32 %v2877_v22, 1e-24  ;;  %v2390_v21 = vadd.f32 %v2230_v31, %v1740_v25  ;;  %v9244_v27 = vmax.f32 %v2389_v37, 0.0  ;;  %v441_v47 = vmul.f32 %v9054_v17, %v8891_v48 }
  0xa7   :  { %8561 = vrsqrt.f32 %v3580_v29  ;;  %v3583_v34 = vmax.f32 %v2895_v49, 1e-24  ;;  %v2899_v28 = vrot.slane %v2898_v16, 4  ;;  %v442_v8 = vmul.f32 %v9090_v45, %v8891_v48 }
  0xa8   :  { %8563 = vrsqrt.f32 %v3582_v46  ;;  %v9250_v51 = vmax.f32 %v2390_v21, 0.0  ;;  %v2709_v35 = vmul.f32 %v9244_v27, %v9244_v27  ;;  %v931_v43 = vmul.f32 %v9052_v10, %v8903_v52 }
  0xa9   :  { %8565 = vrsqrt.f32 %v3581_v20  ;;  %v2900_v15 = vadd.f32 %v2899_v28, %v2898_v16  ;;  %v932_v1 = vmul.f32 %v9088_v0, %v8903_v52  ;;  %v1581_v38 = vmul.f32 %v9126_v26, %v8909_v54  ;;  %v9270_v52 = vld [vmem:[%s13874_s0 + $0x48] sm:$0xf] }
  0xaa   :  { %8567 = vrsqrt.f32 %v3583_v34  ;;  %v2710_v48 = vmul.f32 %v9250_v51, %v9250_v51  ;;  %v2905_v36 = vsel %vm2859_vm0, %v2709_v35, 0.0  ;;  %v1091_v7 = vadd.f32 %v931_v43, %v441_v47 }
  0xab   :  { %v2901_v32 = vrot.slane %v2900_v15, 2  ;;  %v1092_v6 = vadd.f32 %v932_v1, %v442_v8  ;;  %v1582_v12 = vmul.f32 %v9124_v24, %v8909_v54  ;;  %v2231_v25 = vmul.f32 %v9152_v30, %v8912_v55 }
  0xac   :  { %v2906_v13 = vsel %vm2859_vm0, %v2710_v48, 0.0  ;;  %v1741_v14 = vadd.f32 %v1581_v38, %v1091_v7  ;;  %v2232_v59 = vmul.f32 %v9150_v58, %v8912_v55  ;;  %v443_v18 = vmul.f32 %v9054_v17, %v8906_v53 }
  0xad   :  { %v2902_v50 = vadd.f32 %v2901_v32, %v2900_v15  ;;  %v2907_v22 = vadd.f32 %v2906_v13, %v2905_v36  ;;  %v1742_v54 = vadd.f32 %v1582_v12, %v1092_v6  ;;  %v444_v23 = vmul.f32 %v9090_v45, %v8906_v53 }
  0xae   :  { %v2391_v31 = vadd.f32 %v2231_v25, %v1741_v14  ;;  %v933_v37 = vmul.f32 %v9052_v10, %v8915_v56  ;;  %v934_v29 = vmul.f32 %v9088_v0, %v8915_v56  ;;  %v9285_v46 = vrot.slane %v9270_v52, %v8786_v11 }
  0xaf   :  { %v2903_v55 = vrot.slane %v2902_v50, 1  ;;  %v2908_v49 = vrot.slane %v2907_v22, 4  ;;  %v2392_v16 = vadd.f32 %v2232_v59, %v1742_v54  ;;  %v1583_v20 = vmul.f32 %v9126_v26, %v8927_v60 }
  0xb0   :  { %v9289_v21 = vmax.f32 %v2391_v31, 0.0  ;;  %v1093_v53 = vadd.f32 %v933_v37, %v443_v18  ;;  %v1094_v47 = vadd.f32 %v934_v29, %v444_v23  ;;  %v1584_v34 = vmul.f32 %v9124_v24, %v8927_v60 }
  0xb1   :  { %v8562_v28 = vpop.eup %8561  ;;  %v2904_v8 = vadd.f32 %v2903_v55, %v2902_v50  ;;  %v2909_v56 = vadd.f32 %v2908_v49, %v2907_v22  ;;  %v9293_v35 = vmax.f32 %v2392_v16, 0.0  ;;  %v2233_v43 = vmul.f32 %v9152_v30, %v8945_v2 }
  0xb2   :  { %v8564_v15 = vpop.eup %8563  ;;  %v3741_v1 = vmul.f32 %v8562_v28, %v9172_v19  ;;  %v3740_v38 = vmul.f32 %v8562_v28, %v9170_v9  ;;  %v2711_v48 = vmul.f32 %v9289_v21, %v9289_v21  ;;  %v2234_v36 = vmul.f32 %v9150_v58, %v8945_v2 }
  0xb3   :  { %v8566_v60 = vpop.eup %8565  ;;  %v3744_v7 = vmul.f32 %v8564_v15, %v9174_v42  ;;  %v3584_v32 = vmax.f32 %v2904_v8, 1e-24  ;;  %v3745_v6 = vmul.f32 %v8564_v15, %v9176_v40  ;;  %v2910_v12 = vrot.slane %v2909_v56, 2 }
  0xb4   :  { %v8568_v25 = vpop.eup %8567  ;;  %v3903_v13 = vsel %vm2859_vm0, %v3741_v1, 0.0  ;;  %v3900_v19 = vsel %vm2859_vm0, %v3740_v38, 0.0  ;;  %v3742_v9 = vmul.f32 %v8566_v60, %v9178_v39  ;;  %v3743_v14 = vmul.f32 %v8566_v60, %v9180_v44 }
  0xb5   :  { %3904 = vadd.xlane.f32.xlu1 %v3903_v13  ;;  %3901 = vadd.xlane.f32.xlu0 %v3900_v19  ;;  %v3912_v2 = vsel %vm2859_vm0, %v3744_v7, 0.0  ;;  %v3746_v59 = vmul.f32 %v8568_v25, %v9182_v41  ;;  %8569 = vrsqrt.f32 %v3584_v32  ;;  %v1743_v42 = vadd.f32 %v1583_v20, %v1093_v53 }
  0xb6   :  { %v3906_v40 = vsel %vm2859_vm0, %v3742_v9, 0.0  ;;  %v3909_v18 = vsel %vm2859_vm0, %v3743_v14, 0.0  ;;  %v3915_v50 = vsel %vm2859_vm0, %v3745_v6, 0.0  ;;  %v2911_v22 = vadd.f32 %v2910_v12, %v2909_v56 }
  0xb7   :  { %v3747_v54 = vmul.f32 %v8568_v25, %v9184_v4  ;;  %v2712_v39 = vmul.f32 %v9293_v35, %v9293_v35  ;;  %v2914_v44 = vsel %vm2859_vm0, %v2711_v48, 0.0  ;;  %v1744_v23 = vadd.f32 %v1584_v34, %v1094_v47 }
  0xb8   :  { %v3918_v31 = vsel %vm2859_vm0, %v3746_v59, 0.0  ;;  %v2912_v41 = vrot.slane %v2911_v22, 1  ;;  %v2393_v37 = vadd.f32 %v2233_v43, %v1743_v42  ;;  %v445_v29 = vmul.f32 %v9054_v17, %v8918_v57 }
  0xb9   :  { %3913 = vadd.xlane.f32.xlu1 %v3912_v2  ;;  %3907 = vadd.xlane.f32.xlu0 %v3906_v40  ;;  %v2915_v55 = vsel %vm2859_vm0, %v2712_v39, 0.0  ;;  %v2394_v49 = vadd.f32 %v2234_v36, %v1744_v23  ;;  %v446_v4 = vmul.f32 %v9090_v45, %v8918_v57  ;;  %v935_v16 = vmul.f32 %v9052_v10, %v8930_v61 }
  0xba   :  { %v2913_v20 = vadd.f32 %v2912_v41, %v2911_v22  ;;  %v2916_v53 = vadd.f32 %v2915_v55, %v2914_v44  ;;  %v9326_v47 = vmax.f32 %v2393_v37, 0.0  ;;  %v936_v34 = vmul.f32 %v9088_v0, %v8930_v61  ;;  %v14126_v22 = vld [vmem:[#allocation9_spill] sm:$0xff]  ;;  %v14127_v37 = vld [vmem:[#allocation10_spill] sm:$0xff] }
  0xbb   :  { %v9330_v28 = vmax.f32 %v2394_v49, 0.0  ;;  %v1095_v8 = vadd.f32 %v935_v16, %v445_v29  ;;  %v1585_v56 = vmul.f32 %v9126_v26, %v8948_v3  ;;  %v1586_v43 = vmul.f32 %v9124_v24, %v8948_v3 }
  0xbc   :  { %v3585_v57 = vmax.f32 %v2913_v20, 1e-24  ;;  %v2917_v15 = vrot.slane %v2916_v53, 4  ;;  %v2713_v1 = vmul.f32 %v9326_v47, %v9326_v47  ;;  %v1096_v38 = vadd.f32 %v936_v34, %v446_v4  ;;  %v14128_v20 = vld [vmem:[#allocation13_spill] sm:$0xff] }
  0xbd   :  { %3919 = vadd.xlane.f32.xlu1 %v3918_v31  ;;  %3910 = vadd.xlane.f32.xlu0 %v3909_v18  ;;  %v3921_v48 = vsel %vm2859_vm0, %v3747_v54, 0.0  ;;  %v2714_v61 = vmul.f32 %v9330_v28, %v9330_v28  ;;  %v1745_v36 = vadd.f32 %v1585_v56, %v1095_v8  ;;  %v2235_v60 = vmul.f32 %v9152_v30, %v8954_v5 }
  0xbe   :  { %8571 = vrsqrt.f32 %v3585_v57  ;;  %v2918_v7 = vadd.f32 %v2917_v15, %v2916_v53  ;;  %v2923_v3 = vsel %vm2859_vm0, %v2713_v1, 0.0  ;;  %v1746_v32 = vadd.f32 %v1586_v43, %v1096_v38  ;;  %v14129_v1 = vld [vmem:[#allocation11_spill] sm:$0xff] }
  0xbf   :  { %v8570_v6 = vpop.eup %8569  ;;  %v2924_v12 = vsel %vm2859_vm0, %v2714_v61, 0.0  ;;  %v2236_v25 = vmul.f32 %v9150_v58, %v8954_v5  ;;  %v2395_v13 = vadd.f32 %v2235_v60, %v1745_v36  ;;  %v447_v19 = vmul.f32 %v9054_v17, %v8933_v62 }
  0xc0   :  { %v3748_v9 = vmul.f32 %v8570_v6, %v9228_v33  ;;  %v2919_v14 = vrot.slane %v2918_v7, 2  ;;  %v3749_v2 = vmul.f32 %v8570_v6, %v9230_v63  ;;  %v2925_v59 = vadd.f32 %v2924_v12, %v2923_v3 }
  0xc1   :  { %3916 = vadd.xlane.f32.xlu0 %v3915_v50  ;;  %v2396_v42 = vadd.f32 %v2236_v25, %v1746_v32  ;;  %v9351_v40 = vmax.f32 %v2395_v13, 0.0  ;;  %v448_v18 = vmul.f32 %v9090_v45, %v8933_v62  ;;  %v937_v5 = vmul.f32 %v9052_v10, %v14126_v22  ;;  %v14130_v25 = vld [vmem:[#allocation12_spill] sm:$0xff] }
  0xc2   :  { %v3924_v54 = vsel %vm2859_vm0, %v3748_v9, 0.0  ;;  %v2920_v39 = vadd.f32 %v2919_v14, %v2918_v7  ;;  %v3927_v44 = vsel %vm2859_vm0, %v3749_v2, 0.0  ;;  %v2926_v33 = vrot.slane %v2925_v59, 4 }
  0xc3   :  { %3925 = vadd.xlane.f32.xlu1 %v3924_v54  ;;  %v9359_v23 = vmax.f32 %v2396_v42, 0.0  ;;  %v2715_v63 = vmul.f32 %v9351_v40, %v9351_v40  ;;  %v938_v50 = vmul.f32 %v9088_v0, %v14126_v22  ;;  %v1097_v31 = vadd.f32 %v937_v5, %v447_v19 }
  0xc4   :  { %v2921_v62 = vrot.slane %v2920_v39, 1  ;;  %v2927_v41 = vadd.f32 %v2926_v33, %v2925_v59  ;;  %v1587_v29 = vmul.f32 %v9126_v26, %v14127_v37  ;;  %v1588_v55 = vmul.f32 %v9124_v24, %v14127_v37 }
  0xc5   :  { %3922 = vadd.xlane.f32.xlu0 %v3921_v48  ;;  %v2716_v49 = vmul.f32 %v9359_v23, %v9359_v23  ;;  %v2932_v4 = vsel %vm2859_vm0, %v2715_v63, 0.0  ;;  %v1098_v16 = vadd.f32 %v938_v50, %v448_v18  ;;  %v2237_v53 = vmul.f32 %v9152_v30, %v14128_v20 }
  0xc6   :  { %v2922_v34 = vadd.f32 %v2921_v62, %v2920_v39  ;;  %v2928_v8 = vrot.slane %v2927_v41, 2  ;;  %v1747_v56 = vadd.f32 %v1587_v29, %v1097_v31  ;;  %v2238_v43 = vmul.f32 %v9150_v58, %v14128_v20 }
  0xc7   :  { %v2933_v57 = vsel %vm2859_vm0, %v2716_v49, 0.0  ;;  %v1748_v15 = vadd.f32 %v1588_v55, %v1098_v16  ;;  %v449_v38 = vmul.f32 %v9054_v17, %v14129_v1  ;;  %v450_v48 = vmul.f32 %v9090_v45, %v14129_v1 }
  0xc8   :  { %v8572_v61 = vpop.eup %8571  ;;  %v3586_v36 = vmax.f32 %v2922_v34, 1e-24  ;;  %v2929_v60 = vadd.f32 %v2928_v8, %v2927_v41  ;;  %v2934_v7 = vadd.f32 %v2933_v57, %v2932_v4  ;;  %v2397_v3 = vadd.f32 %v2237_v53, %v1747_v56  ;;  %v14132_v41 = vld [vmem:[#allocation18_spill] sm:$0xff]  ;;  %v14134_v57 = vld [vmem:[#allocation15_spill] sm:$0xff] }
  0xc9   :  { %v3750_v32 = vmul.f32 %v8572_v61, %v9244_v27  ;;  %3928 = vadd.xlane.f32.xlu0 %v3927_v44  ;;  %v3751_v6 = vmul.f32 %v8572_v61, %v9250_v51  ;;  %v2398_v12 = vadd.f32 %v2238_v43, %v1748_v15  ;;  %v939_v13 = vmul.f32 %v9052_v10, %v14130_v25  ;;  %v14131_v44 = vld [vmem:[#allocation17_spill] sm:$0xff]  ;;  %v14133_v53 = vld [vmem:[#allocation14_spill] sm:$0xff]  ;;  %v14135_v61 = vld [vmem:[#allocation19_spill] sm:$0xff] }
  0xca   :  { %8573 = vrsqrt.f32 %v3586_v36  ;;  %v2930_v19 = vrot.slane %v2929_v60, 1  ;;  %v2935_v9 = vrot.slane %v2934_v7, 4  ;;  %v9385_v14 = vmax.f32 %v2397_v3, 0.0 }
  0xcb   :  { %v3930_v2 = vsel %vm2859_vm0, %v3750_v32, 0.0  ;;  %v3933_v59 = vsel %vm2859_vm0, %v3751_v6, 0.0  ;;  %v9389_v42 = vmax.f32 %v2398_v12, 0.0  ;;  %v940_v27 = vmul.f32 %v9088_v0, %v14130_v25 }
  0xcc   :  { %3931 = vadd.xlane.f32.xlu1 %v3930_v2  ;;  %v2931_v51 = vadd.f32 %v2930_v19, %v2929_v60  ;;  %v2936_v18 = vadd.f32 %v2935_v9, %v2934_v7  ;;  %v2717_v22 = vmul.f32 %v9385_v14, %v9385_v14  ;;  %v1099_v5 = vadd.f32 %v939_v13, %v449_v38  ;;  %v14136_v19 = vld [vmem:[#allocation21_spill] sm:$0xff] }
  0xcd   :  { %3934 = vadd.xlane.f32.xlu0 %v3933_v59  ;;  %v2718_v54 = vmul.f32 %v9389_v42, %v9389_v42  ;;  %v1100_v39 = vadd.f32 %v940_v27, %v450_v48  ;;  %v1589_v33 = vmul.f32 %v9126_v26, %v14131_v44  ;;  %v1590_v63 = vmul.f32 %v9124_v24, %v14131_v44 }
  0xce   :  { %v3587_v50 = vmax.f32 %v2931_v51, 1e-24  ;;  %v2937_v31 = vrot.slane %v2936_v18, 2  ;;  %v2941_v62 = vsel %vm2859_vm0, %v2717_v22, 0.0  ;;  %v2239_v37 = vmul.f32 %v9152_v30, %v14132_v41 }
  0xcf   :  { %v2942_v29 = vsel %vm2859_vm0, %v2718_v54, 0.0  ;;  %v1749_v55 = vadd.f32 %v1589_v33, %v1099_v5  ;;  %v1750_v49 = vadd.f32 %v1590_v63, %v1100_v39  ;;  %v2240_v4 = vmul.f32 %v9150_v58, %v14132_v41 }
  0xd0   :  { %8575 = vrsqrt.f32 %v3587_v50  ;;  %v2938_v16 = vadd.f32 %v2937_v31, %v2936_v18  ;;  %v2943_v20 = vadd.f32 %v2942_v29, %v2941_v62  ;;  %v451_v34 = vmul.f32 %v9054_v17, %v14133_v53  ;;  %v14137_v62 = vld [vmem:[#allocation16_spill] sm:$0xff] }
  0xd1   :  { %v2399_v8 = vadd.f32 %v2239_v37, %v1749_v55  ;;  %v2400_v56 = vadd.f32 %v2240_v4, %v1750_v49  ;;  %v452_v43 = vmul.f32 %v9090_v45, %v14133_v53  ;;  %v941_v15 = vmul.f32 %v9052_v10, %v14134_v57  ;;  %v14138_v29 = vld [vmem:[#allocation20_spill] sm:$0xff] }
  0xd2   :  { %v2939_v1 = vrot.slane %v2938_v16, 1  ;;  %v2944_v38 = vrot.slane %v2943_v20, 4  ;;  %v942_v48 = vmul.f32 %v9088_v0, %v14134_v57  ;;  %v1591_v36 = vmul.f32 %v9126_v26, %v14135_v61 }
  0xd3   :  { %v9417_v60 = vmax.f32 %v2399_v8, 0.0  ;;  %v9419_v7 = vmax.f32 %v2400_v56, 0.0  ;;  %v1101_v3 = vadd.f32 %v941_v15, %v451_v34  ;;  %v1592_v32 = vmul.f32 %v9124_v24, %v14135_v61 }
  0xd4   :  { %v8574_v6 = vpop.eup %8573  ;;  %v2940_v12 = vadd.f32 %v2939_v1, %v2938_v16  ;;  %v2945_v25 = vadd.f32 %v2944_v38, %v2943_v20  ;;  %v1102_v13 = vadd.f32 %v942_v48, %v452_v43  ;;  %v2241_v9 = vmul.f32 %v9152_v30, %v14136_v19 }
  0xd5   :  { %v3752_v2 = vmul.f32 %v8574_v6, %v9289_v21  ;;  %v3753_v59 = vmul.f32 %v8574_v6, %v9293_v35  ;;  %v2719_v27 = vmul.f32 %v9417_v60, %v9417_v60  ;;  %v2720_v51 = vmul.f32 %v9419_v7, %v9419_v7 }
  0xd6   :  { %v3588_v18 = vmax.f32 %v2940_v12, 1e-24  ;;  %v2946_v22 = vrot.slane %v2945_v25, 2  ;;  %v1751_v5 = vadd.f32 %v1591_v36, %v1101_v3  ;;  %v1752_v54 = vadd.f32 %v1592_v32, %v1102_v13  ;;  %v14139_v3 = vld [vmem:[#allocation22_spill] sm:$0xff] }
  0xd7   :  { %v3936_v39 = vsel %vm2859_vm0, %v3752_v2, 0.0  ;;  %v3939_v44 = vsel %vm2859_vm0, %v3753_v59, 0.0  ;;  %v2950_v33 = vsel %vm2859_vm0, %v2719_v27, 0.0  ;;  %v2951_v21 = vsel %vm2859_vm0, %v2720_v51, 0.0 }
  0xd8   :  { %3937 = vadd.xlane.f32.xlu1 %v3936_v39  ;;  %8577 = vrsqrt.f32 %v3588_v18  ;;  %3940 = vadd.xlane.f32.xlu0 %v3939_v44  ;;  %v2947_v35 = vadd.f32 %v2946_v22, %v2945_v25  ;;  %v2952_v63 = vadd.f32 %v2951_v21, %v2950_v33  ;;  %v2242_v50 = vmul.f32 %v9150_v58, %v14136_v19  ;;  %v14140_v19 = vld [vmem:[#allocation25_spill] sm:$0xff] }
  0xd9   :  { %v2401_v31 = vadd.f32 %v2241_v9, %v1751_v5  ;;  %v453_v41 = vmul.f32 %v9054_v17, %v14137_v62  ;;  %v454_v37 = vmul.f32 %v9090_v45, %v14137_v62  ;;  %v943_v55 = vmul.f32 %v9052_v10, %v14138_v29  ;;  %v14141_v5 = vld [vmem:[#allocation23_spill] sm:$0xff] }
  0xda   :  { %v8576_v49 = vpop.eup %8575  ;;  %v2948_v4 = vrot.slane %v2947_v35, 1  ;;  %v2953_v16 = vrot.slane %v2952_v63, 4  ;;  %v2402_v20 = vadd.f32 %v2242_v50, %v1752_v54  ;;  %v944_v53 = vmul.f32 %v9088_v0, %v14138_v29 }
  0xdb   :  { %v3754_v34 = vmul.f32 %v8576_v49, %v9326_v47  ;;  %v3755_v8 = vmul.f32 %v8576_v49, %v9330_v28  ;;  %v9447_v56 = vmax.f32 %v2401_v31, 0.0  ;;  %v1103_v43 = vadd.f32 %v943_v55, %v453_v41 }
  0xdc   :  { %v2949_v57 = vadd.f32 %v2948_v4, %v2947_v35  ;;  %v2954_v15 = vadd.f32 %v2953_v16, %v2952_v63  ;;  %v9449_v1 = vmax.f32 %v2402_v20, 0.0  ;;  %v1104_v38 = vadd.f32 %v944_v53, %v454_v37  ;;  %v14142_v35 = vld [vmem:[#allocation24_spill] sm:$0xff] }
  0xdd   :  { %v3942_v48 = vsel %vm2859_vm0, %v3754_v34, 0.0  ;;  %v3945_v61 = vsel %vm2859_vm0, %v3755_v8, 0.0  ;;  %v2721_v36 = vmul.f32 %v9447_v56, %v9447_v56  ;;  %v1593_v47 = vmul.f32 %v9126_v26, %v14139_v3  ;;  %v14143_v8 = vld [vmem:[#allocation26_spill] sm:$0xff] }
  0xde   :  { %3943 = vadd.xlane.f32.xlu1 %v3942_v48  ;;  %v3589_v28 = vmax.f32 %v2949_v57, 1e-24  ;;  %3946 = vadd.xlane.f32.xlu0 %v3945_v61  ;;  %v2955_v32 = vrot.slane %v2954_v15, 2  ;;  %v2722_v6 = vmul.f32 %v9449_v1, %v9449_v1  ;;  %v1594_v12 = vmul.f32 %v9124_v24, %v14139_v3  ;;  %v14144_v48 = vld [vmem:[#allocation29_spill] sm:$0xff] }
  0xdf   :  { %v2959_v25 = vsel %vm2859_vm0, %v2721_v36, 0.0  ;;  %v1753_v13 = vadd.f32 %v1593_v47, %v1103_v43  ;;  %v2243_v9 = vmul.f32 %v9152_v30, %v14140_v19  ;;  %v2244_v2 = vmul.f32 %v9150_v58, %v14140_v19 }
  0xe0   :  { %8579 = vrsqrt.f32 %v3589_v28  ;;  %v2956_v59 = vadd.f32 %v2955_v32, %v2954_v15  ;;  %v2960_v27 = vsel %vm2859_vm0, %v2722_v6, 0.0  ;;  %v1754_v51 = vadd.f32 %v1594_v12, %v1104_v38  ;;  %v14145_v12 = vld [vmem:[#allocation27_spill] sm:$0xff] }
  0xe1   :  { %v2961_v18 = vadd.f32 %v2960_v27, %v2959_v25  ;;  %v2403_v22 = vadd.f32 %v2243_v9, %v1753_v13  ;;  %v455_v54 = vmul.f32 %v9054_v17, %v14141_v5  ;;  %v456_v39 = vmul.f32 %v9090_v45, %v14141_v5 }
  0xe2   :  { %v8578_v44 = vpop.eup %8577  ;;  %v2957_v33 = vrot.slane %v2956_v59, 1  ;;  %v2404_v21 = vadd.f32 %v2244_v2, %v1754_v51  ;;  %v945_v63 = vmul.f32 %v9052_v10, %v14142_v35  ;;  %v946_v50 = vmul.f32 %v9088_v0, %v14142_v35 }
  0xe3   :  { %v3756_v31 = vmul.f32 %v8578_v44, %v9351_v40  ;;  %v3757_v62 = vmul.f32 %v8578_v44, %v9359_v23  ;;  %v2962_v41 = vrot.slane %v2961_v18, 4  ;;  %v9477_v37 = vmax.f32 %v2403_v22, 0.0 }
  0xe4   :  { %v2958_v29 = vadd.f32 %v2957_v33, %v2956_v59  ;;  %v9479_v55 = vmax.f32 %v2404_v21, 0.0  ;;  %v1105_v49 = vadd.f32 %v945_v63, %v455_v54  ;;  %v1106_v4 = vadd.f32 %v946_v50, %v456_v39  ;;  %v14146_v59 = vld [vmem:[#allocation28_spill] sm:$0xff] }
  0xe5   :  { %v3948_v16 = vsel %vm2859_vm0, %v3756_v31, 0.0  ;;  %v3951_v20 = vsel %vm2859_vm0, %v3757_v62, 0.0  ;;  %v2963_v53 = vadd.f32 %v2962_v41, %v2961_v18  ;;  %v2723_v34 = vmul.f32 %v9477_v37, %v9477_v37  ;;  %v14147_v62 = vld [vmem:[#allocation30_spill] sm:$0xff] }
  0xe6   :  { %3949 = vadd.xlane.f32.xlu1 %v3948_v16  ;;  %v3590_v40 = vmax.f32 %v2958_v29, 1e-24  ;;  %3952 = vadd.xlane.f32.xlu0 %v3951_v20  ;;  %v2724_v23 = vmul.f32 %v9479_v55, %v9479_v55  ;;  %v1595_v43 = vmul.f32 %v9126_v26, %v14143_v8  ;;  %v1596_v57 = vmul.f32 %v9124_v24, %v14143_v8  ;;  %v14148_v16 = vld [vmem:[#allocation33_spill] sm:$0xff] }
  0xe7   :  { %v2964_v15 = vrot.slane %v2963_v53, 2  ;;  %v2968_v38 = vsel %vm2859_vm0, %v2723_v34, 0.0  ;;  %v2245_v61 = vmul.f32 %v9152_v30, %v14144_v48  ;;  %v2246_v36 = vmul.f32 %v9150_v58, %v14144_v48  ;;  %v14149_v48 = vld [vmem:[#allocation31_spill] sm:$0xff] }
  0xe8   :  { %8581 = vrsqrt.f32 %v3590_v40  ;;  %v2969_v3 = vsel %vm2859_vm0, %v2724_v23, 0.0  ;;  %v1755_v47 = vadd.f32 %v1595_v43, %v1105_v49  ;;  %v1756_v28 = vadd.f32 %v1596_v57, %v1106_v4 }
  0xe9   :  { %v2965_v32 = vadd.f32 %v2964_v15, %v2963_v53  ;;  %v2970_v6 = vadd.f32 %v2969_v3, %v2968_v38  ;;  %v457_v25 = vmul.f32 %v9054_v17, %v14145_v12  ;;  %v458_v13 = vmul.f32 %v9090_v45, %v14145_v12  ;;  %v14150_v3 = vld [vmem:[#allocation32_spill] sm:$0xff] }
  0xea   :  { %v8580_v19 = vpop.eup %8579  ;;  %v2405_v9 = vadd.f32 %v2245_v61, %v1755_v47  ;;  %v2406_v2 = vadd.f32 %v2246_v36, %v1756_v28  ;;  %v947_v27 = vmul.f32 %v9052_v10, %v14146_v59  ;;  %v948_v51 = vmul.f32 %v9088_v0, %v14146_v59 }
  0xeb   :  { %v3758_v18 = vmul.f32 %v8580_v19, %v9385_v14  ;;  %v2966_v22 = vrot.slane %v2965_v32, 1  ;;  %v3759_v5 = vmul.f32 %v8580_v19, %v9389_v42  ;;  %v2971_v54 = vrot.slane %v2970_v6, 4 }
  0xec   :  { %v9507_v39 = vmax.f32 %v2405_v9, 0.0  ;;  %v9509_v44 = vmax.f32 %v2406_v2, 0.0  ;;  %v1107_v33 = vadd.f32 %v947_v27, %v457_v25  ;;  %v1108_v21 = vadd.f32 %v948_v51, %v458_v13 }
  0xed   :  { %v3954_v35 = vsel %vm2859_vm0, %v3758_v18, 0.0  ;;  %v2967_v63 = vadd.f32 %v2966_v22, %v2965_v32  ;;  %v3957_v50 = vsel %vm2859_vm0, %v3759_v5, 0.0  ;;  %v2972_v31 = vadd.f32 %v2971_v54, %v2970_v6  ;;  %v14151_v22 = vld [vmem:[#allocation34_spill] sm:$0xff] }
  0xee   :  { %3955 = vadd.xlane.f32.xlu1 %v3954_v35  ;;  %3958 = vadd.xlane.f32.xlu0 %v3957_v50  ;;  %v2725_v14 = vmul.f32 %v9507_v39, %v9507_v39  ;;  %v2726_v42 = vmul.f32 %v9509_v44, %v9509_v44  ;;  %v1597_v41 = vmul.f32 %v9126_v26, %v14147_v62  ;;  %v14152_v35 = vld [vmem:[#allocation37_spill] sm:$0xff] }
  0xef   :  { %v3591_v29 = vmax.f32 %v2967_v63, 1e-24  ;;  %v2973_v49 = vrot.slane %v2972_v31, 2  ;;  %v1598_v4 = vmul.f32 %v9124_v24, %v14147_v62  ;;  %v2247_v20 = vmul.f32 %v9152_v30, %v14148_v16 }
  0xf0   :  { %v2977_v53 = vsel %vm2859_vm0, %v2725_v14, 0.0  ;;  %v2978_v34 = vsel %vm2859_vm0, %v2726_v42, 0.0  ;;  %v1757_v40 = vadd.f32 %v1597_v41, %v1107_v33  ;;  %v2248_v23 = vmul.f32 %v9150_v58, %v14148_v16 }
  0xf1   :  { %8583 = vrsqrt.f32 %v3591_v29  ;;  %v2974_v8 = vadd.f32 %v2973_v49, %v2972_v31  ;;  %v2979_v43 = vadd.f32 %v2978_v34, %v2977_v53  ;;  %v1758_v57 = vadd.f32 %v1598_v4, %v1108_v21  ;;  %v14153_v29 = vld [vmem:[#allocation35_spill] sm:$0xff]  ;;  %v14154_v53 = vld [vmem:[#allocation36_spill] sm:$0xff] }
  0xf2   :  { %v8582_v15 = vpop.eup %8581  ;;  %v2407_v38 = vadd.f32 %v2247_v20, %v1757_v40  ;;  %v459_v61 = vmul.f32 %v9054_v17, %v14149_v48  ;;  %v460_v36 = vmul.f32 %v9090_v45, %v14149_v48  ;;  %v949_v47 = vmul.f32 %v9052_v10, %v14150_v3 }
  0xf3   :  { %v3760_v28 = vmul.f32 %v8582_v15, %v9417_v60  ;;  %v2975_v32 = vrot.slane %v2974_v8, 1  ;;  %v3761_v6 = vmul.f32 %v8582_v15, %v9419_v7  ;;  %v2980_v12 = vrot.slane %v2979_v43, 4 }
  0xf4   :  { %v2408_v25 = vadd.f32 %v2248_v23, %v1758_v57  ;;  %v9535_v13 = vmax.f32 %v2407_v38, 0.0  ;;  %v950_v19 = vmul.f32 %v9088_v0, %v14150_v3  ;;  %v1109_v9 = vadd.f32 %v949_v47, %v459_v61 }
  0xf5   :  { %v3960_v2 = vsel %vm2859_vm0, %v3760_v28, 0.0  ;;  %v2976_v59 = vadd.f32 %v2975_v32, %v2974_v8  ;;  %v3963_v27 = vsel %vm2859_vm0, %v3761_v6, 0.0  ;;  %v2981_v51 = vadd.f32 %v2980_v12, %v2979_v43 }
  0xf6   :  { %3961 = vadd.xlane.f32.xlu1 %v3960_v2  ;;  %3964 = vadd.xlane.f32.xlu0 %v3963_v27  ;;  %v9541_v60 = vmax.f32 %v2408_v25, 0.0  ;;  %v2727_v7 = vmul.f32 %v9535_v13, %v9535_v13  ;;  %v1110_v18 = vadd.f32 %v950_v19, %v460_v36  ;;  %v1599_v5 = vmul.f32 %v9126_v26, %v14151_v22  ;;  %v14155_v25 = vld [vmem:[#allocation38_spill] sm:$0xff] }
  0xf7   :  { %v3592_v54 = vmax.f32 %v2976_v59, 1e-24  ;;  %v2982_v33 = vrot.slane %v2981_v51, 2  ;;  %v1600_v21 = vmul.f32 %v9124_v24, %v14151_v22  ;;  %v2249_v63 = vmul.f32 %v9152_v30, %v14152_v35  ;;  %v14157_v22 = vld [vmem:[#allocation39_spill] sm:$0xff] }
  0xf8   :  { %v2728_v50 = vmul.f32 %v9541_v60, %v9541_v60  ;;  %v2986_v31 = vsel %vm2859_vm0, %v2727_v7, 0.0  ;;  %v1759_v14 = vadd.f32 %v1599_v5, %v1109_v9  ;;  %v2250_v42 = vmul.f32 %v9150_v58, %v14152_v35  ;;  %v14156_v7 = vld [vmem:[#allocation6_spill] sm:$0xff] }
  0xf9   :  { %8585 = vrsqrt.f32 %v3592_v54  ;;  %v2983_v62 = vadd.f32 %v2982_v33, %v2981_v51  ;;  %v1760_v41 = vadd.f32 %v1600_v21, %v1110_v18  ;;  %v461_v49 = vmul.f32 %v9054_v17, %v14153_v29  ;;  %v8741_v51 = vld [vmem:[%s13874_s0 + $0x40] sm:$0xf] }
  0xfa   :  { %v2987_v4 = vsel %vm2859_vm0, %v2728_v50, 0.0  ;;  %v2409_v16 = vadd.f32 %v2249_v63, %v1759_v14  ;;  %v462_v20 = vmul.f32 %v9090_v45, %v14153_v29  ;;  %v951_v34 = vmul.f32 %v9052_v10, %v14154_v53 }
  0xfb   :  { %v8584_v40 = vpop.eup %8583  ;;  %v2984_v23 = vrot.slane %v2983_v62, 1  ;;  %v2988_v8 = vadd.f32 %v2987_v4, %v2986_v31  ;;  %v2410_v43 = vadd.f32 %v2250_v42, %v1760_v41  ;;  %v952_v57 = vmul.f32 %v9088_v0, %v14154_v53  ;;  %v14159_v4 = vld [vmem:[#allocation5_spill] sm:$0xff] }
  0xfc   :  { %v3762_v15 = vmul.f32 %v8584_v40, %v9447_v56  ;;  %v3763_v38 = vmul.f32 %v8584_v40, %v9449_v1  ;;  %v9567_v48 = vmax.f32 %v2409_v16, 0.0  ;;  %v1111_v61 = vadd.f32 %v951_v34, %v461_v49  ;;  %v8742_v49 = vld [vmem:[%s13874_s0 + $0x44] sm:$0xf] }
  0xfd   :  { %v2985_v36 = vadd.f32 %v2984_v23, %v2983_v62  ;;  %v2989_v3 = vrot.slane %v2988_v8, 4  ;;  %v9569_v47 = vmax.f32 %v2410_v43, 0.0  ;;  %v1112_v28 = vadd.f32 %v952_v57, %v462_v20  ;;  %v14158_v62 = vld [vmem:[#allocation40_spill] sm:$0xff] }
  0xfe   :  { %v3966_v32 = vsel %vm2859_vm0, %v3762_v15, 0.0  ;;  %v3969_v6 = vsel %vm2859_vm0, %v3763_v38, 0.0  ;;  %v2729_v12 = vmul.f32 %v9567_v48, %v9567_v48  ;;  %v1601_v56 = vmul.f32 %v9126_v26, %v14155_v25 }
  0xff   :  { %3967 = vadd.xlane.f32.xlu1 %v3966_v32  ;;  %v3593_v1 = vmax.f32 %v2985_v36, 1e-24  ;;  %3970 = vadd.xlane.f32.xlu0 %v3969_v6  ;;  %v2990_v19 = vadd.f32 %v2989_v3, %v2988_v8  ;;  %v2730_v9 = vmul.f32 %v9569_v47, %v9569_v47  ;;  %v1602_v2 = vmul.f32 %v9124_v24, %v14155_v25 }
 0x100   :  { %v2995_v59 = vsel %vm2859_vm0, %v2729_v12, 0.0  ;;  %v1761_v27 = vadd.f32 %v1601_v56, %v1111_v61  ;;  %v1956_v18 = vrot.slane %v8741_v51, %v14156_v7  ;;  %v463_v5 = vmul.f32 %v9054_v17, %v14157_v22 }
 0x101   :  { %8587 = vrsqrt.f32 %v3593_v1  ;;  %v2991_v54 = vrot.slane %v2990_v19, 2  ;;  %v2996_v33 = vsel %vm2859_vm0, %v2730_v9, 0.0  ;;  %v1762_v21 = vadd.f32 %v1602_v2, %v1112_v28 }
 0x102   :  { %v2997_v35 = vadd.f32 %v2996_v33, %v2995_v59  ;;  %v2251_v63 = vmul.f32 %v9152_v30, %v1956_v18  ;;  %v2252_v50 = vmul.f32 %v9150_v58, %v1956_v18  ;;  %v464_v31 = vmul.f32 %v9090_v45, %v14157_v22 }
 0x103   :  { %v8586_v14 = vpop.eup %8585  ;;  %v2992_v42 = vadd.f32 %v2991_v54, %v2990_v19  ;;  %v953_v41 = vmul.f32 %v9052_v10, %v14158_v62  ;;  %v954_v29 = vmul.f32 %v9088_v0, %v14158_v62  ;;  %v1310_v16 = vrot.slane %v8742_v49, %v14159_v4  ;;  %v14160_v54 = vld [vmem:[#allocation4_spill] sm:$0xff] }
 0x104   :  { %v3764_v20 = vmul.f32 %v8586_v14, %v9477_v37  ;;  %v3765_v53 = vmul.f32 %v8586_v14, %v9479_v55  ;;  %v2998_v34 = vrot.slane %v2997_v35, 4  ;;  %v2411_v40 = vadd.f32 %v2251_v63, %v1761_v27 }
 0x105   :  { %v2993_v23 = vrot.slane %v2992_v42, 1  ;;  %v2412_v8 = vadd.f32 %v2252_v50, %v1762_v21  ;;  %v1113_v43 = vadd.f32 %v953_v41, %v463_v5  ;;  %v1114_v57 = vadd.f32 %v954_v29, %v464_v31 }
 0x106   :  { %v3972_v15 = vsel %vm2859_vm0, %v3764_v20, 0.0  ;;  %v3975_v38 = vsel %vm2859_vm0, %v3765_v53, 0.0  ;;  %v2999_v61 = vadd.f32 %v2998_v34, %v2997_v35  ;;  %v9605_v36 = vmax.f32 %v2411_v40, 0.0 }
 0x107   :  { %3973 = vadd.xlane.f32.xlu1 %v3972_v15  ;;  %v2994_v3 = vadd.f32 %v2993_v23, %v2992_v42  ;;  %3976 = vadd.xlane.f32.xlu0 %v3975_v38  ;;  %v9607_v28 = vmax.f32 %v2412_v8, 0.0  ;;  %v1603_v37 = vmul.f32 %v9126_v26, %v1310_v16  ;;  %v1604_v55 = vmul.f32 %v9124_v24, %v1310_v16 }
 0x108   :  { %v3000_v32 = vrot.slane %v2999_v61, 2  ;;  %v2731_v6 = vmul.f32 %v9605_v36, %v9605_v36  ;;  %v1960_v12 = vrot.slane %v8742_v49, %v14156_v7  ;;  %v465_v25 = vmul.f32 %v9054_v17, %v9285_v46 }
 0x109   :  { %v3594_v56 = vmax.f32 %v2994_v3, 1e-24  ;;  %v2732_v1 = vmul.f32 %v9607_v28, %v9607_v28  ;;  %v1763_v19 = vadd.f32 %v1603_v37, %v1113_v43  ;;  %v1764_v9 = vadd.f32 %v1604_v55, %v1114_v57 }
 0x10a   :  { %v3001_v2 = vadd.f32 %v3000_v32, %v2999_v61  ;;  %v3004_v59 = vsel %vm2859_vm0, %v2731_v6, 0.0  ;;  %v2253_v27 = vmul.f32 %v9152_v30, %v1960_v12  ;;  %v2254_v51 = vmul.f32 %v9150_v58, %v1960_v12 }
 0x10b   :  { %v8588_v18 = vpop.eup %8587  ;;  %8589 = vrsqrt.f32 %v3594_v56  ;;  %v3005_v22 = vsel %vm2859_vm0, %v2732_v1, 0.0  ;;  %v466_v5 = vmul.f32 %v9090_v45, %v9285_v46  ;;  %v664_v33 = vrot.slane %v9270_v52, %v14160_v54 }
 0x10c   :  { %v3766_v21 = vmul.f32 %v8588_v18, %v9507_v39  ;;  %v3002_v35 = vrot.slane %v3001_v2, 1  ;;  %v3767_v63 = vmul.f32 %v8588_v18, %v9509_v44  ;;  %v3006_v50 = vadd.f32 %v3005_v22, %v3004_v59  ;;  %v30_v39 = vld [vmem:[%s13874_s0 + $0x4c] sm:$0xf] }
 0x10d   :  { %v2413_v31 = vadd.f32 %v2253_v27, %v1763_v19  ;;  %v2414_v14 = vadd.f32 %v2254_v51, %v1764_v9  ;;  %v955_v42 = vmul.f32 %v9052_v10, %v664_v33  ;;  %v956_v62 = vmul.f32 %v9088_v0, %v664_v33 }
 0x10e   :  { %v3978_v41 = vsel %vm2859_vm0, %v3766_v21, 0.0  ;;  %v3003_v29 = vadd.f32 %v3002_v35, %v3001_v2  ;;  %v3981_v46 = vsel %vm2859_vm0, %v3767_v63, 0.0  ;;  %v3007_v49 = vrot.slane %v3006_v50, 4 }
 0x10f   :  { %3979 = vadd.xlane.f32.xlu1 %v3978_v41  ;;  %3982 = vadd.xlane.f32.xlu0 %v3981_v46  ;;  %v9635_v44 = vmax.f32 %v2413_v31, 0.0  ;;  %v9637_v16 = vmax.f32 %v2414_v14, 0.0  ;;  %v1115_v20 = vadd.f32 %v955_v42, %v465_v25  ;;  %v1116_v53 = vadd.f32 %v956_v62, %v466_v5 }
 0x110   :  { %v3595_v34 = vmax.f32 %v3003_v29, 1e-24  ;;  %v3008_v40 = vadd.f32 %v3007_v49, %v3006_v50  ;;  %v1314_v23 = vrot.slane %v9270_v52, %v14159_v4  ;;  %v1964_v8 = vrot.slane %v9270_v52, %v14156_v7  ;;  %v31_v50 = vld [vmem:[%s13874_s0 + $0x50] sm:$0xf] }
 0x111   :  { %v2733_v43 = vmul.f32 %v9635_v44, %v9635_v44  ;;  %v2734_v57 = vmul.f32 %v9637_v16, %v9637_v16  ;;  %v178_v15 = vrot.slane %v30_v39, %v8786_v11  ;;  %v668_v38 = vrot.slane %v30_v39, %v14160_v54 }
 0x112   :  { %8591 = vrsqrt.f32 %v3595_v34  ;;  %v3009_v61 = vrot.slane %v3008_v40, 2  ;;  %v1605_v3 = vmul.f32 %v9126_v26, %v1314_v23  ;;  %v1606_v37 = vmul.f32 %v9124_v24, %v1314_v23 }
 0x113   :  { %v3013_v55 = vsel %vm2859_vm0, %v2733_v43, 0.0  ;;  %v3014_v52 = vsel %vm2859_vm0, %v2734_v57, 0.0  ;;  %v2255_v32 = vmul.f32 %v9152_v30, %v1964_v8  ;;  %v2256_v6 = vmul.f32 %v9150_v58, %v1964_v8 }
 0x114   :  { %v3010_v12 = vadd.f32 %v3009_v61, %v3008_v40  ;;  %v3015_v25 = vadd.f32 %v3014_v52, %v3013_v55  ;;  %v1765_v56 = vadd.f32 %v1605_v3, %v1115_v20  ;;  %v1766_v1 = vadd.f32 %v1606_v37, %v1116_v53 }
 0x115   :  { %v8590_v19 = vpop.eup %8589  ;;  %v467_v9 = vmul.f32 %v9054_v17, %v178_v15  ;;  %v468_v2 = vmul.f32 %v9090_v45, %v178_v15  ;;  %v957_v59 = vmul.f32 %v9052_v10, %v668_v38  ;;  %v958_v27 = vmul.f32 %v9088_v0, %v668_v38 }
 0x116   :  { %v3768_v51 = vmul.f32 %v8590_v19, %v9535_v13  ;;  %v3011_v18 = vrot.slane %v3010_v12, 1  ;;  %v3769_v22 = vmul.f32 %v8590_v19, %v9541_v60  ;;  %v3016_v5 = vrot.slane %v3015_v25, 4 }
 0x117   :  { %v2415_v33 = vadd.f32 %v2255_v32, %v1765_v56  ;;  %v2416_v21 = vadd.f32 %v2256_v6, %v1766_v1  ;;  %v1117_v35 = vadd.f32 %v957_v59, %v467_v9  ;;  %v1118_v63 = vadd.f32 %v958_v27, %v468_v2 }
 0x118   :  { %v3984_v31 = vsel %vm2859_vm0, %v3768_v51, 0.0  ;;  %v3012_v14 = vadd.f32 %v3011_v18, %v3010_v12  ;;  %v3987_v42 = vsel %vm2859_vm0, %v3769_v22, 0.0  ;;  %v3017_v62 = vadd.f32 %v3016_v5, %v3015_v25 }
 0x119   :  { %3985 = vadd.xlane.f32.xlu1 %v3984_v31  ;;  %3988 = vadd.xlane.f32.xlu0 %v3987_v42  ;;  %v9666_v13 = vmax.f32 %v2415_v33, 0.0  ;;  %v9668_v60 = vmax.f32 %v2416_v21, 0.0  ;;  %v1318_v41 = vrot.slane %v30_v39, %v14159_v4  ;;  %v1968_v29 = vrot.slane %v30_v39, %v14156_v7 }
 0x11a   :  { %v3596_v46 = vmax.f32 %v3012_v14, 1e-24  ;;  %v3018_v49 = vrot.slane %v3017_v62, 2  ;;  %v182_v20 = vrot.slane %v31_v50, %v8786_v11  ;;  %v672_v53 = vrot.slane %v31_v50, %v14160_v54  ;;  %v32_v14 = vld [vmem:[%s13874_s0 + $0x54] sm:$0xf] }
 0x11b   :  { %v2735_v34 = vmul.f32 %v9666_v13, %v9666_v13  ;;  %v2736_v40 = vmul.f32 %v9668_v60, %v9668_v60  ;;  %v1607_v23 = vmul.f32 %v9126_v26, %v1318_v41  ;;  %v1608_v8 = vmul.f32 %v9124_v24, %v1318_v41 }
 0x11c   :  { %v8592_v43 = vpop.eup %8591  ;;  %8593 = vrsqrt.f32 %v3596_v46  ;;  %v3019_v57 = vadd.f32 %v3018_v49, %v3017_v62  ;;  %v2257_v39 = vmul.f32 %v9152_v30, %v1968_v29  ;;  %v2258_v15 = vmul.f32 %v9150_v58, %v1968_v29 }
 0x11d   :  { %v3770_v38 = vmul.f32 %v8592_v43, %v9567_v48  ;;  %v3771_v61 = vmul.f32 %v8592_v43, %v9569_v47  ;;  %v3022_v3 = vsel %vm2859_vm0, %v2735_v34, 0.0  ;;  %v3023_v37 = vsel %vm2859_vm0, %v2736_v40, 0.0 }
 0x11e   :  { %v3020_v55 = vrot.slane %v3019_v57, 1  ;;  %v3024_v52 = vadd.f32 %v3023_v37, %v3022_v3  ;;  %v1767_v32 = vadd.f32 %v1607_v23, %v1117_v35  ;;  %v1768_v6 = vadd.f32 %v1608_v8, %v1118_v63  ;;  %v33_v37 = vld [vmem:[%s13874_s0 + $0x58] sm:$0xf] }
 0x11f   :  { %v3990_v12 = vsel %vm2859_vm0, %v3770_v38, 0.0  ;;  %v3993_v25 = vsel %vm2859_vm0, %v3771_v61, 0.0  ;;  %v469_v56 = vmul.f32 %v9054_v17, %v182_v20  ;;  %v470_v1 = vmul.f32 %v9090_v45, %v182_v20 }
 0x120   :  { %3991 = vadd.xlane.f32.xlu1 %v3990_v12  ;;  %v3021_v48 = vadd.f32 %v3020_v55, %v3019_v57  ;;  %3994 = vadd.xlane.f32.xlu0 %v3993_v25  ;;  %v3025_v47 = vrot.slane %v3024_v52, 4  ;;  %v2417_v19 = vadd.f32 %v2257_v39, %v1767_v32  ;;  %v2418_v9 = vadd.f32 %v2258_v15, %v1768_v6 }
 0x121   :  { %v959_v2 = vmul.f32 %v9052_v10, %v672_v53  ;;  %v960_v59 = vmul.f32 %v9088_v0, %v672_v53  ;;  %v1322_v27 = vrot.slane %v31_v50, %v14159_v4  ;;  %v1972_v51 = vrot.slane %v31_v50, %v14156_v7 }
 0x122   :  { %v3597_v18 = vmax.f32 %v3021_v48, 1e-24  ;;  %v3026_v22 = vadd.f32 %v3025_v47, %v3024_v52  ;;  %v9694_v5 = vmax.f32 %v2417_v19, 0.0  ;;  %v9696_v33 = vmax.f32 %v2418_v9, 0.0 }
 0x123   :  { %v1119_v21 = vadd.f32 %v959_v2, %v469_v56  ;;  %v1120_v35 = vadd.f32 %v960_v59, %v470_v1  ;;  %v1609_v63 = vmul.f32 %v9126_v26, %v1322_v27  ;;  %v1610_v31 = vmul.f32 %v9124_v24, %v1322_v27 }
 0x124   :  { %8595 = vrsqrt.f32 %v3597_v18  ;;  %v3027_v42 = vrot.slane %v3026_v22, 2  ;;  %v2737_v50 = vmul.f32 %v9694_v5, %v9694_v5  ;;  %v2738_v62 = vmul.f32 %v9696_v33, %v9696_v33 }
 0x125   :  { %v1769_v41 = vadd.f32 %v1609_v63, %v1119_v21  ;;  %v1770_v29 = vadd.f32 %v1610_v31, %v1120_v35  ;;  %v2259_v46 = vmul.f32 %v9152_v30, %v1972_v51  ;;  %v2260_v49 = vmul.f32 %v9150_v58, %v1972_v51 }
 0x126   :  { %v8594_v20 = vpop.eup %8593  ;;  %v3028_v53 = vadd.f32 %v3027_v42, %v3026_v22  ;;  %v3031_v34 = vsel %vm2859_vm0, %v2737_v50, 0.0  ;;  %v3032_v40 = vsel %vm2859_vm0, %v2738_v62, 0.0  ;;  %v186_v23 = vrot.slane %v32_v14, %v8786_v11 }
 0x127   :  { %v3772_v8 = vmul.f32 %v8594_v20, %v9605_v36  ;;  %v3773_v43 = vmul.f32 %v8594_v20, %v9607_v28  ;;  %v3033_v57 = vadd.f32 %v3032_v40, %v3031_v34  ;;  %v2419_v39 = vadd.f32 %v2259_v46, %v1769_v41 }
 0x128   :  { %v3029_v15 = vrot.slane %v3028_v53, 1  ;;  %v2420_v38 = vadd.f32 %v2260_v49, %v1770_v29  ;;  %v471_v61 = vmul.f32 %v9054_v17, %v186_v23  ;;  %v472_v3 = vmul.f32 %v9090_v45, %v186_v23 }
 0x129   :  { %v3996_v55 = vsel %vm2859_vm0, %v3772_v8, 0.0  ;;  %v3999_v52 = vsel %vm2859_vm0, %v3773_v43, 0.0  ;;  %v3034_v32 = vrot.slane %v3033_v57, 4  ;;  %v9721_v36 = vmax.f32 %v2419_v39, 0.0 }
 0x12a   :  { %3997 = vadd.xlane.f32.xlu1 %v3996_v55  ;;  %v3030_v28 = vadd.f32 %v3029_v15, %v3028_v53  ;;  %4000 = vadd.xlane.f32.xlu0 %v3999_v52  ;;  %v9723_v6 = vmax.f32 %v2420_v38, 0.0  ;;  %v676_v12 = vrot.slane %v32_v14, %v14160_v54  ;;  %v1326_v25 = vrot.slane %v32_v14, %v14159_v4 }
 0x12b   :  { %v3035_v56 = vadd.f32 %v3034_v32, %v3033_v57  ;;  %v2739_v1 = vmul.f32 %v9721_v36, %v9721_v36  ;;  %v1976_v48 = vrot.slane %v32_v14, %v14156_v7  ;;  %v190_v47 = vrot.slane %v33_v37, %v8786_v11 }
 0x12c   :  { %v3598_v19 = vmax.f32 %v3030_v28, 1e-24  ;;  %v2740_v9 = vmul.f32 %v9723_v6, %v9723_v6  ;;  %v961_v2 = vmul.f32 %v9052_v10, %v676_v12  ;;  %v962_v59 = vmul.f32 %v9088_v0, %v676_v12 }
 0x12d   :  { %v3036_v27 = vrot.slane %v3035_v56, 2  ;;  %v3040_v51 = vsel %vm2859_vm0, %v2739_v1, 0.0  ;;  %v1611_v18 = vmul.f32 %v9126_v26, %v1326_v25  ;;  %v1612_v22 = vmul.f32 %v9124_v24, %v1326_v25 }
 0x12e   :  { %v8596_v21 = vpop.eup %8595  ;;  %8597 = vrsqrt.f32 %v3598_v19  ;;  %v3041_v35 = vsel %vm2859_vm0, %v2740_v9, 0.0  ;;  %v1121_v63 = vadd.f32 %v961_v2, %v471_v61  ;;  %v1122_v31 = vadd.f32 %v962_v59, %v472_v3  ;;  %v34_v19 = vld [vmem:[%s13874_s0 + $0x5c] sm:$0xf] }
 0x12f   :  { %v3774_v14 = vmul.f32 %v8596_v21, %v9635_v44  ;;  %v3037_v42 = vadd.f32 %v3036_v27, %v3035_v56  ;;  %v3775_v50 = vmul.f32 %v8596_v21, %v9637_v16  ;;  %v3042_v62 = vadd.f32 %v3041_v35, %v3040_v51 }
 0x130   :  { %v1771_v41 = vadd.f32 %v1611_v18, %v1121_v63  ;;  %v1772_v29 = vadd.f32 %v1612_v22, %v1122_v31  ;;  %v2261_v46 = vmul.f32 %v9152_v30, %v1976_v48  ;;  %v2262_v49 = vmul.f32 %v9150_v58, %v1976_v48 }
 0x131   :  { %v4002_v20 = vsel %vm2859_vm0, %v3774_v14, 0.0  ;;  %v3038_v53 = vrot.slane %v3037_v42, 1  ;;  %v4005_v34 = vsel %vm2859_vm0, %v3775_v50, 0.0  ;;  %v3043_v40 = vrot.slane %v3042_v62, 4 }
 0x132   :  { %4003 = vadd.xlane.f32.xlu1 %v4002_v20  ;;  %4006 = vadd.xlane.f32.xlu0 %v4005_v34  ;;  %v2421_v23 = vadd.f32 %v2261_v46, %v1771_v41  ;;  %v2422_v44 = vadd.f32 %v2262_v49, %v1772_v29  ;;  %v473_v8 = vmul.f32 %v9054_v17, %v190_v47 }
 0x133   :  { %v3039_v16 = vadd.f32 %v3038_v53, %v3037_v42  ;;  %v3044_v43 = vadd.f32 %v3043_v40, %v3042_v62  ;;  %v474_v57 = vmul.f32 %v9090_v45, %v190_v47  ;;  %v680_v39 = vrot.slane %v33_v37, %v14160_v54 }
 0x134   :  { %v9748_v15 = vmax.f32 %v2421_v23, 0.0  ;;  %v9750_v38 = vmax.f32 %v2422_v44, 0.0  ;;  %v1330_v61 = vrot.slane %v33_v37, %v14159_v4  ;;  %v1980_v3 = vrot.slane %v33_v37, %v14156_v7 }
 0x135   :  { %v3599_v55 = vmax.f32 %v3039_v16, 1e-24  ;;  %v3045_v52 = vrot.slane %v3044_v43, 2  ;;  %v963_v32 = vmul.f32 %v9052_v10, %v680_v39  ;;  %v964_v28 = vmul.f32 %v9088_v0, %v680_v39 }
 0x136   :  { %v2741_v12 = vmul.f32 %v9748_v15, %v9748_v15  ;;  %v2742_v25 = vmul.f32 %v9750_v38, %v9750_v38  ;;  %v1613_v56 = vmul.f32 %v9126_v26, %v1330_v61  ;;  %v1614_v1 = vmul.f32 %v9124_v24, %v1330_v61 }
 0x137   :  { %8599 = vrsqrt.f32 %v3599_v55  ;;  %v3046_v48 = vadd.f32 %v3045_v52, %v3044_v43  ;;  %v1123_v47 = vadd.f32 %v963_v32, %v473_v8  ;;  %v1124_v37 = vadd.f32 %v964_v28, %v474_v57 }
 0x138   :  { %v8598_v9 = vpop.eup %8597  ;;  %v3049_v2 = vsel %vm2859_vm0, %v2741_v12, 0.0  ;;  %v3050_v59 = vsel %vm2859_vm0, %v2742_v25, 0.0  ;;  %v2263_v27 = vmul.f32 %v9152_v30, %v1980_v3  ;;  %v2264_v51 = vmul.f32 %v9150_v58, %v1980_v3 }
 0x139   :  { %v3776_v18 = vmul.f32 %v8598_v9, %v9666_v13  ;;  %v3047_v22 = vrot.slane %v3046_v48, 1  ;;  %v3777_v21 = vmul.f32 %v8598_v9, %v9668_v60  ;;  %v3051_v35 = vadd.f32 %v3050_v59, %v3049_v2 }
 0x13a   :  { %v1773_v63 = vadd.f32 %v1613_v56, %v1123_v47  ;;  %v1774_v31 = vadd.f32 %v1614_v1, %v1124_v37  ;;  %v194_v14 = vrot.slane %v34_v19, %v8786_v11  ;;  %v684_v42 = vrot.slane %v34_v19, %v14160_v54  ;;  %v35_v56 = vld [vmem:[%s13874_s0 + $0x60] sm:$0xf] }
 0x13b   :  { %v4008_v50 = vsel %vm2859_vm0, %v3776_v18, 0.0  ;;  %v3048_v62 = vadd.f32 %v3047_v22, %v3046_v48  ;;  %v4011_v41 = vsel %vm2859_vm0, %v3777_v21, 0.0  ;;  %v3052_v29 = vrot.slane %v3051_v35, 4 }
 0x13c   :  { %4009 = vadd.xlane.f32.xlu1 %v4008_v50  ;;  %4012 = vadd.xlane.f32.xlu0 %v4011_v41  ;;  %v2423_v46 = vadd.f32 %v2263_v27, %v1773_v63  ;;  %v2424_v13 = vadd.f32 %v2264_v51, %v1774_v31  ;;  %v475_v49 = vmul.f32 %v9054_v17, %v194_v14 }
 0x13d   :  { %v3600_v60 = vmax.f32 %v3048_v62, 1e-24  ;;  %v3053_v20 = vadd.f32 %v3052_v29, %v3051_v35  ;;  %v476_v53 = vmul.f32 %v9090_v45, %v194_v14  ;;  %v965_v34 = vmul.f32 %v9052_v10, %v684_v42 }
 0x13e   :  { %v9778_v40 = vmax.f32 %v2423_v46, 0.0  ;;  %v9780_v23 = vmax.f32 %v2424_v13, 0.0  ;;  %v966_v44 = vmul.f32 %v9088_v0, %v684_v42  ;;  %v1334_v8 = vrot.slane %v34_v19, %v14159_v4 }
 0x13f   :  { %8601 = vrsqrt.f32 %v3600_v60  ;;  %v3054_v16 = vrot.slane %v3053_v20, 2  ;;  %v1125_v43 = vadd.f32 %v965_v34, %v475_v49  ;;  %v1984_v57 = vrot.slane %v34_v19, %v14156_v7 }
 0x140   :  { %v2743_v39 = vmul.f32 %v9778_v40, %v9778_v40  ;;  %v2744_v61 = vmul.f32 %v9780_v23, %v9780_v23  ;;  %v1126_v3 = vadd.f32 %v966_v44, %v476_v53  ;;  %v1615_v55 = vmul.f32 %v9126_v26, %v1334_v8 }
 0x141   :  { %v8600_v52 = vpop.eup %8599  ;;  %v3055_v32 = vadd.f32 %v3054_v16, %v3053_v20  ;;  %v1616_v28 = vmul.f32 %v9124_v24, %v1334_v8  ;;  %v2265_v12 = vmul.f32 %v9152_v30, %v1984_v57  ;;  %v2266_v25 = vmul.f32 %v9150_v58, %v1984_v57 }
 0x142   :  { %v3778_v1 = vmul.f32 %v8600_v52, %v9694_v5  ;;  %v3779_v48 = vmul.f32 %v8600_v52, %v9696_v33  ;;  %v3058_v47 = vsel %vm2859_vm0, %v2743_v39, 0.0  ;;  %v3059_v37 = vsel %vm2859_vm0, %v2744_v61, 0.0  ;;  %v36_v39 = vld [vmem:[%s13874_s0 + $0x64] sm:$0xf] }
 0x143   :  { %v3056_v19 = vrot.slane %v3055_v32, 1  ;;  %v3060_v9 = vadd.f32 %v3059_v37, %v3058_v47  ;;  %v1775_v2 = vadd.f32 %v1615_v55, %v1125_v43  ;;  %v1776_v59 = vadd.f32 %v1616_v28, %v1126_v3 }
 0x144   :  { %v4014_v27 = vsel %vm2859_vm0, %v3778_v1, 0.0  ;;  %v4017_v51 = vsel %vm2859_vm0, %v3779_v48, 0.0  ;;  %v198_v18 = vrot.slane %v35_v56, %v8786_v11  ;;  %v688_v22 = vrot.slane %v35_v56, %v14160_v54 }
 0x145   :  { %4015 = vadd.xlane.f32.xlu1 %v4014_v27  ;;  %v3057_v5 = vadd.f32 %v3056_v19, %v3055_v32  ;;  %4018 = vadd.xlane.f32.xlu0 %v4017_v51  ;;  %v3061_v33 = vrot.slane %v3060_v9, 4  ;;  %v2425_v21 = vadd.f32 %v2265_v12, %v1775_v2  ;;  %v2426_v35 = vadd.f32 %v2266_v25, %v1776_v59 }
 0x146   :  { %v477_v63 = vmul.f32 %v9054_v17, %v198_v18  ;;  %v478_v31 = vmul.f32 %v9090_v45, %v198_v18  ;;  %v967_v14 = vmul.f32 %v9052_v10, %v688_v22  ;;  %v968_v42 = vmul.f32 %v9088_v0, %v688_v22 }
 0x147   :  { %v3601_v50 = vmax.f32 %v3057_v5, 1e-24  ;;  %v3062_v62 = vadd.f32 %v3061_v33, %v3060_v9  ;;  %v9808_v41 = vmax.f32 %v2425_v21, 0.0  ;;  %v9810_v29 = vmax.f32 %v2426_v35, 0.0  ;;  %v37_v33 = vld [vmem:[%s13874_s0 + $0x68] sm:$0xf] }
 0x148   :  { %v1127_v46 = vadd.f32 %v967_v14, %v477_v63  ;;  %v1128_v13 = vadd.f32 %v968_v42, %v478_v31  ;;  %v1338_v49 = vrot.slane %v35_v56, %v14159_v4  ;;  %v1988_v60 = vrot.slane %v35_v56, %v14156_v7 }
 0x149   :  { %v8602_v20 = vpop.eup %8601  ;;  %8603 = vrsqrt.f32 %v3601_v50  ;;  %v3063_v53 = vrot.slane %v3062_v62, 2  ;;  %v2745_v34 = vmul.f32 %v9808_v41, %v9808_v41  ;;  %v2746_v44 = vmul.f32 %v9810_v29, %v9810_v29 }
 0x14a   :  { %v3780_v8 = vmul.f32 %v8602_v20, %v9721_v36  ;;  %v3781_v16 = vmul.f32 %v8602_v20, %v9723_v6  ;;  %v1617_v43 = vmul.f32 %v9126_v26, %v1338_v49  ;;  %v1618_v57 = vmul.f32 %v9124_v24, %v1338_v49 }
 0x14b   :  { %v3064_v61 = vadd.f32 %v3063_v53, %v3062_v62  ;;  %v3067_v3 = vsel %vm2859_vm0, %v2745_v34, 0.0  ;;  %v3068_v55 = vsel %vm2859_vm0, %v2746_v44, 0.0  ;;  %v2267_v52 = vmul.f32 %v9152_v30, %v1988_v60 }
 0x14c   :  { %v4020_v32 = vsel %vm2859_vm0, %v3780_v8, 0.0  ;;  %v4023_v36 = vsel %vm2859_vm0, %v3781_v16, 0.0  ;;  %v3069_v6 = vadd.f32 %v3068_v55, %v3067_v3  ;;  %v1777_v28 = vadd.f32 %v1617_v43, %v1127_v46 }
 0x14d   :  { %4021 = vadd.xlane.f32.xlu1 %v4020_v32  ;;  %v3065_v12 = vrot.slane %v3064_v61, 1  ;;  %4024 = vadd.xlane.f32.xlu0 %v4023_v36  ;;  %v1778_v25 = vadd.f32 %v1618_v57, %v1128_v13  ;;  %v2268_v56 = vmul.f32 %v9150_v58, %v1988_v60  ;;  %v202_v1 = vrot.slane %v36_v39, %v8786_v11 }
 0x14e   :  { %v3070_v48 = vrot.slane %v3069_v6, 4  ;;  %v2427_v47 = vadd.f32 %v2267_v52, %v1777_v28  ;;  %v692_v37 = vrot.slane %v36_v39, %v14160_v54  ;;  %v1342_v19 = vrot.slane %v36_v39, %v14159_v4 }
 0x14f   :  { %v3066_v9 = vadd.f32 %v3065_v12, %v3064_v61  ;;  %v2428_v2 = vadd.f32 %v2268_v56, %v1778_v25  ;;  %v479_v59 = vmul.f32 %v9054_v17, %v202_v1  ;;  %v480_v27 = vmul.f32 %v9090_v45, %v202_v1 }
 0x150   :  { %v3071_v51 = vadd.f32 %v3070_v48, %v3069_v6  ;;  %v9836_v18 = vmax.f32 %v2427_v47, 0.0  ;;  %v969_v22 = vmul.f32 %v9052_v10, %v692_v37  ;;  %v970_v5 = vmul.f32 %v9088_v0, %v692_v37 }
 0x151   :  { %v3602_v21 = vmax.f32 %v3066_v9, 1e-24  ;;  %v9843_v35 = vmax.f32 %v2428_v2, 0.0  ;;  %v1619_v63 = vmul.f32 %v9126_v26, %v1342_v19  ;;  %v1620_v31 = vmul.f32 %v9124_v24, %v1342_v19 }
 0x152   :  { %v3072_v14 = vrot.slane %v3071_v51, 2  ;;  %v2747_v42 = vmul.f32 %v9836_v18, %v9836_v18  ;;  %v1129_v50 = vadd.f32 %v969_v22, %v479_v59  ;;  %v1130_v62 = vadd.f32 %v970_v5, %v480_v27 }
 0x153   :  { %v8604_v46 = vpop.eup %8603  ;;  %8605 = vrsqrt.f32 %v3602_v21  ;;  %v2748_v13 = vmul.f32 %v9843_v35, %v9843_v35  ;;  %v1992_v49 = vrot.slane %v36_v39, %v14156_v7  ;;  %v206_v60 = vrot.slane %v37_v33, %v8786_v11 }
 0x154   :  { %v3782_v20 = vmul.f32 %v8604_v46, %v9748_v15  ;;  %v3073_v53 = vadd.f32 %v3072_v14, %v3071_v51  ;;  %v3783_v34 = vmul.f32 %v8604_v46, %v9750_v38  ;;  %v3076_v44 = vsel %vm2859_vm0, %v2747_v42, 0.0 }
 0x155   :  { %v3077_v8 = vsel %vm2859_vm0, %v2748_v13, 0.0  ;;  %v1779_v16 = vadd.f32 %v1619_v63, %v1129_v50  ;;  %v1780_v43 = vadd.f32 %v1620_v31, %v1130_v62  ;;  %v2269_v57 = vmul.f32 %v9152_v30, %v1992_v49 }
 0x156   :  { %v4026_v61 = vsel %vm2859_vm0, %v3782_v20, 0.0  ;;  %v3074_v3 = vrot.slane %v3073_v53, 1  ;;  %v4029_v39 = vsel %vm2859_vm0, %v3783_v34, 0.0  ;;  %v3078_v55 = vadd.f32 %v3077_v8, %v3076_v44 }
 0x157   :  { %4027 = vadd.xlane.f32.xlu1 %v4026_v61  ;;  %4030 = vadd.xlane.f32.xlu0 %v4029_v39  ;;  %v2270_v15 = vmul.f32 %v9150_v58, %v1992_v49  ;;  %v2429_v52 = vadd.f32 %v2269_v57, %v1779_v16  ;;  %v481_v38 = vmul.f32 %v9054_v17, %v206_v60 }
 0x158   :  { %v3075_v32 = vadd.f32 %v3074_v3, %v3073_v53  ;;  %v3079_v36 = vrot.slane %v3078_v55, 4  ;;  %v482_v6 = vmul.f32 %v9090_v45, %v206_v60  ;;  %v696_v28 = vrot.slane %v37_v33, %v14160_v54 }
 0x159   :  { %v2430_v12 = vadd.f32 %v2270_v15, %v1780_v43  ;;  %v9864_v25 = vmax.f32 %v2429_v52, 0.0  ;;  %v1346_v56 = vrot.slane %v37_v33, %v14159_v4  ;;  %v1996_v1 = vrot.slane %v37_v33, %v14156_v7  ;;  %v38_v33 = vld [vmem:[%s13874_s0 + $0x6c] sm:$0xf] }
 0x15a   :  { %v3603_v48 = vmax.f32 %v3075_v32, 1e-24  ;;  %v3080_v47 = vadd.f32 %v3079_v36, %v3078_v55  ;;  %v971_v37 = vmul.f32 %v9052_v10, %v696_v28  ;;  %v972_v19 = vmul.f32 %v9088_v0, %v696_v28 }
 0x15b   :  { %v9870_v9 = vmax.f32 %v2430_v12, 0.0  ;;  %v2749_v2 = vmul.f32 %v9864_v25, %v9864_v25  ;;  %v1621_v59 = vmul.f32 %v9126_v26, %v1346_v56  ;;  %v1622_v27 = vmul.f32 %v9124_v24, %v1346_v56 }
 0x15c   :  { %8607 = vrsqrt.f32 %v3603_v48  ;;  %v3081_v51 = vrot.slane %v3080_v47, 2  ;;  %v1131_v22 = vadd.f32 %v971_v37, %v481_v38  ;;  %v1132_v5 = vadd.f32 %v972_v19, %v482_v6 }
 0x15d   :  { %v8606_v21 = vpop.eup %8605  ;;  %v2750_v63 = vmul.f32 %v9870_v9, %v9870_v9  ;;  %v3085_v31 = vsel %vm2859_vm0, %v2749_v2, 0.0  ;;  %v2271_v14 = vmul.f32 %v9152_v30, %v1996_v1  ;;  %v2272_v42 = vmul.f32 %v9150_v58, %v1996_v1 }
 0x15e   :  { %v3784_v50 = vmul.f32 %v8606_v21, %v9778_v40  ;;  %v3082_v62 = vadd.f32 %v3081_v51, %v3080_v47  ;;  %v3785_v46 = vmul.f32 %v8606_v21, %v9780_v23  ;;  %v1781_v13 = vadd.f32 %v1621_v59, %v1131_v22  ;;  %v39_v59 = vld [vmem:[%s13874_s0 + $0x70] sm:$0xf] }
 0x15f   :  { %v3086_v49 = vsel %vm2859_vm0, %v2750_v63, 0.0  ;;  %v1782_v60 = vadd.f32 %v1622_v27, %v1132_v5  ;;  %v210_v20 = vrot.slane %v38_v33, %v8786_v11  ;;  %v700_v53 = vrot.slane %v38_v33, %v14160_v54 }
 0x160   :  { %v4032_v34 = vsel %vm2859_vm0, %v3784_v50, 0.0  ;;  %v3083_v44 = vrot.slane %v3082_v62, 1  ;;  %v4035_v8 = vsel %vm2859_vm0, %v3785_v46, 0.0  ;;  %v3087_v16 = vadd.f32 %v3086_v49, %v3085_v31 }
 0x161   :  { %4033 = vadd.xlane.f32.xlu1 %v4032_v34  ;;  %4036 = vadd.xlane.f32.xlu0 %v4035_v8  ;;  %v2431_v40 = vadd.f32 %v2271_v14, %v1781_v13  ;;  %v2432_v43 = vadd.f32 %v2272_v42, %v1782_v60  ;;  %v483_v23 = vmul.f32 %v9054_v17, %v210_v20 }
 0x162   :  { %v3084_v57 = vadd.f32 %v3083_v44, %v3082_v62  ;;  %v3088_v61 = vrot.slane %v3087_v16, 4  ;;  %v484_v3 = vmul.f32 %v9090_v45, %v210_v20  ;;  %v973_v39 = vmul.f32 %v9052_v10, %v700_v53 }
 0x163   :  { %v9894_v55 = vmax.f32 %v2431_v40, 0.0  ;;  %v9896_v15 = vmax.f32 %v2432_v43, 0.0  ;;  %v974_v52 = vmul.f32 %v9088_v0, %v700_v53  ;;  %v1350_v38 = vrot.slane %v38_v33, %v14159_v4  ;;  %v40_v40 = vld [vmem:[%s13874_s0 + $0x74] sm:$0xf] }
 0x164   :  { %v3604_v32 = vmax.f32 %v3084_v57, 1e-24  ;;  %v3089_v36 = vadd.f32 %v3088_v61, %v3087_v16  ;;  %v1133_v6 = vadd.f32 %v973_v39, %v483_v23  ;;  %v2000_v28 = vrot.slane %v38_v33, %v14156_v7 }
 0x165   :  { %v2751_v12 = vmul.f32 %v9894_v55, %v9894_v55  ;;  %v2752_v56 = vmul.f32 %v9896_v15, %v9896_v15  ;;  %v1134_v1 = vadd.f32 %v974_v52, %v484_v3  ;;  %v1623_v48 = vmul.f32 %v9126_v26, %v1350_v38 }
 0x166   :  { %v8608_v47 = vpop.eup %8607  ;;  %8609 = vrsqrt.f32 %v3604_v32  ;;  %v3090_v37 = vrot.slane %v3089_v36, 2  ;;  %v1624_v19 = vmul.f32 %v9124_v24, %v1350_v38  ;;  %v2273_v2 = vmul.f32 %v9152_v30, %v2000_v28 }
 0x167   :  { %v3786_v27 = vmul.f32 %v8608_v47, %v9808_v41  ;;  %v3787_v51 = vmul.f32 %v8608_v47, %v9810_v29  ;;  %v3094_v22 = vsel %vm2859_vm0, %v2751_v12, 0.0  ;;  %v3095_v5 = vsel %vm2859_vm0, %v2752_v56, 0.0 }
 0x168   :  { %v3091_v33 = vadd.f32 %v3090_v37, %v3089_v36  ;;  %v3096_v21 = vadd.f32 %v3095_v5, %v3094_v22  ;;  %v1783_v63 = vadd.f32 %v1623_v48, %v1133_v6  ;;  %v1784_v31 = vadd.f32 %v1624_v19, %v1134_v1  ;;  %v41_v5 = vld [vmem:[%s13874_s0 + $0x78] sm:$0xf] }
 0x169   :  { %v4038_v14 = vsel %vm2859_vm0, %v3786_v27, 0.0  ;;  %v4041_v42 = vsel %vm2859_vm0, %v3787_v51, 0.0  ;;  %v2274_v50 = vmul.f32 %v9150_v58, %v2000_v28  ;;  %v214_v62 = vrot.slane %v39_v59, %v8786_v11 }
 0x16a   :  { %4039 = vadd.xlane.f32.xlu1 %v4038_v14  ;;  %v3092_v41 = vrot.slane %v3091_v33, 1  ;;  %4042 = vadd.xlane.f32.xlu0 %v4041_v42  ;;  %v3097_v29 = vrot.slane %v3096_v21, 4  ;;  %v2433_v46 = vadd.f32 %v2273_v2, %v1783_v63  ;;  %v704_v13 = vrot.slane %v39_v59, %v14160_v54 }
 0x16b   :  { %v2434_v49 = vadd.f32 %v2274_v50, %v1784_v31  ;;  %v485_v60 = vmul.f32 %v9054_v17, %v214_v62  ;;  %v486_v20 = vmul.f32 %v9090_v45, %v214_v62  ;;  %v1354_v53 = vrot.slane %v39_v59, %v14159_v4 }
 0x16c   :  { %v3093_v34 = vadd.f32 %v3092_v41, %v3091_v33  ;;  %v3098_v44 = vadd.f32 %v3097_v29, %v3096_v21  ;;  %v9923_v8 = vmax.f32 %v2433_v46, 0.0  ;;  %v975_v16 = vmul.f32 %v9052_v10, %v704_v13 }
 0x16d   :  { %v9929_v43 = vmax.f32 %v2434_v49, 0.0  ;;  %v976_v23 = vmul.f32 %v9088_v0, %v704_v13  ;;  %v1625_v57 = vmul.f32 %v9126_v26, %v1354_v53  ;;  %v1626_v61 = vmul.f32 %v9124_v24, %v1354_v53 }
 0x16e   :  { %v3605_v3 = vmax.f32 %v3093_v34, 1e-24  ;;  %v3099_v39 = vrot.slane %v3098_v44, 2  ;;  %v2753_v52 = vmul.f32 %v9923_v8, %v9923_v8  ;;  %v1135_v38 = vadd.f32 %v975_v16, %v485_v60 }
 0x16f   :  { %v2754_v32 = vmul.f32 %v9929_v43, %v9929_v43  ;;  %v1136_v36 = vadd.f32 %v976_v23, %v486_v20  ;;  %v2004_v6 = vrot.slane %v39_v59, %v14156_v7  ;;  %v218_v28 = vrot.slane %v40_v40, %v8786_v11 }
 0x170   :  { %v8610_v12 = vpop.eup %8609  ;;  %8611 = vrsqrt.f32 %v3605_v3  ;;  %v3100_v56 = vadd.f32 %v3099_v39, %v3098_v44  ;;  %v3103_v1 = vsel %vm2859_vm0, %v2753_v52, 0.0  ;;  %v1785_v48 = vadd.f32 %v1625_v57, %v1135_v38 }
 0x171   :  { %v3788_v47 = vmul.f32 %v8610_v12, %v9836_v18  ;;  %v3789_v37 = vmul.f32 %v8610_v12, %v9843_v35  ;;  %v3104_v19 = vsel %vm2859_vm0, %v2754_v32, 0.0  ;;  %v1786_v2 = vadd.f32 %v1626_v61, %v1136_v36 }
 0x172   :  { %v3101_v27 = vrot.slane %v3100_v56, 1  ;;  %v3105_v51 = vadd.f32 %v3104_v19, %v3103_v1  ;;  %v2275_v22 = vmul.f32 %v9152_v30, %v2004_v6  ;;  %v2276_v59 = vmul.f32 %v9150_v58, %v2004_v6 }
 0x173   :  { %v4044_v33 = vsel %vm2859_vm0, %v3788_v47, 0.0  ;;  %v4047_v21 = vsel %vm2859_vm0, %v3789_v37, 0.0  ;;  %v487_v18 = vmul.f32 %v9054_v17, %v218_v28  ;;  %v488_v35 = vmul.f32 %v9090_v45, %v218_v28 }
 0x174   :  { %4045 = vadd.xlane.f32.xlu1 %v4044_v33  ;;  %v3102_v63 = vadd.f32 %v3101_v27, %v3100_v56  ;;  %4048 = vadd.xlane.f32.xlu0 %v4047_v21  ;;  %v3106_v31 = vrot.slane %v3105_v51, 4  ;;  %v2435_v14 = vadd.f32 %v2275_v22, %v1785_v48  ;;  %v2436_v42 = vadd.f32 %v2276_v59, %v1786_v2 }
 0x175   :  { %v708_v50 = vrot.slane %v40_v40, %v14160_v54  ;;  %v1358_v62 = vrot.slane %v40_v40, %v14159_v4  ;;  %v2008_v41 = vrot.slane %v40_v40, %v14156_v7  ;;  %v222_v29 = vrot.slane %v41_v5, %v8786_v11 }
 0x176   :  { %v3606_v46 = vmax.f32 %v3102_v63, 1e-24  ;;  %v3107_v13 = vadd.f32 %v3106_v31, %v3105_v51  ;;  %v9957_v49 = vmax.f32 %v2435_v14, 0.0  ;;  %v9959_v60 = vmax.f32 %v2436_v42, 0.0 }
 0x177   :  { %v977_v20 = vmul.f32 %v9052_v10, %v708_v50  ;;  %v978_v53 = vmul.f32 %v9088_v0, %v708_v50  ;;  %v1627_v34 = vmul.f32 %v9126_v26, %v1358_v62  ;;  %v1628_v44 = vmul.f32 %v9124_v24, %v1358_v62 }
 0x178   :  { %8613 = vrsqrt.f32 %v3606_v46  ;;  %v3108_v16 = vrot.slane %v3107_v13, 2  ;;  %v2755_v40 = vmul.f32 %v9957_v49, %v9957_v49  ;;  %v2756_v23 = vmul.f32 %v9959_v60, %v9959_v60 }
 0x179   :  { %v1137_v57 = vadd.f32 %v977_v20, %v487_v18  ;;  %v1138_v61 = vadd.f32 %v978_v53, %v488_v35  ;;  %v2277_v3 = vmul.f32 %v9152_v30, %v2008_v41  ;;  %v2278_v39 = vmul.f32 %v9150_v58, %v2008_v41 }
 0x17a   :  { %v8612_v52 = vpop.eup %8611  ;;  %v3109_v38 = vadd.f32 %v3108_v16, %v3107_v13  ;;  %v3112_v32 = vsel %vm2859_vm0, %v2755_v40, 0.0  ;;  %v3113_v36 = vsel %vm2859_vm0, %v2756_v23, 0.0  ;;  %v489_v6 = vmul.f32 %v9054_v17, %v222_v29  ;;  %v42_v40 = vld [vmem:[%s13874_s0 + $0x7c] sm:$0xf]  ;;  %v3905_v23 = vpop.xlane.xlu1 %3904 }
 0x17b   :  { %v3790_v28 = vmul.f32 %v8612_v52, %v9864_v25  ;;  %v3791_v12 = vmul.f32 %v8612_v52, %v9870_v9  ;;  %v3114_v56 = vadd.f32 %v3113_v36, %v3112_v32  ;;  %v1787_v1 = vadd.f32 %v1627_v34, %v1137_v57 }
 0x17c   :  { %v3110_v48 = vrot.slane %v3109_v38, 1  ;;  %v1788_v47 = vadd.f32 %v1628_v44, %v1138_v61  ;;  %v490_v37 = vmul.f32 %v9090_v45, %v222_v29  ;;  %v712_v19 = vrot.slane %v41_v5, %v14160_v54 }
 0x17d   :  { %v4050_v2 = vsel %vm2859_vm0, %v3790_v28, 0.0  ;;  %v4053_v27 = vsel %vm2859_vm0, %v3791_v12, 0.0  ;;  %v3115_v51 = vrot.slane %v3114_v56, 4  ;;  %v2437_v22 = vadd.f32 %v2277_v3, %v1787_v1 }
 0x17e   :  { %4051 = vadd.xlane.f32.xlu1 %v4050_v2  ;;  %v3111_v59 = vadd.f32 %v3110_v48, %v3109_v38  ;;  %4054 = vadd.xlane.f32.xlu0 %v4053_v27  ;;  %v2438_v25 = vadd.f32 %v2278_v39, %v1788_v47  ;;  %v979_v9 = vmul.f32 %v9052_v10, %v712_v19  ;;  %v10006_v28 = vmul.f32 0.015625, %v3905_v23 }
 0x17f   :  { %v3116_v33 = vadd.f32 %v3115_v51, %v3114_v56  ;;  %v9981_v21 = vmax.f32 %v2437_v22, 0.0  ;;  %v980_v18 = vmul.f32 %v9088_v0, %v712_v19  ;;  %v1362_v35 = vrot.slane %v41_v5, %v14159_v4 }
 0x180   :  { %v3607_v63 = vmax.f32 %v3111_v59, 1e-24  ;;  %v9985_v31 = vmax.f32 %v2438_v25, 0.0  ;;  %v1139_v14 = vadd.f32 %v979_v9, %v489_v6  ;;  %v2012_v42 = vrot.slane %v41_v5, %v14156_v7  ;;  %14161 = vst [vmem:[#allocation9_spill] sm:$0xff] %v10006_v28  ;;  %v43_v25 = vld [vmem:[%s13874_s0 + $0x80] sm:$0xf] }
 0x181   :  { %v3117_v50 = vrot.slane %v3116_v33, 2  ;;  %v2757_v62 = vmul.f32 %v9981_v21, %v9981_v21  ;;  %v1140_v41 = vadd.f32 %v980_v18, %v490_v37  ;;  %v1629_v29 = vmul.f32 %v9126_v26, %v1362_v35 }
 0x182   :  { %v8614_v46 = vpop.eup %8613  ;;  %8615 = vrsqrt.f32 %v3607_v63  ;;  %v2758_v13 = vmul.f32 %v9985_v31, %v9985_v31  ;;  %v1630_v20 = vmul.f32 %v9124_v24, %v1362_v35  ;;  %v2279_v53 = vmul.f32 %v9152_v30, %v2012_v42 }
 0x183   :  { %v3792_v34 = vmul.f32 %v8614_v46, %v9894_v55  ;;  %v3118_v44 = vadd.f32 %v3117_v50, %v3116_v33  ;;  %v3793_v5 = vmul.f32 %v8614_v46, %v9896_v15  ;;  %v3121_v16 = vsel %vm2859_vm0, %v2757_v62, 0.0 }
 0x184   :  { %v3122_v57 = vsel %vm2859_vm0, %v2758_v13, 0.0  ;;  %v1789_v61 = vadd.f32 %v1629_v29, %v1139_v14  ;;  %v1790_v3 = vadd.f32 %v1630_v20, %v1140_v41  ;;  %v2280_v39 = vmul.f32 %v9150_v58, %v2012_v42 }
 0x185   :  { %v4056_v52 = vsel %vm2859_vm0, %v3792_v34, 0.0  ;;  %v3119_v38 = vrot.slane %v3118_v44, 1  ;;  %v4059_v55 = vsel %vm2859_vm0, %v3793_v5, 0.0  ;;  %v3123_v32 = vadd.f32 %v3122_v57, %v3121_v16 }
 0x186   :  { %4057 = vadd.xlane.f32.xlu1 %v4056_v52  ;;  %4060 = vadd.xlane.f32.xlu0 %v4059_v55  ;;  %v2439_v15 = vadd.f32 %v2279_v53, %v1789_v61  ;;  %v2440_v36 = vadd.f32 %v2280_v39, %v1790_v3  ;;  %v226_v6 = vrot.slane %v42_v40, %v8786_v11 }
 0x187   :  { %v3120_v12 = vadd.f32 %v3119_v38, %v3118_v44  ;;  %v3124_v56 = vrot.slane %v3123_v32, 4  ;;  %v716_v1 = vrot.slane %v42_v40, %v14160_v54  ;;  %v1366_v48 = vrot.slane %v42_v40, %v14159_v4  ;;  %v3902_v44 = vpop.xlane.xlu0 %3901 }
 0x188   :  { %v10010_v47 = vmax.f32 %v2439_v15, 0.0  ;;  %v10012_v37 = vmax.f32 %v2440_v36, 0.0  ;;  %v491_v19 = vmul.f32 %v9054_v17, %v226_v6  ;;  %v492_v2 = vmul.f32 %v9090_v45, %v226_v6 }
 0x189   :  { %v3608_v27 = vmax.f32 %v3120_v12, 1e-24  ;;  %v3125_v51 = vadd.f32 %v3124_v56, %v3123_v32  ;;  %v981_v22 = vmul.f32 %v9052_v10, %v716_v1  ;;  %v982_v59 = vmul.f32 %v9088_v0, %v716_v1 }
 0x18a   :  { %v2759_v9 = vmul.f32 %v10010_v47, %v10010_v47  ;;  %v2760_v33 = vmul.f32 %v10012_v37, %v10012_v37  ;;  %v1631_v18 = vmul.f32 %v9126_v26, %v1366_v48  ;;  %v1632_v35 = vmul.f32 %v9124_v24, %v1366_v48 }
 0x18b   :  { %8617 = vrsqrt.f32 %v3608_v27  ;;  %v3126_v63 = vrot.slane %v3125_v51, 2  ;;  %v1141_v14 = vadd.f32 %v981_v22, %v491_v19  ;;  %v1142_v42 = vadd.f32 %v982_v59, %v492_v2 }
 0x18c   :  { %v8616_v50 = vpop.eup %8615  ;;  %v3130_v62 = vsel %vm2859_vm0, %v2759_v9, 0.0  ;;  %v3131_v41 = vsel %vm2859_vm0, %v2760_v33, 0.0  ;;  %v2016_v29 = vrot.slane %v42_v40, %v14156_v7  ;;  %v230_v46 = vrot.slane %v43_v25, %v8786_v11 }
 0x18d   :  { %v3794_v13 = vmul.f32 %v8616_v50, %v9923_v8  ;;  %v3127_v20 = vadd.f32 %v3126_v63, %v3125_v51  ;;  %v3795_v53 = vmul.f32 %v8616_v50, %v9929_v43  ;;  %v3132_v34 = vadd.f32 %v3131_v41, %v3130_v62  ;;  %v44_v62 = vld [vmem:[%s13874_s0 + $0x84] sm:$0xf] }
 0x18e   :  { %v1791_v5 = vadd.f32 %v1631_v18, %v1141_v14  ;;  %v1792_v16 = vadd.f32 %v1632_v35, %v1142_v42  ;;  %v2281_v23 = vmul.f32 %v9152_v30, %v2016_v29  ;;  %v2282_v57 = vmul.f32 %v9150_v58, %v2016_v29 }
 0x18f   :  { %v4062_v61 = vsel %vm2859_vm0, %v3794_v13, 0.0  ;;  %v3128_v3 = vrot.slane %v3127_v20, 1  ;;  %v4065_v40 = vsel %vm2859_vm0, %v3795_v53, 0.0  ;;  %v3133_v39 = vrot.slane %v3132_v34, 4 }
 0x190   :  { %4063 = vadd.xlane.f32.xlu1 %v4062_v61  ;;  %4066 = vadd.xlane.f32.xlu0 %v4065_v40  ;;  %v2441_v8 = vadd.f32 %v2281_v23, %v1791_v5  ;;  %v2442_v52 = vadd.f32 %v2282_v57, %v1792_v16  ;;  %v493_v43 = vmul.f32 %v9054_v17, %v230_v46  ;;  %v10038_v38 = vmul.f32 0.015625, %v3902_v44 }
 0x191   :  { %v3129_v55 = vadd.f32 %v3128_v3, %v3127_v20  ;;  %v3134_v32 = vadd.f32 %v3133_v39, %v3132_v34  ;;  %v494_v15 = vmul.f32 %v9090_v45, %v230_v46  ;;  %v720_v36 = vrot.slane %v43_v25, %v14160_v54 }
 0x192   :  { %14162 = vst [vmem:[#allocation10_spill] sm:$0xff] %v10038_v38  ;;  %v10042_v6 = vmax.f32 %v2441_v8, 0.0  ;;  %v10044_v12 = vmax.f32 %v2442_v52, 0.0  ;;  %v1370_v56 = vrot.slane %v43_v25, %v14159_v4  ;;  %v2020_v1 = vrot.slane %v43_v25, %v14156_v7 }
 0x193   :  { %v3609_v48 = vmax.f32 %v3129_v55, 1e-24  ;;  %v3135_v19 = vrot.slane %v3134_v32, 2  ;;  %v983_v2 = vmul.f32 %v9052_v10, %v720_v36  ;;  %v984_v27 = vmul.f32 %v9088_v0, %v720_v36  ;;  %v45_v36 = vld [vmem:[%s13874_s0 + $0x88] sm:$0xf] }
 0x194   :  { %v2761_v51 = vmul.f32 %v10042_v6, %v10042_v6  ;;  %v2762_v22 = vmul.f32 %v10044_v12, %v10044_v12  ;;  %v1633_v59 = vmul.f32 %v9126_v26, %v1370_v56  ;;  %v1634_v9 = vmul.f32 %v9124_v24, %v1370_v56 }
 0x195   :  { %v8618_v33 = vpop.eup %8617  ;;  %8619 = vrsqrt.f32 %v3609_v48  ;;  %v3136_v18 = vadd.f32 %v3135_v19, %v3134_v32  ;;  %v1143_v25 = vadd.f32 %v983_v2, %v493_v43  ;;  %v1144_v35 = vadd.f32 %v984_v27, %v494_v15 }
 0x196   :  { %v3796_v63 = vmul.f32 %v8618_v33, %v9957_v49  ;;  %v3797_v14 = vmul.f32 %v8618_v33, %v9959_v60  ;;  %v3139_v42 = vsel %vm2859_vm0, %v2761_v51, 0.0  ;;  %v3140_v50 = vsel %vm2859_vm0, %v2762_v22, 0.0 }
 0x197   :  { %v3137_v41 = vrot.slane %v3136_v18, 1  ;;  %v3141_v29 = vadd.f32 %v3140_v50, %v3139_v42  ;;  %v1793_v46 = vadd.f32 %v1633_v59, %v1143_v25  ;;  %v1794_v13 = vadd.f32 %v1634_v9, %v1144_v35 }
 0x198   :  { %v4068_v20 = vsel %vm2859_vm0, %v3796_v63, 0.0  ;;  %v4071_v53 = vsel %vm2859_vm0, %v3797_v14, 0.0  ;;  %v2283_v49 = vmul.f32 %v9152_v30, %v2020_v1  ;;  %v2284_v60 = vmul.f32 %v9150_v58, %v2020_v1 }
 0x199   :  { %4069 = vadd.xlane.f32.xlu1 %v4068_v20  ;;  %v3138_v34 = vadd.f32 %v3137_v41, %v3136_v18  ;;  %4072 = vadd.xlane.f32.xlu0 %v4071_v53  ;;  %v3142_v44 = vrot.slane %v3141_v29, 4  ;;  %v234_v5 = vrot.slane %v44_v62, %v8786_v11  ;;  %v724_v16 = vrot.slane %v44_v62, %v14160_v54 }
 0x19a   :  { %v2443_v23 = vadd.f32 %v2283_v49, %v1793_v46  ;;  %v2444_v57 = vadd.f32 %v2284_v60, %v1794_v13  ;;  %v1374_v61 = vrot.slane %v44_v62, %v14159_v4  ;;  %v2024_v3 = vrot.slane %v44_v62, %v14156_v7 }
 0x19b   :  { %v3610_v40 = vmax.f32 %v3138_v34, 1e-24  ;;  %v3143_v39 = vadd.f32 %v3142_v44, %v3141_v29  ;;  %v495_v8 = vmul.f32 %v9054_v17, %v234_v5  ;;  %v496_v52 = vmul.f32 %v9090_v45, %v234_v5  ;;  %v46_v29 = vld [vmem:[%s13874_s0 + $0x8c] sm:$0xf] }
 0x19c   :  { %v10073_v43 = vmax.f32 %v2443_v23, 0.0  ;;  %v10075_v55 = vmax.f32 %v2444_v57, 0.0  ;;  %v985_v32 = vmul.f32 %v9052_v10, %v724_v16  ;;  %v986_v15 = vmul.f32 %v9088_v0, %v724_v16 }
 0x19d   :  { %8621 = vrsqrt.f32 %v3610_v40  ;;  %v3144_v56 = vrot.slane %v3143_v39, 2  ;;  %v1635_v1 = vmul.f32 %v9126_v26, %v1374_v61  ;;  %v1636_v48 = vmul.f32 %v9124_v24, %v1374_v61 }
 0x19e   :  { %v2763_v19 = vmul.f32 %v10073_v43, %v10073_v43  ;;  %v2764_v2 = vmul.f32 %v10075_v55, %v10075_v55  ;;  %v1145_v27 = vadd.f32 %v985_v32, %v495_v8  ;;  %v1146_v51 = vadd.f32 %v986_v15, %v496_v52 }
 0x19f   :  { %v8620_v22 = vpop.eup %8619  ;;  %v3145_v59 = vadd.f32 %v3144_v56, %v3143_v39  ;;  %v2285_v9 = vmul.f32 %v9152_v30, %v2024_v3  ;;  %v2286_v33 = vmul.f32 %v9150_v58, %v2024_v3  ;;  %v238_v18 = vrot.slane %v45_v36, %v8786_v11 }
 0x1a0   :  { %v3798_v25 = vmul.f32 %v8620_v22, %v9981_v21  ;;  %v3799_v35 = vmul.f32 %v8620_v22, %v9985_v31  ;;  %v3148_v63 = vsel %vm2859_vm0, %v2763_v19, 0.0  ;;  %v3149_v14 = vsel %vm2859_vm0, %v2764_v2, 0.0 }
 0x1a1   :  { %v3146_v42 = vrot.slane %v3145_v59, 1  ;;  %v3150_v50 = vadd.f32 %v3149_v14, %v3148_v63  ;;  %v1795_v62 = vadd.f32 %v1635_v1, %v1145_v27  ;;  %v1796_v41 = vadd.f32 %v1636_v48, %v1146_v51 }
 0x1a2   :  { %v4074_v46 = vsel %vm2859_vm0, %v3798_v25, 0.0  ;;  %v4077_v13 = vsel %vm2859_vm0, %v3799_v35, 0.0  ;;  %v497_v21 = vmul.f32 %v9054_v17, %v238_v18  ;;  %v498_v31 = vmul.f32 %v9090_v45, %v238_v18 }
 0x1a3   :  { %4075 = vadd.xlane.f32.xlu1 %v4074_v46  ;;  %v3147_v20 = vadd.f32 %v3146_v42, %v3145_v59  ;;  %4078 = vadd.xlane.f32.xlu0 %v4077_v13  ;;  %v3151_v53 = vrot.slane %v3150_v50, 4  ;;  %v2445_v49 = vadd.f32 %v2285_v9, %v1795_v62  ;;  %v2446_v60 = vadd.f32 %v2286_v33, %v1796_v41 }
 0x1a4   :  { %v728_v34 = vrot.slane %v45_v36, %v14160_v54  ;;  %v1378_v44 = vrot.slane %v45_v36, %v14159_v4  ;;  %v2028_v5 = vrot.slane %v45_v36, %v14156_v7  ;;  %v242_v16 = vrot.slane %v46_v29, %v8786_v11 }
 0x1a5   :  { %v3611_v23 = vmax.f32 %v3147_v20, 1e-24  ;;  %v3152_v57 = vadd.f32 %v3151_v53, %v3150_v50  ;;  %v10106_v61 = vmax.f32 %v2445_v49, 0.0  ;;  %v10108_v3 = vmax.f32 %v2446_v60, 0.0 }
 0x1a6   :  { %v987_v40 = vmul.f32 %v9052_v10, %v728_v34  ;;  %v988_v39 = vmul.f32 %v9088_v0, %v728_v34  ;;  %v1637_v8 = vmul.f32 %v9126_v26, %v1378_v44  ;;  %v1638_v52 = vmul.f32 %v9124_v24, %v1378_v44 }
 0x1a7   :  { %v8622_v32 = vpop.eup %8621  ;;  %8623 = vrsqrt.f32 %v3611_v23  ;;  %v3153_v15 = vrot.slane %v3152_v57, 2  ;;  %v2765_v36 = vmul.f32 %v10106_v61, %v10106_v61  ;;  %v2766_v56 = vmul.f32 %v10108_v3, %v10108_v3 }
 0x1a8   :  { %v3800_v1 = vmul.f32 %v8622_v32, %v10010_v47  ;;  %v3801_v48 = vmul.f32 %v8622_v32, %v10012_v37  ;;  %v1147_v19 = vadd.f32 %v987_v40, %v497_v21  ;;  %v1148_v2 = vadd.f32 %v988_v39, %v498_v31  ;;  %v47_v40 = vld [vmem:[%s13874_s0 + $0x90] sm:$0xf] }
 0x1a9   :  { %v3154_v27 = vadd.f32 %v3153_v15, %v3152_v57  ;;  %v3157_v51 = vsel %vm2859_vm0, %v2765_v36, 0.0  ;;  %v3158_v22 = vsel %vm2859_vm0, %v2766_v56, 0.0  ;;  %v2287_v59 = vmul.f32 %v9152_v30, %v2028_v5 }
 0x1aa   :  { %v4080_v9 = vsel %vm2859_vm0, %v3800_v1, 0.0  ;;  %v4083_v33 = vsel %vm2859_vm0, %v3801_v48, 0.0  ;;  %v3159_v18 = vadd.f32 %v3158_v22, %v3157_v51  ;;  %v1797_v25 = vadd.f32 %v1637_v8, %v1147_v19  ;;  %v3914_v48 = vpop.xlane.xlu1 %3913 }
 0x1ab   :  { %4081 = vadd.xlane.f32.xlu1 %v4080_v9  ;;  %v3155_v35 = vrot.slane %v3154_v27, 1  ;;  %4084 = vadd.xlane.f32.xlu0 %v4083_v33  ;;  %v1798_v47 = vadd.f32 %v1638_v52, %v1148_v2  ;;  %v2288_v37 = vmul.f32 %v9150_v58, %v2028_v5  ;;  %v499_v63 = vmul.f32 %v9054_v17, %v242_v16 }
 0x1ac   :  { %v3160_v14 = vrot.slane %v3159_v18, 4  ;;  %v2447_v42 = vadd.f32 %v2287_v59, %v1797_v25  ;;  %v500_v50 = vmul.f32 %v9090_v45, %v242_v16  ;;  %v732_v62 = vrot.slane %v46_v29, %v14160_v54 }
 0x1ad   :  { %v3156_v41 = vadd.f32 %v3155_v35, %v3154_v27  ;;  %v2448_v46 = vadd.f32 %v2288_v37, %v1798_v47  ;;  %v1382_v13 = vrot.slane %v46_v29, %v14159_v4  ;;  %v2032_v21 = vrot.slane %v46_v29, %v14156_v7 }
 0x1ae   :  { %v3161_v31 = vadd.f32 %v3160_v14, %v3159_v18  ;;  %v10131_v20 = vmax.f32 %v2447_v42, 0.0  ;;  %v989_v53 = vmul.f32 %v9052_v10, %v732_v62  ;;  %v990_v49 = vmul.f32 %v9088_v0, %v732_v62 }
 0x1af   :  { %v3612_v60 = vmax.f32 %v3156_v41, 1e-24  ;;  %v10135_v34 = vmax.f32 %v2448_v46, 0.0  ;;  %v1639_v44 = vmul.f32 %v9126_v26, %v1382_v13  ;;  %v1640_v5 = vmul.f32 %v9124_v24, %v1382_v13 }
 0x1b0   :  { %v3162_v16 = vrot.slane %v3161_v31, 2  ;;  %v2767_v23 = vmul.f32 %v10131_v20, %v10131_v20  ;;  %v1149_v57 = vadd.f32 %v989_v53, %v499_v63  ;;  %v1150_v29 = vadd.f32 %v990_v49, %v500_v50 }
 0x1b1   :  { %v8624_v39 = vpop.eup %8623  ;;  %8625 = vrsqrt.f32 %v3612_v60  ;;  %v2768_v8 = vmul.f32 %v10135_v34, %v10135_v34  ;;  %v2289_v52 = vmul.f32 %v9152_v30, %v2032_v21  ;;  %v2290_v32 = vmul.f32 %v9150_v58, %v2032_v21 }
 0x1b2   :  { %v3802_v15 = vmul.f32 %v8624_v39, %v10042_v6  ;;  %v3163_v36 = vadd.f32 %v3162_v16, %v3161_v31  ;;  %v3803_v56 = vmul.f32 %v8624_v39, %v10044_v12  ;;  %v3166_v1 = vsel %vm2859_vm0, %v2767_v23, 0.0 }
 0x1b3   :  { %v3167_v19 = vsel %vm2859_vm0, %v2768_v8, 0.0  ;;  %v1799_v2 = vadd.f32 %v1639_v44, %v1149_v57  ;;  %v1800_v27 = vadd.f32 %v1640_v5, %v1150_v29  ;;  %v246_v51 = vrot.slane %v47_v40, %v8786_v11 }
 0x1b4   :  { %v4086_v22 = vsel %vm2859_vm0, %v3802_v15, 0.0  ;;  %v3164_v59 = vrot.slane %v3163_v36, 1  ;;  %v4089_v9 = vsel %vm2859_vm0, %v3803_v56, 0.0  ;;  %v3168_v33 = vadd.f32 %v3167_v19, %v3166_v1 }
 0x1b5   :  { %4087 = vadd.xlane.f32.xlu1 %v4086_v22  ;;  %4090 = vadd.xlane.f32.xlu0 %v4089_v9  ;;  %v2449_v6 = vadd.f32 %v2289_v52, %v1799_v2  ;;  %v2450_v18 = vadd.f32 %v2290_v32, %v1800_v27  ;;  %v501_v12 = vmul.f32 %v9054_v17, %v246_v51  ;;  %v10156_v25 = vmul.f32 0.015625, %v3914_v48  ;;  %v48_v2 = vld [vmem:[%s13874_s0 + $0x94] sm:$0xf] }
 0x1b6   :  { %v3165_v35 = vadd.f32 %v3164_v59, %v3163_v36  ;;  %v3169_v47 = vrot.slane %v3168_v33, 4  ;;  %v502_v37 = vmul.f32 %v9090_v45, %v246_v51  ;;  %v736_v63 = vrot.slane %v47_v40, %v14160_v54  ;;  %v3908_v36 = vpop.xlane.xlu0 %3907  ;;  %v14164_v9 = vld [vmem:[#allocation8_spill] sm:$0xff] }
 0x1b7   :  { %14163 = vst [vmem:[#allocation13_spill] sm:$0xff] %v10156_v25  ;;  %v10160_v14 = vmax.f32 %v2449_v6, 0.0  ;;  %v10162_v42 = vmax.f32 %v2450_v18, 0.0  ;;  %v1386_v50 = vrot.slane %v47_v40, %v14159_v4  ;;  %v2036_v62 = vrot.slane %v47_v40, %v14156_v7 }
 0x1b8   :  { %v3613_v41 = vmax.f32 %v3165_v35, 1e-24  ;;  %v3170_v46 = vadd.f32 %v3169_v47, %v3168_v33  ;;  %v991_v13 = vmul.f32 %v9052_v10, %v736_v63  ;;  %v992_v21 = vmul.f32 %v9088_v0, %v736_v63  ;;  %v14166_v35 = vld [vmem:[#allocation7_spill] sm:$0xff] }
 0x1b9   :  { %v2769_v31 = vmul.f32 %v10160_v14, %v10160_v14  ;;  %v2770_v53 = vmul.f32 %v10162_v42, %v10162_v42  ;;  %v1641_v49 = vmul.f32 %v9126_v26, %v1386_v50  ;;  %v1642_v60 = vmul.f32 %v9124_v24, %v1386_v50 }
 0x1ba   :  { %8627 = vrsqrt.f32 %v3613_v41  ;;  %v3171_v44 = vrot.slane %v3170_v46, 2  ;;  %v1151_v5 = vadd.f32 %v991_v13, %v501_v12  ;;  %v1152_v16 = vadd.f32 %v992_v21, %v502_v37 }
 0x1bb   :  { %v8626_v23 = vpop.eup %8625  ;;  %v3175_v57 = vsel %vm2859_vm0, %v2769_v31, 0.0  ;;  %v3176_v29 = vsel %vm2859_vm0, %v2770_v53, 0.0  ;;  %v2291_v40 = vmul.f32 %v9152_v30, %v2036_v62  ;;  %v2292_v39 = vmul.f32 %v9150_v58, %v2036_v62 }
 0x1bc   :  { %v3804_v8 = vmul.f32 %v8626_v23, %v10073_v43  ;;  %v3172_v52 = vadd.f32 %v3171_v44, %v3170_v46  ;;  %v3805_v32 = vmul.f32 %v8626_v23, %v10075_v55  ;;  %v3177_v15 = vadd.f32 %v3176_v29, %v3175_v57 }
 0x1bd   :  { %v1801_v56 = vadd.f32 %v1641_v49, %v1151_v5  ;;  %v1802_v1 = vadd.f32 %v1642_v60, %v1152_v16  ;;  %v4542_v48 = vmul.f32 %v10006_v28, %v10006_v28  ;;  %v4541_v19 = vmul.f32 %v10038_v38, %v10038_v38 }
 0x1be   :  { %v4092_v27 = vsel %vm2859_vm0, %v3804_v8, 0.0  ;;  %v3173_v43 = vrot.slane %v3172_v52, 1  ;;  %v4095_v51 = vsel %vm2859_vm0, %v3805_v32, 0.0  ;;  %v3178_v55 = vrot.slane %v3177_v15, 4 }
 0x1bf   :  { %4093 = vadd.xlane.f32.xlu1 %v4092_v27  ;;  %4096 = vadd.xlane.f32.xlu0 %v4095_v51  ;;  %v2451_v22 = vadd.f32 %v2291_v40, %v1801_v56  ;;  %v2452_v59 = vadd.f32 %v2292_v39, %v1802_v1  ;;  %v4871_v33 = vrot.slane %v4542_v48, %v14164_v9  ;;  %v10190_v6 = vmul.f32 0.015625, %v3908_v36 }
 0x1c0   :  { %v3174_v18 = vadd.f32 %v3173_v43, %v3172_v52  ;;  %v3179_v12 = vadd.f32 %v3178_v55, %v3177_v15  ;;  %v4866_v47 = vrot.slane %v4541_v19, %v14166_v35  ;;  %v250_v37 = vrot.slane %v48_v2, %v8786_v11 }
 0x1c1   :  { %14165 = vst [vmem:[#allocation11_spill] sm:$0xff] %v10190_v6  ;;  %v10194_v63 = vmax.f32 %v2451_v22, 0.0  ;;  %v10196_v50 = vmax.f32 %v2452_v59, 0.0  ;;  %v740_v62 = vrot.slane %v48_v2, %v14160_v54  ;;  %v1390_v41 = vrot.slane %v48_v2, %v14159_v4 }
 0x1c2   :  { %v3614_v46 = vmax.f32 %v3174_v18, 1e-24  ;;  %v3180_v13 = vrot.slane %v3179_v12, 2  ;;  %v10201_v21 = vsel %vm4872_vm1, %v4871_v33, %v4866_v47  ;;  %v503_v31 = vmul.f32 %v9054_v17, %v250_v37 }
 0x1c3   :  { %v2771_v53 = vmul.f32 %v10194_v63, %v10194_v63  ;;  %v2772_v49 = vmul.f32 %v10196_v50, %v10196_v50  ;;  %v504_v60 = vmul.f32 %v9090_v45, %v250_v37  ;;  %v993_v44 = vmul.f32 %v9052_v10, %v740_v62 }
 0x1c4   :  { %v8628_v5 = vpop.eup %8627  ;;  %8629 = vrsqrt.f32 %v3614_v46  ;;  %v3181_v16 = vadd.f32 %v3180_v13, %v3179_v12  ;;  %v994_v23 = vmul.f32 %v9088_v0, %v740_v62  ;;  %v1643_v57 = vmul.f32 %v9126_v26, %v1390_v41  ;;  %v3920_v13 = vpop.xlane.xlu1 %3919 }
 0x1c5   :  { %v3806_v29 = vmul.f32 %v8628_v5, %v10106_v61  ;;  %v3807_v40 = vmul.f32 %v8628_v5, %v10108_v3  ;;  %v3184_v39 = vsel %vm2859_vm0, %v2771_v53, 0.0  ;;  %v3185_v8 = vsel %vm2859_vm0, %v2772_v49, 0.0  ;;  %v49_v61 = vld [vmem:[%s13874_s0 + $0x98] sm:$0xf] }
 0x1c6   :  { %v3182_v52 = vrot.slane %v3181_v16, 1  ;;  %v3186_v32 = vadd.f32 %v3185_v8, %v3184_v39  ;;  %v1153_v15 = vadd.f32 %v993_v44, %v503_v31  ;;  %v1154_v36 = vadd.f32 %v994_v23, %v504_v60 }
 0x1c7   :  { %v4098_v56 = vsel %vm2859_vm0, %v3806_v29, 0.0  ;;  %v4101_v1 = vsel %vm2859_vm0, %v3807_v40, 0.0  ;;  %v1644_v48 = vmul.f32 %v9124_v24, %v1390_v41  ;;  %v2040_v19 = vrot.slane %v48_v2, %v14156_v7 }
 0x1c8   :  { %4099 = vadd.xlane.f32.xlu1 %v4098_v56  ;;  %v3183_v3 = vadd.f32 %v3182_v52, %v3181_v16  ;;  %4102 = vadd.xlane.f32.xlu0 %v4101_v1  ;;  %v3187_v27 = vrot.slane %v3186_v32, 4  ;;  %v1803_v43 = vadd.f32 %v1643_v57, %v1153_v15  ;;  %v10225_v51 = vmul.f32 %v10156_v25, %v10156_v25 }
 0x1c9   :  { %v1804_v55 = vadd.f32 %v1644_v48, %v1154_v36  ;;  %v2293_v22 = vmul.f32 %v9152_v30, %v2040_v19  ;;  %v2294_v59 = vmul.f32 %v9150_v58, %v2040_v19  ;;  %v10231_v2 = vmul.f32 %v10190_v6, %v10190_v6 }
 0x1ca   :  { %v3615_v33 = vmax.f32 %v3183_v3, 1e-24  ;;  %v3188_v18 = vadd.f32 %v3187_v27, %v3186_v32  ;;  %v4886_v12 = vrot.slane %v10225_v51, %v14166_v35  ;;  %v254_v47 = vrot.slane %v49_v61, %v8786_v11 }
 0x1cb   :  { %v2453_v37 = vadd.f32 %v2293_v22, %v1803_v43  ;;  %v2454_v62 = vadd.f32 %v2294_v59, %v1804_v55  ;;  %v4877_v41 = vrot.slane %v10231_v2, %v14166_v35  ;;  %v744_v46 = vrot.slane %v49_v61, %v14160_v54  ;;  %v50_v22 = vld [vmem:[%s13874_s0 + $0x9c] sm:$0xf] }
 0x1cc   :  { %8631 = vrsqrt.f32 %v3615_v33  ;;  %v3189_v31 = vrot.slane %v3188_v18, 2  ;;  %v505_v53 = vmul.f32 %v9054_v17, %v254_v47  ;;  %v506_v49 = vmul.f32 %v9090_v45, %v254_v47 }
 0x1cd   :  { %v10241_v60 = vmax.f32 %v2453_v37, 0.0  ;;  %v10243_v44 = vmax.f32 %v2454_v62, 0.0  ;;  %v995_v5 = vmul.f32 %v9052_v10, %v744_v46  ;;  %v996_v16 = vmul.f32 %v9088_v0, %v744_v46 }
 0x1ce   :  { %v8630_v23 = vpop.eup %8629  ;;  %v3190_v57 = vadd.f32 %v3189_v31, %v3188_v18  ;;  %v1394_v29 = vrot.slane %v49_v61, %v14159_v4  ;;  %v2044_v40 = vrot.slane %v49_v61, %v14156_v7  ;;  %v10249_v39 = vmul.f32 0.015625, %v3920_v13 }
 0x1cf   :  { %v3808_v8 = vmul.f32 %v8630_v23, %v10131_v20  ;;  %v3809_v52 = vmul.f32 %v8630_v23, %v10135_v34  ;;  %v2773_v32 = vmul.f32 %v10241_v60, %v10241_v60  ;;  %v2774_v15 = vmul.f32 %v10243_v44, %v10243_v44  ;;  %v3911_v34 = vpop.xlane.xlu0 %3910 }
 0x1d0   :  { %14167 = vst [vmem:[#allocation12_spill] sm:$0xff] %v10249_v39  ;;  %v3191_v36 = vrot.slane %v3190_v57, 1  ;;  %v1155_v56 = vadd.f32 %v995_v5, %v505_v53  ;;  %v1156_v1 = vadd.f32 %v996_v16, %v506_v49  ;;  %v1645_v48 = vmul.f32 %v9126_v26, %v1394_v29 }
 0x1d1   :  { %v4104_v19 = vsel %vm2859_vm0, %v3808_v8, 0.0  ;;  %v4107_v61 = vsel %vm2859_vm0, %v3809_v52, 0.0  ;;  %v3193_v3 = vsel %vm2859_vm0, %v2773_v32, 0.0  ;;  %v3194_v20 = vsel %vm2859_vm0, %v2774_v15, 0.0  ;;  %v3926_v15 = vpop.xlane.xlu1 %3925 }
 0x1d2   :  { %4105 = vadd.xlane.f32.xlu1 %v4104_v19  ;;  %v3192_v27 = vadd.f32 %v3191_v36, %v3190_v57  ;;  %4108 = vadd.xlane.f32.xlu0 %v4107_v61  ;;  %v3195_v43 = vadd.f32 %v3194_v20, %v3193_v3  ;;  %v1646_v55 = vmul.f32 %v9124_v24, %v1394_v29  ;;  %v10272_v13 = vmul.f32 0.015625, %v3911_v34 }
 0x1d3   :  { %v1805_v59 = vadd.f32 %v1645_v48, %v1155_v56  ;;  %v2295_v33 = vmul.f32 %v9152_v30, %v2044_v40  ;;  %v2296_v18 = vmul.f32 %v9150_v58, %v2044_v40  ;;  %v10270_v47 = vmul.f32 %v10249_v39, %v10249_v39  ;;  %v3917_v2 = vpop.xlane.xlu0 %3916 }
 0x1d4   :  { %v3616_v37 = vmax.f32 %v3192_v27, 1e-24  ;;  %v3196_v62 = vrot.slane %v3195_v43, 4  ;;  %v1806_v46 = vadd.f32 %v1646_v55, %v1156_v1  ;;  %14168 = vst [vmem:[#allocation17_spill] sm:$0xff] %v10272_v13  ;;  %v258_v49 = vrot.slane %v50_v22, %v8786_v11 }
 0x1d5   :  { %v2455_v31 = vadd.f32 %v2295_v33, %v1805_v59  ;;  %v4895_v53 = vrot.slane %v10270_v47, %v14166_v35  ;;  %v748_v5 = vrot.slane %v50_v22, %v14160_v54  ;;  %v4544_v29 = vmul.f32 %v10272_v13, %v10272_v13 }
 0x1d6   :  { %v8632_v16 = vpop.eup %8631  ;;  %8633 = vrsqrt.f32 %v3616_v37  ;;  %v3197_v23 = vadd.f32 %v3196_v62, %v3195_v43  ;;  %v2456_v57 = vadd.f32 %v2296_v18, %v1806_v46  ;;  %v507_v32 = vmul.f32 %v9054_v17, %v258_v49 }
 0x1d7   :  { %v3810_v40 = vmul.f32 %v8632_v16, %v10160_v14  ;;  %v3811_v8 = vmul.f32 %v8632_v16, %v10162_v42  ;;  %v10282_v52 = vmax.f32 %v2455_v31, 0.0  ;;  %v4881_v1 = vrot.slane %v4544_v29, %v14164_v9 }
 0x1d8   :  { %v3198_v36 = vrot.slane %v3197_v23, 2  ;;  %v10285_v56 = vmax.f32 %v2456_v57, 0.0  ;;  %v508_v48 = vmul.f32 %v9090_v45, %v258_v49  ;;  %v997_v42 = vmul.f32 %v9052_v10, %v748_v5 }
 0x1d9   :  { %v4110_v19 = vsel %vm2859_vm0, %v3810_v40, 0.0  ;;  %v4113_v61 = vsel %vm2859_vm0, %v3811_v8, 0.0  ;;  %v2775_v14 = vmul.f32 %v10282_v52, %v10282_v52  ;;  %v4882_v34 = vsel %vm4872_vm1, %v4881_v1, %v4877_v41 }
 0x1da   :  { %4111 = vadd.xlane.f32.xlu1 %v4110_v19  ;;  %v3199_v3 = vadd.f32 %v3198_v36, %v3197_v23  ;;  %4114 = vadd.xlane.f32.xlu0 %v4113_v61  ;;  %v2776_v20 = vmul.f32 %v10285_v56, %v10285_v56  ;;  %v10300_v27 = vmul.f32 0.015625, %v3926_v15  ;;  %v5586_v55 = vsel %vm5585_vm2, %v4882_v34, %v10201_v21  ;;  %v51_v21 = vld [vmem:[%s13874_s0 + $0xa0] sm:$0xf] }
 0x1db   :  { %v3202_v43 = vsel %vm2859_vm0, %v2775_v14, 0.0  ;;  %v998_v59 = vmul.f32 %v9088_v0, %v748_v5  ;;  %v1157_v33 = vadd.f32 %v997_v42, %v507_v32  ;;  %v1398_v62 = vrot.slane %v50_v22, %v14159_v4 }
 0x1dc   :  { %14169 = vst [vmem:[#allocation18_spill] sm:$0xff] %v10300_v27  ;;  %v3200_v18 = vrot.slane %v3199_v3, 1  ;;  %v3203_v37 = vsel %vm2859_vm0, %v2776_v20, 0.0  ;;  %v2048_v46 = vrot.slane %v50_v22, %v14156_v7  ;;  %v10311_v49 = vmul.f32 %v10300_v27, %v10300_v27 }
 0x1dd   :  { %v3204_v31 = vadd.f32 %v3203_v37, %v3202_v43  ;;  %v1158_v41 = vadd.f32 %v998_v59, %v508_v48  ;;  %v1647_v16 = vmul.f32 %v9126_v26, %v1398_v62  ;;  %v1648_v23 = vmul.f32 %v9124_v24, %v1398_v62 }
 0x1de   :  { %v3201_v5 = vadd.f32 %v3200_v18, %v3199_v3  ;;  %v2297_v57 = vmul.f32 %v9152_v30, %v2048_v46  ;;  %v2298_v29 = vmul.f32 %v9150_v58, %v2048_v46  ;;  %v4904_v40 = vrot.slane %v10311_v49, %v14166_v35 }
 0x1df   :  { %v3205_v22 = vrot.slane %v3204_v31, 4  ;;  %v10322_v8 = vmul.f32 0.015625, %v3917_v2  ;;  %v1807_v36 = vadd.f32 %v1647_v16, %v1157_v33  ;;  %v1808_v1 = vadd.f32 %v1648_v23, %v1158_v41 }
 0x1e0   :  { %v8634_v32 = vpop.eup %8633  ;;  %v3617_v15 = vmax.f32 %v3201_v5, 1e-24  ;;  %v262_v48 = vrot.slane %v51_v21, %v8786_v11  ;;  %v752_v62 = vrot.slane %v51_v21, %v14160_v54  ;;  %v2052_v41 = vrot.slane %v51_v21, %v14156_v7 }
 0x1e1   :  { %14170 = vst [vmem:[#allocation14_spill] sm:$0xff] %v10322_v8  ;;  %v3812_v19 = vmul.f32 %v8634_v32, %v10194_v63  ;;  %v3206_v61 = vadd.f32 %v3205_v22, %v3204_v31  ;;  %v3813_v14 = vmul.f32 %v8634_v32, %v10196_v50  ;;  %v4546_v42 = vmul.f32 %v10322_v8, %v10322_v8  ;;  %v3932_v32 = vpop.xlane.xlu1 %3931 }
 0x1e2   :  { %8635 = vrsqrt.f32 %v3617_v15  ;;  %v2457_v3 = vadd.f32 %v2297_v57, %v1807_v36  ;;  %v2458_v20 = vadd.f32 %v2298_v29, %v1808_v1  ;;  %v509_v34 = vmul.f32 %v9054_v17, %v262_v48  ;;  %v52_v15 = vld [vmem:[%s13874_s0 + $0xa4] sm:$0xf] }
 0x1e3   :  { %v4116_v43 = vsel %vm2859_vm0, %v3812_v19, 0.0  ;;  %v3207_v59 = vrot.slane %v3206_v61, 2  ;;  %v4119_v33 = vsel %vm2859_vm0, %v3813_v14, 0.0  ;;  %v4890_v18 = vrot.slane %v4546_v42, %v14164_v9 }
 0x1e4   :  { %4117 = vadd.xlane.f32.xlu1 %v4116_v43  ;;  %4120 = vadd.xlane.f32.xlu0 %v4119_v33  ;;  %v10333_v63 = vmax.f32 %v2457_v3, 0.0  ;;  %v10335_v50 = vmax.f32 %v2458_v20, 0.0  ;;  %v510_v37 = vmul.f32 %v9090_v45, %v262_v48  ;;  %v1402_v31 = vrot.slane %v51_v21, %v14159_v4  ;;  %v3923_v21 = vpop.xlane.xlu0 %3922 }
 0x1e5   :  { %v3208_v46 = vadd.f32 %v3207_v59, %v3206_v61  ;;  %v4891_v2 = vsel %vm4872_vm1, %v4890_v18, %v4886_v12  ;;  %v999_v57 = vmul.f32 %v9052_v10, %v752_v62  ;;  %v1000_v51 = vmul.f32 %v9088_v0, %v752_v62 }
 0x1e6   :  { %v2777_v5 = vmul.f32 %v10333_v63, %v10333_v63  ;;  %v2778_v16 = vmul.f32 %v10335_v50, %v10335_v50  ;;  %v10350_v23 = vsel %vm5587_vm3, %v4891_v2, %v5586_v55  ;;  %v1649_v12 = vmul.f32 %v9126_v26, %v1402_v31 }
 0x1e7   :  { %14171 = vst [vmem:[#allocation15_spill] sm:$0xff] %v10350_v23  ;;  %v3209_v22 = vrot.slane %v3208_v46, 1  ;;  %v1650_v29 = vmul.f32 %v9124_v24, %v1402_v31  ;;  %v1159_v1 = vadd.f32 %v999_v57, %v509_v34  ;;  %v2299_v48 = vmul.f32 %v9152_v30, %v2052_v41 }
 0x1e8   :  { %v3211_v36 = vsel %vm2859_vm0, %v2777_v5, 0.0  ;;  %v3212_v55 = vsel %vm2859_vm0, %v2778_v16, 0.0  ;;  %v1160_v14 = vadd.f32 %v1000_v51, %v510_v37  ;;  %v2300_v42 = vmul.f32 %v9150_v58, %v2052_v41 }
 0x1e9   :  { %v3210_v19 = vadd.f32 %v3209_v22, %v3208_v46  ;;  %v3213_v61 = vadd.f32 %v3212_v55, %v3211_v36  ;;  %v1809_v3 = vadd.f32 %v1649_v12, %v1159_v1  ;;  %v10363_v20 = vmul.f32 0.015625, %v3932_v32 }
 0x1ea   :  { %v10365_v43 = vmul.f32 0.015625, %v3923_v21  ;;  %v266_v59 = vrot.slane %v52_v15, %v8786_v11  ;;  %v1810_v62 = vadd.f32 %v1650_v29, %v1160_v14  ;;  %v756_v2 = vrot.slane %v52_v15, %v14160_v54 }
 0x1eb   :  { %14172 = vst [vmem:[#allocation19_spill] sm:$0xff] %v10363_v20  ;;  %v3618_v33 = vmax.f32 %v3210_v19, 1e-24  ;;  %v3214_v18 = vrot.slane %v3213_v61, 4  ;;  %v2459_v31 = vadd.f32 %v2299_v48, %v1809_v3  ;;  %v10371_v46 = vmul.f32 %v10363_v20, %v10363_v20 }
 0x1ec   :  { %14173 = vst [vmem:[#allocation21_spill] sm:$0xff] %v10365_v43  ;;  %v8636_v34 = vpop.eup %8635  ;;  %v4548_v37 = vmul.f32 %v10365_v43, %v10365_v43  ;;  %v511_v41 = vmul.f32 %v9054_v17, %v266_v59  ;;  %v2460_v22 = vadd.f32 %v2300_v42, %v1810_v62  ;;  %v512_v55 = vmul.f32 %v9090_v45, %v266_v59 }
 0x1ed   :  { %14174 = vst [vmem:[#allocation16_spill] sm:$0xff] %v10371_v46  ;;  %v3814_v5 = vmul.f32 %v8636_v34, %v10241_v60  ;;  %8637 = vrsqrt.f32 %v3618_v33  ;;  %v3215_v16 = vadd.f32 %v3214_v18, %v3213_v61  ;;  %v3815_v57 = vmul.f32 %v8636_v34, %v10243_v44  ;;  %v3938_v60 = vpop.xlane.xlu1 %3937 }
 0x1ee   :  { %v10378_v51 = vmax.f32 %v2459_v31, 0.0  ;;  %v4899_v29 = vrot.slane %v4548_v37, %v14164_v9  ;;  %v10386_v1 = vmax.f32 %v2460_v22, 0.0  ;;  %v1001_v19 = vmul.f32 %v9052_v10, %v756_v2  ;;  %v3929_v37 = vpop.xlane.xlu0 %3928 }
 0x1ef   :  { %v4122_v32 = vsel %vm2859_vm0, %v3814_v5, 0.0  ;;  %v3216_v21 = vrot.slane %v3215_v16, 2  ;;  %v4125_v36 = vsel %vm2859_vm0, %v3815_v57, 0.0  ;;  %v1002_v14 = vmul.f32 %v9088_v0, %v756_v2  ;;  %v53_v2 = vld [vmem:[%s13874_s0 + $0xa8] sm:$0xf] }
 0x1f0   :  { %4123 = vadd.xlane.f32.xlu1 %v4122_v32  ;;  %4126 = vadd.xlane.f32.xlu0 %v4125_v36  ;;  %v2779_v44 = vmul.f32 %v10378_v51, %v10378_v51  ;;  %v10394_v48 = vsel %vm4872_vm1, %v4899_v29, %v4895_v53  ;;  %v1406_v42 = vrot.slane %v52_v15, %v14159_v4  ;;  %v10403_v62 = vmul.f32 0.015625, %v3938_v60 }
 0x1f1   :  { %14175 = vst [vmem:[#allocation20_spill] sm:$0xff] %v10394_v48  ;;  %v3217_v61 = vadd.f32 %v3216_v21, %v3215_v16  ;;  %v2056_v3 = vrot.slane %v52_v15, %v14156_v7  ;;  %v2780_v59 = vmul.f32 %v10386_v1, %v10386_v1  ;;  %v1161_v18 = vadd.f32 %v1001_v19, %v511_v41 }
 0x1f2   :  { %v3220_v33 = vsel %vm2859_vm0, %v2779_v44, 0.0  ;;  %14176 = vst [vmem:[#allocation22_spill] sm:$0xff] %v10403_v62  ;;  %v1162_v53 = vadd.f32 %v1002_v14, %v512_v55  ;;  %v1651_v34 = vmul.f32 %v9126_v26, %v1406_v42  ;;  %v1652_v31 = vmul.f32 %v9124_v24, %v1406_v42 }
 0x1f3   :  { %v3218_v47 = vrot.slane %v3217_v61, 1  ;;  %v3221_v15 = vsel %vm2859_vm0, %v2780_v59, 0.0  ;;  %v2301_v5 = vmul.f32 %v9152_v30, %v2056_v3  ;;  %v2302_v16 = vmul.f32 %v9150_v58, %v2056_v3 }
 0x1f4   :  { %v10415_v41 = vmul.f32 %v10403_v62, %v10403_v62  ;;  %v3222_v22 = vadd.f32 %v3221_v15, %v3220_v33  ;;  %v1811_v29 = vadd.f32 %v1651_v34, %v1161_v18  ;;  %v1812_v32 = vadd.f32 %v1652_v31, %v1162_v53 }
 0x1f5   :  { %v3219_v57 = vadd.f32 %v3218_v47, %v3217_v61  ;;  %v10419_v36 = vmul.f32 0.015625, %v3929_v37  ;;  %v270_v55 = vrot.slane %v53_v2, %v8786_v11  ;;  %v760_v60 = vrot.slane %v53_v2, %v14160_v54 }
 0x1f6   :  { %14177 = vst [vmem:[#allocation25_spill] sm:$0xff] %v10415_v41  ;;  %v3223_v14 = vrot.slane %v3222_v22, 4  ;;  %v2461_v42 = vadd.f32 %v2301_v5, %v1811_v29  ;;  %v2462_v3 = vadd.f32 %v2302_v16, %v1812_v32  ;;  %v1410_v32 = vrot.slane %v53_v2, %v14159_v4 }
 0x1f7   :  { %14178 = vst [vmem:[#allocation23_spill] sm:$0xff] %v10419_v36  ;;  %v8638_v44 = vpop.eup %8637  ;;  %v3619_v19 = vmax.f32 %v3219_v57, 1e-24  ;;  %v4550_v33 = vmul.f32 %v10419_v36, %v10419_v36  ;;  %v513_v18 = vmul.f32 %v9054_v17, %v270_v55  ;;  %v1003_v57 = vmul.f32 %v9052_v10, %v760_v60 }
 0x1f8   :  { %v3816_v59 = vmul.f32 %v8638_v44, %v10282_v52  ;;  %v3817_v61 = vmul.f32 %v8638_v44, %v10285_v56  ;;  %v3224_v47 = vadd.f32 %v3223_v14, %v3222_v22  ;;  %v10428_v53 = vmax.f32 %v2461_v42, 0.0  ;;  %v3944_v44 = vpop.xlane.xlu1 %3943 }
 0x1f9   :  { %8639 = vrsqrt.f32 %v3619_v19  ;;  %v10430_v34 = vmax.f32 %v2462_v3, 0.0  ;;  %v4908_v15 = vrot.slane %v4550_v33, %v14164_v9  ;;  %v514_v52 = vmul.f32 %v9090_v45, %v270_v55 }
 0x1fa   :  { %v4128_v31 = vsel %vm2859_vm0, %v3816_v59, 0.0  ;;  %v4131_v37 = vsel %vm2859_vm0, %v3817_v61, 0.0  ;;  %v3225_v56 = vrot.slane %v3224_v47, 2  ;;  %v2781_v5 = vmul.f32 %v10428_v53, %v10428_v53  ;;  %v3935_v59 = vpop.xlane.xlu0 %3934 }
 0x1fb   :  { %4129 = vadd.xlane.f32.xlu1 %v4128_v31  ;;  %4132 = vadd.xlane.f32.xlu0 %v4131_v37  ;;  %v2782_v16 = vmul.f32 %v10430_v34, %v10430_v34  ;;  %v10445_v22 = vsel %vm4872_vm1, %v4908_v15, %v4904_v40  ;;  %v1004_v29 = vmul.f32 %v9088_v0, %v760_v60  ;;  %v54_v60 = vld [vmem:[%s13874_s0 + $0xac] sm:$0xf]  ;;  %v10459_v37 = vmul.f32 0.015625, %v3944_v44 }
 0x1fc   :  { %14179 = vst [vmem:[#allocation24_spill] sm:$0xff] %v10445_v22  ;;  %v2060_v55 = vrot.slane %v53_v2, %v14156_v7  ;;  %v3226_v19 = vadd.f32 %v3225_v56, %v3224_v47  ;;  %v3229_v14 = vsel %vm2859_vm0, %v2781_v5, 0.0  ;;  %v1163_v3 = vadd.f32 %v1003_v57, %v513_v18 }
 0x1fd   :  { %v3230_v42 = vsel %vm2859_vm0, %v2782_v16, 0.0  ;;  %v1164_v33 = vadd.f32 %v1004_v29, %v514_v52  ;;  %v1653_v49 = vmul.f32 %v9126_v26, %v1410_v32  ;;  %v1654_v40 = vmul.f32 %v9124_v24, %v1410_v32  ;;  %14180 = vst [vmem:[#allocation26_spill] sm:$0xff] %v10459_v37 }
 0x1fe   :  { %v3231_v61 = vadd.f32 %v3230_v42, %v3229_v14  ;;  %v3227_v31 = vrot.slane %v3226_v19, 1  ;;  %v2303_v2 = vmul.f32 %v9152_v30, %v2060_v55  ;;  %v2304_v47 = vmul.f32 %v9150_v58, %v2060_v55 }
 0x1ff   :  { %v1813_v18 = vadd.f32 %v1653_v49, %v1163_v3  ;;  %v1814_v56 = vadd.f32 %v1654_v40, %v1164_v33  ;;  %v10461_v5 = vmul.f32 0.015625, %v3935_v59  ;;  %v10465_v16 = vmul.f32 %v10459_v37, %v10459_v37 }
 0x200   :  { %v3232_v15 = vrot.slane %v3231_v61, 4  ;;  %v3228_v52 = vadd.f32 %v3227_v31, %v3226_v19  ;;  %v274_v57 = vrot.slane %v54_v60, %v8786_v11  ;;  %v764_v29 = vrot.slane %v54_v60, %v14160_v54 }
 0x201   :  { %14181 = vst [vmem:[#allocation29_spill] sm:$0xff] %v10461_v5  ;;  %14182 = vst [vmem:[#allocation27_spill] sm:$0xff] %v10465_v16  ;;  %v2463_v14 = vadd.f32 %v2303_v2, %v1813_v18  ;;  %v2464_v42 = vadd.f32 %v2304_v47, %v1814_v56  ;;  %v10471_v55 = vmul.f32 %v10461_v5, %v10461_v5  ;;  %v3950_v2 = vpop.xlane.xlu1 %3949 }
 0x202   :  { %v3233_v32 = vadd.f32 %v3232_v15, %v3231_v61  ;;  %v3620_v3 = vmax.f32 %v3228_v52, 1e-24  ;;  %v515_v59 = vmul.f32 %v9054_v17, %v274_v57  ;;  %v516_v33 = vmul.f32 %v9090_v45, %v274_v57 }
 0x203   :  { %14183 = vst [vmem:[#allocation28_spill] sm:$0xff] %v10471_v55  ;;  %v8640_v44 = vpop.eup %8639  ;;  %v10479_v31 = vmax.f32 %v2463_v14, 0.0  ;;  %v10481_v47 = vmax.f32 %v2464_v42, 0.0  ;;  %v1005_v18 = vmul.f32 %v9052_v10, %v764_v29  ;;  %v1006_v42 = vmul.f32 %v9088_v0, %v764_v29 }
 0x204   :  { %v3818_v49 = vmul.f32 %v8640_v44, %v10333_v63  ;;  %v3234_v40 = vrot.slane %v3233_v32, 2  ;;  %v3819_v61 = vmul.f32 %v8640_v44, %v10335_v50  ;;  %8641 = vrsqrt.f32 %v3620_v3  ;;  %v3941_v50 = vpop.xlane.xlu0 %3940 }
 0x205   :  { %v2783_v63 = vmul.f32 %v10479_v31, %v10479_v31  ;;  %v2784_v14 = vmul.f32 %v10481_v47, %v10481_v47  ;;  %v1165_v44 = vadd.f32 %v1005_v18, %v515_v59  ;;  %v10493_v3 = vmul.f32 0.015625, %v3950_v2 }
 0x206   :  { %v4134_v56 = vsel %vm2859_vm0, %v3818_v49, 0.0  ;;  %v3235_v52 = vadd.f32 %v3234_v40, %v3233_v32  ;;  %v4137_v57 = vsel %vm2859_vm0, %v3819_v61, 0.0  ;;  %v1414_v32 = vrot.slane %v54_v60, %v14159_v4 }
 0x207   :  { %4135 = vadd.xlane.f32.xlu1 %v4134_v56  ;;  %4138 = vadd.xlane.f32.xlu0 %v4137_v57  ;;  %14184 = vst [vmem:[#allocation30_spill] sm:$0xff] %v10493_v3  ;;  %v3238_v49 = vsel %vm2859_vm0, %v2783_v63, 0.0  ;;  %v2064_v40 = vrot.slane %v54_v60, %v14156_v7  ;;  %v3239_v61 = vsel %vm2859_vm0, %v2784_v14, 0.0  ;;  %v1166_v21 = vadd.f32 %v1006_v42, %v516_v33  ;;  %v55_v63 = vld [vmem:[%s13874_s0 + $0xb0] sm:$0xf] }
 0x208   :  { %v3236_v19 = vrot.slane %v3235_v52, 1  ;;  %v10501_v56 = vmul.f32 %v10493_v3, %v10493_v3  ;;  %v10503_v57 = vmul.f32 0.015625, %v3941_v50  ;;  %v3240_v59 = vadd.f32 %v3239_v61, %v3238_v49 }
 0x209   :  { %v1655_v2 = vmul.f32 %v9126_v26, %v1414_v32  ;;  %v1656_v18 = vmul.f32 %v9124_v24, %v1414_v32  ;;  %v2305_v60 = vmul.f32 %v9152_v30, %v2064_v40  ;;  %v2306_v33 = vmul.f32 %v9150_v58, %v2064_v40 }
 0x20a   :  { %14185 = vst [vmem:[#allocation33_spill] sm:$0xff] %v10503_v57  ;;  %v3237_v29 = vadd.f32 %v3236_v19, %v3235_v52  ;;  %v10516_v50 = vmul.f32 %v10503_v57, %v10503_v57  ;;  %v3241_v52 = vrot.slane %v3240_v59, 4  ;;  %v278_v61 = vrot.slane %v55_v63, %v8786_v11 }
 0x20b   :  { %v1815_v42 = vadd.f32 %v1655_v2, %v1165_v44  ;;  %v1816_v49 = vadd.f32 %v1656_v18, %v1166_v21  ;;  %v768_v15 = vrot.slane %v55_v63, %v14160_v54  ;;  %v1418_v40 = vrot.slane %v55_v63, %v14159_v4 }
 0x20c   :  { %14186 = vst [vmem:[#allocation31_spill] sm:$0xff] %v10516_v50  ;;  %v3621_v19 = vmax.f32 %v3237_v29, 1e-24  ;;  %v3242_v12 = vadd.f32 %v3241_v52, %v3240_v59  ;;  %v517_v57 = vmul.f32 %v9054_v17, %v278_v61  ;;  %v518_v29 = vmul.f32 %v9090_v45, %v278_v61 }
 0x20d   :  { %v2465_v14 = vadd.f32 %v2305_v60, %v1815_v42  ;;  %v2466_v3 = vadd.f32 %v2306_v33, %v1816_v49  ;;  %v1007_v21 = vmul.f32 %v9052_v10, %v768_v15  ;;  %v1008_v44 = vmul.f32 %v9088_v0, %v768_v15  ;;  %v3947_v42 = vpop.xlane.xlu0 %3946 }
 0x20e   :  { %8643 = vrsqrt.f32 %v3621_v19  ;;  %v8642_v37 = vpop.eup %8641  ;;  %v3243_v18 = vrot.slane %v3242_v12, 2  ;;  %v3956_v19 = vpop.xlane.xlu1 %3955  ;;  %v1657_v52 = vmul.f32 %v9126_v26, %v1418_v40 }
 0x20f   :  { %v3820_v2 = vmul.f32 %v8642_v37, %v10378_v51  ;;  %v3821_v32 = vmul.f32 %v8642_v37, %v10386_v1  ;;  %v10529_v62 = vmax.f32 %v2465_v14, 0.0  ;;  %v10531_v59 = vmax.f32 %v2466_v3, 0.0  ;;  %v56_v1 = vld [vmem:[%s13874_s0 + $0xb4] sm:$0xf] }
 0x210   :  { %v1167_v60 = vadd.f32 %v1007_v21, %v517_v57  ;;  %v1168_v33 = vadd.f32 %v1008_v44, %v518_v29  ;;  %v3244_v61 = vadd.f32 %v3243_v18, %v3242_v12  ;;  %v1658_v3 = vmul.f32 %v9124_v24, %v1418_v40 }
 0x211   :  { %v4140_v49 = vsel %vm2859_vm0, %v3820_v2, 0.0  ;;  %v4143_v15 = vsel %vm2859_vm0, %v3821_v32, 0.0  ;;  %v2785_v51 = vmul.f32 %v10529_v62, %v10529_v62  ;;  %v2786_v37 = vmul.f32 %v10531_v59, %v10531_v59 }
 0x212   :  { %4141 = vadd.xlane.f32.xlu1 %v4140_v49  ;;  %4144 = vadd.xlane.f32.xlu0 %v4143_v15  ;;  %v1817_v57 = vadd.f32 %v1657_v52, %v1167_v60  ;;  %v10544_v14 = vmul.f32 0.015625, %v3956_v19  ;;  %v3245_v12 = vrot.slane %v3244_v61, 1  ;;  %v2068_v29 = vrot.slane %v55_v63, %v14156_v7 }
 0x213   :  { %v3247_v32 = vsel %vm2859_vm0, %v2785_v51, 0.0  ;;  %v10548_v21 = vmul.f32 0.015625, %v3947_v42  ;;  %v3248_v44 = vsel %vm2859_vm0, %v2786_v37, 0.0  ;;  %v1818_v2 = vadd.f32 %v1658_v3, %v1168_v33 }
 0x214   :  { %14187 = vst [vmem:[#allocation32_spill] sm:$0xff] %v10544_v14  ;;  %v10553_v18 = vmul.f32 %v10544_v14, %v10544_v14  ;;  %v282_v49 = vrot.slane %v56_v1, %v8786_v11  ;;  %v3246_v40 = vadd.f32 %v3245_v12, %v3244_v61  ;;  %v3249_v60 = vadd.f32 %v3248_v44, %v3247_v32 }
 0x215   :  { %14188 = vst [vmem:[#allocation34_spill] sm:$0xff] %v10548_v21  ;;  %v2307_v19 = vmul.f32 %v9152_v30, %v2068_v29  ;;  %v2308_v52 = vmul.f32 %v9150_v58, %v2068_v29  ;;  %v10562_v42 = vmul.f32 %v10548_v21, %v10548_v21  ;;  %v772_v63 = vrot.slane %v56_v1, %v14160_v54 }
 0x216   :  { %v519_v33 = vmul.f32 %v9054_v17, %v282_v49  ;;  %v520_v15 = vmul.f32 %v9090_v45, %v282_v49  ;;  %v3622_v37 = vmax.f32 %v3246_v40, 1e-24  ;;  %v3250_v3 = vrot.slane %v3249_v60, 4  ;;  %v3962_v49 = vpop.xlane.xlu1 %3961 }
 0x217   :  { %14189 = vst [vmem:[#allocation37_spill] sm:$0xff] %v10562_v42  ;;  %v2467_v61 = vadd.f32 %v2307_v19, %v1817_v57  ;;  %v2468_v12 = vadd.f32 %v2308_v52, %v1818_v2  ;;  %v1422_v52 = vrot.slane %v56_v1, %v14159_v4 }
 0x218   :  { %v8644_v51 = vpop.eup %8643  ;;  %8645 = vrsqrt.f32 %v3622_v37  ;;  %v3251_v14 = vadd.f32 %v3250_v3, %v3249_v60  ;;  %v2072_v3 = vrot.slane %v56_v1, %v14156_v7 }
 0x219   :  { %v3822_v32 = vmul.f32 %v8644_v51, %v10428_v53  ;;  %v3823_v29 = vmul.f32 %v8644_v51, %v10430_v34  ;;  %v10571_v21 = vmax.f32 %v2467_v61, 0.0  ;;  %v10573_v5 = vmax.f32 %v2468_v12, 0.0  ;;  %v3953_v12 = vpop.xlane.xlu0 %3952 }
 0x21a   :  { %v1009_v53 = vmul.f32 %v9052_v10, %v772_v63  ;;  %v1010_v34 = vmul.f32 %v9088_v0, %v772_v63  ;;  %v3252_v2 = vrot.slane %v3251_v14, 2  ;;  %v10585_v61 = vmul.f32 0.015625, %v3962_v49 }
 0x21b   :  { %v4146_v40 = vsel %vm2859_vm0, %v3822_v32, 0.0  ;;  %v4149_v57 = vsel %vm2859_vm0, %v3823_v29, 0.0  ;;  %v2787_v19 = vmul.f32 %v10571_v21, %v10571_v21  ;;  %v2788_v60 = vmul.f32 %v10573_v5, %v10573_v5 }
 0x21c   :  { %4147 = vadd.xlane.f32.xlu1 %v4146_v40  ;;  %4150 = vadd.xlane.f32.xlu0 %v4149_v57  ;;  %v1169_v51 = vadd.f32 %v1009_v53, %v519_v33  ;;  %v1170_v37 = vadd.f32 %v1010_v34, %v520_v15  ;;  %14190 = vst [vmem:[#allocation35_spill] sm:$0xff] %v10585_v61  ;;  %v57_v57 = vld [vmem:[%s13874_s0 + $0xb8] sm:$0xf]  ;;  %v10600_v34 = vmul.f32 0.015625, %v3953_v12 }
 0x21d   :  { %v3253_v32 = vadd.f32 %v3252_v2, %v3251_v14  ;;  %v3256_v63 = vsel %vm2859_vm0, %v2787_v19, 0.0  ;;  %v3257_v29 = vsel %vm2859_vm0, %v2788_v60, 0.0  ;;  %v1659_v40 = vmul.f32 %v9126_v26, %v1422_v52 }
 0x21e   :  { %v3258_v44 = vadd.f32 %v3257_v29, %v3256_v63  ;;  %v1660_v33 = vmul.f32 %v9124_v24, %v1422_v52  ;;  %v2309_v15 = vmul.f32 %v9152_v30, %v2072_v3  ;;  %v2310_v1 = vmul.f32 %v9150_v58, %v2072_v3  ;;  %14191 = vst [vmem:[#allocation36_spill] sm:$0xff] %v10600_v34 }
 0x21f   :  { %v3254_v49 = vrot.slane %v3253_v32, 1  ;;  %v1819_v53 = vadd.f32 %v1659_v40, %v1169_v51  ;;  %v10598_v14 = vmul.f32 %v10585_v61, %v10585_v61  ;;  %v286_v60 = vrot.slane %v57_v57, %v8786_v11 }
 0x220   :  { %v3259_v2 = vrot.slane %v3258_v44, 4  ;;  %v1820_v19 = vadd.f32 %v1660_v33, %v1170_v37  ;;  %v776_v63 = vrot.slane %v57_v57, %v14160_v54  ;;  %v4558_v51 = vmul.f32 %v10600_v34, %v10600_v34 }
 0x221   :  { %v3255_v29 = vadd.f32 %v3254_v49, %v3253_v32  ;;  %v2469_v52 = vadd.f32 %v2309_v15, %v1819_v53  ;;  %v521_v61 = vmul.f32 %v9054_v17, %v286_v60  ;;  %v522_v12 = vmul.f32 %v9090_v45, %v286_v60  ;;  %v3968_v60 = vpop.xlane.xlu1 %3967 }
 0x222   :  { %v3260_v3 = vadd.f32 %v3259_v2, %v3258_v44  ;;  %v2470_v40 = vadd.f32 %v2310_v1, %v1820_v19  ;;  %v8646_v36 = vpop.eup %8645  ;;  %v4944_v27 = vrot.slane %v4558_v51, %v14164_v9  ;;  %v1011_v32 = vmul.f32 %v9052_v10, %v776_v63 }
 0x223   :  { %v3623_v37 = vmax.f32 %v3255_v29, 1e-24  ;;  %v10610_v33 = vmax.f32 %v2469_v52, 0.0  ;;  %v3824_v15 = vmul.f32 %v8646_v36, %v10479_v31  ;;  %v3825_v53 = vmul.f32 %v8646_v36, %v10481_v47  ;;  %v3959_v47 = vpop.xlane.xlu0 %3958 }
 0x224   :  { %v3261_v49 = vrot.slane %v3260_v3, 2  ;;  %v10616_v20 = vmax.f32 %v2470_v40, 0.0  ;;  %v14192_v1 = vrot.slane %v10501_v56, %v14166_v35  ;;  %v1012_v19 = vmul.f32 %v9088_v0, %v776_v63 }
 0x225   :  { %8647 = vrsqrt.f32 %v3623_v37  ;;  %v2789_v44 = vmul.f32 %v10610_v33, %v10610_v33  ;;  %v4152_v29 = vsel %vm2859_vm0, %v3824_v15, 0.0  ;;  %v4155_v52 = vsel %vm2859_vm0, %v3825_v53, 0.0 }
 0x226   :  { %v4945_v2 = vsel %vm4872_vm1, %v4944_v27, %v14192_v1  ;;  %v3262_v31 = vadd.f32 %v3261_v49, %v3260_v3  ;;  %v2790_v36 = vmul.f32 %v10616_v20, %v10616_v20  ;;  %4153 = vadd.xlane.f32.xlu1 %v4152_v29  ;;  %4156 = vadd.xlane.f32.xlu0 %v4155_v52  ;;  %v10633_v3 = vmul.f32 0.015625, %v3968_v60 }
 0x227   :  { %v3265_v51 = vsel %vm2859_vm0, %v2789_v44, 0.0  ;;  %v1171_v40 = vadd.f32 %v1011_v32, %v521_v61  ;;  %v1172_v56 = vadd.f32 %v1012_v19, %v522_v12  ;;  %v1426_v27 = vrot.slane %v57_v57, %v14159_v4  ;;  %v58_v61 = vld [vmem:[%s13874_s0 + $0xbc] sm:$0xf] }
 0x228   :  { %v3263_v37 = vrot.slane %v3262_v31, 1  ;;  %v3266_v63 = vsel %vm2859_vm0, %v2790_v36, 0.0  ;;  %v2076_v15 = vrot.slane %v57_v57, %v14156_v7  ;;  %14193 = vst [vmem:[#allocation38_spill] sm:$0xff] %v10633_v3  ;;  %v10637_v29 = vmul.f32 0.015625, %v3959_v47 }
 0x229   :  { %v3267_v49 = vadd.f32 %v3266_v63, %v3265_v51  ;;  %v1661_v53 = vmul.f32 %v9126_v26, %v1426_v27  ;;  %v1662_v1 = vmul.f32 %v9124_v24, %v1426_v27  ;;  %v10646_v57 = vmul.f32 %v10633_v3, %v10633_v3 }
 0x22a   :  { %14194 = vst [vmem:[#allocation6_spill] sm:$0xff] %v10637_v29  ;;  %v3264_v12 = vadd.f32 %v3263_v37, %v3262_v31  ;;  %v2311_v32 = vmul.f32 %v9152_v30, %v2076_v15  ;;  %v2312_v44 = vmul.f32 %v9150_v58, %v2076_v15  ;;  %v4560_v36 = vmul.f32 %v10637_v29, %v10637_v29 }
 0x22b   :  { %v3268_v19 = vrot.slane %v3267_v49, 4  ;;  %v1821_v60 = vadd.f32 %v1661_v53, %v1171_v40  ;;  %v1822_v52 = vadd.f32 %v1662_v1, %v1172_v56  ;;  %v290_v31 = vrot.slane %v58_v61, %v8786_v11 }
 0x22c   :  { %v3624_v47 = vmax.f32 %v3264_v12, 1e-24  ;;  %v780_v27 = vrot.slane %v58_v61, %v14160_v54  ;;  %v4953_v3 = vrot.slane %v4560_v36, %v14164_v9 }
 0x22d   :  { %v3269_v37 = vadd.f32 %v3268_v19, %v3267_v49  ;;  %v2471_v63 = vadd.f32 %v2311_v32, %v1821_v60  ;;  %v2472_v15 = vadd.f32 %v2312_v44, %v1822_v52  ;;  %v523_v40 = vmul.f32 %v9054_v17, %v290_v31 }
 0x22e   :  { %8649 = vrsqrt.f32 %v3624_v47  ;;  %v524_v56 = vmul.f32 %v9090_v45, %v290_v31  ;;  %v1013_v53 = vmul.f32 %v9052_v10, %v780_v27  ;;  %v14195_v49 = vrot.slane %v10553_v18, %v14166_v35  ;;  %v3974_v18 = vpop.xlane.xlu1 %3973 }
 0x22f   :  { %v8648_v1 = vpop.eup %8647  ;;  %v3270_v12 = vrot.slane %v3269_v37, 2  ;;  %v10658_v29 = vmax.f32 %v2471_v63, 0.0  ;;  %v10660_v51 = vmax.f32 %v2472_v15, 0.0  ;;  %v1014_v52 = vmul.f32 %v9088_v0, %v780_v27 }
 0x230   :  { %v4954_v32 = vsel %vm4872_vm1, %v4953_v3, %v14195_v49  ;;  %v3826_v44 = vmul.f32 %v8648_v1, %v10529_v62  ;;  %v3827_v19 = vmul.f32 %v8648_v1, %v10531_v59  ;;  %v1173_v63 = vadd.f32 %v1013_v53, %v523_v40 }
 0x231   :  { %v10669_v60 = vsel %vm5585_vm2, %v4954_v32, %v4945_v2  ;;  %v3271_v36 = vadd.f32 %v3270_v12, %v3269_v37  ;;  %v2791_v47 = vmul.f32 %v10658_v29, %v10658_v29  ;;  %v2792_v31 = vmul.f32 %v10660_v51, %v10660_v51  ;;  %v3965_v2 = vpop.xlane.xlu0 %3964 }
 0x232   :  { %v4158_v3 = vsel %vm2859_vm0, %v3826_v44, 0.0  ;;  %v4161_v62 = vsel %vm2859_vm0, %v3827_v19, 0.0  ;;  %v1174_v15 = vadd.f32 %v1014_v52, %v524_v56  ;;  %v1430_v59 = vrot.slane %v58_v61, %v14159_v4  ;;  %v59_v56 = vld [vmem:[%s13874_s0 + $0xc0] sm:$0xf] }
 0x233   :  { %4159 = vadd.xlane.f32.xlu1 %v4158_v3  ;;  %v3272_v1 = vrot.slane %v3271_v36, 1  ;;  %4162 = vadd.xlane.f32.xlu0 %v4161_v62  ;;  %v3274_v27 = vsel %vm2859_vm0, %v2791_v47, 0.0  ;;  %v3275_v37 = vsel %vm2859_vm0, %v2792_v31, 0.0  ;;  %v2080_v12 = vrot.slane %v58_v61, %v14156_v7 }
 0x234   :  { %v3276_v49 = vadd.f32 %v3275_v37, %v3274_v27  ;;  %v1663_v40 = vmul.f32 %v9126_v26, %v1430_v59  ;;  %v1664_v53 = vmul.f32 %v9124_v24, %v1430_v59  ;;  %v10684_v32 = vmul.f32 0.015625, %v3974_v18 }
 0x235   :  { %v3273_v44 = vadd.f32 %v3272_v1, %v3271_v36  ;;  %v2313_v19 = vmul.f32 %v9152_v30, %v2080_v12  ;;  %v2314_v52 = vmul.f32 %v9150_v58, %v2080_v12  ;;  %v10691_v47 = vmul.f32 0.015625, %v3965_v2 }
 0x236   :  { %14196 = vst [vmem:[#allocation39_spill] sm:$0xff] %v10684_v32  ;;  %v3277_v31 = vrot.slane %v3276_v49, 4  ;;  %v1823_v61 = vadd.f32 %v1663_v40, %v1173_v63  ;;  %v1824_v3 = vadd.f32 %v1664_v53, %v1174_v15  ;;  %v10695_v62 = vmul.f32 %v10684_v32, %v10684_v32 }
 0x237   :  { %14197 = vst [vmem:[#allocation40_spill] sm:$0xff] %v10691_v47  ;;  %v3625_v18 = vmax.f32 %v3273_v44, 1e-24  ;;  %v4562_v59 = vmul.f32 %v10691_v47, %v10691_v47  ;;  %v294_v27 = vrot.slane %v59_v56, %v8786_v11  ;;  %v784_v36 = vrot.slane %v59_v56, %v14160_v54 }
 0x238   :  { %v8650_v1 = vpop.eup %8649  ;;  %v3278_v37 = vadd.f32 %v3277_v31, %v3276_v49  ;;  %v2473_v12 = vadd.f32 %v2313_v19, %v1823_v61  ;;  %v2474_v2 = vadd.f32 %v2314_v52, %v1824_v3  ;;  %v3980_v49 = vpop.xlane.xlu1 %3979 }
 0x239   :  { %v3828_v15 = vmul.f32 %v8650_v1, %v10571_v21  ;;  %8651 = vrsqrt.f32 %v3625_v18  ;;  %v3829_v40 = vmul.f32 %v8650_v1, %v10573_v5  ;;  %v4962_v53 = vrot.slane %v4562_v59, %v14164_v9 }
 0x23a   :  { %v3279_v44 = vrot.slane %v3278_v37, 2  ;;  %v10706_v32 = vmax.f32 %v2473_v12, 0.0  ;;  %v10708_v47 = vmax.f32 %v2474_v2, 0.0  ;;  %v525_v34 = vmul.f32 %v9054_v17, %v294_v27 }
 0x23b   :  { %v4164_v19 = vsel %vm2859_vm0, %v3828_v15, 0.0  ;;  %v4167_v52 = vsel %vm2859_vm0, %v3829_v40, 0.0  ;;  %v14198_v21 = vrot.slane %v10598_v14, %v14166_v35  ;;  %v526_v5 = vmul.f32 %v9090_v45, %v294_v27  ;;  %v3971_v40 = vpop.xlane.xlu0 %3970 }
 0x23c   :  { %4165 = vadd.xlane.f32.xlu1 %v4164_v19  ;;  %v3280_v61 = vadd.f32 %v3279_v44, %v3278_v37  ;;  %4168 = vadd.xlane.f32.xlu0 %v4167_v52  ;;  %v2793_v3 = vmul.f32 %v10706_v32, %v10706_v32  ;;  %v2794_v18 = vmul.f32 %v10708_v47, %v10708_v47  ;;  %v10725_v14 = vmul.f32 0.015625, %v3980_v49 }
 0x23d   :  { %v4963_v31 = vsel %vm4872_vm1, %v4962_v53, %v14198_v21  ;;  %v1015_v59 = vmul.f32 %v9052_v10, %v784_v36  ;;  %v1016_v1 = vmul.f32 %v9088_v0, %v784_v36  ;;  %v1434_v12 = vrot.slane %v59_v56, %v14159_v4  ;;  %v60_v36 = vld [vmem:[%s13874_s0 + $0xc4] sm:$0xf] }
 0x23e   :  { %14199 = vst [vmem:[#allocation5_spill] sm:$0xff] %v10725_v14  ;;  %v3281_v2 = vrot.slane %v3280_v61, 1  ;;  %v3283_v27 = vsel %vm2859_vm0, %v2793_v3, 0.0  ;;  %v3284_v37 = vsel %vm2859_vm0, %v2794_v18, 0.0  ;;  %v2084_v15 = vrot.slane %v59_v56, %v14156_v7 }
 0x23f   :  { %v3285_v53 = vadd.f32 %v3284_v37, %v3283_v27  ;;  %v1175_v44 = vadd.f32 %v1015_v59, %v525_v34  ;;  %v1176_v19 = vadd.f32 %v1016_v1, %v526_v5  ;;  %v1665_v52 = vmul.f32 %v9126_v26, %v1434_v12 }
 0x240   :  { %v3282_v21 = vadd.f32 %v3281_v2, %v3280_v61  ;;  %v1666_v49 = vmul.f32 %v9124_v24, %v1434_v12  ;;  %v2315_v63 = vmul.f32 %v9152_v30, %v2084_v15  ;;  %v2316_v3 = vmul.f32 %v9150_v58, %v2084_v15 }
 0x241   :  { %v3286_v18 = vrot.slane %v3285_v53, 4  ;;  %v10739_v56 = vsel %vm5587_vm3, %v4963_v31, %v10669_v60  ;;  %v1825_v34 = vadd.f32 %v1665_v52, %v1175_v44  ;;  %v10741_v5 = vmul.f32 0.015625, %v3971_v40 }
 0x242   :  { %14200 = vst [vmem:[#allocation8_spill] sm:$0xff] %v10739_v56  ;;  %v3626_v59 = vmax.f32 %v3282_v21, 1e-24  ;;  %v1826_v1 = vadd.f32 %v1666_v49, %v1176_v19  ;;  %v10745_v27 = vmul.f32 %v10725_v14, %v10725_v14  ;;  %v298_v61 = vrot.slane %v60_v36, %v8786_v11 }
 0x243   :  { %14201 = vst [vmem:[#allocation7_spill] sm:$0xff] %v10741_v5  ;;  %v8652_v12 = vpop.eup %8651  ;;  %v3287_v2 = vadd.f32 %v3286_v18, %v3285_v53  ;;  %v2475_v37 = vadd.f32 %v2315_v63, %v1825_v34  ;;  %v4564_v15 = vmul.f32 %v10741_v5, %v10741_v5  ;;  %v788_v60 = vrot.slane %v60_v36, %v14160_v54 }
 0x244   :  { %14202 = vst [vmem:[#allocation41_spill] sm:$0xff] %v10745_v27  ;;  %v3830_v31 = vmul.f32 %v8652_v12, %v10610_v33  ;;  %8653 = vrsqrt.f32 %v3626_v59  ;;  %v3831_v40 = vmul.f32 %v8652_v12, %v10616_v20  ;;  %v2476_v44 = vadd.f32 %v2316_v3, %v1826_v1 }
 0x245   :  { %v3288_v19 = vrot.slane %v3287_v2, 2  ;;  %v10753_v52 = vmax.f32 %v2475_v37, 0.0  ;;  %v4971_v21 = vrot.slane %v4564_v15, %v14164_v9  ;;  %v527_v49 = vmul.f32 %v9054_v17, %v298_v61 }
 0x246   :  { %v4170_v63 = vsel %vm2859_vm0, %v3830_v31, 0.0  ;;  %v4173_v53 = vsel %vm2859_vm0, %v3831_v40, 0.0  ;;  %v10759_v18 = vmax.f32 %v2476_v44, 0.0  ;;  %v528_v34 = vmul.f32 %v9090_v45, %v298_v61  ;;  %v3986_v44 = vpop.xlane.xlu1 %3985 }
 0x247   :  { %4171 = vadd.xlane.f32.xlu1 %v4170_v63  ;;  %v3289_v33 = vadd.f32 %v3288_v19, %v3287_v2  ;;  %4174 = vadd.xlane.f32.xlu0 %v4173_v53  ;;  %v2795_v20 = vmul.f32 %v10753_v52, %v10753_v52  ;;  %v1017_v1 = vmul.f32 %v9052_v10, %v788_v60  ;;  %v3977_v19 = vpop.xlane.xlu0 %3976  ;;  %v10787_v43 = vmul.f32 0.015625, %v3986_v44 }
 0x248   :  { %v2796_v59 = vmul.f32 %v10759_v18, %v10759_v18  ;;  %v1018_v12 = vmul.f32 %v9088_v0, %v788_v60  ;;  %v1438_v37 = vrot.slane %v60_v36, %v14159_v4  ;;  %v14203_v2 = vrot.slane %v10646_v57, %v14166_v35 }
 0x249   :  { %v3290_v15 = vrot.slane %v3289_v33, 1  ;;  %v3292_v61 = vsel %vm2859_vm0, %v2795_v20, 0.0  ;;  %v2088_v40 = vrot.slane %v60_v36, %v14156_v7  ;;  %v1177_v53 = vadd.f32 %v1017_v1, %v527_v49  ;;  %v61_v20 = vld [vmem:[%s13874_s0 + $0xc8] sm:$0xf]  ;;  %14205 = vst [vmem:[#allocation43_spill] sm:$0xff] %v10787_v43 }
 0x24a   :  { %v10776_v31 = vsel %vm4872_vm1, %v4971_v21, %v14203_v2  ;;  %v3293_v63 = vsel %vm2859_vm0, %v2796_v59, 0.0  ;;  %v1178_v3 = vadd.f32 %v1018_v12, %v528_v34  ;;  %v1667_v60 = vmul.f32 %v9126_v26, %v1438_v37 }
 0x24b   :  { %14204 = vst [vmem:[#allocation42_spill] sm:$0xff] %v10776_v31  ;;  %v3291_v14 = vadd.f32 %v3290_v15, %v3289_v33  ;;  %v3294_v5 = vadd.f32 %v3293_v63, %v3292_v61  ;;  %v1668_v57 = vmul.f32 %v9124_v24, %v1438_v37  ;;  %v2317_v21 = vmul.f32 %v9152_v30, %v2088_v40 }
 0x24c   :  { %v1827_v2 = vadd.f32 %v1667_v60, %v1177_v53  ;;  %v2318_v36 = vmul.f32 %v9150_v58, %v2088_v40  ;;  %v10789_v59 = vmul.f32 0.015625, %v3977_v19  ;;  %v302_v12 = vrot.slane %v61_v20, %v8786_v11 }
 0x24d   :  { %v3627_v49 = vmax.f32 %v3291_v14, 1e-24  ;;  %v3295_v34 = vrot.slane %v3294_v5, 4  ;;  %v1828_v1 = vadd.f32 %v1668_v57, %v1178_v3  ;;  %v792_v37 = vrot.slane %v61_v20, %v14160_v54 }
 0x24e   :  { %14206 = vst [vmem:[#allocation44_spill] sm:$0xff] %v10789_v59  ;;  %v8654_v39 = vpop.eup %8653  ;;  %v2477_v8 = vadd.f32 %v2317_v21, %v1827_v2  ;;  %v4566_v33 = vmul.f32 %v10789_v59, %v10789_v59  ;;  %v1442_v15 = vrot.slane %v61_v20, %v14159_v4  ;;  %v10802_v3 = vmul.f32 %v10787_v43, %v10787_v43  ;;  %v3992_v21 = vpop.xlane.xlu1 %3991 }
 0x24f   :  { %v3832_v61 = vmul.f32 %v8654_v39, %v10658_v29  ;;  %8655 = vrsqrt.f32 %v3627_v49  ;;  %v3296_v40 = vadd.f32 %v3295_v34, %v3294_v5  ;;  %v3833_v44 = vmul.f32 %v8654_v39, %v10660_v51  ;;  %v3983_v2 = vpop.xlane.xlu0 %3982 }
 0x250   :  { %v2478_v14 = vadd.f32 %v2318_v36, %v1828_v1  ;;  %v10798_v19 = vmax.f32 %v2477_v8, 0.0  ;;  %14207 = vst [vmem:[#allocation45_spill] sm:$0xff] %v10802_v3  ;;  %v529_v63 = vmul.f32 %v9054_v17, %v302_v12  ;;  %v530_v29 = vmul.f32 %v9090_v45, %v302_v12 }
 0x251   :  { %v4176_v53 = vsel %vm2859_vm0, %v3832_v61, 0.0  ;;  %v3297_v60 = vrot.slane %v3296_v40, 2  ;;  %v4179_v57 = vsel %vm2859_vm0, %v3833_v44, 0.0  ;;  %v4980_v8 = vrot.slane %v4566_v33, %v14164_v9 }
 0x252   :  { %4177 = vadd.xlane.f32.xlu1 %v4176_v53  ;;  %4180 = vadd.xlane.f32.xlu0 %v4179_v57  ;;  %v10808_v5 = vmax.f32 %v2478_v14, 0.0  ;;  %v2797_v39 = vmul.f32 %v10798_v19, %v10798_v19  ;;  %v1019_v51 = vmul.f32 %v9052_v10, %v792_v37  ;;  %v1020_v49 = vmul.f32 %v9088_v0, %v792_v37  ;;  %v62_v37 = vld [vmem:[%s13874_s0 + $0xcc] sm:$0xf] }
 0x253   :  { %v3298_v36 = vadd.f32 %v3297_v60, %v3296_v40  ;;  %v1669_v34 = vmul.f32 %v9126_v26, %v1442_v15  ;;  %v1670_v1 = vmul.f32 %v9124_v24, %v1442_v15  ;;  %v2092_v14 = vrot.slane %v61_v20, %v14156_v7  ;;  %v63_v20 = vld [vmem:[%s13874_s0 + $0xd0] sm:$0xf]  ;;  %v3989_v59 = vpop.xlane.xlu0 %3988 }
 0x254   :  { %v2798_v12 = vmul.f32 %v10808_v5, %v10808_v5  ;;  %v3301_v61 = vsel %vm2859_vm0, %v2797_v39, 0.0  ;;  %v1179_v44 = vadd.f32 %v1019_v51, %v529_v63  ;;  %v1180_v53 = vadd.f32 %v1020_v49, %v530_v29 }
 0x255   :  { %v3299_v33 = vrot.slane %v3298_v36, 1  ;;  %v10821_v57 = vmul.f32 0.015625, %v3992_v21  ;;  %v10823_v43 = vmul.f32 0.015625, %v3983_v2  ;;  %v2319_v60 = vmul.f32 %v9152_v30, %v2092_v14 }
 0x256   :  { %v3302_v15 = vsel %vm2859_vm0, %v2798_v12, 0.0  ;;  %v1829_v40 = vadd.f32 %v1669_v34, %v1179_v44  ;;  %v2320_v39 = vmul.f32 %v9150_v58, %v2092_v14  ;;  %v1830_v29 = vadd.f32 %v1670_v1, %v1180_v53 }
 0x257   :  { %14208 = vst [vmem:[#allocation46_spill] sm:$0xff] %v10821_v57  ;;  %14209 = vst [vmem:[#allocation47_spill] sm:$0xff] %v10823_v43  ;;  %v3300_v63 = vadd.f32 %v3299_v33, %v3298_v36  ;;  %v3303_v51 = vadd.f32 %v3302_v15, %v3301_v61  ;;  %v14210_v21 = vrot.slane %v10695_v62, %v14166_v35 }
 0x258   :  { %v2479_v49 = vadd.f32 %v2319_v60, %v1829_v40  ;;  %v10841_v34 = vmul.f32 %v10821_v57, %v10821_v57  ;;  %v306_v12 = vrot.slane %v62_v37, %v8786_v11  ;;  %v2480_v14 = vadd.f32 %v2320_v39, %v1830_v29 }
 0x259   :  { %v10837_v2 = vsel %vm4872_vm1, %v4980_v8, %v14210_v21  ;;  %v8656_v44 = vpop.eup %8655  ;;  %v3628_v36 = vmax.f32 %v3300_v63, 1e-24  ;;  %v3304_v61 = vrot.slane %v3303_v51, 4  ;;  %v796_v33 = vrot.slane %v62_v37, %v14160_v54  ;;  %v3998_v63 = vpop.xlane.xlu1 %3997 }
 0x25a   :  { %14211 = vst [vmem:[#allocation48_spill] sm:$0xff] %v10837_v2  ;;  %14212 = vst [vmem:[#allocation49_spill] sm:$0xff] %v10841_v34  ;;  %v3834_v1 = vmul.f32 %v8656_v44, %v10706_v32  ;;  %v3835_v62 = vmul.f32 %v8656_v44, %v10708_v47  ;;  %v10847_v53 = vmax.f32 %v2479_v49, 0.0  ;;  %v10851_v8 = vmul.f32 %v10823_v43, %v10823_v43 }
 0x25b   :  { %8657 = vrsqrt.f32 %v3628_v36  ;;  %v3305_v15 = vadd.f32 %v3304_v61, %v3303_v51  ;;  %v10853_v40 = vmax.f32 %v2480_v14, 0.0  ;;  %v531_v60 = vmul.f32 %v9054_v17, %v306_v12 }
 0x25c   :  { %14213 = vst [vmem:[#allocation50_spill] sm:$0xff] %v10851_v8  ;;  %v4182_v39 = vsel %vm2859_vm0, %v3834_v1, 0.0  ;;  %v4185_v29 = vsel %vm2859_vm0, %v3835_v62, 0.0  ;;  %v2799_v32 = vmul.f32 %v10847_v53, %v10847_v53  ;;  %v532_v47 = vmul.f32 %v9090_v45, %v306_v12 }
 0x25d   :  { %4183 = vadd.xlane.f32.xlu1 %v4182_v39  ;;  %v3306_v21 = vrot.slane %v3305_v15, 2  ;;  %4186 = vadd.xlane.f32.xlu0 %v4185_v29  ;;  %v2800_v51 = vmul.f32 %v10853_v40, %v10853_v40  ;;  %v1021_v49 = vmul.f32 %v9052_v10, %v796_v33  ;;  %v1022_v44 = vmul.f32 %v9088_v0, %v796_v33 }
 0x25e   :  { %v3310_v36 = vsel %vm2859_vm0, %v2799_v32, 0.0  ;;  %v1446_v61 = vrot.slane %v62_v37, %v14159_v4  ;;  %v2096_v14 = vrot.slane %v62_v37, %v14156_v7  ;;  %v10868_v1 = vmul.f32 0.015625, %v3998_v63 }
 0x25f   :  { %v3307_v62 = vadd.f32 %v3306_v21, %v3305_v15  ;;  %v3311_v12 = vsel %vm2859_vm0, %v2800_v51, 0.0  ;;  %v1181_v39 = vadd.f32 %v1021_v49, %v531_v60  ;;  %v1182_v29 = vadd.f32 %v1022_v44, %v532_v47 }
 0x260   :  { %14214 = vst [vmem:[#allocation51_spill] sm:$0xff] %v10868_v1  ;;  %v3312_v57 = vadd.f32 %v3311_v12, %v3310_v36  ;;  %v1671_v33 = vmul.f32 %v9126_v26, %v1446_v61  ;;  %v1672_v32 = vmul.f32 %v9124_v24, %v1446_v61  ;;  %v2321_v43 = vmul.f32 %v9152_v30, %v2096_v14 }
 0x261   :  { %v3308_v37 = vrot.slane %v3307_v62, 1  ;;  %v2322_v63 = vmul.f32 %v9150_v58, %v2096_v14  ;;  %v10882_v60 = vmul.f32 %v10868_v1, %v10868_v1  ;;  %v310_v49 = vrot.slane %v63_v20, %v8786_v11 }
 0x262   :  { %v3313_v47 = vrot.slane %v3312_v57, 4  ;;  %v1831_v21 = vadd.f32 %v1671_v33, %v1181_v39  ;;  %v1832_v51 = vadd.f32 %v1672_v32, %v1182_v29  ;;  %v10887_v61 = vmul.f32 0.015625, %v3989_v59 }
 0x263   :  { %v3309_v44 = vadd.f32 %v3308_v37, %v3307_v62  ;;  %v800_v12 = vrot.slane %v63_v20, %v14160_v54  ;;  %v533_v39 = vmul.f32 %v9054_v17, %v310_v49  ;;  %v534_v29 = vmul.f32 %v9090_v45, %v310_v49 }
 0x264   :  { %14215 = vst [vmem:[#allocation52_spill] sm:$0xff] %v10887_v61  ;;  %v3314_v15 = vadd.f32 %v3313_v47, %v3312_v57  ;;  %v2481_v25 = vadd.f32 %v2321_v43, %v1831_v21  ;;  %v2482_v14 = vadd.f32 %v2322_v63, %v1832_v51  ;;  %v4004_v43 = vpop.xlane.xlu1 %4003  ;;  %v10903_v63 = vmul.f32 %v10887_v61, %v10887_v61 }
 0x265   :  { %v8658_v13 = vpop.eup %8657  ;;  %v3629_v28 = vmax.f32 %v3309_v44, 1e-24  ;;  %v1023_v62 = vmul.f32 %v9052_v10, %v800_v12  ;;  %v1024_v47 = vmul.f32 %v9088_v0, %v800_v12  ;;  %v1450_v49 = vrot.slane %v63_v20, %v14159_v4 }
 0x266   :  { %v3836_v33 = vmul.f32 %v8658_v13, %v10753_v52  ;;  %v3315_v59 = vrot.slane %v3314_v15, 2  ;;  %v3837_v32 = vmul.f32 %v8658_v13, %v10759_v18  ;;  %v10897_v37 = vmax.f32 %v2481_v25, 0.0  ;;  %14216 = vst [vmem:[#allocation53_spill] sm:$0xff] %v10903_v63  ;;  %v3995_v25 = vpop.xlane.xlu0 %3994 }
 0x267   :  { %8659 = vrsqrt.f32 %v3629_v28  ;;  %v10899_v57 = vmax.f32 %v2482_v14, 0.0  ;;  %v1183_v18 = vadd.f32 %v1023_v62, %v533_v39  ;;  %v10913_v44 = vmul.f32 0.015625, %v4004_v43  ;;  %v64_v39 = vld [vmem:[%s13874_s0 + $0xd4] sm:$0xf] }
 0x268   :  { %v4188_v21 = vsel %vm2859_vm0, %v3836_v33, 0.0  ;;  %v3316_v51 = vadd.f32 %v3315_v59, %v3314_v15  ;;  %v4191_v52 = vsel %vm2859_vm0, %v3837_v32, 0.0  ;;  %v2801_v13 = vmul.f32 %v10897_v37, %v10897_v37 }
 0x269   :  { %4189 = vadd.xlane.f32.xlu1 %v4188_v21  ;;  %4192 = vadd.xlane.f32.xlu0 %v4191_v52  ;;  %v2802_v28 = vmul.f32 %v10899_v57, %v10899_v57  ;;  %14217 = vst [vmem:[#allocation54_spill] sm:$0xff] %v10913_v44  ;;  %v1184_v15 = vadd.f32 %v1024_v47, %v534_v29  ;;  %v10920_v52 = vmul.f32 0.015625, %v3995_v25 }
 0x26a   :  { %v3317_v12 = vrot.slane %v3316_v51, 1  ;;  %v3319_v14 = vsel %vm2859_vm0, %v2801_v13, 0.0  ;;  %v2100_v33 = vrot.slane %v63_v20, %v14156_v7  ;;  %v1673_v32 = vmul.f32 %v9126_v26, %v1450_v49  ;;  %v4001_v61 = vpop.xlane.xlu0 %4000 }
 0x26b   :  { %v3320_v59 = vsel %vm2859_vm0, %v2802_v28, 0.0  ;;  %v1674_v21 = vmul.f32 %v9124_v24, %v1450_v49  ;;  %14218 = vst [vmem:[#allocation55_spill] sm:$0xff] %v10920_v52  ;;  %v10931_v28 = vmul.f32 %v10913_v44, %v10913_v44  ;;  %v314_v1 = vrot.slane %v64_v39, %v8786_v11 }
 0x26c   :  { %v3318_v62 = vadd.f32 %v3317_v12, %v3316_v51  ;;  %v3321_v43 = vadd.f32 %v3320_v59, %v3319_v14  ;;  %v2323_v36 = vmul.f32 %v9152_v30, %v2100_v33  ;;  %v2324_v29 = vmul.f32 %v9150_v58, %v2100_v33 }
 0x26d   :  { %v1833_v47 = vadd.f32 %v1673_v32, %v1183_v18  ;;  %v1834_v13 = vadd.f32 %v1674_v21, %v1184_v15  ;;  %v804_v51 = vrot.slane %v64_v39, %v14160_v54  ;;  %v10937_v33 = vmul.f32 %v10920_v52, %v10920_v52 }
 0x26e   :  { %v3630_v25 = vmax.f32 %v3318_v62, 1e-24  ;;  %v3322_v49 = vrot.slane %v3321_v43, 4  ;;  %v1454_v59 = vrot.slane %v64_v39, %v14159_v4  ;;  %v535_v15 = vmul.f32 %v9054_v17, %v314_v1 }
 0x26f   :  { %v2483_v12 = vadd.f32 %v2323_v36, %v1833_v47  ;;  %v2484_v14 = vadd.f32 %v2324_v29, %v1834_v13  ;;  %14219 = vst [vmem:[#allocation56_spill] sm:$0xff] %v10937_v33  ;;  %v536_v32 = vmul.f32 %v9090_v45, %v314_v1  ;;  %v1025_v36 = vmul.f32 %v9052_v10, %v804_v51 }
 0x270   :  { %8661 = vrsqrt.f32 %v3630_v25  ;;  %v3323_v18 = vadd.f32 %v3322_v49, %v3321_v43  ;;  %v1026_v29 = vmul.f32 %v9088_v0, %v804_v51  ;;  %v1675_v43 = vmul.f32 %v9126_v26, %v1454_v59 }
 0x271   :  { %v8660_v21 = vpop.eup %8659  ;;  %v10942_v62 = vmax.f32 %v2483_v12, 0.0  ;;  %v10944_v20 = vmax.f32 %v2484_v14, 0.0  ;;  %v1185_v49 = vadd.f32 %v1025_v36, %v535_v15 }
 0x272   :  { %v3838_v47 = vmul.f32 %v8660_v21, %v10798_v19  ;;  %v3324_v13 = vrot.slane %v3323_v18, 2  ;;  %v3839_v44 = vmul.f32 %v8660_v21, %v10808_v5  ;;  %v1186_v12 = vadd.f32 %v1026_v29, %v536_v32  ;;  %v65_v5 = vld [vmem:[%s13874_s0 + $0xd8] sm:$0xf]  ;;  %v4010_v29 = vpop.xlane.xlu1 %4009 }
 0x273   :  { %v2803_v25 = vmul.f32 %v10942_v62, %v10942_v62  ;;  %v2804_v1 = vmul.f32 %v10944_v20, %v10944_v20  ;;  %v1676_v19 = vmul.f32 %v9124_v24, %v1454_v59  ;;  %v1835_v36 = vadd.f32 %v1675_v43, %v1185_v49 }
 0x274   :  { %v4194_v14 = vsel %vm2859_vm0, %v3838_v47, 0.0  ;;  %v3325_v52 = vadd.f32 %v3324_v13, %v3323_v18  ;;  %v4197_v51 = vsel %vm2859_vm0, %v3839_v44, 0.0  ;;  %v2104_v18 = vrot.slane %v64_v39, %v14156_v7 }
 0x275   :  { %4195 = vadd.xlane.f32.xlu1 %v4194_v14  ;;  %4198 = vadd.xlane.f32.xlu0 %v4197_v51  ;;  %v3328_v21 = vsel %vm2859_vm0, %v2803_v25, 0.0  ;;  %v3329_v6 = vsel %vm2859_vm0, %v2804_v1, 0.0  ;;  %v1836_v59 = vadd.f32 %v1676_v19, %v1186_v12  ;;  %v10968_v14 = vmul.f32 0.015625, %v4001_v61 }
 0x276   :  { %v3326_v32 = vrot.slane %v3325_v52, 1  ;;  %v3330_v44 = vadd.f32 %v3329_v6, %v3328_v21  ;;  %v2325_v47 = vmul.f32 %v9152_v30, %v2104_v18  ;;  %v2326_v13 = vmul.f32 %v9150_v58, %v2104_v18 }
 0x277   :  { %14220 = vst [vmem:[#allocation57_spill] sm:$0xff] %v10968_v14  ;;  %v318_v25 = vrot.slane %v65_v5, %v8786_v11  ;;  %v808_v39 = vrot.slane %v65_v5, %v14160_v54  ;;  %v10974_v43 = vmul.f32 0.015625, %v4010_v29  ;;  %v4574_v49 = vmul.f32 %v10968_v14, %v10968_v14 }
 0x278   :  { %v3327_v51 = vadd.f32 %v3326_v32, %v3325_v52  ;;  %v3331_v1 = vrot.slane %v3330_v44, 4  ;;  %v2485_v38 = vadd.f32 %v2325_v47, %v1835_v36  ;;  %v2486_v6 = vadd.f32 %v2326_v13, %v1836_v59 }
 0x279   :  { %14221 = vst [vmem:[#allocation58_spill] sm:$0xff] %v10974_v43  ;;  %v537_v21 = vmul.f32 %v9054_v17, %v318_v25  ;;  %v538_v52 = vmul.f32 %v9090_v45, %v318_v25  ;;  %v5016_v29 = vrot.slane %v4574_v49, %v14164_v9  ;;  %v1027_v47 = vmul.f32 %v9052_v10, %v808_v39 }
 0x27a   :  { %v8662_v12 = vpop.eup %8661  ;;  %v3631_v19 = vmax.f32 %v3327_v51, 1e-24  ;;  %v3332_v61 = vadd.f32 %v3331_v1, %v3330_v44  ;;  %v10982_v15 = vmax.f32 %v2485_v38, 0.0  ;;  %v10984_v36 = vmax.f32 %v2486_v6, 0.0  ;;  %v4007_v1 = vpop.xlane.xlu0 %4006 }
 0x27b   :  { %v3840_v18 = vmul.f32 %v8662_v12, %v10847_v53  ;;  %v3841_v32 = vmul.f32 %v8662_v12, %v10853_v40  ;;  %v10996_v40 = vmul.f32 %v10974_v43, %v10974_v43  ;;  %v1028_v51 = vmul.f32 %v9088_v0, %v808_v39 }
 0x27c   :  { %8663 = vrsqrt.f32 %v3631_v19  ;;  %v3333_v59 = vrot.slane %v3332_v61, 2  ;;  %v2805_v25 = vmul.f32 %v10982_v15, %v10982_v15  ;;  %v2806_v53 = vmul.f32 %v10984_v36, %v10984_v36 }
 0x27d   :  { %v4200_v44 = vsel %vm2859_vm0, %v3840_v18, 0.0  ;;  %v4203_v13 = vsel %vm2859_vm0, %v3841_v32, 0.0  ;;  %v14222_v12 = vrot.slane %v10882_v60, %v14166_v35  ;;  %v1188_v39 = vadd.f32 %v1028_v51, %v538_v52  ;;  %v66_v60 = vld [vmem:[%s13874_s0 + $0xdc] sm:$0xf] }
 0x27e   :  { %4201 = vadd.xlane.f32.xlu1 %v4200_v44  ;;  %v3334_v38 = vadd.f32 %v3333_v59, %v3332_v61  ;;  %4204 = vadd.xlane.f32.xlu0 %v4203_v13  ;;  %v3337_v6 = vsel %vm2859_vm0, %v2805_v25, 0.0  ;;  %v3338_v49 = vsel %vm2859_vm0, %v2806_v53, 0.0  ;;  %v1458_v61 = vrot.slane %v65_v5, %v14159_v4  ;;  %v4016_v13 = vpop.xlane.xlu1 %4015 }
 0x27f   :  { %v11005_v19 = vsel %vm4872_vm1, %v5016_v29, %v14222_v12  ;;  %v3339_v32 = vadd.f32 %v3338_v49, %v3337_v6  ;;  %v1187_v59 = vadd.f32 %v1027_v47, %v537_v21  ;;  %v2108_v44 = vrot.slane %v65_v5, %v14156_v7 }
 0x280   :  { %v3335_v18 = vrot.slane %v3334_v38, 1  ;;  %v1677_v43 = vmul.f32 %v9126_v26, %v1458_v61  ;;  %v1678_v25 = vmul.f32 %v9124_v24, %v1458_v61  ;;  %v11011_v53 = vmul.f32 0.015625, %v4007_v1 }
 0x281   :  { %v3340_v12 = vrot.slane %v3339_v32, 4  ;;  %v2327_v14 = vmul.f32 %v9152_v30, %v2108_v44  ;;  %v2328_v21 = vmul.f32 %v9150_v58, %v2108_v44  ;;  %v11018_v6 = vmul.f32 0.015625, %v4016_v13 }
 0x282   :  { %14223 = vst [vmem:[#allocation59_spill] sm:$0xff] %v11011_v53  ;;  %v3336_v29 = vadd.f32 %v3335_v18, %v3334_v38  ;;  %v1837_v47 = vadd.f32 %v1677_v43, %v1187_v59  ;;  %v1838_v5 = vadd.f32 %v1678_v25, %v1188_v39  ;;  %v4576_v52 = vmul.f32 %v11011_v53, %v11011_v53 }
 0x283   :  { %14224 = vst [vmem:[#allocation60_spill] sm:$0xff] %v11018_v6  ;;  %v3341_v1 = vadd.f32 %v3340_v12, %v3339_v32  ;;  %v322_v49 = vrot.slane %v66_v60, %v8786_v11  ;;  %v812_v61 = vrot.slane %v66_v60, %v14160_v54  ;;  %v1462_v33 = vrot.slane %v66_v60, %v14159_v4 }
 0x284   :  { %v3632_v51 = vmax.f32 %v3336_v29, 1e-24  ;;  %v2487_v2 = vadd.f32 %v2327_v14, %v1837_v47  ;;  %v2488_v38 = vadd.f32 %v2328_v21, %v1838_v5  ;;  %v5025_v18 = vrot.slane %v4576_v52, %v14164_v9 }
 0x285   :  { %v3342_v43 = vrot.slane %v3341_v1, 2  ;;  %v539_v59 = vmul.f32 %v9054_v17, %v322_v49  ;;  %v540_v13 = vmul.f32 %v9090_v45, %v322_v49  ;;  %v11036_v12 = vmul.f32 %v11018_v6, %v11018_v6 }
 0x286   :  { %v8664_v44 = vpop.eup %8663  ;;  %8665 = vrsqrt.f32 %v3632_v51  ;;  %v11030_v25 = vmax.f32 %v2487_v2, 0.0  ;;  %v11032_v29 = vmax.f32 %v2488_v38, 0.0  ;;  %v1029_v21 = vmul.f32 %v9052_v10, %v812_v61 }
 0x287   :  { %v3842_v39 = vmul.f32 %v8664_v44, %v10897_v37  ;;  %v3843_v32 = vmul.f32 %v8664_v44, %v10899_v57  ;;  %v3343_v14 = vadd.f32 %v3342_v43, %v3341_v1  ;;  %v1030_v47 = vmul.f32 %v9088_v0, %v812_v61  ;;  %v4022_v57 = vpop.xlane.xlu1 %4021  ;;  %v4013_v44 = vpop.xlane.xlu0 %4012  ;;  %v67_v43 = vld [vmem:[%s13874_s0 + $0xe0] sm:$0xf] }
 0x288   :  { %v2807_v37 = vmul.f32 %v11030_v25, %v11030_v25  ;;  %v2808_v2 = vmul.f32 %v11032_v29, %v11032_v29  ;;  %v14225_v1 = vrot.slane %v10931_v28, %v14166_v35  ;;  %v1189_v61 = vadd.f32 %v1029_v21, %v539_v59 }
 0x289   :  { %v4206_v5 = vsel %vm2859_vm0, %v3842_v39, 0.0  ;;  %v4209_v52 = vsel %vm2859_vm0, %v3843_v32, 0.0  ;;  %v3344_v51 = vrot.slane %v3343_v14, 1  ;;  %v1190_v38 = vadd.f32 %v1030_v47, %v540_v13 }
 0x28a   :  { %4207 = vadd.xlane.f32.xlu1 %v4206_v5  ;;  %4210 = vadd.xlane.f32.xlu0 %v4209_v52  ;;  %v5026_v49 = vsel %vm4872_vm1, %v5025_v18, %v14225_v1  ;;  %v3346_v39 = vsel %vm2859_vm0, %v2807_v37, 0.0  ;;  %v3347_v32 = vsel %vm2859_vm0, %v2808_v2, 0.0  ;;  %v1679_v5 = vmul.f32 %v9126_v26, %v1462_v33 }
 0x28b   :  { %v1680_v52 = vmul.f32 %v9124_v24, %v1462_v33  ;;  %v3345_v6 = vadd.f32 %v3344_v51, %v3343_v14  ;;  %v3348_v53 = vadd.f32 %v3347_v32, %v3346_v39  ;;  %v2112_v28 = vrot.slane %v66_v60, %v14156_v7 }
 0x28c   :  { %v11058_v18 = vmul.f32 0.015625, %v4022_v57  ;;  %v1839_v59 = vadd.f32 %v1679_v5, %v1189_v61  ;;  %v11060_v21 = vmul.f32 0.015625, %v4013_v44  ;;  %v326_v47 = vrot.slane %v67_v43, %v8786_v11 }
 0x28d   :  { %v1840_v13 = vadd.f32 %v1680_v52, %v1190_v38  ;;  %v3633_v1 = vmax.f32 %v3345_v6, 1e-24  ;;  %v3349_v37 = vrot.slane %v3348_v53, 4  ;;  %v2329_v2 = vmul.f32 %v9152_v30, %v2112_v28 }
 0x28e   :  { %14226 = vst [vmem:[#allocation61_spill] sm:$0xff] %v11058_v18  ;;  %14227 = vst [vmem:[#allocation62_spill] sm:$0xff] %v11060_v21  ;;  %v2330_v34 = vmul.f32 %v9150_v58, %v2112_v28  ;;  %v5030_v33 = vrot.slane %v10996_v40, %v14166_v35  ;;  %v11071_v14 = vsel %vm5585_vm2, %v5026_v49, %v11005_v19 }
 0x28f   :  { %v11075_v57 = vmul.f32 %v11058_v18, %v11058_v18  ;;  %8667 = vrsqrt.f32 %v3633_v1  ;;  %v3350_v51 = vadd.f32 %v3349_v37, %v3348_v53  ;;  %v2489_v61 = vadd.f32 %v2329_v2, %v1839_v59 }
 0x290   :  { %v8666_v6 = vpop.eup %8665  ;;  %v2490_v38 = vadd.f32 %v2330_v34, %v1840_v13  ;;  %v4578_v39 = vmul.f32 %v11060_v21, %v11060_v21  ;;  %v541_v32 = vmul.f32 %v9054_v17, %v326_v47  ;;  %v816_v52 = vrot.slane %v67_v43, %v14160_v54 }
 0x291   :  { %v3844_v44 = vmul.f32 %v8666_v6, %v10942_v62  ;;  %v3845_v40 = vmul.f32 %v8666_v6, %v10944_v20  ;;  %v3351_v19 = vrot.slane %v3350_v51, 2  ;;  %v11082_v49 = vmax.f32 %v2489_v61, 0.0  ;;  %v4019_v61 = vpop.xlane.xlu0 %4018 }
 0x292   :  { %v11084_v5 = vmax.f32 %v2490_v38, 0.0  ;;  %v542_v62 = vmul.f32 %v9090_v45, %v326_v47  ;;  %v1466_v20 = vrot.slane %v67_v43, %v14159_v4  ;;  %v5034_v1 = vrot.slane %v4578_v39, %v14164_v9  ;;  %v4028_v47 = vpop.xlane.xlu1 %4027 }
 0x293   :  { %v4212_v53 = vsel %vm2859_vm0, %v3844_v44, 0.0  ;;  %v4215_v34 = vsel %vm2859_vm0, %v3845_v40, 0.0  ;;  %v3352_v28 = vadd.f32 %v3351_v19, %v3350_v51  ;;  %v2809_v59 = vmul.f32 %v11082_v49, %v11082_v49 }
 0x294   :  { %4213 = vadd.xlane.f32.xlu1 %v4212_v53  ;;  %4216 = vadd.xlane.f32.xlu0 %v4215_v34  ;;  %v2810_v13 = vmul.f32 %v11084_v5, %v11084_v5  ;;  %v1031_v37 = vmul.f32 %v9052_v10, %v816_v52  ;;  %v1032_v2 = vmul.f32 %v9088_v0, %v816_v52  ;;  %v68_v52 = vld [vmem:[%s13874_s0 + $0xe4] sm:$0xf]  ;;  %v11108_v21 = vmul.f32 0.015625, %v4028_v47 }
 0x295   :  { %v1681_v6 = vmul.f32 %v9126_v26, %v1466_v20  ;;  %v3353_v38 = vrot.slane %v3352_v28, 1  ;;  %v3355_v51 = vsel %vm2859_vm0, %v2809_v59, 0.0  ;;  %v1682_v40 = vmul.f32 %v9124_v24, %v1466_v20 }
 0x296   :  { %v3356_v44 = vsel %vm2859_vm0, %v2810_v13, 0.0  ;;  %v1191_v39 = vadd.f32 %v1031_v37, %v541_v32  ;;  %v2116_v34 = vrot.slane %v67_v43, %v14156_v7  ;;  %v1192_v18 = vadd.f32 %v1032_v2, %v542_v62  ;;  %14228 = vst [vmem:[#allocation63_spill] sm:$0xff] %v11108_v21 }
 0x297   :  { %v3357_v19 = vadd.f32 %v3356_v44, %v3355_v51  ;;  %v3354_v60 = vadd.f32 %v3353_v38, %v3352_v28  ;;  %v11110_v59 = vmul.f32 0.015625, %v4019_v61  ;;  %v5035_v20 = vsel %vm4872_vm1, %v5034_v1, %v5030_v33 }
 0x298   :  { %v1841_v51 = vadd.f32 %v1681_v6, %v1191_v39  ;;  %v2331_v44 = vmul.f32 %v9152_v30, %v2116_v34  ;;  %v1842_v37 = vadd.f32 %v1682_v40, %v1192_v18  ;;  %v2332_v43 = vmul.f32 %v9150_v58, %v2116_v34 }
 0x299   :  { %14229 = vst [vmem:[#allocation64_spill] sm:$0xff] %v11110_v59  ;;  %v3358_v13 = vrot.slane %v3357_v19, 4  ;;  %v8668_v53 = vpop.eup %8667  ;;  %v3634_v32 = vmax.f32 %v3354_v60, 1e-24  ;;  %v330_v31 = vrot.slane %v68_v52, %v8786_v11  ;;  %v11120_v33 = vmul.f32 %v11108_v21, %v11108_v21 }
 0x29a   :  { %v3846_v28 = vmul.f32 %v8668_v53, %v10982_v15  ;;  %v3847_v2 = vmul.f32 %v8668_v53, %v10984_v36  ;;  %v2491_v47 = vadd.f32 %v2331_v44, %v1841_v51  ;;  %v2492_v61 = vadd.f32 %v2332_v43, %v1842_v37 }
 0x29b   :  { %v3359_v62 = vadd.f32 %v3358_v13, %v3357_v19  ;;  %8669 = vrsqrt.f32 %v3634_v32  ;;  %14230 = vst [vmem:[#allocation65_spill] sm:$0xff] %v11120_v33  ;;  %v4580_v60 = vmul.f32 %v11110_v59, %v11110_v59  ;;  %v543_v36 = vmul.f32 %v9054_v17, %v330_v31 }
 0x29c   :  { %v4218_v18 = vsel %vm2859_vm0, %v3846_v28, 0.0  ;;  %v4221_v6 = vsel %vm2859_vm0, %v3847_v2, 0.0  ;;  %v11126_v38 = vmax.f32 %v2491_v47, 0.0  ;;  %v11128_v15 = vmax.f32 %v2492_v61, 0.0  ;;  %v4034_v2 = vpop.xlane.xlu1 %4033 }
 0x29d   :  { %v3360_v1 = vrot.slane %v3359_v62, 2  ;;  %4219 = vadd.xlane.f32.xlu1 %v4218_v18  ;;  %4222 = vadd.xlane.f32.xlu0 %v4221_v6  ;;  %v544_v40 = vmul.f32 %v9090_v45, %v330_v31  ;;  %v820_v19 = vrot.slane %v68_v52, %v14160_v54  ;;  %v1470_v34 = vrot.slane %v68_v52, %v14159_v4 }
 0x29e   :  { %v2811_v39 = vmul.f32 %v11126_v38, %v11126_v38  ;;  %v2120_v13 = vrot.slane %v68_v52, %v14156_v7  ;;  %v2812_v51 = vmul.f32 %v11128_v15, %v11128_v15  ;;  %v5043_v44 = vrot.slane %v4580_v60, %v14164_v9  ;;  %v69_v52 = vld [vmem:[%s13874_s0 + $0xe8] sm:$0xf] }
 0x29f   :  { %v3361_v53 = vadd.f32 %v3360_v1, %v3359_v62  ;;  %v1033_v32 = vmul.f32 %v9052_v10, %v820_v19  ;;  %v1034_v37 = vmul.f32 %v9088_v0, %v820_v19  ;;  %v1683_v28 = vmul.f32 %v9126_v26, %v1470_v34 }
 0x2a0   :  { %v3364_v43 = vsel %vm2859_vm0, %v2811_v39, 0.0  ;;  %v1684_v62 = vmul.f32 %v9124_v24, %v1470_v34  ;;  %v3365_v47 = vsel %vm2859_vm0, %v2812_v51, 0.0  ;;  %v2333_v18 = vmul.f32 %v9152_v30, %v2120_v13  ;;  %v4025_v34 = vpop.xlane.xlu0 %4024 }
 0x2a1   :  { %v3362_v31 = vrot.slane %v3361_v53, 1  ;;  %v1193_v61 = vadd.f32 %v1033_v32, %v543_v36  ;;  %v1194_v60 = vadd.f32 %v1034_v37, %v544_v40  ;;  %v11152_v6 = vsel %vm5587_vm3, %v5035_v20, %v11071_v14 }
 0x2a2   :  { %14231 = vst [vmem:[#allocation66_spill] sm:$0xff] %v11152_v6  ;;  %v3366_v19 = vadd.f32 %v3365_v47, %v3364_v43  ;;  %v2334_v39 = vmul.f32 %v9150_v58, %v2120_v13  ;;  %v11155_v56 = vmul.f32 0.015625, %v4034_v2  ;;  %v334_v63 = vrot.slane %v69_v52, %v8786_v11 }
 0x2a3   :  { %v3363_v1 = vadd.f32 %v3362_v31, %v3361_v53  ;;  %v1843_v21 = vadd.f32 %v1683_v28, %v1193_v61  ;;  %v1844_v59 = vadd.f32 %v1684_v62, %v1194_v60  ;;  %v824_v53 = vrot.slane %v69_v52, %v14160_v54 }
 0x2a4   :  { %14232 = vst [vmem:[#allocation67_spill] sm:$0xff] %v11155_v56  ;;  %v3367_v36 = vrot.slane %v3366_v19, 4  ;;  %v14233_v14 = vrot.slane %v11036_v12, %v14166_v35  ;;  %v11167_v31 = vmul.f32 0.015625, %v4025_v34  ;;  %v11177_v12 = vmul.f32 %v11155_v56, %v11155_v56 }
 0x2a5   :  { %v3635_v51 = vmax.f32 %v3363_v1, 1e-24  ;;  %v8670_v32 = vpop.eup %8669  ;;  %v2493_v13 = vadd.f32 %v2333_v18, %v1843_v21  ;;  %v2494_v37 = vadd.f32 %v2334_v39, %v1844_v59  ;;  %v546_v18 = vmul.f32 %v9090_v45, %v334_v63 }
 0x2a6   :  { %v11165_v20 = vsel %vm4872_vm1, %v5043_v44, %v14233_v14  ;;  %14235 = vst [vmem:[#allocation69_spill] sm:$0xff] %v11167_v31  ;;  %v3848_v43 = vmul.f32 %v8670_v32, %v11030_v25  ;;  %v3368_v28 = vadd.f32 %v3367_v36, %v3366_v19  ;;  %v3849_v62 = vmul.f32 %v8670_v32, %v11032_v29 }
 0x2a7   :  { %14234 = vst [vmem:[#allocation68_spill] sm:$0xff] %v11165_v20  ;;  %8671 = vrsqrt.f32 %v3635_v51  ;;  %v11171_v2 = vmax.f32 %v2493_v13, 0.0  ;;  %v11173_v47 = vmax.f32 %v2494_v37, 0.0  ;;  %14236 = vst [vmem:[#allocation70_spill] sm:$0xff] %v11177_v12  ;;  %v545_v44 = vmul.f32 %v9054_v17, %v334_v63  ;;  %v4040_v13 = vpop.xlane.xlu1 %4039 }
 0x2a8   :  { %v4224_v21 = vsel %vm2859_vm0, %v3848_v43, 0.0  ;;  %v3369_v59 = vrot.slane %v3368_v28, 2  ;;  %v4227_v61 = vsel %vm2859_vm0, %v3849_v62, 0.0  ;;  %v1035_v25 = vmul.f32 %v9052_v10, %v824_v53  ;;  %v4031_v62 = vpop.xlane.xlu0 %4030 }
 0x2a9   :  { %4225 = vadd.xlane.f32.xlu1 %v4224_v21  ;;  %4228 = vadd.xlane.f32.xlu0 %v4227_v61  ;;  %v2813_v29 = vmul.f32 %v11171_v2, %v11171_v2  ;;  %v2814_v60 = vmul.f32 %v11173_v47, %v11173_v47  ;;  %v4582_v19 = vmul.f32 %v11167_v31, %v11167_v31 }
 0x2aa   :  { %v3370_v1 = vadd.f32 %v3369_v59, %v3368_v28  ;;  %v1036_v39 = vmul.f32 %v9088_v0, %v824_v53  ;;  %v1474_v34 = vrot.slane %v69_v52, %v14159_v4  ;;  %v2124_v14 = vrot.slane %v69_v52, %v14156_v7  ;;  %v70_v53 = vld [vmem:[%s13874_s0 + $0xec] sm:$0xf] }
 0x2ab   :  { %v3373_v51 = vsel %vm2859_vm0, %v2813_v29, 0.0  ;;  %v3374_v36 = vsel %vm2859_vm0, %v2814_v60, 0.0  ;;  %v1195_v43 = vadd.f32 %v1035_v25, %v545_v44  ;;  %v5052_v32 = vrot.slane %v4582_v19, %v14164_v9 }
 0x2ac   :  { %v3371_v37 = vrot.slane %v3370_v1, 1  ;;  %v3375_v63 = vadd.f32 %v3374_v36, %v3373_v51  ;;  %v1685_v28 = vmul.f32 %v9126_v26, %v1474_v34  ;;  %v1196_v21 = vadd.f32 %v1036_v39, %v546_v18 }
 0x2ad   :  { %v1686_v59 = vmul.f32 %v9124_v24, %v1474_v34  ;;  %v2335_v61 = vmul.f32 %v9152_v30, %v2124_v14  ;;  %v2336_v29 = vmul.f32 %v9150_v58, %v2124_v14  ;;  %v11205_v25 = vmul.f32 0.015625, %v4040_v13 }
 0x2ae   :  { %v3372_v60 = vadd.f32 %v3371_v37, %v3370_v1  ;;  %v3376_v52 = vrot.slane %v3375_v63, 4  ;;  %v1845_v51 = vadd.f32 %v1685_v28, %v1195_v43  ;;  %v11207_v36 = vmul.f32 0.015625, %v4031_v62  ;;  %v4046_v43 = vpop.xlane.xlu1 %4045 }
 0x2af   :  { %v1846_v44 = vadd.f32 %v1686_v59, %v1196_v21  ;;  %14237 = vst [vmem:[#allocation71_spill] sm:$0xff] %v11205_v25  ;;  %v338_v40 = vrot.slane %v70_v53, %v8786_v11  ;;  %v828_v31 = vrot.slane %v70_v53, %v14160_v54  ;;  %v1478_v19 = vrot.slane %v70_v53, %v14159_v4 }
 0x2b0   :  { %14238 = vst [vmem:[#allocation72_spill] sm:$0xff] %v11207_v36  ;;  %v3636_v18 = vmax.f32 %v3372_v60, 1e-24  ;;  %v3377_v39 = vadd.f32 %v3376_v52, %v3375_v63  ;;  %v2495_v34 = vadd.f32 %v2335_v61, %v1845_v51 }
 0x2b1   :  { %v8672_v56 = vpop.eup %8671  ;;  %v2496_v37 = vadd.f32 %v2336_v29, %v1846_v44  ;;  %v547_v62 = vmul.f32 %v9054_v17, %v338_v40  ;;  %v1037_v61 = vmul.f32 %v9052_v10, %v828_v31  ;;  %v11225_v29 = vmul.f32 0.015625, %v4046_v43 }
 0x2b2   :  { %v3850_v14 = vmul.f32 %v8672_v56, %v11082_v49  ;;  %v3851_v1 = vmul.f32 %v8672_v56, %v11084_v5  ;;  %8673 = vrsqrt.f32 %v3636_v18  ;;  %v3378_v13 = vrot.slane %v3377_v39, 2 }
 0x2b3   :  { %v11214_v28 = vmax.f32 %v2495_v34, 0.0  ;;  %v11219_v59 = vmax.f32 %v2496_v37, 0.0  ;;  %v548_v49 = vmul.f32 %v9090_v45, %v338_v40  ;;  %14239 = vst [vmem:[#allocation73_spill] sm:$0xff] %v11225_v29  ;;  %v1038_v52 = vmul.f32 %v9088_v0, %v828_v31 }
 0x2b4   :  { %v4230_v21 = vsel %vm2859_vm0, %v3850_v14, 0.0  ;;  %v4233_v63 = vsel %vm2859_vm0, %v3851_v1, 0.0  ;;  %v3379_v56 = vadd.f32 %v3378_v13, %v3377_v39  ;;  %v1687_v51 = vmul.f32 %v9126_v26, %v1478_v19 }
 0x2b5   :  { %4231 = vadd.xlane.f32.xlu1 %v4230_v21  ;;  %4234 = vadd.xlane.f32.xlu0 %v4233_v63  ;;  %v2815_v5 = vmul.f32 %v11214_v28, %v11214_v28  ;;  %v2816_v60 = vmul.f32 %v11219_v59, %v11219_v59  ;;  %v1688_v44 = vmul.f32 %v9124_v24, %v1478_v19  ;;  %v71_v19 = vld [vmem:[%s13874_s0 + $0xf0] sm:$0xf] }
 0x2b6   :  { %v3380_v40 = vrot.slane %v3379_v56, 1  ;;  %v1197_v39 = vadd.f32 %v1037_v61, %v547_v62  ;;  %v2128_v34 = vrot.slane %v70_v53, %v14156_v7  ;;  %v14240_v14 = vrot.slane %v11075_v57, %v14166_v35  ;;  %v4037_v57 = vpop.xlane.xlu0 %4036 }
 0x2b7   :  { %v3382_v18 = vsel %vm2859_vm0, %v2815_v5, 0.0  ;;  %v3383_v37 = vsel %vm2859_vm0, %v2816_v60, 0.0  ;;  %v11243_v31 = vmul.f32 %v11205_v25, %v11205_v25  ;;  %v1198_v43 = vadd.f32 %v1038_v52, %v548_v49 }
 0x2b8   :  { %v11238_v1 = vsel %vm4872_vm1, %v5052_v32, %v14240_v14  ;;  %v3381_v13 = vadd.f32 %v3380_v40, %v3379_v56  ;;  %v3384_v62 = vadd.f32 %v3383_v37, %v3382_v18  ;;  %v1847_v53 = vadd.f32 %v1687_v51, %v1197_v39 }
 0x2b9   :  { %14241 = vst [vmem:[#allocation74_spill] sm:$0xff] %v11238_v1  ;;  %14242 = vst [vmem:[#allocation75_spill] sm:$0xff] %v11243_v31  ;;  %v2337_v21 = vmul.f32 %v9152_v30, %v2128_v34  ;;  %v11251_v32 = vmul.f32 %v11207_v36, %v11207_v36  ;;  %v1848_v63 = vadd.f32 %v1688_v44, %v1198_v43  ;;  %v11259_v40 = vmul.f32 0.015625, %v4037_v57 }
 0x2ba   :  { %v2338_v5 = vmul.f32 %v9150_v58, %v2128_v34  ;;  %v11256_v49 = vmul.f32 %v11225_v29, %v11225_v29  ;;  %v3637_v61 = vmax.f32 %v3381_v13, 1e-24  ;;  %v3385_v60 = vrot.slane %v3384_v62, 4 }
 0x2bb   :  { %14243 = vst [vmem:[#allocation76_spill] sm:$0xff] %v11251_v32  ;;  %v2497_v52 = vadd.f32 %v2337_v21, %v1847_v53  ;;  %v342_v56 = vrot.slane %v71_v19, %v8786_v11  ;;  %14244 = vst [vmem:[#allocation77_spill] sm:$0xff] %v11259_v40  ;;  %v832_v18 = vrot.slane %v71_v19, %v14160_v54 }
 0x2bc   :  { %v2498_v51 = vadd.f32 %v2338_v5, %v1848_v63  ;;  %v1482_v39 = vrot.slane %v71_v19, %v14159_v4  ;;  %v8674_v14 = vpop.eup %8673  ;;  %8675 = vrsqrt.f32 %v3637_v61  ;;  %v3386_v44 = vadd.f32 %v3385_v60, %v3384_v62 }
 0x2bd   :  { %v11263_v34 = vmax.f32 %v2497_v52, 0.0  ;;  %v549_v37 = vmul.f32 %v9054_v17, %v342_v56  ;;  %v3852_v43 = vmul.f32 %v8674_v14, %v11126_v38  ;;  %v3853_v13 = vmul.f32 %v8674_v14, %v11128_v15 }
 0x2be   :  { %v11268_v53 = vmax.f32 %v2498_v51, 0.0  ;;  %v550_v21 = vmul.f32 %v9090_v45, %v342_v56  ;;  %v3387_v57 = vrot.slane %v3386_v44, 2  ;;  %v1039_v5 = vmul.f32 %v9052_v10, %v832_v18 }
 0x2bf   :  { %v2817_v63 = vmul.f32 %v11263_v34, %v11263_v34  ;;  %v1040_v62 = vmul.f32 %v9088_v0, %v832_v18  ;;  %v4236_v61 = vsel %vm2859_vm0, %v3852_v43, 0.0  ;;  %v4239_v60 = vsel %vm2859_vm0, %v3853_v13, 0.0 }
 0x2c0   :  { %v2818_v38 = vmul.f32 %v11268_v53, %v11268_v53  ;;  %v1689_v15 = vmul.f32 %v9126_v26, %v1482_v39  ;;  %4237 = vadd.xlane.f32.xlu1 %v4236_v61  ;;  %v3388_v52 = vadd.f32 %v3387_v57, %v3386_v44  ;;  %4240 = vadd.xlane.f32.xlu0 %v4239_v60  ;;  %v72_v61 = vld [vmem:[%s13874_s0 + $0xf4] sm:$0xf]  ;;  %v4043_v57 = vpop.xlane.xlu0 %4042 }
 0x2c1   :  { %v3391_v56 = vsel %vm2859_vm0, %v2817_v63, 0.0  ;;  %v11283_v51 = vmul.f32 %v11259_v40, %v11259_v40  ;;  %v1199_v14 = vadd.f32 %v1039_v5, %v549_v37  ;;  %v1200_v43 = vadd.f32 %v1040_v62, %v550_v21  ;;  %v4052_v62 = vpop.xlane.xlu1 %4051 }
 0x2c2   :  { %v3392_v18 = vsel %vm2859_vm0, %v2818_v38, 0.0  ;;  %v1690_v13 = vmul.f32 %v9124_v24, %v1482_v39  ;;  %v2132_v29 = vrot.slane %v71_v19, %v14156_v7  ;;  %v3389_v44 = vrot.slane %v3388_v52, 1 }
 0x2c3   :  { %14245 = vst [vmem:[#allocation78_spill] sm:$0xff] %v11283_v51  ;;  %v3393_v60 = vadd.f32 %v3392_v18, %v3391_v56  ;;  %v1849_v37 = vadd.f32 %v1689_v15, %v1199_v14  ;;  %v346_v40 = vrot.slane %v72_v61, %v8786_v11  ;;  %v836_v15 = vrot.slane %v72_v61, %v14160_v54 }
 0x2c4   :  { %v1850_v5 = vadd.f32 %v1690_v13, %v1200_v43  ;;  %v2339_v21 = vmul.f32 %v9152_v30, %v2132_v29  ;;  %v2340_v39 = vmul.f32 %v9150_v58, %v2132_v29  ;;  %v3390_v19 = vadd.f32 %v3389_v44, %v3388_v52 }
 0x2c5   :  { %v3394_v38 = vrot.slane %v3393_v60, 4  ;;  %v11303_v43 = vmul.f32 0.015625, %v4052_v62  ;;  %v551_v29 = vmul.f32 %v9054_v17, %v346_v40  ;;  %v11320_v62 = vmul.f32 0.015625, %v4043_v57  ;;  %v73_v57 = vld [vmem:[%s13874_s0 + $0xf8] sm:$0xf] }
 0x2c6   :  { %v2499_v36 = vadd.f32 %v2339_v21, %v1849_v37  ;;  %v2500_v63 = vadd.f32 %v2340_v39, %v1850_v5  ;;  %v8676_v56 = vpop.eup %8675  ;;  %v3638_v14 = vmax.f32 %v3390_v19, 1e-24  ;;  %v552_v5 = vmul.f32 %v9090_v45, %v346_v40 }
 0x2c7   :  { %v3395_v18 = vadd.f32 %v3394_v38, %v3393_v60  ;;  %14246 = vst [vmem:[#allocation79_spill] sm:$0xff] %v11303_v43  ;;  %v3854_v52 = vmul.f32 %v8676_v56, %v11171_v2  ;;  %v3855_v13 = vmul.f32 %v8676_v56, %v11173_v47  ;;  %v1041_v21 = vmul.f32 %v9052_v10, %v836_v15 }
 0x2c8   :  { %v11308_v44 = vmax.f32 %v2499_v36, 0.0  ;;  %v11310_v25 = vmax.f32 %v2500_v63, 0.0  ;;  %8677 = vrsqrt.f32 %v3638_v14  ;;  %v4058_v36 = vpop.xlane.xlu1 %4057  ;;  %14247 = vst [vmem:[#allocation80_spill] sm:$0xff] %v11320_v62  ;;  %v1042_v40 = vmul.f32 %v9088_v0, %v836_v15 }
 0x2c9   :  { %v3396_v37 = vrot.slane %v3395_v18, 2  ;;  %v4242_v60 = vsel %vm2859_vm0, %v3854_v52, 0.0  ;;  %v4245_v39 = vsel %vm2859_vm0, %v3855_v13, 0.0  ;;  %v1201_v19 = vadd.f32 %v1041_v21, %v551_v29  ;;  %v4049_v21 = vpop.xlane.xlu0 %4048 }
 0x2ca   :  { %v2819_v2 = vmul.f32 %v11308_v44, %v11308_v44  ;;  %v2820_v47 = vmul.f32 %v11310_v25, %v11310_v25  ;;  %4243 = vadd.xlane.f32.xlu1 %v4242_v60  ;;  %4246 = vadd.xlane.f32.xlu0 %v4245_v39  ;;  %v1486_v14 = vrot.slane %v72_v61, %v14159_v4  ;;  %v11327_v27 = vmul.f32 0.015625, %v4058_v36 }
 0x2cb   :  { %v3397_v63 = vadd.f32 %v3396_v37, %v3395_v18  ;;  %v2136_v52 = vrot.slane %v72_v61, %v14156_v7  ;;  %v1202_v8 = vadd.f32 %v1042_v40, %v552_v5  ;;  %v11338_v5 = vmul.f32 %v11303_v43, %v11303_v43 }
 0x2cc   :  { %v3400_v38 = vsel %vm2859_vm0, %v2819_v2, 0.0  ;;  %v3401_v56 = vsel %vm2859_vm0, %v2820_v47, 0.0  ;;  %14248 = vst [vmem:[#allocation81_spill] sm:$0xff] %v11327_v27  ;;  %v1691_v15 = vmul.f32 %v9126_v26, %v1486_v14  ;;  %v1692_v18 = vmul.f32 %v9124_v24, %v1486_v14 }
 0x2cd   :  { %v3398_v13 = vrot.slane %v3397_v63, 1  ;;  %v3402_v3 = vadd.f32 %v3401_v56, %v3400_v38  ;;  %v2341_v29 = vmul.f32 %v9152_v30, %v2136_v52  ;;  %v2342_v37 = vmul.f32 %v9150_v58, %v2136_v52 }
 0x2ce   :  { %v11342_v39 = vmul.f32 %v11320_v62, %v11320_v62  ;;  %v1851_v2 = vadd.f32 %v1691_v15, %v1201_v19  ;;  %v1852_v47 = vadd.f32 %v1692_v18, %v1202_v8  ;;  %v350_v36 = vrot.slane %v73_v57, %v8786_v11 }
 0x2cf   :  { %v3399_v60 = vadd.f32 %v3398_v13, %v3397_v63  ;;  %v3403_v61 = vrot.slane %v3402_v3, 4  ;;  %v840_v40 = vrot.slane %v73_v57, %v14160_v54  ;;  %v11348_v63 = vmul.f32 %v11327_v27, %v11327_v27 }
 0x2d0   :  { %14249 = vst [vmem:[#allocation82_spill] sm:$0xff] %v11342_v39  ;;  %v11350_v14 = vmul.f32 0.015625, %v4049_v21  ;;  %v2501_v52 = vadd.f32 %v2341_v29, %v1851_v2  ;;  %v2502_v13 = vadd.f32 %v2342_v37, %v1852_v47  ;;  %v553_v43 = vmul.f32 %v9054_v17, %v350_v36 }
 0x2d1   :  { %v3639_v38 = vmax.f32 %v3399_v60, 1e-24  ;;  %v3404_v56 = vadd.f32 %v3403_v61, %v3402_v3  ;;  %v1490_v62 = vrot.slane %v73_v57, %v14159_v4  ;;  %v554_v15 = vmul.f32 %v9090_v45, %v350_v36 }
 0x2d2   :  { %14250 = vst [vmem:[#allocation83_spill] sm:$0xff] %v11350_v14  ;;  %v8678_v19 = vpop.eup %8677  ;;  %v1043_v18 = vmul.f32 %v9052_v10, %v840_v40  ;;  %v11358_v61 = vmax.f32 %v2501_v52, 0.0  ;;  %v11360_v21 = vmax.f32 %v2502_v13, 0.0  ;;  %v4590_v37 = vmul.f32 %v11350_v14, %v11350_v14 }
 0x2d3   :  { %8679 = vrsqrt.f32 %v3639_v38  ;;  %v3405_v8 = vrot.slane %v3404_v56, 2  ;;  %v3856_v3 = vmul.f32 %v8678_v19, %v11214_v28  ;;  %v3857_v60 = vmul.f32 %v8678_v19, %v11219_v59  ;;  %v4064_v38 = vpop.xlane.xlu1 %4063 }
 0x2d4   :  { %v1044_v2 = vmul.f32 %v9088_v0, %v840_v40  ;;  %v1203_v47 = vadd.f32 %v1043_v18, %v553_v43  ;;  %v2821_v28 = vmul.f32 %v11358_v61, %v11358_v61  ;;  %v2822_v59 = vmul.f32 %v11360_v21, %v11360_v21  ;;  %v4055_v43 = vpop.xlane.xlu0 %4054 }
 0x2d5   :  { %v3406_v29 = vadd.f32 %v3405_v8, %v3404_v56  ;;  %v4248_v36 = vsel %vm2859_vm0, %v3856_v3, 0.0  ;;  %v4251_v27 = vsel %vm2859_vm0, %v3857_v60, 0.0  ;;  %v1693_v13 = vmul.f32 %v9126_v26, %v1490_v62  ;;  %v74_v60 = vld [vmem:[%s13874_s0 + $0xfc] sm:$0xf] }
 0x2d6   :  { %4249 = vadd.xlane.f32.xlu1 %v4248_v36  ;;  %4252 = vadd.xlane.f32.xlu0 %v4251_v27  ;;  %v1204_v56 = vadd.f32 %v1044_v2, %v554_v15  ;;  %v1694_v40 = vmul.f32 %v9124_v24, %v1490_v62  ;;  %v3409_v19 = vsel %vm2859_vm0, %v2821_v28, 0.0  ;;  %v3410_v8 = vsel %vm2859_vm0, %v2822_v59, 0.0 }
 0x2d7   :  { %v3407_v52 = vrot.slane %v3406_v29, 1  ;;  %v2140_v18 = vrot.slane %v73_v57, %v14156_v7  ;;  %v11376_v3 = vmul.f32 0.015625, %v4064_v38  ;;  %v3411_v27 = vadd.f32 %v3410_v8, %v3409_v19 }
 0x2d8   :  { %v5088_v15 = vrot.slane %v4590_v37, %v14164_v9  ;;  %v1853_v2 = vadd.f32 %v1693_v13, %v1203_v47  ;;  %v1854_v14 = vadd.f32 %v1694_v40, %v1204_v56  ;;  %v11384_v1 = vmul.f32 0.015625, %v4055_v43 }
 0x2d9   :  { %14251 = vst [vmem:[#allocation84_spill] sm:$0xff] %v11376_v3  ;;  %v3408_v36 = vadd.f32 %v3407_v52, %v3406_v29  ;;  %v2343_v62 = vmul.f32 %v9152_v30, %v2140_v18  ;;  %v2344_v28 = vmul.f32 %v9150_v58, %v2140_v18  ;;  %v3412_v57 = vrot.slane %v3411_v27, 4 }
 0x2da   :  { %14252 = vst [vmem:[#allocation85_spill] sm:$0xff] %v11384_v1  ;;  %v354_v38 = vrot.slane %v74_v60, %v8786_v11  ;;  %v844_v20 = vrot.slane %v74_v60, %v14160_v54  ;;  %v11390_v29 = vmul.f32 %v11376_v3, %v11376_v3  ;;  %v4592_v37 = vmul.f32 %v11384_v1, %v11384_v1 }
 0x2db   :  { %v3640_v59 = vmax.f32 %v3408_v36, 1e-24  ;;  %v2503_v6 = vadd.f32 %v2343_v62, %v1853_v2  ;;  %v2504_v31 = vadd.f32 %v2344_v28, %v1854_v14  ;;  %v3413_v52 = vadd.f32 %v3412_v57, %v3411_v27  ;;  %v4061_v27 = vpop.xlane.xlu0 %4060 }
 0x2dc   :  { %v555_v56 = vmul.f32 %v9054_v17, %v354_v38  ;;  %v556_v13 = vmul.f32 %v9090_v45, %v354_v38  ;;  %v5097_v18 = vrot.slane %v4592_v37, %v14164_v9  ;;  %v1045_v36 = vmul.f32 %v9052_v10, %v844_v20 }
 0x2dd   :  { %v8680_v47 = vpop.eup %8679  ;;  %8681 = vrsqrt.f32 %v3640_v59  ;;  %v11398_v19 = vmax.f32 %v2503_v6, 0.0  ;;  %v11400_v14 = vmax.f32 %v2504_v31, 0.0  ;;  %v3414_v8 = vrot.slane %v3413_v52, 2 }
 0x2de   :  { %v3858_v40 = vmul.f32 %v8680_v47, %v11263_v34  ;;  %v3859_v43 = vmul.f32 %v8680_v47, %v11268_v53  ;;  %v1046_v2 = vmul.f32 %v9088_v0, %v844_v20  ;;  %v5093_v31 = vrot.slane %v11338_v5, %v14166_v35 }
 0x2df   :  { %v2823_v34 = vmul.f32 %v11398_v19, %v11398_v19  ;;  %v2824_v6 = vmul.f32 %v11400_v14, %v11400_v14  ;;  %v3415_v59 = vadd.f32 %v3414_v8, %v3413_v52  ;;  %v14253_v57 = vrot.slane %v11256_v49, %v14166_v35  ;;  %v4070_v8 = vpop.xlane.xlu1 %4069  ;;  %v4067_v53 = vpop.xlane.xlu0 %4066 }
 0x2e0   :  { %v4254_v62 = vsel %vm2859_vm0, %v3858_v40, 0.0  ;;  %v4257_v28 = vsel %vm2859_vm0, %v3859_v43, 0.0  ;;  %v1494_v43 = vrot.slane %v74_v60, %v14159_v4  ;;  %v2144_v52 = vrot.slane %v74_v60, %v14156_v7 }
 0x2e1   :  { %4255 = vadd.xlane.f32.xlu1 %v4254_v62  ;;  %4258 = vadd.xlane.f32.xlu0 %v4257_v28  ;;  %v11421_v38 = vsel %vm4872_vm1, %v5088_v15, %v14253_v57  ;;  %v3418_v37 = vsel %vm2859_vm0, %v2823_v34, 0.0  ;;  %v3419_v47 = vsel %vm2859_vm0, %v2824_v6, 0.0  ;;  %v3416_v40 = vrot.slane %v3415_v59, 1  ;;  %v75_v62 = vld [vmem:[%s13874_s0 + $0x100] sm:$0xf] }
 0x2e2   :  { %v3420_v5 = vadd.f32 %v3419_v47, %v3418_v37  ;;  %v5098_v15 = vsel %vm4872_vm1, %v5097_v18, %v5093_v31  ;;  %v1205_v28 = vadd.f32 %v1045_v36, %v555_v56  ;;  %v1206_v34 = vadd.f32 %v1046_v2, %v556_v13 }
 0x2e3   :  { %v3417_v57 = vadd.f32 %v3416_v40, %v3415_v59  ;;  %v1695_v37 = vmul.f32 %v9126_v26, %v1494_v43  ;;  %v1696_v47 = vmul.f32 %v9124_v24, %v1494_v43  ;;  %v2345_v60 = vmul.f32 %v9152_v30, %v2144_v52 }
 0x2e4   :  { %v3421_v6 = vrot.slane %v3420_v5, 4  ;;  %v2346_v20 = vmul.f32 %v9150_v58, %v2144_v52  ;;  %v11437_v3 = vmul.f32 0.015625, %v4070_v8  ;;  %v358_v1 = vrot.slane %v75_v62, %v8786_v11 }
 0x2e5   :  { %v3641_v39 = vmax.f32 %v3417_v57, 1e-24  ;;  %v1855_v56 = vadd.f32 %v1695_v37, %v1205_v28  ;;  %v1856_v13 = vadd.f32 %v1696_v47, %v1206_v34  ;;  %v11442_v31 = vmul.f32 0.015625, %v4061_v27 }
 0x2e6   :  { %14254 = vst [vmem:[#allocation86_spill] sm:$0xff] %v11437_v3  ;;  %v3422_v18 = vadd.f32 %v3421_v6, %v3420_v5  ;;  %v848_v59 = vrot.slane %v75_v62, %v14160_v54  ;;  %v557_v5 = vmul.f32 %v9054_v17, %v358_v1  ;;  %v558_v28 = vmul.f32 %v9090_v45, %v358_v1 }
 0x2e7   :  { %v8682_v49 = vpop.eup %8681  ;;  %14255 = vst [vmem:[#allocation87_spill] sm:$0xff] %v11442_v31  ;;  %8683 = vrsqrt.f32 %v3641_v39  ;;  %v2505_v43 = vadd.f32 %v2345_v60, %v1855_v56  ;;  %v2506_v52 = vadd.f32 %v2346_v20, %v1856_v13  ;;  %v11455_v39 = vmul.f32 %v11437_v3, %v11437_v3  ;;  %v11457_v20 = vpop.xlane.xlu0 %4072 }
 0x2e8   :  { %v3860_v36 = vmul.f32 %v8682_v49, %v11308_v44  ;;  %v3861_v2 = vmul.f32 %v8682_v49, %v11310_v25  ;;  %v3423_v40 = vrot.slane %v3422_v18, 2  ;;  %v1047_v49 = vmul.f32 %v9052_v10, %v848_v59 }
 0x2e9   :  { %v11449_v25 = vmax.f32 %v2505_v43, 0.0  ;;  %v11451_v27 = vmax.f32 %v2506_v52, 0.0  ;;  %v1048_v34 = vmul.f32 %v9088_v0, %v848_v59  ;;  %v1498_v57 = vrot.slane %v75_v62, %v14159_v4 }
 0x2ea   :  { %v4260_v8 = vsel %vm2859_vm0, %v3860_v36, 0.0  ;;  %v4263_v51 = vsel %vm2859_vm0, %v3861_v2, 0.0  ;;  %v3424_v44 = vadd.f32 %v3423_v40, %v3422_v18  ;;  %v2148_v1 = vrot.slane %v75_v62, %v14156_v7  ;;  %v76_v62 = vld [vmem:[%s13874_s0 + $0x104] sm:$0xf] }
 0x2eb   :  { %4261 = vadd.xlane.f32.xlu1 %v4260_v8  ;;  %4264 = vadd.xlane.f32.xlu0 %v4263_v51  ;;  %v2825_v51 = vmul.f32 %v11449_v25, %v11449_v25  ;;  %v2826_v37 = vmul.f32 %v11451_v27, %v11451_v27  ;;  %v4594_v47 = vmul.f32 %v11442_v31, %v11442_v31 }
 0x2ec   :  { %v3425_v6 = vrot.slane %v3424_v44, 1  ;;  %v1207_v60 = vadd.f32 %v1047_v49, %v557_v5  ;;  %v1208_v18 = vadd.f32 %v1048_v34, %v558_v28  ;;  %v1697_v56 = vmul.f32 %v9126_v26, %v1498_v57  ;;  %v4076_v28 = vpop.xlane.xlu1 %4075 }
 0x2ed   :  { %v1698_v13 = vmul.f32 %v9124_v24, %v1498_v57  ;;  %v3427_v2 = vsel %vm2859_vm0, %v2825_v51, 0.0  ;;  %v3428_v59 = vsel %vm2859_vm0, %v2826_v37, 0.0  ;;  %v2347_v40 = vmul.f32 %v9152_v30, %v2148_v1 }
 0x2ee   :  { %v3426_v36 = vadd.f32 %v3425_v6, %v3424_v44  ;;  %v3429_v43 = vadd.f32 %v3428_v59, %v3427_v2  ;;  %v1857_v52 = vadd.f32 %v1697_v56, %v1207_v60  ;;  %v2348_v5 = vmul.f32 %v9150_v58, %v2148_v1  ;;  %v11485_v6 = vpop.xlane.xlu0 %4078 }
 0x2ef   :  { %v1858_v8 = vadd.f32 %v1698_v13, %v1208_v18  ;;  %v11480_v34 = vsel %vm5585_vm2, %v5098_v15, %v11421_v38  ;;  %v11482_v57 = vmul.f32 0.015625, %v4067_v53  ;;  %v362_v44 = vrot.slane %v76_v62, %v8786_v11 }
 0x2f0   :  { %v3642_v49 = vmax.f32 %v3426_v36, 1e-24  ;;  %v3430_v51 = vrot.slane %v3429_v43, 4  ;;  %v2507_v37 = vadd.f32 %v2347_v40, %v1857_v52  ;;  %v852_v60 = vrot.slane %v76_v62, %v14160_v54 }
 0x2f1   :  { %14256 = vst [vmem:[#allocation88_spill] sm:$0xff] %v11482_v57  ;;  %v2508_v3 = vadd.f32 %v2348_v5, %v1858_v8  ;;  %v8684_v18 = vpop.eup %8683  ;;  %v5106_v56 = vrot.slane %v4594_v47, %v14164_v9  ;;  %v11491_v38 = vmul.f32 0.015625, %v4076_v28  ;;  %v11501_v59 = vmul.f32 %v11482_v57, %v11482_v57 }
 0x2f2   :  { %8685 = vrsqrt.f32 %v3642_v49  ;;  %v3862_v53 = vmul.f32 %v8684_v18, %v11358_v61  ;;  %v3431_v15 = vadd.f32 %v3430_v51, %v3429_v43  ;;  %v3863_v13 = vmul.f32 %v8684_v18, %v11360_v21  ;;  %v11513_v28 = vpop.xlane.xlu0 %4084 }
 0x2f3   :  { %14257 = vst [vmem:[#allocation89_spill] sm:$0xff] %v11491_v38  ;;  %v11495_v36 = vmax.f32 %v2507_v37, 0.0  ;;  %v11497_v2 = vmax.f32 %v2508_v3, 0.0  ;;  %v559_v40 = vmul.f32 %v9054_v17, %v362_v44  ;;  %v1049_v52 = vmul.f32 %v9052_v10, %v852_v60 }
 0x2f4   :  { %v4266_v47 = vsel %vm2859_vm0, %v3862_v53, 0.0  ;;  %v3432_v8 = vrot.slane %v3431_v15, 2  ;;  %v4269_v61 = vsel %vm2859_vm0, %v3863_v13, 0.0  ;;  %v560_v43 = vmul.f32 %v9090_v45, %v362_v44  ;;  %v4082_v13 = vpop.xlane.xlu1 %4081 }
 0x2f5   :  { %v2827_v21 = vmul.f32 %v11495_v36, %v11495_v36  ;;  %4267 = vadd.xlane.f32.xlu1 %v4266_v47  ;;  %4270 = vadd.xlane.f32.xlu0 %v4269_v61  ;;  %v2828_v3 = vmul.f32 %v11497_v2, %v11497_v2  ;;  %v1050_v5 = vmul.f32 %v9088_v0, %v852_v60 }
 0x2f6   :  { %v3433_v49 = vadd.f32 %v3432_v8, %v3431_v15  ;;  %v14258_v51 = vrot.slane %v11348_v63, %v14166_v35  ;;  %v1502_v53 = vrot.slane %v76_v62, %v14159_v4  ;;  %v11526_v44 = vmul.f32 %v11491_v38, %v11491_v38  ;;  %v11543_v32 = vpop.xlane.xlu0 %4090 }
 0x2f7   :  { %v3436_v18 = vsel %vm2859_vm0, %v2827_v21, 0.0  ;;  %v3437_v47 = vsel %vm2859_vm0, %v2828_v3, 0.0  ;;  %v1209_v60 = vadd.f32 %v1049_v52, %v559_v40  ;;  %v2152_v15 = vrot.slane %v76_v62, %v14156_v7  ;;  %v77_v21 = vld [vmem:[%s13874_s0 + $0x108] sm:$0xf] }
 0x2f8   :  { %v11519_v37 = vsel %vm4872_vm1, %v5106_v56, %v14258_v51  ;;  %14259 = vst [vmem:[#allocation90_spill] sm:$0xff] %v11526_v44  ;;  %v3434_v8 = vrot.slane %v3433_v49, 1  ;;  %v3438_v61 = vadd.f32 %v3437_v47, %v3436_v18  ;;  %v1699_v63 = vmul.f32 %v9126_v26, %v1502_v53 }
 0x2f9   :  { %v1700_v56 = vmul.f32 %v9124_v24, %v1502_v53  ;;  %v1210_v51 = vadd.f32 %v1050_v5, %v560_v43  ;;  %v2349_v1 = vmul.f32 %v9152_v30, %v2152_v15  ;;  %v2350_v40 = vmul.f32 %v9150_v58, %v2152_v15  ;;  %v11547_v15 = vpop.xlane.xlu1 %4087 }
 0x2fa   :  { %v3435_v52 = vadd.f32 %v3434_v8, %v3433_v49  ;;  %v3439_v62 = vrot.slane %v3438_v61, 4  ;;  %v1859_v38 = vadd.f32 %v1699_v63, %v1209_v60  ;;  %v11538_v18 = vmul.f32 0.015625, %v4082_v13 }
 0x2fb   :  { %v1860_v57 = vadd.f32 %v1700_v56, %v1210_v51  ;;  %v366_v53 = vrot.slane %v77_v21, %v8786_v11  ;;  %v856_v31 = vrot.slane %v77_v21, %v14160_v54  ;;  %v1506_v12 = vrot.slane %v77_v21, %v14159_v4 }
 0x2fc   :  { %14260 = vst [vmem:[#allocation91_spill] sm:$0xff] %v11538_v18  ;;  %v8686_v47 = vpop.eup %8685  ;;  %v3643_v5 = vmax.f32 %v3435_v52, 1e-24  ;;  %v3440_v3 = vadd.f32 %v3439_v62, %v3438_v61  ;;  %v2509_v13 = vadd.f32 %v2349_v1, %v1859_v38  ;;  %v11550_v8 = vmul.f32 0.015625, %v11457_v20 }
 0x2fd   :  { %v3864_v43 = vmul.f32 %v8686_v47, %v11398_v19  ;;  %v3865_v49 = vmul.f32 %v8686_v47, %v11400_v14  ;;  %v2510_v60 = vadd.f32 %v2350_v40, %v1860_v57  ;;  %v561_v63 = vmul.f32 %v9054_v17, %v366_v53 }
 0x2fe   :  { %14261 = vst [vmem:[#allocation92_spill] sm:$0xff] %v11550_v8  ;;  %8687 = vrsqrt.f32 %v3643_v5  ;;  %v3441_v51 = vrot.slane %v3440_v3, 2  ;;  %v11555_v19 = vmax.f32 %v2509_v13, 0.0  ;;  %v11561_v57 = vmul.f32 %v11538_v18, %v11538_v18  ;;  %v11580_v13 = vpop.xlane.xlu1 %4093 }
 0x2ff   :  { %v4272_v56 = vsel %vm2859_vm0, %v3864_v43, 0.0  ;;  %v4275_v33 = vsel %vm2859_vm0, %v3865_v49, 0.0  ;;  %v11557_v14 = vmax.f32 %v2510_v60, 0.0  ;;  %v562_v20 = vmul.f32 %v9090_v45, %v366_v53  ;;  %v11573_v43 = vpop.xlane.xlu0 %4096  ;;  %v78_v49 = vld [vmem:[%s13874_s0 + $0x10c] sm:$0xf] }
 0x300   :  { %4273 = vadd.xlane.f32.xlu1 %v4272_v56  ;;  %4276 = vadd.xlane.f32.xlu0 %v4275_v33  ;;  %14262 = vst [vmem:[#allocation93_spill] sm:$0xff] %v11561_v57  ;;  %v3442_v1 = vadd.f32 %v3441_v51, %v3440_v3  ;;  %v1051_v38 = vmul.f32 %v9052_v10, %v856_v31 }
 0x301   :  { %v1052_v61 = vmul.f32 %v9088_v0, %v856_v31  ;;  %v1701_v40 = vmul.f32 %v9126_v26, %v1506_v12  ;;  %v2829_v33 = vmul.f32 %v11555_v19, %v11555_v19  ;;  %v2830_v52 = vmul.f32 %v11557_v14, %v11557_v14 }
 0x302   :  { %v1702_v62 = vmul.f32 %v9124_v24, %v1506_v12  ;;  %v2156_v47 = vrot.slane %v77_v21, %v14156_v7  ;;  %v3443_v53 = vrot.slane %v3442_v1, 1  ;;  %v4598_v3 = vmul.f32 %v11550_v8, %v11550_v8 }
 0x303   :  { %v1211_v5 = vadd.f32 %v1051_v38, %v561_v63  ;;  %v1212_v31 = vadd.f32 %v1052_v61, %v562_v20  ;;  %v3445_v60 = vsel %vm2859_vm0, %v2829_v33, 0.0  ;;  %v3446_v12 = vsel %vm2859_vm0, %v2830_v52, 0.0 }
 0x304   :  { %v2351_v21 = vmul.f32 %v9152_v30, %v2156_v47  ;;  %v2352_v56 = vmul.f32 %v9150_v58, %v2156_v47  ;;  %v3444_v51 = vadd.f32 %v3443_v53, %v3442_v1  ;;  %v3447_v18 = vadd.f32 %v3446_v12, %v3445_v60 }
 0x305   :  { %v1861_v22 = vadd.f32 %v1701_v40, %v1211_v5  ;;  %v1862_v8 = vadd.f32 %v1702_v62, %v1212_v31  ;;  %v11589_v63 = vsel %vm5587_vm3, %v11519_v37, %v11480_v34  ;;  %v370_v38 = vrot.slane %v78_v49, %v8786_v11  ;;  %v11608_v5 = vpop.xlane.xlu0 %4102 }
 0x306   :  { %14263 = vst [vmem:[#allocation94_spill] sm:$0xff] %v11589_v63  ;;  %v860_v61 = vrot.slane %v78_v49, %v14160_v54  ;;  %v3644_v33 = vmax.f32 %v3444_v51, 1e-24  ;;  %v3448_v52 = vrot.slane %v3447_v18, 4  ;;  %v14264_v1 = vrot.slane %v11390_v29, %v14166_v35  ;;  %v81_v63 = vld [vmem:[%s13874_s0 + $0x118] sm:$0xf] }
 0x307   :  { %v2511_v48 = vadd.f32 %v2351_v21, %v1861_v22  ;;  %v2512_v47 = vadd.f32 %v2352_v56, %v1862_v8  ;;  %v14265_v40 = vrot.slane %v11501_v59, %v14164_v9  ;;  %v5124_v62 = vrot.slane %v4598_v3, %v14164_v9  ;;  %v11614_v59 = vpop.xlane.xlu1 %4099 }
 0x308   :  { %v563_v53 = vmul.f32 %v9054_v17, %v370_v38  ;;  %v8688_v22 = vpop.eup %8687  ;;  %8689 = vrsqrt.f32 %v3644_v33  ;;  %v3449_v8 = vadd.f32 %v3448_v52, %v3447_v18  ;;  %v564_v21 = vmul.f32 %v9090_v45, %v370_v38  ;;  %v79_v38 = vld [vmem:[%s13874_s0 + $0x110] sm:$0xf] }
 0x309   :  { %v11602_v34 = vsel %vm4872_vm1, %v14265_v40, %v14264_v1  ;;  %v11610_v31 = vmax.f32 %v2511_v48, 0.0  ;;  %v11612_v29 = vmax.f32 %v2512_v47, 0.0  ;;  %v3866_v60 = vmul.f32 %v8688_v22, %v11449_v25  ;;  %v11639_v37 = vpop.xlane.xlu0 %4108 }
 0x30a   :  { %14266 = vst [vmem:[#allocation95_spill] sm:$0xff] %v11602_v34  ;;  %v3867_v12 = vmul.f32 %v8688_v22, %v11451_v27  ;;  %v1053_v3 = vmul.f32 %v9052_v10, %v860_v61  ;;  %v3450_v56 = vrot.slane %v3449_v8, 2  ;;  %v1054_v18 = vmul.f32 %v9088_v0, %v860_v61 }
 0x30b   :  { %v2831_v51 = vmul.f32 %v11610_v31, %v11610_v31  ;;  %v2832_v48 = vmul.f32 %v11612_v29, %v11612_v29  ;;  %v4278_v33 = vsel %vm2859_vm0, %v3866_v60, 0.0  ;;  %v11628_v25 = vmul.f32 0.015625, %v11547_v15 }
 0x30c   :  { %v4281_v52 = vsel %vm2859_vm0, %v3867_v12, 0.0  ;;  %v1510_v27 = vrot.slane %v78_v49, %v14159_v4  ;;  %4279 = vadd.xlane.f32.xlu1 %v4278_v33  ;;  %v3451_v47 = vadd.f32 %v3450_v56, %v3449_v8  ;;  %v1213_v40 = vadd.f32 %v1053_v3, %v563_v53  ;;  %v11648_v53 = vpop.xlane.xlu1 %4105 }
 0x30d   :  { %14267 = vst [vmem:[#allocation96_spill] sm:$0xff] %v11628_v25  ;;  %4282 = vadd.xlane.f32.xlu0 %v4281_v52  ;;  %v3454_v1 = vsel %vm2859_vm0, %v2831_v51, 0.0  ;;  %v3455_v61 = vsel %vm2859_vm0, %v2832_v48, 0.0  ;;  %v2160_v12 = vrot.slane %v78_v49, %v14156_v7  ;;  %v14268_v33 = vrot.slane %v11455_v39, %v14166_v35 }
 0x30e   :  { %v3456_v22 = vadd.f32 %v3455_v61, %v3454_v1  ;;  %v1703_v60 = vmul.f32 %v9126_v26, %v1510_v27  ;;  %v1704_v15 = vmul.f32 %v9124_v24, %v1510_v27  ;;  %v3452_v20 = vrot.slane %v3451_v47, 1 }
 0x30f   :  { %v11645_v8 = vsel %vm4872_vm1, %v5124_v62, %v14268_v33  ;;  %v1214_v56 = vadd.f32 %v1054_v18, %v564_v21  ;;  %v374_v51 = vrot.slane %v79_v38, %v8786_v11  ;;  %v11652_v48 = vmul.f32 %v11628_v25, %v11628_v25 }
 0x310   :  { %14269 = vst [vmem:[#allocation97_spill] sm:$0xff] %v11645_v8  ;;  %v3457_v3 = vrot.slane %v3456_v22, 4  ;;  %v1863_v49 = vadd.f32 %v1703_v60, %v1213_v40  ;;  %v2353_v52 = vmul.f32 %v9152_v30, %v2160_v12  ;;  %v3453_v27 = vadd.f32 %v3452_v20, %v3451_v47 }
 0x311   :  { %14270 = vst [vmem:[#allocation98_spill] sm:$0xff] %v11652_v48  ;;  %v11656_v1 = vmul.f32 0.015625, %v11485_v6  ;;  %v1864_v39 = vadd.f32 %v1704_v15, %v1214_v56  ;;  %v2354_v62 = vmul.f32 %v9150_v58, %v2160_v12  ;;  %v11660_v61 = vmul.f32 0.015625, %v11580_v13  ;;  %v11671_v12 = vpop.xlane.xlu0 %4114 }
 0x312   :  { %v3458_v21 = vadd.f32 %v3457_v3, %v3456_v22  ;;  %v2513_v18 = vadd.f32 %v2353_v52, %v1863_v49  ;;  %v11663_v33 = vmul.f32 0.015625, %v11513_v28  ;;  %v8690_v25 = vpop.eup %8689  ;;  %v3645_v8 = vmax.f32 %v3453_v27, 1e-24  ;;  %v11677_v3 = vpop.xlane.xlu1 %4111 }
 0x313   :  { %14271 = vst [vmem:[#allocation99_spill] sm:$0xff] %v11656_v1  ;;  %14272 = vst [vmem:[#allocation100_spill] sm:$0xff] %v11660_v61  ;;  %v2514_v40 = vadd.f32 %v2354_v62, %v1864_v39  ;;  %v565_v60 = vmul.f32 %v9054_v17, %v374_v51  ;;  %v566_v20 = vmul.f32 %v9090_v45, %v374_v51  ;;  %v11688_v27 = vmul.f32 0.015625, %v11614_v59 }
 0x314   :  { %14273 = vst [vmem:[#allocation101_spill] sm:$0xff] %v11663_v33  ;;  %v3868_v6 = vmul.f32 %v8690_v25, %v11495_v36  ;;  %v3459_v47 = vrot.slane %v3458_v21, 2  ;;  %v3869_v15 = vmul.f32 %v8690_v25, %v11497_v2  ;;  %v11669_v22 = vmax.f32 %v2513_v18, 0.0 }
 0x315   :  { %8691 = vrsqrt.f32 %v3645_v8  ;;  %v11673_v13 = vmax.f32 %v2514_v40, 0.0  ;;  %v864_v28 = vrot.slane %v79_v38, %v14160_v54  ;;  %v1514_v56 = vrot.slane %v79_v38, %v14159_v4  ;;  %14274 = vst [vmem:[#allocation102_spill] sm:$0xff] %v11688_v27 }
 0x316   :  { %v4284_v51 = vsel %vm2859_vm0, %v3868_v6, 0.0  ;;  %v3460_v49 = vadd.f32 %v3459_v47, %v3458_v21  ;;  %v4287_v36 = vsel %vm2859_vm0, %v3869_v15, 0.0  ;;  %v2833_v2 = vmul.f32 %v11669_v22, %v11669_v22 }
 0x317   :  { %4285 = vadd.xlane.f32.xlu1 %v4284_v51  ;;  %4288 = vadd.xlane.f32.xlu0 %v4287_v36  ;;  %v2834_v25 = vmul.f32 %v11673_v13, %v11673_v13  ;;  %v1055_v8 = vmul.f32 %v9052_v10, %v864_v28  ;;  %v1056_v52 = vmul.f32 %v9088_v0, %v864_v28 }
 0x318   :  { %v3461_v39 = vrot.slane %v3460_v49, 1  ;;  %v3463_v62 = vsel %vm2859_vm0, %v2833_v2, 0.0  ;;  %v1705_v21 = vmul.f32 %v9126_v26, %v1514_v56  ;;  %v1706_v18 = vmul.f32 %v9124_v24, %v1514_v56  ;;  %v80_v56 = vld [vmem:[%s13874_s0 + $0x114] sm:$0xf]  ;;  %v11706_v2 = vpop.xlane.xlu0 %4120 }
 0x319   :  { %v3464_v40 = vsel %vm2859_vm0, %v2834_v25, 0.0  ;;  %v1215_v6 = vadd.f32 %v1055_v8, %v565_v60  ;;  %v1216_v47 = vadd.f32 %v1056_v52, %v566_v20  ;;  %v2164_v15 = vrot.slane %v79_v38, %v14156_v7  ;;  %v11710_v25 = vpop.xlane.xlu1 %4117 }
 0x31a   :  { %v3462_v51 = vadd.f32 %v3461_v39, %v3460_v49  ;;  %v11697_v28 = vmul.f32 %v11656_v1, %v11656_v1  ;;  %v3465_v59 = vadd.f32 %v3464_v40, %v3463_v62  ;;  %v11701_v36 = vmul.f32 %v11660_v61, %v11660_v61 }
 0x31b   :  { %v1865_v60 = vadd.f32 %v1705_v21, %v1215_v6  ;;  %v1866_v20 = vadd.f32 %v1706_v18, %v1216_v47  ;;  %v2355_v38 = vmul.f32 %v9152_v30, %v2164_v15  ;;  %v2356_v49 = vmul.f32 %v9150_v58, %v2164_v15 }
 0x31c   :  { %14275 = vst [vmem:[#allocation103_spill] sm:$0xff] %v11697_v28  ;;  %v3646_v8 = vmax.f32 %v3462_v51, 1e-24  ;;  %v3466_v52 = vrot.slane %v3465_v59, 4  ;;  %v11714_v39 = vmul.f32 %v11663_v33, %v11663_v33  ;;  %v11718_v62 = vmul.f32 %v11688_v27, %v11688_v27 }
 0x31d   :  { %v2515_v40 = vadd.f32 %v2355_v38, %v1865_v60  ;;  %v2516_v61 = vadd.f32 %v2356_v49, %v1866_v20  ;;  %v378_v21 = vrot.slane %v80_v56, %v8786_v11  ;;  %v868_v18 = vrot.slane %v80_v56, %v14160_v54 }
 0x31e   :  { %14276 = vst [vmem:[#allocation104_spill] sm:$0xff] %v11714_v39  ;;  %8693 = vrsqrt.f32 %v3646_v8  ;;  %v3467_v6 = vadd.f32 %v3466_v52, %v3465_v59  ;;  %v11723_v47 = vmul.f32 0.015625, %v11543_v32  ;;  %v1518_v15 = vrot.slane %v80_v56, %v14159_v4  ;;  %v11735_v32 = vpop.xlane.xlu0 %4126 }
 0x31f   :  { %v8692_v51 = vpop.eup %8691  ;;  %v11726_v33 = vmax.f32 %v2515_v40, 0.0  ;;  %v11728_v1 = vmax.f32 %v2516_v61, 0.0  ;;  %v567_v27 = vmul.f32 %v9054_v17, %v378_v21  ;;  %v568_v60 = vmul.f32 %v9090_v45, %v378_v21  ;;  %v11743_v21 = vpop.xlane.xlu1 %4123 }
 0x320   :  { %14277 = vst [vmem:[#allocation105_spill] sm:$0xff] %v11723_v47  ;;  %v3870_v20 = vmul.f32 %v8692_v51, %v11555_v19  ;;  %v3468_v38 = vrot.slane %v3467_v6, 2  ;;  %v3871_v49 = vmul.f32 %v8692_v51, %v11557_v14  ;;  %v1057_v59 = vmul.f32 %v9052_v10, %v868_v18 }
 0x321   :  { %v2835_v8 = vmul.f32 %v11726_v33, %v11726_v33  ;;  %v2836_v61 = vmul.f32 %v11728_v1, %v11728_v1  ;;  %v1058_v52 = vmul.f32 %v9088_v0, %v868_v18  ;;  %v1707_v40 = vmul.f32 %v9126_v26, %v1518_v15 }
 0x322   :  { %v4290_v19 = vsel %vm2859_vm0, %v3870_v20, 0.0  ;;  %v3469_v34 = vadd.f32 %v3468_v38, %v3467_v6  ;;  %v4293_v14 = vsel %vm2859_vm0, %v3871_v49, 0.0  ;;  %v1217_v51 = vadd.f32 %v1057_v59, %v567_v27 }
 0x323   :  { %4291 = vadd.xlane.f32.xlu1 %v4290_v19  ;;  %4294 = vadd.xlane.f32.xlu0 %v4293_v14  ;;  %v3472_v57 = vsel %vm2859_vm0, %v2835_v8, 0.0  ;;  %v3473_v18 = vsel %vm2859_vm0, %v2836_v61, 0.0  ;;  %v1218_v44 = vadd.f32 %v1058_v52, %v568_v60  ;;  %v1708_v23 = vmul.f32 %v9124_v24, %v1518_v15  ;;  %v11761_v61 = vpop.xlane.xlu0 %4132 }
 0x324   :  { %v3470_v6 = vrot.slane %v3469_v34, 1  ;;  %v3474_v38 = vadd.f32 %v3473_v18, %v3472_v57  ;;  %v2168_v27 = vrot.slane %v80_v56, %v14156_v7  ;;  %v1867_v59 = vadd.f32 %v1707_v40, %v1217_v51 }
 0x325   :  { %v1868_v19 = vadd.f32 %v1708_v23, %v1218_v44  ;;  %v382_v14 = vrot.slane %v81_v63, %v8786_v11  ;;  %v11771_v23 = vmul.f32 %v11723_v47, %v11723_v47  ;;  %v11773_v44 = vpop.xlane.xlu1 %4129  ;;  %v11778_v56 = vmul.f32 0.015625, %v11573_v43 }
 0x326   :  { %v3471_v8 = vadd.f32 %v3470_v6, %v3469_v34  ;;  %v3475_v42 = vrot.slane %v3474_v38, 4  ;;  %v2357_v60 = vmul.f32 %v9152_v30, %v2168_v27  ;;  %v2358_v15 = vmul.f32 %v9150_v58, %v2168_v27 }
 0x327   :  { %14278 = vst [vmem:[#allocation106_spill] sm:$0xff] %v11771_v23  ;;  %14279 = vst [vmem:[#allocation107_spill] sm:$0xff] %v11778_v56  ;;  %v569_v49 = vmul.f32 %v9054_v17, %v382_v14 }
 0x328   :  { %v8694_v34 = vpop.eup %8693  ;;  %v3647_v40 = vmax.f32 %v3471_v8, 1e-24  ;;  %v3476_v51 = vadd.f32 %v3475_v42, %v3474_v38  ;;  %v2517_v18 = vadd.f32 %v2357_v60, %v1867_v59  ;;  %v2518_v6 = vadd.f32 %v2358_v15, %v1868_v19  ;;  %v11796_v60 = vpop.xlane.xlu0 %4138 }
 0x329   :  { %v3872_v27 = vmul.f32 %v8694_v34, %v11610_v31  ;;  %v3873_v20 = vmul.f32 %v8694_v34, %v11612_v29  ;;  %v570_v38 = vmul.f32 %v9090_v45, %v382_v14  ;;  %v872_v31 = vrot.slane %v81_v63, %v14160_v54  ;;  %v11802_v34 = vpop.xlane.xlu1 %4135 }
 0x32a   :  { %8695 = vrsqrt.f32 %v3647_v40  ;;  %v3477_v52 = vrot.slane %v3476_v51, 2  ;;  %v11781_v57 = vmax.f32 %v2517_v18, 0.0  ;;  %v11783_v47 = vmax.f32 %v2518_v6, 0.0 }
 0x32b   :  { %v4296_v8 = vsel %vm2859_vm0, %v3872_v27, 0.0  ;;  %v4299_v42 = vsel %vm2859_vm0, %v3873_v20, 0.0  ;;  %v11794_v19 = vmul.f32 0.015625, %v11648_v53  ;;  %v1059_v20 = vmul.f32 %v9052_v10, %v872_v31 }
 0x32c   :  { %4297 = vadd.xlane.f32.xlu1 %v4296_v8  ;;  %v3478_v29 = vadd.f32 %v3477_v52, %v3476_v51  ;;  %4300 = vadd.xlane.f32.xlu0 %v4299_v42  ;;  %v2837_v43 = vmul.f32 %v11781_v57, %v11781_v57  ;;  %v2838_v59 = vmul.f32 %v11783_v47, %v11783_v47 }
 0x32d   :  { %14280 = vst [vmem:[#allocation108_spill] sm:$0xff] %v11794_v19  ;;  %v1060_v14 = vmul.f32 %v9088_v0, %v872_v31  ;;  %v1522_v15 = vrot.slane %v81_v63, %v14159_v4  ;;  %v2172_v52 = vrot.slane %v81_v63, %v14156_v7  ;;  %v4606_v53 = vmul.f32 %v11778_v56, %v11778_v56  ;;  %v82_v31 = vld [vmem:[%s13874_s0 + $0x11c] sm:$0xf]  ;;  %v11829_v23 = vpop.xlane.xlu1 %4141 }
 0x32e   :  { %v3479_v40 = vrot.slane %v3478_v29, 1  ;;  %v3481_v51 = vsel %vm2859_vm0, %v2837_v43, 0.0  ;;  %v3482_v18 = vsel %vm2859_vm0, %v2838_v59, 0.0  ;;  %v1219_v27 = vadd.f32 %v1059_v20, %v569_v49 }
 0x32f   :  { %v3483_v6 = vadd.f32 %v3482_v18, %v3481_v51  ;;  %v1220_v8 = vadd.f32 %v1060_v14, %v570_v38  ;;  %v1709_v42 = vmul.f32 %v9126_v26, %v1522_v15  ;;  %v1710_v48 = vmul.f32 %v9124_v24, %v1522_v15  ;;  %v11823_v15 = vpop.xlane.xlu0 %4144 }
 0x330   :  { %v3480_v63 = vadd.f32 %v3479_v40, %v3478_v29  ;;  %v2359_v39 = vmul.f32 %v9152_v30, %v2172_v52  ;;  %v2360_v43 = vmul.f32 %v9150_v58, %v2172_v52  ;;  %v11819_v49 = vmul.f32 %v11794_v19, %v11794_v19 }
 0x331   :  { %v3484_v56 = vrot.slane %v3483_v6, 4  ;;  %v1869_v38 = vadd.f32 %v1709_v42, %v1219_v27  ;;  %v1870_v14 = vadd.f32 %v1710_v48, %v1220_v8  ;;  %v386_v51 = vrot.slane %v82_v31, %v8786_v11 }
 0x332   :  { %v3648_v20 = vmax.f32 %v3480_v63, 1e-24  ;;  %v876_v29 = vrot.slane %v82_v31, %v14160_v54  ;;  %v5160_v52 = vrot.slane %v4606_v53, %v14164_v9  ;;  %v11827_v59 = vmul.f32 0.015625, %v11608_v5 }
 0x333   :  { %v3485_v40 = vadd.f32 %v3484_v56, %v3483_v6  ;;  %v2519_v18 = vadd.f32 %v2359_v39, %v1869_v38  ;;  %v2520_v27 = vadd.f32 %v2360_v43, %v1870_v14  ;;  %v571_v48 = vmul.f32 %v9054_v17, %v386_v51 }
 0x334   :  { %14281 = vst [vmem:[#allocation109_spill] sm:$0xff] %v11827_v59  ;;  %v8696_v19 = vpop.eup %8695  ;;  %8697 = vrsqrt.f32 %v3648_v20  ;;  %v572_v8 = vmul.f32 %v9090_v45, %v386_v51  ;;  %v1061_v5 = vmul.f32 %v9052_v10, %v876_v29  ;;  %v1062_v53 = vmul.f32 %v9088_v0, %v876_v29  ;;  %v11852_v29 = vpop.xlane.xlu0 %4150 }
 0x335   :  { %v3874_v42 = vmul.f32 %v8696_v19, %v11669_v22  ;;  %v3486_v63 = vrot.slane %v3485_v40, 2  ;;  %v3875_v56 = vmul.f32 %v8696_v19, %v11673_v13  ;;  %v11835_v6 = vmax.f32 %v2519_v18, 0.0 }
 0x336   :  { %v11837_v39 = vmax.f32 %v2520_v27, 0.0  ;;  %v1526_v38 = vrot.slane %v82_v31, %v14159_v4  ;;  %v4608_v51 = vmul.f32 %v11827_v59, %v11827_v59  ;;  %v1221_v27 = vadd.f32 %v1061_v5, %v571_v48 }
 0x337   :  { %v4302_v43 = vsel %vm2859_vm0, %v3874_v42, 0.0  ;;  %v3487_v20 = vadd.f32 %v3486_v63, %v3485_v40  ;;  %v4305_v14 = vsel %vm2859_vm0, %v3875_v56, 0.0  ;;  %v2839_v22 = vmul.f32 %v11835_v6, %v11835_v6  ;;  %v11855_v63 = vpop.xlane.xlu1 %4147 }
 0x338   :  { %4303 = vadd.xlane.f32.xlu1 %v4302_v43  ;;  %4306 = vadd.xlane.f32.xlu0 %v4305_v14  ;;  %v2840_v19 = vmul.f32 %v11837_v39, %v11837_v39  ;;  %v1222_v42 = vadd.f32 %v1062_v53, %v572_v8  ;;  %v1711_v43 = vmul.f32 %v9126_v26, %v1526_v38  ;;  %v11866_v48 = vmul.f32 0.015625, %v11677_v3  ;;  %v83_v8 = vld [vmem:[%s13874_s0 + $0x120] sm:$0xf] }
 0x339   :  { %v3488_v18 = vrot.slane %v3487_v20, 1  ;;  %v3490_v40 = vsel %vm2859_vm0, %v2839_v22, 0.0  ;;  %v1712_v14 = vmul.f32 %v9124_v24, %v1526_v38  ;;  %v2176_v13 = vrot.slane %v82_v31, %v14156_v7 }
 0x33a   :  { %v3491_v56 = vsel %vm2859_vm0, %v2840_v19, 0.0  ;;  %v14282_v59 = vrot.slane %v11701_v36, %v14166_v35  ;;  %14283 = vst [vmem:[#allocation110_spill] sm:$0xff] %v11866_v48  ;;  %v1871_v5 = vadd.f32 %v1711_v43, %v1221_v27  ;;  %v5169_v36 = vrot.slane %v4608_v51, %v14164_v9  ;;  %v11879_v27 = vpop.xlane.xlu0 %4156 }
 0x33b   :  { %v3489_v28 = vadd.f32 %v3488_v18, %v3487_v20  ;;  %v3492_v50 = vadd.f32 %v3491_v56, %v3490_v40  ;;  %v1872_v53 = vadd.f32 %v1712_v14, %v1222_v42  ;;  %v2361_v38 = vmul.f32 %v9152_v30, %v2176_v13  ;;  %14285 = vst [vmem:[#allocation112_spill] sm:$0xff] %v11879_v27  ;;  %v11883_v56 = vpop.xlane.xlu1 %4153 }
 0x33c   :  { %v5161_v16 = vsel %vm4872_vm1, %v5160_v52, %v14282_v59  ;;  %v2362_v31 = vmul.f32 %v9150_v58, %v2176_v13  ;;  %v11875_v59 = vmul.f32 0.015625, %v11639_v37  ;;  %v390_v18 = vrot.slane %v83_v8, %v8786_v11 }
 0x33d   :  { %v3649_v20 = vmax.f32 %v3489_v28, 1e-24  ;;  %v3493_v22 = vrot.slane %v3492_v50, 4  ;;  %v2521_v3 = vadd.f32 %v2361_v38, %v1871_v5  ;;  %v880_v40 = vrot.slane %v83_v8, %v14160_v54 }
 0x33e   :  { %14284 = vst [vmem:[#allocation111_spill] sm:$0xff] %v11875_v59  ;;  %v8698_v52 = vpop.eup %8697  ;;  %v2522_v19 = vadd.f32 %v2362_v31, %v1872_v53  ;;  %v11887_v37 = vmul.f32 %v11866_v48, %v11866_v48  ;;  %v573_v14 = vmul.f32 %v9054_v17, %v390_v18 }
 0x33f   :  { %v3876_v42 = vmul.f32 %v8698_v52, %v11726_v33  ;;  %8699 = vrsqrt.f32 %v3649_v20  ;;  %v3494_v13 = vadd.f32 %v3493_v22, %v3492_v50  ;;  %v3877_v28 = vmul.f32 %v8698_v52, %v11728_v1  ;;  %v11918_v48 = vpop.xlane.xlu1 %4159 }
 0x340   :  { %v11889_v51 = vmax.f32 %v2521_v3, 0.0  ;;  %v11891_v43 = vmax.f32 %v2522_v19, 0.0  ;;  %v574_v50 = vmul.f32 %v9090_v45, %v390_v18  ;;  %v14286_v1 = vrot.slane %v11718_v62, %v14166_v35 }
 0x341   :  { %v4308_v5 = vsel %vm2859_vm0, %v3876_v42, 0.0  ;;  %v3495_v53 = vrot.slane %v3494_v13, 2  ;;  %v4311_v33 = vsel %vm2859_vm0, %v3877_v28, 0.0  ;;  %v4610_v52 = vmul.f32 %v11875_v59, %v11875_v59  ;;  %v11913_v28 = vpop.xlane.xlu0 %4162 }
 0x342   :  { %4309 = vadd.xlane.f32.xlu1 %v4308_v5  ;;  %4312 = vadd.xlane.f32.xlu0 %v4311_v33  ;;  %v5170_v38 = vsel %vm4872_vm1, %v5169_v36, %v14286_v1  ;;  %v2841_v31 = vmul.f32 %v11889_v51, %v11889_v51  ;;  %v2842_v20 = vmul.f32 %v11891_v43, %v11891_v43  ;;  %v84_v1 = vld [vmem:[%s13874_s0 + $0x124] sm:$0xf] }
 0x343   :  { %v3496_v22 = vadd.f32 %v3495_v53, %v3494_v13  ;;  %v1063_v3 = vmul.f32 %v9052_v10, %v880_v40  ;;  %v1064_v19 = vmul.f32 %v9088_v0, %v880_v40  ;;  %v1530_v36 = vrot.slane %v83_v8, %v14159_v4  ;;  %14287 = vst [vmem:[#allocation113_spill] sm:$0xff] %v11913_v28 }
 0x344   :  { %v3499_v18 = vsel %vm2859_vm0, %v2841_v31, 0.0  ;;  %v3500_v62 = vsel %vm2859_vm0, %v2842_v20, 0.0  ;;  %v2180_v42 = vrot.slane %v83_v8, %v14156_v7  ;;  %v394_v28 = vrot.slane %v84_v1, %v8786_v11 }
 0x345   :  { %v3497_v5 = vrot.slane %v3496_v22, 1  ;;  %v3501_v33 = vadd.f32 %v3500_v62, %v3499_v18  ;;  %v1223_v13 = vadd.f32 %v1063_v3, %v573_v14  ;;  %v1224_v53 = vadd.f32 %v1064_v19, %v574_v50  ;;  %v11935_v27 = vpop.xlane.xlu0 %4168 }
 0x346   :  { %v1713_v40 = vmul.f32 %v9126_v26, %v1530_v36  ;;  %v1714_v31 = vmul.f32 %v9124_v24, %v1530_v36  ;;  %v2363_v20 = vmul.f32 %v9152_v30, %v2180_v42  ;;  %v2364_v8 = vmul.f32 %v9150_v58, %v2180_v42 }
 0x347   :  { %v3498_v59 = vadd.f32 %v3497_v5, %v3496_v22  ;;  %v3502_v14 = vrot.slane %v3501_v33, 4  ;;  %v11927_v50 = vmul.f32 0.015625, %v11710_v25  ;;  %v5620_v3 = vsel %vm5585_vm2, %v5170_v38, %v5161_v16 }
 0x348   :  { %v1873_v19 = vadd.f32 %v1713_v40, %v1223_v13  ;;  %v1874_v62 = vadd.f32 %v1714_v31, %v1224_v53  ;;  %v5178_v46 = vrot.slane %v4610_v52, %v14164_v9  ;;  %v884_v22 = vrot.slane %v84_v1, %v14160_v54 }
 0x349   :  { %14288 = vst [vmem:[#allocation114_spill] sm:$0xff] %v11927_v50  ;;  %v8700_v41 = vpop.eup %8699  ;;  %v3650_v36 = vmax.f32 %v3498_v59, 1e-24  ;;  %v3503_v55 = vadd.f32 %v3502_v14, %v3501_v33  ;;  %v11939_v38 = vmul.f32 %v11927_v50, %v11927_v50  ;;  %v575_v59 = vmul.f32 %v9054_v17, %v394_v28  ;;  %v11942_v33 = vpop.xlane.xlu1 %4165 }
 0x34a   :  { %v3878_v42 = vmul.f32 %v8700_v41, %v11781_v57  ;;  %v3879_v5 = vmul.f32 %v8700_v41, %v11783_v47  ;;  %v2523_v18 = vadd.f32 %v2363_v20, %v1873_v19  ;;  %v2524_v25 = vadd.f32 %v2364_v8, %v1874_v62 }
 0x34b   :  { %8701 = vrsqrt.f32 %v3650_v36  ;;  %v3504_v16 = vrot.slane %v3503_v55, 2  ;;  %v14289_v53 = vrot.slane %v11819_v49, %v14166_v35  ;;  %v11955_v31 = vmul.f32 0.015625, %v11671_v12 }
 0x34c   :  { %v4314_v52 = vsel %vm2859_vm0, %v3878_v42, 0.0  ;;  %v4317_v57 = vsel %vm2859_vm0, %v3879_v5, 0.0  ;;  %v11946_v13 = vmax.f32 %v2523_v18, 0.0  ;;  %v11948_v41 = vmax.f32 %v2524_v25, 0.0  ;;  %v11971_v5 = vpop.xlane.xlu0 %4174 }
 0x34d   :  { %4315 = vadd.xlane.f32.xlu1 %v4314_v52  ;;  %v3505_v47 = vadd.f32 %v3504_v16, %v3503_v55  ;;  %4318 = vadd.xlane.f32.xlu0 %v4317_v57  ;;  %v5179_v40 = vsel %vm4872_vm1, %v5178_v46, %v14289_v53  ;;  %14290 = vst [vmem:[#allocation115_spill] sm:$0xff] %v11955_v31  ;;  %v11965_v49 = vmul.f32 0.015625, %v11743_v21  ;;  %v85_v21 = vld [vmem:[%s13874_s0 + $0x128] sm:$0xf]  ;;  %v11978_v57 = vpop.xlane.xlu1 %4171 }
 0x34e   :  { %v576_v20 = vmul.f32 %v9090_v45, %v394_v28  ;;  %v2843_v8 = vmul.f32 %v11946_v13, %v11946_v13  ;;  %v2844_v18 = vmul.f32 %v11948_v41, %v11948_v41  ;;  %v1065_v14 = vmul.f32 %v9052_v10, %v884_v22 }
 0x34f   :  { %v1066_v55 = vmul.f32 %v9088_v0, %v884_v22  ;;  %v3506_v19 = vrot.slane %v3505_v47, 1  ;;  %14291 = vst [vmem:[#allocation116_spill] sm:$0xff] %v11965_v49  ;;  %v1534_v46 = vrot.slane %v84_v1, %v14159_v4  ;;  %v2184_v12 = vrot.slane %v84_v1, %v14156_v7 }
 0x350   :  { %v3508_v28 = vsel %vm2859_vm0, %v2843_v8, 0.0  ;;  %v3509_v62 = vsel %vm2859_vm0, %v2844_v18, 0.0  ;;  %v1225_v36 = vadd.f32 %v1065_v14, %v575_v59  ;;  %v4612_v59 = vmul.f32 %v11955_v31, %v11955_v31 }
 0x351   :  { %v1226_v42 = vadd.f32 %v1066_v55, %v576_v20  ;;  %v3507_v25 = vadd.f32 %v3506_v19, %v3505_v47  ;;  %v3510_v16 = vadd.f32 %v3509_v62, %v3508_v28  ;;  %v1715_v22 = vmul.f32 %v9126_v26, %v1534_v46 }
 0x352   :  { %v1716_v52 = vmul.f32 %v9124_v24, %v1534_v46  ;;  %v2365_v53 = vmul.f32 %v9152_v30, %v2184_v12  ;;  %v2366_v47 = vmul.f32 %v9150_v58, %v2184_v12  ;;  %v11987_v55 = vsel %vm5587_vm3, %v5179_v40, %v5620_v3 }
 0x353   :  { %v3651_v20 = vmax.f32 %v3507_v25, 1e-24  ;;  %v3511_v8 = vrot.slane %v3510_v16, 4  ;;  %v1875_v18 = vadd.f32 %v1715_v22, %v1225_v36  ;;  %v11991_v19 = vmul.f32 %v11965_v49, %v11965_v49 }
 0x354   :  { %v1876_v14 = vadd.f32 %v1716_v52, %v1226_v42  ;;  %v398_v46 = vrot.slane %v85_v21, %v8786_v11  ;;  %v888_v28 = vrot.slane %v85_v21, %v14160_v54  ;;  %v1538_v40 = vrot.slane %v85_v21, %v14159_v4  ;;  %v11999_v42 = vpop.xlane.xlu0 %4180 }
 0x355   :  { %v8702_v62 = vpop.eup %8701  ;;  %8703 = vrsqrt.f32 %v3651_v20  ;;  %v3512_v1 = vadd.f32 %v3511_v8, %v3510_v16  ;;  %v2525_v50 = vadd.f32 %v2365_v53, %v1875_v18  ;;  %14292 = vst [vmem:[#allocation117_spill] sm:$0xff] %v11999_v42  ;;  %v5187_v52 = vrot.slane %v4612_v59, %v14164_v9  ;;  %v12006_v16 = vpop.xlane.xlu1 %4177 }
 0x356   :  { %v2526_v12 = vadd.f32 %v2366_v47, %v1876_v14  ;;  %v3880_v25 = vmul.f32 %v8702_v62, %v11835_v6  ;;  %v3881_v36 = vmul.f32 %v8702_v62, %v11837_v39  ;;  %v577_v3 = vmul.f32 %v9054_v17, %v398_v46 }
 0x357   :  { %v3513_v22 = vrot.slane %v3512_v1, 2  ;;  %v12002_v49 = vmax.f32 %v2525_v50, 0.0  ;;  %v578_v39 = vmul.f32 %v9090_v45, %v398_v46  ;;  %v1067_v47 = vmul.f32 %v9052_v10, %v888_v28 }
 0x358   :  { %v12004_v31 = vmax.f32 %v2526_v12, 0.0  ;;  %v4320_v53 = vsel %vm2859_vm0, %v3880_v25, 0.0  ;;  %v4323_v6 = vsel %vm2859_vm0, %v3881_v36, 0.0  ;;  %v12017_v8 = vmul.f32 0.015625, %v11773_v44 }
 0x359   :  { %4321 = vadd.xlane.f32.xlu1 %v4320_v53  ;;  %v3514_v20 = vadd.f32 %v3513_v22, %v3512_v1  ;;  %4324 = vadd.xlane.f32.xlu0 %v4323_v6  ;;  %v2845_v59 = vmul.f32 %v12002_v49, %v12002_v49  ;;  %v1068_v18 = vmul.f32 %v9088_v0, %v888_v28  ;;  %v86_v22 = vld [vmem:[%s13874_s0 + $0x12c] sm:$0xf] }
 0x35a   :  { %v2846_v50 = vmul.f32 %v12004_v31, %v12004_v31  ;;  %14293 = vst [vmem:[#allocation118_spill] sm:$0xff] %v12017_v8  ;;  %v1227_v14 = vadd.f32 %v1067_v47, %v577_v3  ;;  %v1717_v62 = vmul.f32 %v9126_v26, %v1538_v40  ;;  %v1718_v46 = vmul.f32 %v9124_v24, %v1538_v40  ;;  %v12033_v40 = vpop.xlane.xlu0 %4186 }
 0x35b   :  { %v3515_v12 = vrot.slane %v3514_v20, 1  ;;  %v3517_v1 = vsel %vm2859_vm0, %v2845_v59, 0.0  ;;  %v2188_v36 = vrot.slane %v85_v21, %v14156_v7  ;;  %v12031_v3 = vmul.f32 0.015625, %v11706_v2  ;;  %14295 = vst [vmem:[#allocation120_spill] sm:$0xff] %v12033_v40 }
 0x35c   :  { %v3518_v25 = vsel %vm2859_vm0, %v2846_v50, 0.0  ;;  %v1228_v53 = vadd.f32 %v1068_v18, %v578_v39  ;;  %v1877_v47 = vadd.f32 %v1717_v62, %v1227_v14  ;;  %v12037_v50 = vpop.xlane.xlu1 %4183  ;;  %v14296_v42 = vrot.slane %v11887_v37, %v14166_v35 }
 0x35d   :  { %v3519_v28 = vadd.f32 %v3518_v25, %v3517_v1  ;;  %14294 = vst [vmem:[#allocation119_spill] sm:$0xff] %v12031_v3  ;;  %v3516_v6 = vadd.f32 %v3515_v12, %v3514_v20  ;;  %v2367_v59 = vmul.f32 %v9152_v30, %v2188_v36  ;;  %v2368_v21 = vmul.f32 %v9150_v58, %v2188_v36 }
 0x35e   :  { %v12043_v44 = vsel %vm4872_vm1, %v5187_v52, %v14296_v42  ;;  %v1878_v2 = vadd.f32 %v1718_v46, %v1228_v53  ;;  %v402_v39 = vrot.slane %v86_v22, %v8786_v11  ;;  %v12048_v20 = vmul.f32 %v12017_v8, %v12017_v8 }
 0x35f   :  { %v3520_v1 = vrot.slane %v3519_v28, 4  ;;  %v8704_v18 = vpop.eup %8703  ;;  %v3652_v25 = vmax.f32 %v3516_v6, 1e-24  ;;  %v2527_v14 = vadd.f32 %v2367_v59, %v1877_v47  ;;  %v892_v62 = vrot.slane %v86_v22, %v14160_v54 }
 0x360   :  { %v3882_v12 = vmul.f32 %v8704_v18, %v11889_v51  ;;  %v3883_v37 = vmul.f32 %v8704_v18, %v11891_v43  ;;  %v2528_v42 = vadd.f32 %v2368_v21, %v1878_v2  ;;  %v12055_v52 = vmul.f32 %v12031_v3, %v12031_v3  ;;  %v12064_v51 = vpop.xlane.xlu0 %4192 }
 0x361   :  { %v3521_v36 = vadd.f32 %v3520_v1, %v3519_v28  ;;  %8705 = vrsqrt.f32 %v3652_v25  ;;  %v12057_v46 = vmax.f32 %v2527_v14, 0.0  ;;  %v579_v53 = vmul.f32 %v9054_v17, %v402_v39  ;;  %14297 = vst [vmem:[#allocation121_spill] sm:$0xff] %v12064_v51  ;;  %v12070_v1 = vpop.xlane.xlu1 %4189 }
 0x362   :  { %v4326_v6 = vsel %vm2859_vm0, %v3882_v12, 0.0  ;;  %v4329_v59 = vsel %vm2859_vm0, %v3883_v37, 0.0  ;;  %v12062_v8 = vmax.f32 %v2528_v42, 0.0  ;;  %v580_v28 = vmul.f32 %v9090_v45, %v402_v39  ;;  %14298 = vst [vmem:[#allocation122_spill] sm:$0xff] %v12070_v1 }
 0x363   :  { %v3522_v47 = vrot.slane %v3521_v36, 2  ;;  %4327 = vadd.xlane.f32.xlu1 %v4326_v6  ;;  %4330 = vadd.xlane.f32.xlu0 %v4329_v59  ;;  %v2847_v43 = vmul.f32 %v12057_v46, %v12057_v46  ;;  %v1069_v21 = vmul.f32 %v9052_v10, %v892_v62  ;;  %v1070_v25 = vmul.f32 %v9088_v0, %v892_v62  ;;  %v87_v62 = vld [vmem:[%s13874_s0 + $0x130] sm:$0xf] }
 0x364   :  { %v2848_v18 = vmul.f32 %v12062_v8, %v12062_v8  ;;  %v1542_v14 = vrot.slane %v86_v22, %v14159_v4  ;;  %v12078_v37 = vmul.f32 0.015625, %v11802_v34  ;;  %v2192_v39 = vrot.slane %v86_v22, %v14156_v7 }
 0x365   :  { %v3523_v2 = vadd.f32 %v3522_v47, %v3521_v36  ;;  %v3526_v12 = vsel %vm2859_vm0, %v2847_v43, 0.0  ;;  %v1229_v42 = vadd.f32 %v1069_v21, %v579_v53  ;;  %v1230_v3 = vadd.f32 %v1070_v25, %v580_v28 }
 0x366   :  { %14299 = vst [vmem:[#allocation123_spill] sm:$0xff] %v12078_v37  ;;  %v3527_v59 = vsel %vm2859_vm0, %v2848_v18, 0.0  ;;  %v1719_v36 = vmul.f32 %v9126_v26, %v1542_v14  ;;  %v1720_v51 = vmul.f32 %v9124_v24, %v1542_v14  ;;  %v2369_v43 = vmul.f32 %v9152_v30, %v2192_v39  ;;  %v12093_v18 = vpop.xlane.xlu0 %4198 }
 0x367   :  { %v3524_v6 = vrot.slane %v3523_v2, 1  ;;  %v3528_v47 = vadd.f32 %v3527_v59, %v3526_v12  ;;  %v2370_v34 = vmul.f32 %v9150_v58, %v2192_v39  ;;  %v5196_v28 = vrot.slane %v12055_v52, %v14164_v9  ;;  %14300 = vst [vmem:[#allocation124_spill] sm:$0xff] %v12093_v18  ;;  %v12097_v59 = vpop.xlane.xlu1 %4195 }
 0x368   :  { %v1879_v21 = vadd.f32 %v1719_v36, %v1229_v42  ;;  %v1880_v40 = vadd.f32 %v1720_v51, %v1230_v3  ;;  %v406_v12 = vrot.slane %v87_v62, %v8786_v11  ;;  %v896_v14 = vrot.slane %v87_v62, %v14160_v54  ;;  %14301 = vst [vmem:[#allocation125_spill] sm:$0xff] %v12097_v59 }
 0x369   :  { %v3525_v53 = vadd.f32 %v3524_v6, %v3523_v2  ;;  %v3529_v25 = vrot.slane %v3528_v47, 4  ;;  %v12101_v2 = vmul.f32 %v12078_v37, %v12078_v37  ;;  %v12104_v39 = vmul.f32 0.015625, %v11735_v32 }
 0x36a   :  { %v2529_v52 = vadd.f32 %v2369_v43, %v1879_v21  ;;  %v2530_v36 = vadd.f32 %v2370_v34, %v1880_v40  ;;  %v581_v3 = vmul.f32 %v9054_v17, %v406_v12  ;;  %v1546_v51 = vrot.slane %v87_v62, %v14159_v4 }
 0x36b   :  { %v3653_v1 = vmax.f32 %v3525_v53, 1e-24  ;;  %14302 = vst [vmem:[#allocation126_spill] sm:$0xff] %v12104_v39  ;;  %v8706_v42 = vpop.eup %8705  ;;  %v3530_v6 = vadd.f32 %v3529_v25, %v3528_v47  ;;  %v582_v32 = vmul.f32 %v9090_v45, %v406_v12  ;;  %v1071_v43 = vmul.f32 %v9052_v10, %v896_v14 }
 0x36c   :  { %v3884_v22 = vmul.f32 %v8706_v42, %v11946_v13  ;;  %v3885_v53 = vmul.f32 %v8706_v42, %v11948_v41  ;;  %v12110_v18 = vmax.f32 %v2529_v52, 0.0  ;;  %v12112_v59 = vmax.f32 %v2530_v36, 0.0  ;;  %v12134_v52 = vpop.xlane.xlu1 %4201 }
 0x36d   :  { %8707 = vrsqrt.f32 %v3653_v1  ;;  %v3531_v37 = vrot.slane %v3530_v6, 2  ;;  %v1072_v13 = vmul.f32 %v9088_v0, %v896_v14  ;;  %v12121_v1 = vpop.xlane.xlu0 %4204  ;;  %v14304_v41 = vrot.slane %v11939_v38, %v14166_v35  ;;  %14306 = vst [vmem:[#allocation129_spill] sm:$0xff] %v12134_v52 }
 0x36e   :  { %v4332_v40 = vsel %vm2859_vm0, %v3884_v22, 0.0  ;;  %v4335_v47 = vsel %vm2859_vm0, %v3885_v53, 0.0  ;;  %v2849_v34 = vmul.f32 %v12110_v18, %v12110_v18  ;;  %14303 = vst [vmem:[#allocation127_spill] sm:$0xff] %v12121_v1  ;;  %v2850_v22 = vmul.f32 %v12112_v59, %v12112_v59 }
 0x36f   :  { %4333 = vadd.xlane.f32.xlu1 %v4332_v40  ;;  %v12127_v21 = vsel %vm4872_vm1, %v5196_v28, %v14304_v41  ;;  %v3532_v25 = vadd.f32 %v3531_v37, %v3530_v6  ;;  %4336 = vadd.xlane.f32.xlu0 %v4335_v47  ;;  %v12132_v12 = vmul.f32 0.015625, %v11829_v23  ;;  %v1231_v42 = vadd.f32 %v1071_v43, %v581_v3  ;;  %v88_v23 = vld [vmem:[%s13874_s0 + $0x134] sm:$0xf] }
 0x370   :  { %v3535_v14 = vsel %vm2859_vm0, %v2849_v34, 0.0  ;;  %v1721_v36 = vmul.f32 %v9126_v26, %v1546_v51  ;;  %v1722_v38 = vmul.f32 %v9124_v24, %v1546_v51  ;;  %v3536_v28 = vsel %vm2859_vm0, %v2850_v22, 0.0 }
 0x371   :  { %14305 = vst [vmem:[#allocation128_spill] sm:$0xff] %v12132_v12  ;;  %v3533_v53 = vrot.slane %v3532_v25, 1  ;;  %v1232_v37 = vadd.f32 %v1072_v13, %v582_v32  ;;  %v2196_v6 = vrot.slane %v87_v62, %v14156_v7  ;;  %v12148_v3 = vmul.f32 %v12104_v39, %v12104_v39  ;;  %v12158_v1 = vpop.xlane.xlu0 %4210 }
 0x372   :  { %v3537_v43 = vadd.f32 %v3536_v28, %v3535_v14  ;;  %v1881_v47 = vadd.f32 %v1721_v36, %v1231_v42  ;;  %v12154_v13 = vmul.f32 %v12132_v12, %v12132_v12  ;;  %v410_v22 = vrot.slane %v88_v23, %v8786_v11  ;;  %14307 = vst [vmem:[#allocation130_spill] sm:$0xff] %v12158_v1  ;;  %v12161_v36 = vpop.xlane.xlu1 %4207  ;;  %v89_v1 = vld [vmem:[%s13874_s0 + $0x138] sm:$0xf] }
 0x373   :  { %v3534_v51 = vadd.f32 %v3533_v53, %v3532_v25  ;;  %v1882_v34 = vadd.f32 %v1722_v38, %v1232_v37  ;;  %v2371_v41 = vmul.f32 %v9152_v30, %v2196_v6  ;;  %v2372_v32 = vmul.f32 %v9150_v58, %v2196_v6  ;;  %14308 = vst [vmem:[#allocation131_spill] sm:$0xff] %v12161_v36 }
 0x374   :  { %v3538_v62 = vrot.slane %v3537_v43, 4  ;;  %v900_v40 = vrot.slane %v88_v23, %v14160_v54  ;;  %v1550_v25 = vrot.slane %v88_v23, %v14159_v4  ;;  %v12164_v28 = vmul.f32 0.015625, %v11761_v61 }
 0x375   :  { %v3654_v39 = vmax.f32 %v3534_v51, 1e-24  ;;  %v2531_v14 = vadd.f32 %v2371_v41, %v1881_v47  ;;  %v2532_v42 = vadd.f32 %v2372_v32, %v1882_v34  ;;  %v583_v37 = vmul.f32 %v9054_v17, %v410_v22 }
 0x376   :  { %v3539_v53 = vadd.f32 %v3538_v62, %v3537_v43  ;;  %14309 = vst [vmem:[#allocation132_spill] sm:$0xff] %v12164_v28  ;;  %v584_v6 = vmul.f32 %v9090_v45, %v410_v22  ;;  %v1073_v32 = vmul.f32 %v9052_v10, %v900_v40  ;;  %v1074_v43 = vmul.f32 %v9088_v0, %v900_v40 }
 0x377   :  { %v8708_v38 = vpop.eup %8707  ;;  %8709 = vrsqrt.f32 %v3654_v39  ;;  %v12170_v47 = vmax.f32 %v2531_v14, 0.0  ;;  %v12172_v41 = vmax.f32 %v2532_v42, 0.0  ;;  %v12183_v42 = vpop.xlane.xlu0 %4216 }
 0x378   :  { %v3886_v12 = vmul.f32 %v8708_v38, %v12002_v49  ;;  %v3887_v51 = vmul.f32 %v8708_v38, %v12004_v31  ;;  %v3540_v34 = vrot.slane %v3539_v53, 2  ;;  %v1723_v49 = vmul.f32 %v9126_v26, %v1550_v25  ;;  %14310 = vst [vmem:[#allocation133_spill] sm:$0xff] %v12183_v42 }
 0x379   :  { %v2851_v22 = vmul.f32 %v12170_v47, %v12170_v47  ;;  %v2852_v39 = vmul.f32 %v12172_v41, %v12172_v41  ;;  %v1233_v14 = vadd.f32 %v1073_v32, %v583_v37  ;;  %v1234_v38 = vadd.f32 %v1074_v43, %v584_v6 }
 0x37a   :  { %v4338_v61 = vsel %vm2859_vm0, %v3886_v12, 0.0  ;;  %v4341_v62 = vsel %vm2859_vm0, %v3887_v51, 0.0  ;;  %v3541_v31 = vadd.f32 %v3540_v34, %v3539_v53  ;;  %v1724_v12 = vmul.f32 %v9124_v24, %v1550_v25 }
 0x37b   :  { %4339 = vadd.xlane.f32.xlu1 %v4338_v61  ;;  %4342 = vadd.xlane.f32.xlu0 %v4341_v62  ;;  %v3544_v40 = vsel %vm2859_vm0, %v2851_v22, 0.0  ;;  %v2200_v51 = vrot.slane %v88_v23, %v14156_v7  ;;  %v12191_v61 = vpop.xlane.xlu1 %4213  ;;  %v12195_v34 = vmul.f32 %v12164_v28, %v12164_v28  ;;  %v3545_v37 = vsel %vm2859_vm0, %v2852_v39, 0.0 }
 0x37c   :  { %14311 = vst [vmem:[#allocation134_spill] sm:$0xff] %v12191_v61  ;;  %v3542_v53 = vrot.slane %v3541_v31, 1  ;;  %v1883_v32 = vadd.f32 %v1723_v49, %v1233_v14  ;;  %v3546_v62 = vadd.f32 %v3545_v37, %v3544_v40  ;;  %v1884_v6 = vadd.f32 %v1724_v12, %v1234_v38 }
 0x37d   :  { %v2373_v25 = vmul.f32 %v9152_v30, %v2200_v51  ;;  %v2374_v23 = vmul.f32 %v9150_v58, %v2200_v51  ;;  %v414_v61 = vrot.slane %v89_v1, %v8786_v11  ;;  %v904_v49 = vrot.slane %v89_v1, %v14160_v54 }
 0x37e   :  { %v3543_v22 = vadd.f32 %v3542_v53, %v3541_v31  ;;  %v3547_v28 = vrot.slane %v3546_v62, 4  ;;  %v12209_v40 = vmul.f32 0.015625, %v11855_v63  ;;  %v12212_v31 = vpop.xlane.xlu0 %4222  ;;  %v1554_v42 = vrot.slane %v89_v1, %v14159_v4 }
 0x37f   :  { %v2533_v36 = vadd.f32 %v2373_v25, %v1883_v32  ;;  %v2534_v52 = vadd.f32 %v2374_v23, %v1884_v6  ;;  %v585_v38 = vmul.f32 %v9054_v17, %v414_v61  ;;  %14313 = vst [vmem:[#allocation136_spill] sm:$0xff] %v12212_v31  ;;  %v586_v32 = vmul.f32 %v9090_v45, %v414_v61  ;;  %v12219_v6 = vpop.xlane.xlu1 %4219 }
 0x380   :  { %v3655_v39 = vmax.f32 %v3543_v22, 1e-24  ;;  %14312 = vst [vmem:[#allocation135_spill] sm:$0xff] %v12209_v40  ;;  %v3548_v51 = vadd.f32 %v3547_v28, %v3546_v62  ;;  %14314 = vst [vmem:[#allocation137_spill] sm:$0xff] %v12219_v6  ;;  %v1075_v23 = vmul.f32 %v9052_v10, %v904_v49  ;;  %v90_v62 = vld [vmem:[%s13874_s0 + $0x13c] sm:$0xf] }
 0x381   :  { %v8710_v12 = vpop.eup %8709  ;;  %v12214_v53 = vmax.f32 %v2533_v36, 0.0  ;;  %v12216_v37 = vmax.f32 %v2534_v52, 0.0  ;;  %v1076_v52 = vmul.f32 %v9088_v0, %v904_v49 }
 0x382   :  { %v3888_v25 = vmul.f32 %v8710_v12, %v12057_v46  ;;  %8711 = vrsqrt.f32 %v3655_v39  ;;  %v3889_v63 = vmul.f32 %v8710_v12, %v12062_v8  ;;  %v3549_v22 = vrot.slane %v3548_v51, 2 }
 0x383   :  { %v2853_v14 = vmul.f32 %v12214_v53, %v12214_v53  ;;  %v2854_v36 = vmul.f32 %v12216_v37, %v12216_v37  ;;  %v12233_v46 = vmul.f32 %v12209_v40, %v12209_v40  ;;  %v12236_v8 = vmul.f32 0.015625, %v11883_v56  ;;  %v12248_v40 = vpop.xlane.xlu0 %4228 }
 0x384   :  { %v4344_v28 = vsel %vm2859_vm0, %v3888_v25, 0.0  ;;  %v4347_v61 = vsel %vm2859_vm0, %v3889_v63, 0.0  ;;  %v3550_v39 = vadd.f32 %v3549_v22, %v3548_v51  ;;  %v12244_v25 = vmul.f32 0.015625, %v11823_v15  ;;  %v12254_v22 = vpop.xlane.xlu1 %4225 }
 0x385   :  { %14315 = vst [vmem:[#allocation138_spill] sm:$0xff] %v12236_v8  ;;  %4345 = vadd.xlane.f32.xlu1 %v4344_v28  ;;  %4348 = vadd.xlane.f32.xlu0 %v4347_v61  ;;  %v3553_v49 = vsel %vm2859_vm0, %v2853_v14, 0.0  ;;  %v3554_v12 = vsel %vm2859_vm0, %v2854_v36, 0.0  ;;  %v1235_v43 = vadd.f32 %v1075_v23, %v585_v38  ;;  %v2204_v56 = vrot.slane %v89_v1, %v14156_v7 }
 0x386   :  { %v3555_v63 = vadd.f32 %v3554_v12, %v3553_v49  ;;  %v3551_v31 = vrot.slane %v3550_v39, 1  ;;  %v1236_v6 = vadd.f32 %v1076_v52, %v586_v32  ;;  %v12251_v51 = vmul.f32 0.015625, %v11852_v29 }
 0x387   :  { %v418_v14 = vrot.slane %v90_v62, %v8786_v11  ;;  %v1725_v15 = vmul.f32 %v9126_v26, %v1554_v42  ;;  %v1726_v38 = vmul.f32 %v9124_v24, %v1554_v42  ;;  %v2375_v23 = vmul.f32 %v9152_v30, %v2204_v56 }
 0x388   :  { %14316 = vst [vmem:[#allocation139_spill] sm:$0xff] %v12251_v51  ;;  %v3556_v36 = vrot.slane %v3555_v63, 4  ;;  %v3552_v28 = vadd.f32 %v3551_v31, %v3550_v39  ;;  %v12260_v1 = vmul.f32 0.015625, %v11796_v60  ;;  %v2376_v32 = vmul.f32 %v9150_v58, %v2204_v56 }
 0x389   :  { %v908_v29 = vrot.slane %v90_v62, %v14160_v54  ;;  %v12266_v61 = vmul.f32 %v12236_v8, %v12236_v8  ;;  %v1885_v49 = vadd.f32 %v1725_v15, %v1235_v43  ;;  %v1886_v12 = vadd.f32 %v1726_v38, %v1236_v6  ;;  %v12276_v8 = vpop.xlane.xlu0 %4234  ;;  %v12281_v38 = vpop.xlane.xlu1 %4231 }
 0x38a   :  { %v3557_v52 = vadd.f32 %v3556_v36, %v3555_v63  ;;  %v3656_v11 = vmax.f32 %v3552_v28, 1e-24  ;;  %v12270_v42 = vmul.f32 %v12244_v25, %v12244_v25  ;;  %v4624_v60 = vmul.f32 %v12251_v51, %v12251_v51 }
 0x38b   :  { %v587_v31 = vmul.f32 %v9054_v17, %v418_v14  ;;  %v2535_v54 = vadd.f32 %v2375_v23, %v1885_v49  ;;  %v2536_v63 = vadd.f32 %v2376_v32, %v1886_v12  ;;  %v588_v36 = vmul.f32 %v9090_v45, %v418_v14  ;;  %v14318_v12 = vld [vmem:[#allocation112_spill] sm:$0xff] }
 0x38c   :  { %v8712_v39 = vpop.eup %8711  ;;  %v3558_v56 = vrot.slane %v3557_v52, 2  ;;  %8713 = vrsqrt.f32 %v3656_v11  ;;  %v1077_v15 = vmul.f32 %v9052_v10, %v908_v29  ;;  %v12288_v23 = vmul.f32 0.015625, %v11918_v48 }
 0x38d   :  { %v3890_v43 = vmul.f32 %v8712_v39, %v12110_v18  ;;  %v3891_v6 = vmul.f32 %v8712_v39, %v12112_v59  ;;  %v12283_v51 = vmax.f32 %v2535_v54, 0.0  ;;  %v12285_v17 = vmax.f32 %v2536_v63, 0.0  ;;  %v12306_v63 = vpop.xlane.xlu0 %4240 }
 0x38e   :  { %v3559_v28 = vadd.f32 %v3558_v56, %v3557_v52  ;;  %14317 = vst [vmem:[#allocation140_spill] sm:$0xff] %v12288_v23  ;;  %v5241_v11 = vrot.slane %v4624_v60, %v14164_v9  ;;  %v1078_v18 = vmul.f32 %v9088_v0, %v908_v29  ;;  %v1558_v48 = vrot.slane %v90_v62, %v14159_v4 }
 0x38f   :  { %v4350_v45 = vsel %vm2859_vm0, %v3890_v43, 0.0  ;;  %v4353_v14 = vsel %vm2859_vm0, %v3891_v6, 0.0  ;;  %v2855_v54 = vmul.f32 %v12283_v51, %v12283_v51  ;;  %v2856_v59 = vmul.f32 %v12285_v17, %v12285_v17 }
 0x390   :  { %4351 = vadd.xlane.f32.xlu1 %v4350_v45  ;;  %v3560_v10 = vrot.slane %v3559_v28, 1  ;;  %4354 = vadd.xlane.f32.xlu0 %v4353_v14  ;;  %v1237_v32 = vadd.f32 %v1077_v15, %v587_v31  ;;  %v1238_v52 = vadd.f32 %v1078_v18, %v588_v36  ;;  %v2208_v49 = vrot.slane %v90_v62, %v14156_v7  ;;  %v12311_v62 = vpop.xlane.xlu1 %4237 }
 0x391   :  { %v12301_v39 = vmul.f32 0.015625, %v14318_v12  ;;  %v3562_v0 = vsel %vm2859_vm0, %v2855_v54, 0.0  ;;  %v3563_v29 = vsel %vm2859_vm0, %v2856_v59, 0.0  ;;  %v1727_v56 = vmul.f32 %v9126_v26, %v1558_v48 }
 0x392   :  { %v3561_v60 = vadd.f32 %v3560_v10, %v3559_v28  ;;  %v3564_v43 = vadd.f32 %v3563_v29, %v3562_v0  ;;  %v1728_v6 = vmul.f32 %v9124_v24, %v1558_v48  ;;  %v2377_v31 = vmul.f32 %v9152_v30, %v2208_v49  ;;  %v14322_v0 = vld [vmem:[#allocation28_spill] sm:$0xff]  ;;  %v14343_v24 = vld [vmem:[#allocation78_spill] sm:$0xff] }
 0x393   :  { %v2378_v36 = vmul.f32 %v9150_v58, %v2208_v49  ;;  %v5237_v15 = vrot.slane %v12233_v46, %v14166_v35  ;;  %v12317_v28 = vmul.f32 %v12260_v1, %v12260_v1  ;;  %v1887_v26 = vadd.f32 %v1727_v56, %v1237_v32 }
 0x394   :  { %v3657_v45 = vmax.f32 %v3561_v60, 1e-24  ;;  %v5246_v14 = vrot.slane %v12266_v61, %v14166_v35  ;;  %v3565_v30 = vrot.slane %v3564_v43, 4  ;;  %v1888_v18 = vadd.f32 %v1728_v6, %v1238_v52  ;;  %v14320_v60 = vld [vmem:[#allocation16_spill] sm:$0xff] }
 0x395   :  { %v12325_v58 = vmul.f32 %v12288_v23, %v12288_v23  ;;  %v12328_v46 = vsel %vm4872_vm1, %v5241_v11, %v5237_v15  ;;  %v2537_v10 = vadd.f32 %v2377_v31, %v1887_v26  ;;  %v12331_v32 = vmul.f32 0.015625, %v11942_v33  ;;  %v14324_v31 = vld [vmem:[#allocation25_spill] sm:$0xff]  ;;  %v14350_v23 = vld [vmem:[#allocation68_spill] sm:$0xff] }
 0x396   :  { %8715 = vrsqrt.f32 %v3657_v45  ;;  %v8714_v54 = vpop.eup %8713  ;;  %v3566_v59 = vadd.f32 %v3565_v30, %v3564_v43  ;;  %v2538_v48 = vadd.f32 %v2378_v36, %v1888_v18  ;;  %v4626_v61 = vmul.f32 %v12301_v39, %v12301_v39  ;;  %v12346_v43 = vpop.xlane.xlu0 %4246  ;;  %v14326_v36 = vld [vmem:[#allocation31_spill] sm:$0xff] }
 0x397   :  { %14319 = vst [vmem:[#allocation112_spill] sm:$0xff] %v12331_v32  ;;  %v3892_v52 = vmul.f32 %v8714_v54, %v12170_v47  ;;  %v3893_v49 = vmul.f32 %v8714_v54, %v12172_v41  ;;  %v12337_v12 = vmax.f32 %v2537_v10, 0.0  ;;  %v14321_v11 = vrot.slane %v14320_v60, %v14166_v35  ;;  %v12357_v45 = vpop.xlane.xlu1 %4243 }
 0x398   :  { %v14323_v29 = vrot.slane %v14322_v0, %v14164_v9  ;;  %v3567_v33 = vrot.slane %v3566_v59, 2  ;;  %v12348_v6 = vmax.f32 %v2538_v48, 0.0  ;;  %v14325_v47 = vrot.slane %v14324_v31, %v14166_v35  ;;  %v14330_v0 = vld [vmem:[#allocation37_spill] sm:$0xff]  ;;  %v14332_v31 = vld [vmem:[#allocation15_spill] sm:$0xff] }
 0x399   :  { %v14327_v41 = vrot.slane %v14326_v36, %v14164_v9  ;;  %v4356_v26 = vsel %vm2859_vm0, %v3892_v52, 0.0  ;;  %v4359_v30 = vsel %vm2859_vm0, %v3893_v49, 0.0  ;;  %v2857_v18 = vmul.f32 %v12337_v12, %v12337_v12 }
 0x39a   :  { %v4918_v56 = vsel %vm4872_vm1, %v14323_v29, %v14321_v11  ;;  %4357 = vadd.xlane.f32.xlu1 %v4356_v26  ;;  %v3568_v10 = vadd.f32 %v3567_v33, %v3566_v59  ;;  %4360 = vadd.xlane.f32.xlu0 %v4359_v30  ;;  %v2858_v54 = vmul.f32 %v12348_v6, %v12348_v6  ;;  %v14328_v11 = vld [vmem:[#allocation27_spill] sm:$0xff] }
 0x39b   :  { %v4927_v15 = vsel %vm4872_vm1, %v14327_v41, %v14325_v47  ;;  %v5250_v48 = vrot.slane %v4626_v61, %v14164_v9  ;;  %v3571_v60 = vsel %vm2859_vm0, %v2857_v18, 0.0  ;;  %v14329_v52 = vrot.slane %v14328_v11, %v14166_v35  ;;  %v14333_v47 = vld [vmem:[#allocation20_spill] sm:$0xff]  ;;  %v14335_v11 = vld [vmem:[#allocation113_spill] sm:$0xff] }
 0x39c   :  { %v14331_v49 = vrot.slane %v14330_v0, %v14164_v9  ;;  %v5590_v59 = vsel %vm5589_vm4, %v14333_v47, %v14332_v31  ;;  %v3569_v33 = vrot.slane %v3568_v10, 1  ;;  %v3572_v36 = vsel %vm2859_vm0, %v2858_v54, 0.0  ;;  %v14334_v61 = vld [vmem:[#allocation24_spill] sm:$0xff]  ;;  %v12388_v0 = vpop.xlane.xlu0 %4252  ;;  %v12392_v47 = vpop.xlane.xlu1 %4249 }
 0x39d   :  { %v5592_v41 = vsel %vm5591_vm5, %v14334_v61, %v5590_v59  ;;  %v3573_v26 = vadd.f32 %v3572_v36, %v3571_v60  ;;  %v12382_v30 = vmul.f32 %v12331_v32, %v12331_v32  ;;  %v5251_v31 = vsel %vm4872_vm1, %v5250_v48, %v5246_v14  ;;  %v14337_v48 = vld [vmem:[#allocation65_spill] sm:$0xff] }
 0x39e   :  { %v4936_v29 = vsel %vm4872_vm1, %v14331_v49, %v14329_v52  ;;  %v5594_v18 = vsel %vm5593_vm6, %v4918_v56, %v5592_v41  ;;  %v12386_v52 = vmul.f32 0.015625, %v14335_v11  ;;  %v3570_v49 = vadd.f32 %v3569_v33, %v3568_v10  ;;  %v14339_v33 = vld [vmem:[#allocation76_spill] sm:$0xff] }
 0x39f   :  { %v5596_v54 = vsel %vm5595_vm7, %v4927_v15, %v5594_v18  ;;  %v3574_v59 = vrot.slane %v3573_v26, 4  ;;  %v12396_v61 = vmul.f32 0.015625, %v11978_v57  ;;  %v14338_v15 = vrot.slane %v14337_v48, %v14166_v35 }
 0x3a0   :  { %14336 = vst [vmem:[#allocation16_spill] sm:$0xff] %v12386_v52  ;;  %v8716_v60 = vpop.eup %8715  ;;  %v5598_v36 = vsel %vm5597_vm8, %v4936_v29, %v5596_v54  ;;  %v4628_v56 = vmul.f32 %v12386_v52, %v12386_v52  ;;  %v3658_v10 = vmax.f32 %v3570_v49, 1e-24  ;;  %v14340_v18 = vrot.slane %v14339_v33, %v14164_v9  ;;  %v14341_v54 = vld [vmem:[#allocation70_spill] sm:$0xff]  ;;  %v14345_v49 = vld [vmem:[#allocation75_spill] sm:$0xff] }
 0x3a1   :  { %v3894_v41 = vmul.f32 %v8716_v60, %v12214_v53  ;;  %v3895_v14 = vmul.f32 %v8716_v60, %v12216_v37  ;;  %v3575_v29 = vadd.f32 %v3574_v59, %v3573_v26  ;;  %v14342_v57 = vrot.slane %v14341_v54, %v14166_v35  ;;  %v14347_v60 = vld [vmem:[#allocation82_spill] sm:$0xff] }
 0x3a2   :  { %v5062_v11 = vsel %vm4872_vm1, %v14340_v18, %v14338_v15  ;;  %v14344_v32 = vrot.slane %v14343_v24, %v14164_v9  ;;  %v14346_v37 = vrot.slane %v14345_v49, %v14166_v35  ;;  %v14348_v48 = vrot.slane %v14347_v60, %v14164_v9  ;;  %v14349_v33 = vld [vmem:[#allocation66_spill] sm:$0xff] }
 0x3a3   :  { %v5608_v26 = vsel %vm5589_vm4, %v14350_v23, %v14349_v33  ;;  %v4362_v59 = vsel %vm2859_vm0, %v3894_v41, 0.0  ;;  %8717 = vrsqrt.f32 %v3658_v10  ;;  %v4365_v15 = vsel %vm2859_vm0, %v3895_v14, 0.0  ;;  %v14351_v24 = vld [vmem:[#allocation74_spill] sm:$0xff]  ;;  %v12436_v23 = vpop.xlane.xlu0 %4258 }
 0x3a4   :  { %v5071_v53 = vsel %vm4872_vm1, %v14344_v32, %v14342_v57  ;;  %v5080_v52 = vsel %vm4872_vm1, %v14348_v48, %v14346_v37  ;;  %v5609_v32 = vsel %vm5591_vm5, %v14351_v24, %v5608_v26  ;;  %4363 = vadd.xlane.f32.xlu1 %v4362_v59  ;;  %v3576_v18 = vrot.slane %v3575_v29, 2  ;;  %4366 = vadd.xlane.f32.xlu0 %v4365_v15 }
 0x3a5   :  { %v12432_v54 = vmul.f32 %v12396_v61, %v12396_v61  ;;  %v5259_v57 = vrot.slane %v4628_v56, %v14164_v9  ;;  %v5610_v49 = vsel %vm5593_vm6, %v5062_v11, %v5609_v32  ;;  %v14352_v41 = vrot.slane %v12154_v13, %v14166_v35  ;;  %v12451_v56 = vpop.xlane.xlu1 %4255  ;;  %v14359_v32 = vld [vmem:[#allocation45_spill] sm:$0xff] }
 0x3a6   :  { %v14353_v10 = vrot.slane %v12270_v42, %v14164_v9  ;;  %v5255_v37 = vrot.slane %v12325_v58, %v14166_v35  ;;  %v5611_v60 = vsel %vm5595_vm7, %v5071_v53, %v5610_v49  ;;  %v12449_v48 = vmul.f32 0.015625, %v11935_v27  ;;  %v14361_v49 = vld [vmem:[#allocation53_spill] sm:$0xff] }
 0x3a7   :  { %v3577_v33 = vadd.f32 %v3576_v18, %v3575_v29  ;;  %v5612_v13 = vsel %vm5597_vm8, %v5080_v52, %v5611_v60  ;;  %v12457_v42 = vmul.f32 0.015625, %v12006_v16  ;;  %v5223_v26 = vrot.slane %v12317_v28, %v14164_v9  ;;  %v14355_v16 = vld [vmem:[#allocation41_spill] sm:$0xff]  ;;  %v14357_v28 = vld [vmem:[#allocation50_spill] sm:$0xff] }
 0x3a8   :  { %v5233_v14 = vsel %vm4872_vm1, %v14353_v10, %v14352_v41  ;;  %v5264_v58 = vrot.slane %v12382_v30, %v14166_v35  ;;  %v12467_v53 = vsel %vm5672_vm9, %v5598_v36, 0.0  ;;  %v12472_v52 = vsel %vm4872_vm1, %v5259_v57, %v5255_v37  ;;  %v14363_v10 = vld [vmem:[#allocation8_spill] sm:$0xff] }
 0x3a9   :  { %v5627_v11 = vsel %vm5585_vm2, %v12328_v46, %v5233_v14  ;;  %14354 = vst [vmem:[#allocation28_spill] sm:$0xff] %v12457_v42  ;;  %v3578_v59 = vrot.slane %v3577_v33, 1  ;;  %v14356_v29 = vrot.slane %v14355_v16, %v14166_v35  ;;  %v14358_v15 = vrot.slane %v14357_v28, %v14164_v9  ;;  %v14364_v14 = vld [vmem:[#allocation42_spill] sm:$0xff]  ;;  %v14403_v46 = vld [vmem:[#allocation131_spill] sm:$0xff] }
 0x3aa   :  { %v12464_v27 = vsel %vm5587_vm3, %v5251_v31, %v5627_v11  ;;  %v12482_v31 = vsel %vm5672_vm9, %v5612_v13, 0.0  ;;  %v4630_v36 = vmul.f32 %v12449_v48, %v12449_v48  ;;  %v14360_v18 = vrot.slane %v14359_v32, %v14166_v35  ;;  %v14365_v13 = vld [vmem:[#allocation49_spill] sm:$0xff]  ;;  %v14369_v32 = vld [vmem:[#allocation48_spill] sm:$0xff] }
 0x3ab   :  { %v4990_v24 = vsel %vm4872_vm1, %v14358_v15, %v14356_v29  ;;  %v14362_v57 = vrot.slane %v14361_v49, %v14164_v9  ;;  %v5601_v37 = vsel %vm5589_vm4, %v14364_v14, %v14363_v10  ;;  %v3579_v60 = vadd.f32 %v3578_v59, %v3577_v33  ;;  %v14367_v29 = vld [vmem:[#allocation56_spill] sm:$0xff]  ;;  %v12509_v49 = vpop.xlane.xlu0 %4264 }
 0x3ac   :  { %v12498_v11 = vmul.f32 %v12457_v42, %v12457_v42  ;;  %v14366_v16 = vrot.slane %v14365_v13, %v14166_v35  ;;  %v14368_v28 = vrot.slane %v14367_v29, %v14164_v9  ;;  %v14370_v33 = vrot.slane %v11991_v19, %v14166_v35 }
 0x3ad   :  { %v4999_v41 = vsel %vm4872_vm1, %v14362_v57, %v14360_v18  ;;  %v5602_v18 = vsel %vm5591_vm5, %v14369_v32, %v5601_v37  ;;  %v14371_v59 = vrot.slane %v12148_v3, %v14164_v9  ;;  %v14372_v14 = vrot.slane %v12048_v20, %v14166_v35 }
 0x3ae   :  { %v5008_v15 = vsel %vm4872_vm1, %v14368_v28, %v14366_v16  ;;  %v5603_v57 = vsel %vm5593_vm6, %v4990_v24, %v5602_v18  ;;  %v14373_v13 = vrot.slane %v12195_v34, %v14164_v9  ;;  %v12527_v16 = vmul.f32 0.015625, %v12037_v50  ;;  %v12529_v24 = vpop.xlane.xlu1 %4261  ;;  %v8718_v34 = vpop.eup %8717 }
 0x3af   :  { %v5206_v10 = vsel %vm4872_vm1, %v14371_v59, %v14370_v33  ;;  %v3659_v29 = vmax.f32 %v3579_v60, 1e-24  ;;  %v5604_v19 = vsel %vm5595_vm7, %v4999_v41, %v5603_v57  ;;  %v14375_v3 = vrot.slane %v12101_v2, %v14166_v35  ;;  %v14380_v57 = vld [vmem:[#allocation93_spill] sm:$0xff]  ;;  %v14382_v33 = vld [vmem:[#allocation104_spill] sm:$0xff] }
 0x3b0   :  { %v5215_v37 = vsel %vm4872_vm1, %v14373_v13, %v14372_v14  ;;  %14374 = vst [vmem:[#allocation25_spill] sm:$0xff] %v12527_v16  ;;  %v5622_v20 = vsel %vm5589_vm4, %v12043_v44, %v11987_v55  ;;  %v5268_v32 = vrot.slane %v4630_v36, %v14164_v9  ;;  %v5605_v50 = vsel %vm5597_vm8, %v5008_v15, %v5604_v19  ;;  %v14376_v44 = vld [vmem:[#allocation90_spill] sm:$0xff]  ;;  %v14378_v15 = vld [vmem:[#allocation103_spill] sm:$0xff] }
 0x3b1   :  { %v5224_v28 = vsel %vm4872_vm1, %v5223_v26, %v14375_v3  ;;  %v5623_v18 = vsel %vm5591_vm5, %v12127_v21, %v5622_v20  ;;  %v12544_v60 = vmul.f32 0.015625, %v11971_v5  ;;  %v3896_v41 = vmul.f32 %v8718_v34, %v12283_v51  ;;  %v14386_v19 = vld [vmem:[#allocation94_spill] sm:$0xff]  ;;  %v14387_v3 = vld [vmem:[#allocation95_spill] sm:$0xff] }
 0x3b2   :  { %8719 = vrsqrt.f32 %v3659_v29  ;;  %v3897_v2 = vmul.f32 %v8718_v34, %v12285_v17  ;;  %v5624_v26 = vsel %vm5593_vm6, %v5206_v10, %v5623_v18  ;;  %v12551_v55 = vmul.f32 %v12527_v16, %v12527_v16  ;;  %v14384_v10 = vld [vmem:[#allocation122_spill] sm:$0xff]  ;;  %v14388_v34 = vld [vmem:[#allocation117_spill] sm:$0xff] }
 0x3b3   :  { %v14377_v36 = vrot.slane %v14376_v44, %v14166_v35  ;;  %v14379_v21 = vrot.slane %v14378_v15, %v14164_v9  ;;  %v14381_v51 = vrot.slane %v14380_v57, %v14166_v35  ;;  %v14383_v17 = vrot.slane %v14382_v33, %v14164_v9  ;;  %v12578_v44 = vpop.xlane.xlu0 %4270  ;;  %v14389_v15 = vld [vmem:[#allocation98_spill] sm:$0xff] }
 0x3b4   :  { %v12568_v14 = vmul.f32 0.015625, %v14384_v10  ;;  %v4368_v13 = vsel %vm2859_vm0, %v3896_v41, 0.0  ;;  %v4371_v29 = vsel %vm2859_vm0, %v3897_v2, 0.0  ;;  %v5615_v20 = vsel %vm5589_vm4, %v14387_v3, %v14386_v19  ;;  %v14391_v41 = vld [vmem:[#allocation106_spill] sm:$0xff]  ;;  %v12594_v19 = vpop.xlane.xlu1 %4267  ;;  %v14395_v3 = vld [vmem:[#allocation125_spill] sm:$0xff] }
 0x3b5   :  { %v5134_v5 = vsel %vm4872_vm1, %v14379_v21, %v14377_v36  ;;  %v5143_v59 = vsel %vm4872_vm1, %v14383_v17, %v14381_v51  ;;  %v12576_v18 = vmul.f32 0.015625, %v14388_v34  ;;  %4369 = vadd.xlane.f32.xlu1 %v4368_v13  ;;  %4372 = vadd.xlane.f32.xlu0 %v4371_v29  ;;  %v4632_v36 = vmul.f32 %v12544_v60, %v12544_v60  ;;  %v14393_v51 = vld [vmem:[#allocation97_spill] sm:$0xff]  ;;  %v14394_v17 = vld [vmem:[#allocation120_spill] sm:$0xff] }
 0x3b6   :  { %14385 = vst [vmem:[#allocation31_spill] sm:$0xff] %v12568_v14  ;;  %v14390_v21 = vrot.slane %v14389_v15, %v14166_v35  ;;  %v14392_v2 = vrot.slane %v14391_v41, %v14164_v9  ;;  %v5616_v33 = vsel %vm5591_vm5, %v14393_v51, %v5615_v20  ;;  %v12592_v10 = vmul.f32 0.015625, %v14394_v17  ;;  %v14397_v15 = vld [vmem:[#allocation121_spill] sm:$0xff] }
 0x3b7   :  { %v5617_v13 = vsel %vm5593_vm6, %v5134_v5, %v5616_v33  ;;  %v4634_v29 = vmul.f32 %v12576_v18, %v12576_v18  ;;  %v12600_v34 = vmul.f32 0.015625, %v14395_v3  ;;  %v12603_v41 = vmul.f32 0.015625, %v14397_v15  ;;  %v14399_v3 = vld [vmem:[#allocation129_spill] sm:$0xff] }
 0x3b8   :  { %v5152_v57 = vsel %vm4872_vm1, %v14392_v2, %v14390_v21  ;;  %v5282_v21 = vrot.slane %v12498_v11, %v14166_v35  ;;  %v5625_v20 = vsel %vm5595_vm7, %v5215_v37, %v5624_v26  ;;  %v5618_v2 = vsel %vm5595_vm7, %v5143_v59, %v5617_v13  ;;  %v14401_v59 = vld [vmem:[#allocation124_spill] sm:$0xff] }
 0x3b9   :  { %14396 = vst [vmem:[#allocation27_spill] sm:$0xff] %v12600_v34  ;;  %14398 = vst [vmem:[#allocation37_spill] sm:$0xff] %v12603_v41  ;;  %v4637_v51 = vmul.f32 %v12568_v14, %v12568_v14  ;;  %v5626_v5 = vsel %vm5597_vm8, %v5224_v28, %v5625_v20  ;;  %v5619_v33 = vsel %vm5597_vm8, %v5152_v57, %v5618_v2  ;;  %v12616_v15 = vmul.f32 0.015625, %v14399_v3  ;;  %v12634_v2 = vpop.xlane.xlu0 %4276  ;;  %v14405_v14 = vld [vmem:[#allocation134_spill] sm:$0xff] }
 0x3ba   :  { %v4636_v17 = vmul.f32 %v12592_v10, %v12592_v10  ;;  %v5269_v11 = vsel %vm4872_vm1, %v5268_v32, %v5264_v58  ;;  %v5676_v37 = vsel %vm5672_vm9, %v5605_v50, 0.0  ;;  %v5291_v26 = vrot.slane %v12551_v55, %v14166_v35 }
 0x3bb   :  { %14400 = vst [vmem:[#allocation15_spill] sm:$0xff] %v12616_v15  ;;  %v12626_v28 = vmul.f32 0.015625, %v14401_v59  ;;  %v5277_v57 = vrot.slane %v4632_v36, %v14164_v9  ;;  %v5286_v13 = vrot.slane %v4634_v29, %v14164_v9  ;;  %v4639_v20 = vmul.f32 %v12600_v34, %v12600_v34  ;;  %v12643_v36 = vpop.xlane.xlu1 %4273 }
 0x3bc   :  { %v4638_v30 = vmul.f32 %v12603_v41, %v12603_v41  ;;  %v12637_v58 = vsel %vm5672_vm9, %v5626_v5, 0.0  ;;  %v5682_v32 = vsel %vm5672_vm9, %v5619_v33, 0.0  ;;  %v5300_v50 = vrot.slane %v4637_v51, %v14166_v35  ;;  %v8720_v29 = vpop.eup %8719  ;;  %v14404_v5 = vld [vmem:[#allocation127_spill] sm:$0xff] }
 0x3bd   :  { %14402 = vst [vmem:[#allocation20_spill] sm:$0xff] %v12626_v28  ;;  %v4640_v55 = vmul.f32 %v12626_v28, %v12626_v28  ;;  %v5295_v3 = vrot.slane %v4636_v17, %v14164_v9  ;;  %v4641_v59 = vmul.f32 %v12616_v15, %v12616_v15  ;;  %v12649_v34 = vmul.f32 0.015625, %v14403_v46 }
 0x3be   :  { %v12652_v41 = vmul.f32 0.015625, %v14404_v5  ;;  %v3898_v33 = vmul.f32 %v8720_v29, %v12337_v12  ;;  %v3899_v51 = vmul.f32 %v8720_v29, %v12348_v6  ;;  %v12658_v16 = vmul.f32 0.015625, %v14405_v14  ;;  %v12683_v29 = vpop.xlane.xlu0 %4282 }
 0x3bf   :  { %v5313_v28 = vrot.slane %v4640_v55, %v14164_v9  ;;  %v5309_v17 = vrot.slane %v4639_v20, %v14166_v35  ;;  %v5304_v42 = vrot.slane %v4638_v30, %v14164_v9  ;;  %v14406_v46 = vrot.slane %v12432_v54, %v14166_v35  ;;  %v14407_v30 = vld [vmem:[#allocation137_spill] sm:$0xff] }
 0x3c0   :  { %v5287_v5 = vsel %vm4872_vm1, %v5286_v13, %v5282_v21  ;;  %v4374_v12 = vsel %vm2859_vm0, %v3898_v33, 0.0  ;;  %v4377_v6 = vsel %vm2859_vm0, %v3899_v51, 0.0  ;;  %v5629_v14 = vsel %vm5589_vm4, %v12472_v52, %v12464_v27  ;;  %v14408_v13 = vld [vmem:[#allocation130_spill] sm:$0xff] }
 0x3c1   :  { %v5278_v15 = vsel %vm4872_vm1, %v5277_v57, %v14406_v46  ;;  %v4642_v20 = vmul.f32 %v12652_v41, %v12652_v41  ;;  %4375 = vadd.xlane.f32.xlu1 %v4374_v12  ;;  %4378 = vadd.xlane.f32.xlu0 %v4377_v6  ;;  %v4643_v54 = vmul.f32 %v12649_v34, %v12649_v34  ;;  %v12678_v21 = vmul.f32 0.015625, %v14407_v30  ;;  %v12690_v46 = vpop.xlane.xlu1 %4279  ;;  %v14409_v6 = vld [vmem:[#allocation133_spill] sm:$0xff]  ;;  %v14410_v30 = vld [vmem:[#allocation136_spill] sm:$0xff] }
 0x3c2   :  { %v5630_v57 = vsel %vm5591_vm5, %v5269_v11, %v5629_v14  ;;  %v12681_v55 = vmul.f32 0.015625, %v14408_v13  ;;  %v5314_v27 = vsel %vm4872_vm1, %v5313_v28, %v5309_v17  ;;  %v5296_v52 = vsel %vm4872_vm1, %v5295_v3, %v5291_v26 }
 0x3c3   :  { %v5631_v33 = vsel %vm5593_vm6, %v5278_v15, %v5630_v57  ;;  %v4645_v51 = vmul.f32 %v12658_v16, %v12658_v16  ;;  %v12695_v12 = vmul.f32 0.015625, %v12254_v22  ;;  %v12698_v14 = vmul.f32 0.015625, %v14409_v6 }
 0x3c4   :  { %v4644_v11 = vmul.f32 %v12681_v55, %v12681_v55  ;;  %v12701_v28 = vmul.f32 0.015625, %v14410_v30  ;;  %v5318_v26 = vrot.slane %v4641_v59, %v14166_v35  ;;  %v5305_v15 = vsel %vm4872_vm1, %v5304_v42, %v5300_v50 }
 0x3c5   :  { %v5632_v3 = vsel %vm5595_vm7, %v5287_v5, %v5631_v33  ;;  %v5322_v17 = vrot.slane %v4642_v20, %v14164_v9  ;;  %5674 = vadd.xlane.f32.xlu1 %v12467_v53  ;;  %5677 = vadd.xlane.f32.xlu0 %v5676_v37  ;;  %v4647_v22 = vmul.f32 %v12678_v21, %v12678_v21  ;;  %v12713_v13 = vmul.f32 0.015625, %v12281_v38  ;;  %v12729_v33 = vpop.xlane.xlu0 %4288 }
 0x3c6   :  { %v4646_v57 = vmul.f32 %v12698_v14, %v12698_v14  ;;  %v12716_v59 = vmul.f32 0.015625, %v12248_v40  ;;  %v5327_v42 = vrot.slane %v4643_v54, %v14166_v35  ;;  %v5634_v50 = vsel %vm5585_vm2, %v5314_v27, %v5305_v15 }
 0x3c7   :  { %v5633_v5 = vsel %vm5597_vm8, %v5296_v52, %v5632_v3  ;;  %v4648_v53 = vmul.f32 %v12701_v28, %v12701_v28  ;;  %v5336_v37 = vrot.slane %v4645_v51, %v14166_v35  ;;  %v5331_v20 = vrot.slane %v4644_v11, %v14164_v9  ;;  %v12739_v51 = vpop.xlane.xlu1 %4285 }
 0x3c8   :  { %v4649_v38 = vmul.f32 %v12695_v12, %v12695_v12  ;;  %v4650_v40 = vmul.f32 %v12716_v59, %v12716_v59  ;;  %v5323_v54 = vsel %vm4872_vm1, %v5322_v17, %v5318_v26  ;;  %v5340_v27 = vrot.slane %v4646_v57, %v14164_v9 }
 0x3c9   :  { %v12734_v52 = vmul.f32 0.015625, %v12311_v62  ;;  %v12737_v6 = vmul.f32 0.015625, %v12276_v8  ;;  %5680 = vadd.xlane.f32.xlu1 %v12482_v31  ;;  %5683 = vadd.xlane.f32.xlu0 %v5682_v32  ;;  %v5688_v11 = vsel %vm5672_vm9, %v5633_v5, 0.0  ;;  %v5345_v30 = vrot.slane %v4647_v22, %v14166_v35 }
 0x3ca   :  { %v4651_v26 = vmul.f32 %v12713_v13, %v12713_v13  ;;  %v5349_v15 = vrot.slane %v4648_v53, %v14164_v9  ;;  %v5358_v62 = vrot.slane %v4650_v40, %v14164_v9  ;;  %v12749_v3 = vmul.f32 0.015625, %v12357_v45 }
 0x3cb   :  { %14411 = vst [vmem:[#allocation24_spill] sm:$0xff] %v12734_v52  ;;  %v4652_v8 = vmul.f32 %v12737_v6, %v12737_v6  ;;  %v12754_v31 = vmul.f32 0.015625, %v12346_v43  ;;  %v5635_v32 = vsel %vm5587_vm3, %v5323_v54, %v5634_v50  ;;  %v5332_v17 = vsel %vm4872_vm1, %v5331_v20, %v5327_v42  ;;  %v12786_v54 = vpop.xlane.xlu1 %4291 }
 0x3cc   :  { %14412 = vst [vmem:[#allocation113_spill] sm:$0xff] %v12749_v3  ;;  %v5354_v22 = vrot.slane %v4649_v38, %v14166_v35  ;;  %v12760_v57 = vmul.f32 0.015625, %v12306_v63  ;;  %v5341_v5 = vsel %vm4872_vm1, %v5340_v27, %v5336_v37  ;;  %v4653_v45 = vmul.f32 %v12734_v52, %v12734_v52  ;;  %v12778_v37 = vpop.xlane.xlu0 %4294 }
 0x3cd   :  { %14413 = vst [vmem:[#allocation65_spill] sm:$0xff] %v12754_v31  ;;  %v5367_v53 = vrot.slane %v4652_v8, %v14164_v9  ;;  %v12767_v40 = vmul.f32 0.015625, %v12392_v47  ;;  %5686 = vadd.xlane.f32.xlu1 %v12637_v58  ;;  %5689 = vadd.xlane.f32.xlu0 %v5688_v11  ;;  %v5363_v43 = vrot.slane %v4651_v26, %v14166_v35  ;;  %v12772_v42 = vmul.f32 0.015625, %v12451_v56 }
 0x3ce   :  { %14414 = vst [vmem:[#allocation76_spill] sm:$0xff] %v12760_v57  ;;  %v5350_v63 = vsel %vm4872_vm1, %v5349_v15, %v5345_v30  ;;  %v12776_v50 = vmul.f32 0.015625, %v12388_v0  ;;  %v4655_v20 = vmul.f32 %v12749_v3, %v12749_v3  ;;  %v4656_v47 = vmul.f32 %v12754_v31, %v12754_v31  ;;  %v14541_v3 = vld [vmem:[#allocation118_spill] sm:$0xff] }
 0x3cf   :  { %14415 = vst [vmem:[#allocation70_spill] sm:$0xff] %v12767_v40  ;;  %14416 = vst [vmem:[#allocation78_spill] sm:$0xff] %v12772_v42  ;;  %v5359_v58 = vsel %vm4872_vm1, %v5358_v62, %v5354_v22  ;;  %v5636_v38 = vsel %vm5589_vm4, %v5332_v17, %v5635_v32  ;;  %v4654_v56 = vmul.f32 %v12760_v57, %v12760_v57  ;;  %v12793_v11 = vmul.f32 0.015625, %v12529_v24 }
 0x3d0   :  { %14417 = vst [vmem:[#allocation75_spill] sm:$0xff] %v12776_v50  ;;  %v5368_v0 = vsel %vm4872_vm1, %v5367_v53, %v5363_v43  ;;  %v5637_v27 = vsel %vm5591_vm5, %v5341_v5, %v5636_v38  ;;  %v4657_v30 = vmul.f32 %v12767_v40, %v12767_v40  ;;  %v4658_v15 = vmul.f32 %v12776_v50, %v12776_v50 }
 0x3d1   :  { %14418 = vst [vmem:[#allocation82_spill] sm:$0xff] %v12793_v11  ;;  %v5638_v26 = vsel %vm5593_vm6, %v5350_v63, %v5637_v27  ;;  %v12801_v62 = vmul.f32 0.015625, %v12436_v23  ;;  %v5372_v8 = vrot.slane %v4653_v45, %v14166_v35  ;;  %v4659_v32 = vmul.f32 %v12772_v42, %v12772_v42 }
 0x3d2   :  { %v5639_v17 = vsel %vm5595_vm7, %v5359_v58, %v5638_v26  ;;  %v12808_v24 = vmul.f32 0.015625, %v12594_v19  ;;  %v5385_v22 = vrot.slane %v4656_v47, %v14164_v9  ;;  %v12815_v23 = vmul.f32 0.015625, %v12643_v36  ;;  %v4301_v58 = vpop.xlane.xlu0 %4300 }
 0x3d3   :  { %14419 = vst [vmem:[#allocation66_spill] sm:$0xff] %v12801_v62  ;;  %v5640_v5 = vsel %vm5597_vm8, %v5368_v0, %v5639_v17  ;;  %v4660_v53 = vmul.f32 %v12801_v62, %v12801_v62  ;;  %v5376_v45 = vrot.slane %v4654_v56, %v14164_v9  ;;  %v4661_v63 = vmul.f32 %v12793_v11, %v12793_v11  ;;  %v4298_v56 = vpop.xlane.xlu1 %4297 }
 0x3d4   :  { %14420 = vst [vmem:[#allocation68_spill] sm:$0xff] %v12808_v24  ;;  %14421 = vst [vmem:[#allocation74_spill] sm:$0xff] %v12815_v23  ;;  %v5691_v43 = vsel %vm5672_vm9, %v5640_v5, 0.0  ;;  %v12822_v19 = vmul.f32 0.015625, %v12509_v49  ;;  %v5381_v47 = vrot.slane %v4655_v20, %v14166_v35  ;;  %v5390_v38 = vrot.slane %v4657_v30, %v14166_v35 }
 0x3d5   :  { %5692 = vadd.xlane.f32.xlu1 %v5691_v43  ;;  %v5394_v0 = vrot.slane %v4658_v15, %v14164_v9  ;;  %v12828_v36 = vmul.f32 0.015625, %v12690_v46  ;;  %v4663_v27 = vmul.f32 %v12808_v24, %v12808_v24  ;;  %v5403_v26 = vrot.slane %v4660_v53, %v14164_v9 }
 0x3d6   :  { %14422 = vst [vmem:[#allocation41_spill] sm:$0xff] %v12822_v19  ;;  %v4662_v49 = vmul.f32 %v12822_v19, %v12822_v19  ;;  %v12836_v17 = vmul.f32 0.015625, %v12578_v44  ;;  %v5399_v20 = vrot.slane %v4659_v32, %v14166_v35  ;;  %v5386_v30 = vsel %vm4872_vm1, %v5385_v22, %v5381_v47 }
 0x3d7   :  { %14423 = vst [vmem:[#allocation50_spill] sm:$0xff] %v12828_v36  ;;  %v4665_v46 = vmul.f32 %v12815_v23, %v12815_v23  ;;  %v12843_v15 = vmul.f32 0.015625, %v12634_v2  ;;  %v5377_v5 = vsel %vm4872_vm1, %v5376_v45, %v5372_v8  ;;  %v5408_v53 = vrot.slane %v4661_v63, %v14166_v35 }
 0x3d8   :  { %14424 = vst [vmem:[#allocation45_spill] sm:$0xff] %v12836_v17  ;;  %v5412_v43 = vrot.slane %v4662_v49, %v14164_v9  ;;  %v4664_v44 = vmul.f32 %v12836_v17, %v12836_v17  ;;  %v5395_v24 = vsel %vm4872_vm1, %v5394_v0, %v5390_v38  ;;  %v4667_v32 = vmul.f32 %v12828_v36, %v12828_v36  ;;  %v4307_v49 = vpop.xlane.xlu0 %4306 }
 0x3d9   :  { %14425 = vst [vmem:[#allocation53_spill] sm:$0xff] %v12843_v15  ;;  %v4666_v22 = vmul.f32 %v12843_v15, %v12843_v15  ;;  %v12856_v2 = vmul.f32 0.015625, %v12683_v29  ;;  %v5641_v8 = vsel %vm5585_vm2, %v5386_v30, %v5377_v5  ;;  %v5417_v45 = vrot.slane %v4663_v27, %v14166_v35  ;;  %v4304_v29 = vpop.xlane.xlu1 %4303 }
 0x3da   :  { %v5404_v63 = vsel %vm4872_vm1, %v5403_v26, %v5399_v20  ;;  %v5421_v47 = vrot.slane %v4664_v44, %v14164_v9  ;;  %v5426_v38 = vrot.slane %v4665_v46, %v14166_v35  ;;  %v5413_v0 = vsel %vm4872_vm1, %v5412_v43, %v5408_v53 }
 0x3db   :  { %14426 = vst [vmem:[#allocation8_spill] sm:$0xff] %v12856_v2  ;;  %v5430_v36 = vrot.slane %v4666_v22, %v14164_v9  ;;  %v4668_v23 = vmul.f32 %v12856_v2, %v12856_v2  ;;  %v5642_v15 = vsel %vm5587_vm3, %v5395_v24, %v5641_v8  ;;  %v5435_v27 = vrot.slane %v4667_v32, %v14166_v35 }
 0x3dc   :  { %v5422_v30 = vsel %vm4872_vm1, %v5421_v47, %v5417_v45  ;;  %v5643_v46 = vsel %vm5589_vm4, %v5404_v63, %v5642_v15  ;;  %v4313_v22 = vpop.xlane.xlu0 %4312  ;;  %v12883_v15 = vmul.f32 0.015625, %v12729_v33  ;;  %v12885_v63 = vmul.f32 0.015625, %v4301_v58 }
 0x3dd   :  { %v5439_v26 = vrot.slane %v4668_v23, %v14164_v9  ;;  %v5431_v20 = vsel %vm4872_vm1, %v5430_v36, %v5426_v38  ;;  %v5644_v5 = vsel %vm5591_vm5, %v5413_v0, %v5643_v46  ;;  %v4310_v8 = vpop.xlane.xlu1 %4309  ;;  %v12880_v36 = vmul.f32 0.015625, %v12778_v37 }
 0x3de   :  { %v5645_v43 = vsel %vm5593_vm6, %v5422_v30, %v5644_v5  ;;  %14428 = vst [vmem:[#allocation49_spill] sm:$0xff] %v12883_v15  ;;  %14429 = vst [vmem:[#allocation56_spill] sm:$0xff] %v12885_v63  ;;  %v12888_v47 = vmul.f32 0.015625, %v12786_v54  ;;  %v12890_v38 = vmul.f32 0.015625, %v4307_v49  ;;  %v12893_v0 = vmul.f32 0.015625, %v12739_v51 }
 0x3df   :  { %v5440_v53 = vsel %vm4872_vm1, %v5439_v26, %v5435_v27  ;;  %v5646_v44 = vsel %vm5595_vm7, %v5431_v20, %v5645_v43  ;;  %14427 = vst [vmem:[#allocation42_spill] sm:$0xff] %v12880_v36  ;;  %v12895_v30 = vmul.f32 0.015625, %v4298_v56  ;;  %v12897_v27 = vmul.f32 0.015625, %v4313_v22 }
 0x3e0   :  { %v5647_v24 = vsel %vm5597_vm8, %v5440_v53, %v5646_v44  ;;  %v4319_v23 = vpop.xlane.xlu0 %4318  ;;  %14430 = vst [vmem:[#allocation48_spill] sm:$0xff] %v12888_v47  ;;  %14431 = vst [vmem:[#allocation90_spill] sm:$0xff] %v12890_v38  ;;  %v12899_v37 = vmul.f32 0.015625, %v4304_v29  ;;  %v4672_v33 = vmul.f32 %v12880_v36, %v12880_v36  ;;  %v4670_v54 = vmul.f32 %v12883_v15, %v12883_v15  ;;  %v14473_v15 = vld [vmem:[#allocation29_spill] sm:$0xff] }
 0x3e1   :  { %v5694_v32 = vsel %vm5672_vm9, %v5647_v24, 0.0  ;;  %v4316_v45 = vpop.xlane.xlu1 %4315  ;;  %14432 = vst [vmem:[#allocation103_spill] sm:$0xff] %v12893_v0  ;;  %14433 = vst [vmem:[#allocation93_spill] sm:$0xff] %v12895_v30  ;;  %v12903_v20 = vmul.f32 0.015625, %v4319_v23  ;;  %v12907_v49 = vmul.f32 0.015625, %v4310_v8  ;;  %v4674_v51 = vmul.f32 %v12885_v63, %v12885_v63 }
 0x3e2   :  { %5695 = vadd.xlane.f32.xlu0 %v5694_v32  ;;  %14434 = vst [vmem:[#allocation104_spill] sm:$0xff] %v12897_v27  ;;  %14435 = vst [vmem:[#allocation122_spill] sm:$0xff] %v12899_v37  ;;  %v4671_v29 = vmul.f32 %v12888_v47, %v12888_v47  ;;  %v12915_v46 = vmul.f32 0.015625, %v4316_v45  ;;  %v4676_v5 = vmul.f32 %v12890_v38, %v12890_v38 }
 0x3e3   :  { %14436 = vst [vmem:[#allocation94_spill] sm:$0xff] %v12903_v20  ;;  %14437 = vst [vmem:[#allocation95_spill] sm:$0xff] %v12907_v49  ;;  %v4669_v53 = vmul.f32 %v12893_v0, %v12893_v0  ;;  %v4673_v43 = vmul.f32 %v12895_v30, %v12895_v30  ;;  %v4678_v22 = vmul.f32 %v12897_v27, %v12897_v27 }
 0x3e4   :  { %14439 = vst [vmem:[#allocation98_spill] sm:$0xff] %v12915_v46  ;;  %v4675_v24 = vmul.f32 %v12899_v37, %v12899_v37  ;;  %v5457_v8 = vrot.slane %v4672_v33, %v14164_v9  ;;  %v4680_v32 = vmul.f32 %v12903_v20, %v12903_v20  ;;  %v5448_v23 = vrot.slane %v4670_v54, %v14164_v9 }
 0x3e5   :  { %v4677_v45 = vmul.f32 %v12907_v49, %v12907_v49  ;;  %v5453_v27 = vrot.slane %v4671_v29, %v14166_v35  ;;  %v4679_v38 = vmul.f32 %v12915_v46, %v12915_v46  ;;  %v5475_v33 = vrot.slane %v4676_v5, %v14164_v9 }
 0x3e6   :  { %v4325_v26 = vpop.xlane.xlu0 %4324  ;;  %v4322_v58 = vpop.xlane.xlu1 %4321  ;;  %v5444_v37 = vrot.slane %v4669_v53, %v14166_v35  ;;  %v5462_v20 = vrot.slane %v4673_v43, %v14166_v35  ;;  %v5484_v49 = vrot.slane %v4678_v22, %v14164_v9  ;;  %v5493_v29 = vrot.slane %v4680_v32, %v14164_v9 }
 0x3e7   :  { %v12911_v56 = vmul.f32 0.015625, %v4325_v26  ;;  %v12923_v44 = vmul.f32 0.015625, %v4322_v58  ;;  %v5466_v26 = vrot.slane %v4674_v51, %v14164_v9  ;;  %v5471_v51 = vrot.slane %v4675_v24, %v14166_v35 }
 0x3e8   :  { %v5449_v63 = vsel %vm4872_vm1, %v5448_v23, %v5444_v37  ;;  %v5480_v46 = vrot.slane %v4677_v45, %v14166_v35 }
 0x3e9   :  { %14438 = vst [vmem:[#allocation117_spill] sm:$0xff] %v12911_v56  ;;  %14440 = vst [vmem:[#allocation106_spill] sm:$0xff] %v12923_v44  ;;  %v4682_v58 = vmul.f32 %v12911_v56, %v12911_v56  ;;  %v4681_v54 = vmul.f32 %v12923_v44, %v12923_v44  ;;  %v5458_v56 = vsel %vm4872_vm1, %v5457_v8, %v5453_v27 }
 0x3ea   :  { %v5467_v5 = vsel %vm4872_vm1, %v5466_v26, %v5462_v20  ;;  %v5489_v44 = vrot.slane %v4679_v38, %v14166_v35  ;;  %v5476_v22 = vsel %vm4872_vm1, %v5475_v33, %v5471_v51  ;;  %v5648_v27 = vsel %vm5585_vm2, %v5458_v56, %v5449_v63 }
 0x3eb   :  { %v5502_v43 = vrot.slane %v4682_v58, %v14164_v9  ;;  %v5498_v37 = vrot.slane %v4681_v54, %v14166_v35  ;;  %v5485_v8 = vsel %vm4872_vm1, %v5484_v49, %v5480_v46  ;;  %v5649_v20 = vsel %vm5587_vm3, %v5467_v5, %v5648_v27 }
 0x3ec   :  { %v5494_v23 = vsel %vm4872_vm1, %v5493_v29, %v5489_v44 }
 0x3ed   :  { %v5503_v45 = vsel %vm4872_vm1, %v5502_v43, %v5498_v37 }
 0x3f0   :  { %v4328_v53 = vpop.xlane.xlu1 %4327  ;;  %v4331_v30 = vpop.xlane.xlu0 %4330 }
 0x3f1   :  { %v12956_v36 = vmul.f32 0.015625, %v4328_v53  ;;  %v12958_v24 = vmul.f32 0.015625, %v4331_v30  ;;  %v5650_v30 = vsel %vm5589_vm4, %v5476_v22, %v5649_v20 }
 0x3f2   :  { %v5651_v49 = vsel %vm5591_vm5, %v5485_v8, %v5650_v30 }
 0x3f3   :  { %14441 = vst [vmem:[#allocation97_spill] sm:$0xff] %v12956_v36  ;;  %14442 = vst [vmem:[#allocation120_spill] sm:$0xff] %v12958_v24  ;;  %v4683_v32 = vmul.f32 %v12956_v36, %v12956_v36  ;;  %v4684_v38 = vmul.f32 %v12958_v24, %v12958_v24  ;;  %v5652_v46 = vsel %vm5593_vm6, %v5494_v23, %v5651_v49 }
 0x3f4   :  { %v5653_v58 = vsel %vm5595_vm7, %v5503_v45, %v5652_v46 }
 0x3f5   :  { %v5507_v63 = vrot.slane %v4683_v32, %v14166_v35  ;;  %v5511_v56 = vrot.slane %v4684_v38, %v14164_v9 }
 0x3f7   :  { %v5512_v26 = vsel %vm4872_vm1, %v5511_v56, %v5507_v63 }
 0x3f8   :  { %v5654_v33 = vsel %vm5597_vm8, %v5512_v26, %v5653_v58 }
 0x3f9   :  { %v5697_v44 = vsel %vm5672_vm9, %v5654_v33, 0.0 }
 0x3fa   :  { %5698 = vadd.xlane.f32.xlu1 %v5697_v44 }
 0x3fc   :  { %v4337_v54 = vpop.xlane.xlu0 %4336  ;;  %v4334_v51 = vpop.xlane.xlu1 %4333 }
 0x3fd   :  { %v12981_v23 = vmul.f32 0.015625, %v4337_v54  ;;  %v12989_v49 = vmul.f32 0.015625, %v4334_v51 }
 0x3ff   :  { %14444 = vst [vmem:[#allocation121_spill] sm:$0xff] %v12981_v23  ;;  %14448 = vst [vmem:[#allocation127_spill] sm:$0xff] %v12989_v49 }
 0x408   :  { %v4343_v29 = vpop.xlane.xlu0 %4342  ;;  %v4340_v5 = vpop.xlane.xlu1 %4339 }
 0x409   :  { %v12979_v38 = vmul.f32 0.015625, %v4343_v29  ;;  %v12985_v30 = vmul.f32 0.015625, %v4340_v5  ;;  %v4686_v29 = vmul.f32 %v12981_v23, %v12981_v23 }
 0x40b   :  { %14443 = vst [vmem:[#allocation125_spill] sm:$0xff] %v12979_v38  ;;  %14446 = vst [vmem:[#allocation124_spill] sm:$0xff] %v12985_v30  ;;  %v4688_v33 = vmul.f32 %v12979_v38, %v12979_v38 }
 0x412   :  { %v4349_v53 = vpop.xlane.xlu0 %4348  ;;  %v4346_v43 = vpop.xlane.xlu1 %4345 }
 0x413   :  { %v12983_v45 = vmul.f32 0.015625, %v4349_v53  ;;  %v12991_v46 = vmul.f32 0.015625, %v4346_v43  ;;  %v4687_v43 = vmul.f32 %v12985_v30, %v12985_v30 }
 0x415   :  { %14445 = vst [vmem:[#allocation129_spill] sm:$0xff] %v12983_v45  ;;  %14449 = vst [vmem:[#allocation134_spill] sm:$0xff] %v12991_v46  ;;  %v4690_v51 = vmul.f32 %v12983_v45, %v12983_v45 }
 0x417   :  { %v5538_v38 = vrot.slane %v4690_v51, %v14164_v9 }
 0x41d   :  { %v4355_v22 = vpop.xlane.xlu0 %4354  ;;  %v4352_v27 = vpop.xlane.xlu1 %4351 }
 0x41e   :  { %v12987_v63 = vmul.f32 0.015625, %v4355_v22  ;;  %v12995_v58 = vmul.f32 0.015625, %v4352_v27 }
 0x420   :  { %14447 = vst [vmem:[#allocation131_spill] sm:$0xff] %v12987_v63  ;;  %14451 = vst [vmem:[#allocation130_spill] sm:$0xff] %v12995_v58  ;;  %v4692_v27 = vmul.f32 %v12987_v63, %v12987_v63  ;;  %v4691_v24 = vmul.f32 %v12995_v58, %v12995_v58  ;;  %v5520_v63 = vrot.slane %v4686_v29, %v14164_v9 }
 0x422   :  { %v5543_v51 = vrot.slane %v4691_v24, %v14166_v35 }
 0x427   :  { %v4361_v37 = vpop.xlane.xlu0 %4360  ;;  %v4358_v8 = vpop.xlane.xlu1 %4357 }
 0x428   :  { %v12993_v26 = vmul.f32 0.015625, %v4361_v37  ;;  %v13003_v5 = vmul.f32 0.015625, %v4358_v8  ;;  %v4685_v37 = vmul.f32 %v12989_v49, %v12989_v49  ;;  %v4689_v8 = vmul.f32 %v12991_v46, %v12991_v46 }
 0x42a   :  { %14450 = vst [vmem:[#allocation137_spill] sm:$0xff] %v12993_v26  ;;  %14453 = vst [vmem:[#allocation136_spill] sm:$0xff] %v13003_v5  ;;  %v4693_v45 = vmul.f32 %v13003_v5, %v13003_v5  ;;  %v5516_v46 = vrot.slane %v4685_v37, %v14166_v35 }
 0x42c   :  { %v5521_v23 = vsel %vm4872_vm1, %v5520_v63, %v5516_v46 }
 0x431   :  { %v4367_v20 = vpop.xlane.xlu0 %4366  ;;  %v4364_v32 = vpop.xlane.xlu1 %4363 }
 0x432   :  { %v12999_v54 = vmul.f32 0.015625, %v4367_v20  ;;  %v13011_v22 = vmul.f32 0.015625, %v4364_v32  ;;  %v5529_v32 = vrot.slane %v4688_v33, %v14164_v9  ;;  %v5547_v33 = vrot.slane %v4692_v27, %v14164_v9 }
 0x434   :  { %14452 = vst [vmem:[#allocation133_spill] sm:$0xff] %v12999_v54  ;;  %14455 = vst [vmem:[#allocation142_spill] sm:$0xff] %v13011_v22  ;;  %v4696_v36 = vmul.f32 %v12999_v54, %v12999_v54  ;;  %v4695_v58 = vmul.f32 %v13011_v22, %v13011_v22  ;;  %v5534_v54 = vrot.slane %v4689_v8, %v14166_v35 }
 0x435   :  { %v5552_v22 = vrot.slane %v4693_v45, %v14166_v35 }
 0x436   :  { %v5539_v27 = vsel %vm4872_vm1, %v5538_v38, %v5534_v54 }
 0x442   :  { %v4373_v56 = vpop.xlane.xlu0 %4372  ;;  %v4370_v44 = vpop.xlane.xlu1 %4369 }
 0x443   :  { %v13007_v53 = vmul.f32 0.015625, %v4373_v56  ;;  %v13019_v20 = vmul.f32 0.015625, %v4370_v44  ;;  %v4694_v56 = vmul.f32 %v12993_v26, %v12993_v26  ;;  %v5525_v26 = vrot.slane %v4687_v43, %v14166_v35 }
 0x444   :  { %v5565_v43 = vrot.slane %v4696_v36, %v14164_v9 }
 0x445   :  { %14454 = vst [vmem:[#allocation141_spill] sm:$0xff] %v13007_v53  ;;  %14456 = vst [vmem:[#allocation143_spill] sm:$0xff] %v13019_v20  ;;  %v4698_v44 = vmul.f32 %v13007_v53, %v13007_v53  ;;  %v4697_v29 = vmul.f32 %v13019_v20, %v13019_v20  ;;  %v5556_v5 = vrot.slane %v4694_v56, %v14164_v9 }
 0x446   :  { %v5530_v53 = vsel %vm4872_vm1, %v5529_v32, %v5525_v26  ;;  %v5561_v20 = vrot.slane %v4695_v58, %v14166_v35  ;;  %v5548_v56 = vsel %vm4872_vm1, %v5547_v33, %v5543_v51 }
 0x447   :  { %v5574_v8 = vrot.slane %v4698_v44, %v14164_v9  ;;  %v5655_v36 = vsel %vm5585_vm2, %v5530_v53, %v5521_v23  ;;  %v5570_v63 = vrot.slane %v4697_v29, %v14166_v35  ;;  %v5557_v45 = vsel %vm4872_vm1, %v5556_v5, %v5552_v22 }
 0x448   :  { %v5656_v38 = vsel %vm5587_vm3, %v5539_v27, %v5655_v36  ;;  %v5566_v58 = vsel %vm4872_vm1, %v5565_v43, %v5561_v20  ;;  %v14459_v27 = vld [vmem:[#allocation3_spill] sm:$0xff]  ;;  %v14461_v36 = vld [vmem:[#allocation10_spill] sm:$0xff] }
 0x449   :  { %v5657_v32 = vsel %vm5589_vm4, %v5548_v56, %v5656_v38 }
 0x44a   :  { %v5658_v22 = vsel %vm5591_vm5, %v5557_v45, %v5657_v32  ;;  %v14462_v45 = vld [vmem:[#allocation11_spill] sm:$0xff] }
 0x44b   :  { %v5659_v44 = vsel %vm5593_vm6, %v5566_v58, %v5658_v22  ;;  %v14463_v58 = vld [vmem:[#allocation9_spill] sm:$0xff] }
 0x44e   :  { %v4376_v37 = vpop.xlane.xlu1 %4375  ;;  %v4379_v30 = vpop.xlane.xlu0 %4378 }
 0x44f   :  { %v13052_v49 = vmul.f32 0.015625, %v4376_v37  ;;  %v13054_v24 = vmul.f32 0.015625, %v4379_v30  ;;  %v5575_v30 = vsel %vm4872_vm1, %v5574_v8, %v5570_v63  ;;  %v14460_v8 = vld [vmem:[#allocation4_spill] sm:$0xff] }
 0x450   :  { %v5660_v29 = vsel %vm5595_vm7, %v5575_v30, %v5659_v44 }
 0x451   :  { %14457 = vst [vmem:[#allocation144_spill] sm:$0xff] %v13052_v49  ;;  %14458 = vst [vmem:[#allocation145_spill] sm:$0xff] %v13054_v24  ;;  %v4699_v46 = vmul.f32 %v13052_v49, %v13052_v49  ;;  %v4700_v26 = vmul.f32 %v13054_v24, %v13054_v24 }
 0x452   :  { %v5675_v54 = vpop.xlane.xlu1 %5674 }
 0x453   :  { %v5579_v23 = vrot.slane %v4699_v46, %v14166_v35  ;;  %v5703_v53 = vmax.f32 %v5675_v54, 1e-24  ;;  %v5583_v5 = vrot.slane %v4700_v26, %v14164_v9 }
 0x455   :  { %8721 = vrsqrt.f32 %v5703_v53  ;;  %v5584_v33 = vsel %vm4872_vm1, %v5583_v5, %v5579_v23  ;;  %v14464_v23 = vld [vmem:[#allocation17_spill] sm:$0xff]  ;;  %v5678_v5 = vpop.xlane.xlu0 %5677 }
 0x456   :  { %v5661_v20 = vsel %vm5597_vm8, %v5584_v33, %v5660_v29  ;;  %v14465_v33 = vld [vmem:[#allocation13_spill] sm:$0xff]  ;;  %v5704_v49 = vmax.f32 %v5678_v5, 1e-24 }
 0x457   :  { %v5700_v51 = vsel %vm5672_vm9, %v5661_v20, 0.0  ;;  %v14466_v20 = vld [vmem:[#allocation2_spill] sm:$0xff] }
 0x458   :  { %5701 = vadd.xlane.f32.xlu0 %v5700_v51  ;;  %v13085_v51 = vsub.s32 4, %v14466_v20  ;;  %8723 = vrsqrt.f32 %v5704_v49 }
 0x45f   :  { %v8722_v43 = vpop.eup %8721 }
 0x460   :  { %v5736_v37 = vrot.slane %v8722_v43, %v14459_v27  ;;  %v5740_v56 = vrot.slane %v8722_v43, %v14460_v8  ;;  %v5744_v26 = vrot.slane %v8722_v43, %v14159_v4  ;;  %v5748_v44 = vrot.slane %v8722_v43, %v14156_v7 }
 0x462   :  { %v6133_v63 = vmul.f32 %v5736_v37, %v14461_v36  ;;  %v6135_v38 = vmul.f32 %v5740_v56, %v14462_v45  ;;  %v6134_v54 = vmul.f32 %v5736_v37, %v14463_v58  ;;  %v6136_v53 = vmul.f32 %v5740_v56, %v14464_v23  ;;  %v14467_v45 = vld [vmem:[#allocation14_spill] sm:$0xff]  ;;  %v14468_v58 = vld [vmem:[#allocation12_spill] sm:$0xff] }
 0x463   :  { %v6137_v29 = vmul.f32 %v5744_v26, %v14465_v33  ;;  %v6138_v24 = vmul.f32 %v5744_v26, %v14467_v45  ;;  %v13089_v37 = vsub.s32 5, %v14466_v20  ;;  %v14469_v33 = vld [vmem:[#allocation21_spill] sm:$0xff] }
 0x464   :  { %v8398_v46 = vpack.c.bf16 %v6133_v63, %v6133_v63  ;;  %v8400_v32 = vpack.c.bf16 %v6135_v38, %v6135_v38  ;;  %v8399_v22 = vpack.c.bf16 %v6134_v54, %v6134_v54  ;;  %v8401_v63 = vpack.c.bf16 %v6136_v53, %v6136_v53 }
 0x465   :  { %v8402_v38 = vpack.c.bf16 %v6137_v29, %v6137_v29  ;;  %v6139_v54 = vmul.f32 %v5748_v44, %v14468_v58  ;;  %v8403_v23 = vpack.c.bf16 %v6138_v24, %v6138_v24  ;;  %v6140_v47 = vmul.f32 %v5748_v44, %v14469_v33  ;;  %v14471_v58 = vld [vmem:[#allocation23_spill] sm:$0xff] }
 0x466   :  { %v6773_v30 = vunpack.c.l.b16 %v8398_v46  ;;  %v6775_v36 = vunpack.c.l.b16 %v8400_v32  ;;  %v6774_v56 = vunpack.c.l.b16 %v8399_v22  ;;  %v5752_v46 = vrot.slane %v8722_v43, %v13085_v51  ;;  %v14470_v22 = vld [vmem:[#allocation18_spill] sm:$0xff] }
 0x467   :  { %v13095_v32 = vsub.s32 6, %v14466_v20  ;;  %v6777_v26 = vunpack.c.l.b16 %v8402_v38  ;;  %v8404_v53 = vpack.c.bf16 %v6139_v54, %v6139_v54  ;;  %v5756_v5 = vrot.slane %v8722_v43, %v13089_v37 }
 0x468   :  { %6934 = vperm.xlu1 %8560, %v6773_v30   ;;  %v6776_v30 = vunpack.c.l.b16 %v8401_v63  ;;  %v6141_v29 = vmul.f32 %v5752_v46, %v14470_v22  ;;  %v8405_v45 = vpack.c.bf16 %v6140_v47, %v6140_v47  ;;  %v6142_v63 = vmul.f32 %v5752_v46, %v14471_v58  ;;  %v13108_v58 = vpop.eup %8723 }
 0x469   :  { %v13101_v24 = vsub.s32 7, %v14466_v20  ;;  %v6779_v49 = vunpack.c.l.b16 %v8404_v53  ;;  %v6144_v22 = vmul.f32 %v5756_v5, %v14473_v15  ;;  %v5768_v15 = vrot.slane %v13108_v58, %v14459_v27 }
 0x46a   :  { %v8406_v44 = vpack.c.bf16 %v6141_v29, %v6141_v29  ;;  %v6780_v54 = vunpack.c.l.b16 %v8405_v45  ;;  %v8407_v33 = vpack.c.bf16 %v6142_v63, %v6142_v63 }
 0x46b   :  { %v5764_v46 = vrot.slane %v8722_v43, %v13101_v24  ;;  %v8409_v29 = vpack.c.bf16 %v6144_v22, %v6144_v22  ;;  %v5772_v22 = vrot.slane %v13108_v58, %v14460_v8 }
 0x46c   :  { %6940 = vperm.xlu1 %8560, %v6775_v36   ;;  %v6778_v36 = vunpack.c.l.b16 %v8403_v23  ;;  %v6781_v47 = vunpack.c.l.b16 %v8406_v44  ;;  %v6782_v53 = vunpack.c.l.b16 %v8407_v33 }
 0x46d   :  { %v6784_v44 = vunpack.c.l.b16 %v8409_v29 }
 0x46e   :  { %6937 = vperm.xlu0 %8559, %v6774_v56   ;;  %v5760_v56 = vrot.slane %v8722_v43, %v13095_v32  ;;  %v14477_v43 = vld [vmem:[#allocation34_spill] sm:$0xff] }
 0x470   :  { %6943 = vperm.xlu1 %8560, %v6776_v30   ;;  %v14472_v30 = vld [vmem:[#allocation19_spill] sm:$0xff] }
 0x471   :  { %v6143_v38 = vmul.f32 %v5756_v5, %v14472_v30  ;;  %v14476_v5 = vld [vmem:[#allocation26_spill] sm:$0xff] }
 0x472   :  { %6946 = vperm.xlu0 %8559, %v6777_v26   ;;  %v14474_v26 = vld [vmem:[#allocation22_spill] sm:$0xff] }
 0x473   :  { %v8408_v23 = vpack.c.bf16 %v6143_v38, %v6143_v38  ;;  %v6145_v20 = vmul.f32 %v5760_v56, %v14474_v26  ;;  %v6148_v38 = vmul.f32 %v5764_v46, %v14477_v43  ;;  %v5681_v43 = vpop.xlane.xlu1 %5680 }
 0x474   :  { %6949 = vperm.xlu1 %8560, %v6778_v36   ;;  %v14475_v36 = vld [vmem:[#allocation33_spill] sm:$0xff] }
 0x475   :  { %v6146_v0 = vmul.f32 %v5760_v56, %v14475_v36  ;;  %v6783_v45 = vunpack.c.l.b16 %v8408_v23  ;;  %v8410_v63 = vpack.c.bf16 %v6145_v20, %v6145_v20  ;;  %v14478_v56 = vld [vmem:[#allocation30_spill] sm:$0xff]  ;;  %v8413_v26 = vpack.c.bf16 %v6148_v38, %v6148_v38  ;;  %v14479_v20 = vld [vmem:[#allocation36_spill] sm:$0xff] }
 0x476   :  { %6952 = vperm.xlu0 %8559, %v6779_v49   ;;  %v6147_v49 = vmul.f32 %v5764_v46, %v14476_v5  ;;  %v14480_v46 = vld [vmem:[#allocation32_spill] sm:$0xff] }
 0x477   :  { %v8411_v30 = vpack.c.bf16 %v6146_v0, %v6146_v0  ;;  %v5776_v0 = vrot.slane %v13108_v58, %v14159_v4 }
 0x478   :  { %6955 = vperm.xlu1 %8560, %v6780_v54   ;;  %v6785_v54 = vunpack.c.l.b16 %v8410_v63  ;;  %v8412_v33 = vpack.c.bf16 %v6147_v49, %v6147_v49  ;;  %v6788_v63 = vunpack.c.l.b16 %v8413_v26  ;;  %v14481_v49 = vld [vmem:[#allocation6_spill] sm:$0xff] }
 0x479   :  { %v6786_v23 = vunpack.c.l.b16 %v8411_v30 }
 0x47a   :  { %6958 = vperm.xlu0 %8559, %v6781_v47   ;;  %v6149_v47 = vmul.f32 %v5768_v15, %v14478_v56  ;;  %v6787_v36 = vunpack.c.l.b16 %v8412_v33 }
 0x47c   :  { %6961 = vperm.xlu1 %8560, %v6782_v53   ;;  %v6150_v53 = vmul.f32 %v5768_v15, %v14479_v20  ;;  %v8414_v29 = vpack.c.bf16 %v6149_v47, %v6149_v47  ;;  %v5780_v15 = vrot.slane %v13108_v58, %v14156_v7 }
 0x47e   :  { %6964 = vperm.xlu0 %8559, %v6783_v45   ;;  %v6151_v45 = vmul.f32 %v5772_v22, %v14480_v46  ;;  %v8415_v5 = vpack.c.bf16 %v6150_v53, %v6150_v53  ;;  %v6789_v30 = vunpack.c.l.b16 %v8414_v29  ;;  %v5705_v46 = vmax.f32 %v5681_v43, 1e-24  ;;  %v14486_v43 = vld [vmem:[#allocation39_spill] sm:$0xff] }
 0x480   :  { %6967 = vperm.xlu1 %8560, %v6784_v44   ;;  %v6152_v44 = vmul.f32 %v5772_v22, %v14481_v49  ;;  %v8416_v38 = vpack.c.bf16 %v6151_v45, %v6151_v45  ;;  %v6790_v56 = vunpack.c.l.b16 %v8415_v5  ;;  %v5784_v22 = vrot.slane %v13108_v58, %v13085_v51  ;;  %v14485_v49 = vld [vmem:[#allocation7_spill] sm:$0xff] }
 0x481   :  { %v6156_v2 = vmul.f32 %v5780_v15, %v14485_v49  ;;  %8725 = vrsqrt.f32 %v5705_v46 }
 0x482   :  { %6970 = vperm.xlu0 %8559, %v6785_v54   ;;  %v14482_v54 = vld [vmem:[#allocation35_spill] sm:$0xff]  ;;  %v8417_v47 = vpack.c.bf16 %v6152_v44, %v6152_v44  ;;  %v6791_v26 = vunpack.c.l.b16 %v8416_v38 }
 0x483   :  { %v6153_v33 = vmul.f32 %v5776_v0, %v14482_v54  ;;  %v8421_v54 = vpack.c.bf16 %v6156_v2, %v6156_v2  ;;  %v5796_v2 = vrot.slane %v13108_v58, %v13101_v24 }
 0x484   :  { %6973 = vperm.xlu1 %8560, %v6786_v23   ;;  %v14483_v23 = vld [vmem:[#allocation40_spill] sm:$0xff]  ;;  %v6792_v45 = vunpack.c.l.b16 %v8417_v47 }
 0x485   :  { %v6154_v20 = vmul.f32 %v5776_v0, %v14483_v23  ;;  %v8418_v53 = vpack.c.bf16 %v6153_v33, %v6153_v33  ;;  %v5788_v0 = vrot.slane %v13108_v58, %v13089_v37  ;;  %v14487_v33 = vld [vmem:[#allocation44_spill] sm:$0xff] }
 0x486   :  { %6976 = vperm.xlu0 %8559, %v6787_v36   ;;  %v14484_v36 = vld [vmem:[#allocation38_spill] sm:$0xff] }
 0x487   :  { %v6155_v29 = vmul.f32 %v5780_v15, %v14484_v36  ;;  %v6793_v5 = vunpack.c.l.b16 %v8418_v53  ;;  %v5792_v15 = vrot.slane %v13108_v58, %v13095_v32  ;;  %v14489_v36 = vld [vmem:[#allocation47_spill] sm:$0xff] }
 0x488   :  { %6979 = vperm.xlu1 %8560, %v6788_v63   ;;  %v8419_v63 = vpack.c.bf16 %v6154_v20, %v6154_v20  ;;  %v14488_v20 = vld [vmem:[#allocation5_spill] sm:$0xff]  ;;  %v14493_v58 = vld [vmem:[#allocation55_spill] sm:$0xff] }
 0x489   :  { %v8420_v44 = vpack.c.bf16 %v6155_v29, %v6155_v29  ;;  %v6159_v46 = vmul.f32 %v5788_v0, %v14488_v20  ;;  %v6160_v29 = vmul.f32 %v5788_v0, %v14489_v36 }
 0x48a   :  { %6982 = vperm.xlu0 %8559, %v6789_v30   ;;  %v6157_v30 = vmul.f32 %v5784_v22, %v14486_v43  ;;  %v6794_v38 = vunpack.c.l.b16 %v8419_v63 }
 0x48b   :  { %v6795_v47 = vunpack.c.l.b16 %v8420_v44  ;;  %v8424_v63 = vpack.c.bf16 %v6159_v46, %v6159_v46  ;;  %v8425_v43 = vpack.c.bf16 %v6160_v29, %v6160_v29  ;;  %v6164_v46 = vmul.f32 %v5796_v2, %v14493_v58 }
 0x48c   :  { %6985 = vperm.xlu1 %8560, %v6790_v56   ;;  %v6158_v56 = vmul.f32 %v5784_v22, %v14487_v33  ;;  %v8422_v23 = vpack.c.bf16 %v6157_v30, %v6157_v30  ;;  %v14490_v22 = vld [vmem:[#allocation43_spill] sm:$0xff]  ;;  %v14491_v30 = vld [vmem:[#allocation52_spill] sm:$0xff] }
 0x48d   :  { %v6161_v49 = vmul.f32 %v5792_v15, %v14490_v22  ;;  %v14495_v22 = vld [vmem:[#allocation57_spill] sm:$0xff] }
 0x48e   :  { %6988 = vperm.xlu0 %8559, %v6791_v26   ;;  %v6796_v26 = vunpack.c.l.b16 %v8421_v54  ;;  %v8423_v53 = vpack.c.bf16 %v6158_v56, %v6158_v56  ;;  %v6799_v54 = vunpack.c.l.b16 %v8424_v63  ;;  %v14492_v56 = vld [vmem:[#allocation46_spill] sm:$0xff]  ;;  %v8429_v63 = vpack.c.bf16 %v6164_v46, %v6164_v46 }
 0x48f   :  { %v8426_v33 = vpack.c.bf16 %v6161_v49, %v6161_v49  ;;  %v14498_v46 = vld [vmem:[#allocation58_spill] sm:$0xff] }
 0x490   :  { %6991 = vperm.xlu1 %8560, %v6792_v45   ;;  %v6797_v45 = vunpack.c.l.b16 %v8422_v23  ;;  %v6798_v44 = vunpack.c.l.b16 %v8423_v53  ;;  %v6800_v23 = vunpack.c.l.b16 %v8425_v43 }
 0x492   :  { %6994 = vperm.xlu0 %8559, %v6793_v5   ;;  %v13142_v5 = vpop.eup %8725 }
 0x493   :  { %v5800_v0 = vrot.slane %v13142_v5, %v14459_v27  ;;  %v5804_v36 = vrot.slane %v13142_v5, %v14460_v8 }
 0x494   :  { %6997 = vperm.xlu1 %8560, %v6794_v38   ;;  %v6162_v38 = vmul.f32 %v5792_v15, %v14491_v30  ;;  %v14494_v15 = vld [vmem:[#allocation51_spill] sm:$0xff]  ;;  %v5808_v30 = vrot.slane %v13142_v5, %v14159_v4 }
 0x495   :  { %v6165_v29 = vmul.f32 %v5800_v0, %v14494_v15  ;;  %v6166_v49 = vmul.f32 %v5800_v0, %v14495_v22  ;;  %v5812_v0 = vrot.slane %v13142_v5, %v14156_v7 }
 0x496   :  { %7000 = vperm.xlu0 %8559, %v6795_v47   ;;  %v6163_v47 = vmul.f32 %v5796_v2, %v14492_v56  ;;  %v8427_v20 = vpack.c.bf16 %v6162_v38, %v6162_v38  ;;  %v14496_v2 = vld [vmem:[#allocation54_spill] sm:$0xff]  ;;  %v14497_v56 = vld [vmem:[#allocation59_spill] sm:$0xff] }
 0x497   :  { %v8430_v43 = vpack.c.bf16 %v6165_v29, %v6165_v29  ;;  %v6167_v38 = vmul.f32 %v5804_v36, %v14496_v2  ;;  %v14499_v29 = vld [vmem:[#allocation62_spill] sm:$0xff] }
 0x498   :  { %7003 = vperm.xlu1 %8560, %v6796_v26   ;;  %v6801_v26 = vunpack.c.l.b16 %v8426_v33  ;;  %v8428_v53 = vpack.c.bf16 %v6163_v47, %v6163_v47  ;;  %v8431_v33 = vpack.c.bf16 %v6166_v49, %v6166_v49  ;;  %v6168_v47 = vmul.f32 %v5804_v36, %v14497_v56 }
 0x499   :  { %v8432_v58 = vpack.c.bf16 %v6167_v38, %v6167_v38  ;;  %v5816_v36 = vrot.slane %v13142_v5, %v13085_v51 }
 0x49a   :  { %7006 = vperm.xlu0 %8559, %v6797_v45   ;;  %v6802_v45 = vunpack.c.l.b16 %v8427_v20  ;;  %v6805_v20 = vunpack.c.l.b16 %v8430_v43  ;;  %v8433_v15 = vpack.c.bf16 %v6168_v47, %v6168_v47 }
 0x49c   :  { %7009 = vperm.xlu1 %8560, %v6798_v44   ;;  %v6803_v44 = vunpack.c.l.b16 %v8428_v53  ;;  %v6806_v53 = vunpack.c.l.b16 %v8431_v33  ;;  %v6808_v2 = vunpack.c.l.b16 %v8433_v15 }
 0x49e   :  { %7012 = vperm.xlu0 %8559, %v6799_v54   ;;  %v6804_v54 = vunpack.c.l.b16 %v8429_v63  ;;  %v6807_v63 = vunpack.c.l.b16 %v8432_v58 }
 0x4a0   :  { %7015 = vperm.xlu1 %8560, %v6800_v23   ;;  %v5684_v23 = vpop.xlane.xlu0 %5683 }
 0x4a1   :  { %v5706_v22 = vmax.f32 %v5684_v23, 1e-24  ;;  %v14502_v23 = vld [vmem:[#allocation61_spill] sm:$0xff] }
 0x4a2   :  { %7018 = vperm.xlu0 %8559, %v6801_v26   ;;  %v6169_v26 = vmul.f32 %v5808_v30, %v14498_v46 }
 0x4a3   :  { %8727 = vrsqrt.f32 %v5706_v22 }
 0x4a4   :  { %7021 = vperm.xlu1 %8560, %v6802_v45   ;;  %v6170_v45 = vmul.f32 %v5808_v30, %v14499_v29  ;;  %v8434_v49 = vpack.c.bf16 %v6169_v26, %v6169_v26  ;;  %v5820_v30 = vrot.slane %v13142_v5, %v13089_v37  ;;  %v14503_v26 = vld [vmem:[#allocation69_spill] sm:$0xff] }
 0x4a6   :  { %7024 = vperm.xlu0 %8559, %v6803_v44   ;;  %v14500_v44 = vld [vmem:[#allocation60_spill] sm:$0xff]  ;;  %v8435_v38 = vpack.c.bf16 %v6170_v45, %v6170_v45  ;;  %v6809_v33 = vunpack.c.l.b16 %v8434_v49  ;;  %v14504_v45 = vld [vmem:[#allocation63_spill] sm:$0xff] }
 0x4a7   :  { %v6171_v43 = vmul.f32 %v5812_v0, %v14500_v44  ;;  %v6175_v22 = vmul.f32 %v5820_v30, %v14504_v45  ;;  %v14505_v44 = vld [vmem:[#allocation72_spill] sm:$0xff] }
 0x4a8   :  { %7027 = vperm.xlu1 %8560, %v6804_v54   ;;  %v14501_v54 = vld [vmem:[#allocation64_spill] sm:$0xff]  ;;  %v6810_v58 = vunpack.c.l.b16 %v8435_v38 }
 0x4a9   :  { %v6172_v56 = vmul.f32 %v5812_v0, %v14501_v54  ;;  %v8436_v47 = vpack.c.bf16 %v6171_v43, %v6171_v43  ;;  %v5824_v0 = vrot.slane %v13142_v5, %v13095_v32  ;;  %v6176_v43 = vmul.f32 %v5820_v30, %v14505_v44 }
 0x4aa   :  { %7030 = vperm.xlu0 %8559, %v6805_v20   ;;  %v6173_v20 = vmul.f32 %v5816_v36, %v14502_v23  ;;  %v8440_v38 = vpack.c.bf16 %v6175_v22, %v6175_v22  ;;  %v5828_v54 = vrot.slane %v13142_v5, %v13101_v24  ;;  %v14509_v5 = vld [vmem:[#allocation80_spill] sm:$0xff] }
 0x4ab   :  { %v8437_v46 = vpack.c.bf16 %v6172_v56, %v6172_v56  ;;  %v6811_v15 = vunpack.c.l.b16 %v8436_v47  ;;  %v8441_v23 = vpack.c.bf16 %v6176_v43, %v6176_v43 }
 0x4ac   :  { %7033 = vperm.xlu1 %8560, %v6806_v53   ;;  %v6174_v53 = vmul.f32 %v5816_v36, %v14503_v26  ;;  %v8438_v29 = vpack.c.bf16 %v6173_v20, %v6173_v20  ;;  %v14506_v36 = vld [vmem:[#allocation67_spill] sm:$0xff]  ;;  %v14507_v20 = vld [vmem:[#allocation77_spill] sm:$0xff]  ;;  %v6180_v22 = vmul.f32 %v5828_v54, %v14509_v5 }
 0x4ad   :  { %v6177_v56 = vmul.f32 %v5824_v0, %v14506_v36  ;;  %v14511_v36 = vld [vmem:[#allocation83_spill] sm:$0xff] }
 0x4ae   :  { %7036 = vperm.xlu0 %8559, %v6807_v63   ;;  %v6812_v63 = vunpack.c.l.b16 %v8437_v46  ;;  %v8439_v49 = vpack.c.bf16 %v6174_v53, %v6174_v53  ;;  %v6815_v46 = vunpack.c.l.b16 %v8440_v38  ;;  %v14508_v53 = vld [vmem:[#allocation71_spill] sm:$0xff]  ;;  %v8445_v38 = vpack.c.bf16 %v6180_v22, %v6180_v22  ;;  %v14514_v22 = vld [vmem:[#allocation81_spill] sm:$0xff] }
 0x4af   :  { %v8442_v26 = vpack.c.bf16 %v6177_v56, %v6177_v56 }
 0x4b0   :  { %7039 = vperm.xlu1 %8560, %v6808_v2   ;;  %v6813_v2 = vunpack.c.l.b16 %v8438_v29  ;;  %v6814_v47 = vunpack.c.l.b16 %v8439_v49  ;;  %v6816_v29 = vunpack.c.l.b16 %v8441_v23 }
 0x4b2   :  { %7042 = vperm.xlu0 %8559, %v6809_v33   ;;  %v13176_v33 = vpop.eup %8727 }
 0x4b3   :  { %v5832_v30 = vrot.slane %v13176_v33, %v14459_v27  ;;  %v5836_v44 = vrot.slane %v13176_v33, %v14460_v8 }
 0x4b4   :  { %7045 = vperm.xlu1 %8560, %v6810_v58   ;;  %v6178_v58 = vmul.f32 %v5824_v0, %v14507_v20  ;;  %v14510_v0 = vld [vmem:[#allocation73_spill] sm:$0xff]  ;;  %v5840_v20 = vrot.slane %v13176_v33, %v14159_v4 }
 0x4b5   :  { %v6181_v43 = vmul.f32 %v5832_v30, %v14510_v0  ;;  %v6182_v56 = vmul.f32 %v5832_v30, %v14511_v36  ;;  %v5844_v30 = vrot.slane %v13176_v33, %v14156_v7 }
 0x4b6   :  { %7048 = vperm.xlu0 %8559, %v6811_v15   ;;  %v6179_v15 = vmul.f32 %v5828_v54, %v14508_v53  ;;  %v8443_v45 = vpack.c.bf16 %v6178_v58, %v6178_v58  ;;  %v14512_v54 = vld [vmem:[#allocation79_spill] sm:$0xff]  ;;  %v14513_v53 = vld [vmem:[#allocation85_spill] sm:$0xff] }
 0x4b7   :  { %v8446_v23 = vpack.c.bf16 %v6181_v43, %v6181_v43  ;;  %v6183_v58 = vmul.f32 %v5836_v44, %v14512_v54  ;;  %v14515_v43 = vld [vmem:[#allocation87_spill] sm:$0xff] }
 0x4b8   :  { %7051 = vperm.xlu1 %8560, %v6812_v63   ;;  %v6817_v63 = vunpack.c.l.b16 %v8442_v26  ;;  %v8444_v49 = vpack.c.bf16 %v6179_v15, %v6179_v15  ;;  %v8447_v26 = vpack.c.bf16 %v6182_v56, %v6182_v56  ;;  %v6184_v15 = vmul.f32 %v5836_v44, %v14513_v53 }
 0x4b9   :  { %v8448_v5 = vpack.c.bf16 %v6183_v58, %v6183_v58  ;;  %v5848_v44 = vrot.slane %v13176_v33, %v13085_v51 }
 0x4ba   :  { %7054 = vperm.xlu0 %8559, %v6813_v2   ;;  %v6818_v2 = vunpack.c.l.b16 %v8443_v45  ;;  %v6821_v45 = vunpack.c.l.b16 %v8446_v23  ;;  %v8449_v0 = vpack.c.bf16 %v6184_v15, %v6184_v15 }
 0x4bc   :  { %7057 = vperm.xlu1 %8560, %v6814_v47   ;;  %v6819_v47 = vunpack.c.l.b16 %v8444_v49  ;;  %v6822_v49 = vunpack.c.l.b16 %v8447_v26  ;;  %v6824_v54 = vunpack.c.l.b16 %v8449_v0 }
 0x4be   :  { %7060 = vperm.xlu0 %8559, %v6815_v46   ;;  %v6820_v46 = vunpack.c.l.b16 %v8445_v38  ;;  %v6823_v38 = vunpack.c.l.b16 %v8448_v5 }
 0x4c0   :  { %7063 = vperm.xlu1 %8560, %v6816_v29   ;;  %v5687_v29 = vpop.xlane.xlu1 %5686 }
 0x4c1   :  { %v5707_v36 = vmax.f32 %v5687_v29, 1e-24  ;;  %v14518_v29 = vld [vmem:[#allocation86_spill] sm:$0xff] }
 0x4c2   :  { %7066 = vperm.xlu0 %8559, %v6817_v63   ;;  %v6185_v63 = vmul.f32 %v5840_v20, %v14514_v22 }
 0x4c3   :  { %8729 = vrsqrt.f32 %v5707_v36 }
 0x4c4   :  { %7069 = vperm.xlu1 %8560, %v6818_v2   ;;  %v6186_v2 = vmul.f32 %v5840_v20, %v14515_v43  ;;  %v8450_v56 = vpack.c.bf16 %v6185_v63, %v6185_v63  ;;  %v5852_v20 = vrot.slane %v13176_v33, %v13089_v37  ;;  %v14519_v63 = vld [vmem:[#allocation92_spill] sm:$0xff] }
 0x4c6   :  { %7072 = vperm.xlu0 %8559, %v6819_v47   ;;  %v14516_v47 = vld [vmem:[#allocation84_spill] sm:$0xff]  ;;  %v8451_v58 = vpack.c.bf16 %v6186_v2, %v6186_v2  ;;  %v6825_v26 = vunpack.c.l.b16 %v8450_v56  ;;  %v14520_v2 = vld [vmem:[#allocation89_spill] sm:$0xff] }
 0x4c7   :  { %v6187_v23 = vmul.f32 %v5844_v30, %v14516_v47  ;;  %v6191_v36 = vmul.f32 %v5852_v20, %v14520_v2  ;;  %v14521_v47 = vld [vmem:[#allocation99_spill] sm:$0xff] }
 0x4c8   :  { %7075 = vperm.xlu1 %8560, %v6820_v46   ;;  %v14517_v46 = vld [vmem:[#allocation88_spill] sm:$0xff]  ;;  %v6826_v5 = vunpack.c.l.b16 %v8451_v58 }
 0x4c9   :  { %v6188_v53 = vmul.f32 %v5844_v30, %v14517_v46  ;;  %v8452_v15 = vpack.c.bf16 %v6187_v23, %v6187_v23  ;;  %v5856_v30 = vrot.slane %v13176_v33, %v13095_v32  ;;  %v6192_v23 = vmul.f32 %v5852_v20, %v14521_v47 }
 0x4ca   :  { %7078 = vperm.xlu0 %8559, %v6821_v45   ;;  %v6189_v45 = vmul.f32 %v5848_v44, %v14518_v29  ;;  %v8456_v58 = vpack.c.bf16 %v6191_v36, %v6191_v36  ;;  %v5860_v46 = vrot.slane %v13176_v33, %v13101_v24  ;;  %v14525_v33 = vld [vmem:[#allocation105_spill] sm:$0xff] }
 0x4cb   :  { %v8453_v22 = vpack.c.bf16 %v6188_v53, %v6188_v53  ;;  %v6827_v0 = vunpack.c.l.b16 %v8452_v15  ;;  %v8457_v29 = vpack.c.bf16 %v6192_v23, %v6192_v23  ;;  %v14526_v23 = vld [vmem:[#allocation100_spill] sm:$0xff] }
 0x4cc   :  { %7081 = vperm.xlu1 %8560, %v6822_v49   ;;  %v6190_v49 = vmul.f32 %v5848_v44, %v14519_v63  ;;  %v8454_v43 = vpack.c.bf16 %v6189_v45, %v6189_v45  ;;  %v14522_v44 = vld [vmem:[#allocation91_spill] sm:$0xff]  ;;  %v14523_v45 = vld [vmem:[#allocation101_spill] sm:$0xff]  ;;  %v6196_v36 = vmul.f32 %v5860_v46, %v14525_v33 }
 0x4cd   :  { %v6193_v53 = vmul.f32 %v5856_v30, %v14522_v44 }
 0x4ce   :  { %7084 = vperm.xlu0 %8559, %v6823_v38   ;;  %v6828_v38 = vunpack.c.l.b16 %v8453_v22  ;;  %v8455_v56 = vpack.c.bf16 %v6190_v49, %v6190_v49  ;;  %v6831_v22 = vunpack.c.l.b16 %v8456_v58  ;;  %v14524_v49 = vld [vmem:[#allocation96_spill] sm:$0xff]  ;;  %v5690_v58 = vpop.xlane.xlu0 %5689 }
 0x4cf   :  { %v8458_v63 = vpack.c.bf16 %v6193_v53, %v6193_v53  ;;  %v8461_v53 = vpack.c.bf16 %v6196_v36, %v6196_v36 }
 0x4d0   :  { %7087 = vperm.xlu1 %8560, %v6824_v54   ;;  %v6829_v54 = vunpack.c.l.b16 %v8454_v43  ;;  %v6830_v15 = vunpack.c.l.b16 %v8455_v56  ;;  %v6832_v43 = vunpack.c.l.b16 %v8457_v29 }
 0x4d1   :  { %v6833_v56 = vunpack.c.l.b16 %v8458_v63  ;;  %v14529_v63 = vld [vmem:[#allocation102_spill] sm:$0xff] }
 0x4d2   :  { %7090 = vperm.xlu0 %8559, %v6825_v26   ;;  %v13210_v26 = vpop.eup %8729 }
 0x4d3   :  { %v5864_v20 = vrot.slane %v13210_v26, %v14459_v27 }
 0x4d4   :  { %7093 = vperm.xlu1 %8560, %v6826_v5   ;;  %v6194_v5 = vmul.f32 %v5856_v30, %v14523_v45  ;;  %v5868_v30 = vrot.slane %v13210_v26, %v14460_v8 }
 0x4d6   :  { %7096 = vperm.xlu0 %8559, %v6827_v0   ;;  %v6195_v0 = vmul.f32 %v5860_v46, %v14524_v49  ;;  %v8459_v2 = vpack.c.bf16 %v6194_v5, %v6194_v5  ;;  %v6199_v49 = vmul.f32 %v5868_v30, %v14529_v63 }
 0x4d8   :  { %7099 = vperm.xlu1 %8560, %v6828_v38   ;;  %v13217_v38 = vpop.xlane.xlu1 %5692  ;;  %v8460_v47 = vpack.c.bf16 %v6195_v0, %v6195_v0  ;;  %v6834_v44 = vunpack.c.l.b16 %v8459_v2  ;;  %v13228_v0 = vpop.xlane.xlu0 %5695  ;;  %v14530_v2 = vld [vmem:[#allocation109_spill] sm:$0xff] }
 0x4d9   :  { %v6200_v36 = vmul.f32 %v5868_v30, %v14530_v2 }
 0x4da   :  { %7102 = vperm.xlu0 %8559, %v6829_v54   ;;  %v6197_v54 = vmul.f32 %v5864_v20, %v14526_v23  ;;  %v6835_v46 = vunpack.c.l.b16 %v8460_v47  ;;  %v5876_v47 = vrot.slane %v13210_v26, %v14156_v7 }
 0x4db   :  { %v8465_v19 = vpack.c.bf16 %v6200_v36, %v6200_v36 }
 0x4dc   :  { %7105 = vperm.xlu1 %8560, %v6830_v15   ;;  %v14527_v15 = vld [vmem:[#allocation107_spill] sm:$0xff]  ;;  %v13223_v45 = vpop.xlane.xlu1 %5698  ;;  %v8462_v5 = vpack.c.bf16 %v6197_v54, %v6197_v54  ;;  %v14531_v54 = vld [vmem:[#allocation108_spill] sm:$0xff] }
 0x4dd   :  { %v6198_v29 = vmul.f32 %v5864_v20, %v14527_v15  ;;  %14528 = vst [vmem:[#allocation3_spill] sm:$0xff] %v13223_v45  ;;  %v14542_v45 = vld [vmem:[#allocation123_spill] sm:$0xff] }
 0x4de   :  { %7108 = vperm.xlu0 %8559, %v6831_v22   ;;  %v5872_v22 = vrot.slane %v13210_v26, %v14159_v4  ;;  %v6837_v20 = vunpack.c.l.b16 %v8462_v5  ;;  %v5880_v5 = vrot.slane %v13210_v26, %v13085_v51 }
 0x4df   :  { %v8463_v33 = vpack.c.bf16 %v6198_v29, %v6198_v29 }
 0x4e0   :  { %7111 = vperm.xlu1 %8560, %v6832_v43   ;;  %v6836_v43 = vunpack.c.l.b16 %v8461_v53  ;;  %v6201_v15 = vmul.f32 %v5872_v22, %v14531_v54  ;;  %v14533_v53 = vld [vmem:[#allocation111_spill] sm:$0xff]  ;;  %v6840_v54 = vunpack.c.l.b16 %v8465_v19 }
 0x4e1   :  { %v6838_v63 = vunpack.c.l.b16 %v8463_v33  ;;  %v6202_v29 = vmul.f32 %v5872_v22, %v14533_v53  ;;  %v14535_v33 = vld [vmem:[#allocation115_spill] sm:$0xff] }
 0x4e2   :  { %7114 = vperm.xlu0 %8559, %v6833_v56   ;;  %v5708_v56 = vmax.f32 %v5690_v58, 1e-24  ;;  %v6204_v36 = vmul.f32 %v5876_v47, %v14535_v33  ;;  %v14537_v19 = vld [vmem:[#allocation119_spill] sm:$0xff]  ;;  %v14538_v33 = vld [vmem:[#allocation116_spill] sm:$0xff] }
 0x4e4   :  { %7117 = vperm.xlu1 %8560, %v6834_v44   ;;  %v8464_v44 = vpack.c.bf16 %v6199_v49, %v6199_v49  ;;  %8731 = vrsqrt.f32 %v5708_v56  ;;  %v14534_v49 = vld [vmem:[#allocation110_spill] sm:$0xff]  ;;  %v8469_v11 = vpack.c.bf16 %v6204_v36, %v6204_v36 }
 0x4e5   :  { %v13236_v17 = vpop.xlane.xlu0 %5701 }
 0x4e6   :  { %7120 = vperm.xlu0 %8559, %v6835_v46   ;;  %14532 = vst [vmem:[#allocation4_spill] sm:$0xff] %v13236_v17  ;;  %v6839_v58 = vunpack.c.l.b16 %v8464_v44  ;;  %v8466_v46 = vpack.c.bf16 %v6201_v15, %v6201_v15  ;;  %v8467_v17 = vpack.c.bf16 %v6202_v29, %v6202_v29  ;;  %v5884_v44 = vrot.slane %v13210_v26, %v13089_v37  ;;  %v14536_v15 = vld [vmem:[#allocation114_spill] sm:$0xff] }
 0x4e7   :  { %v13231_v23 = vpop.permute.xlu1 %6934  ;;  %v6206_v29 = vmul.f32 %v5880_v5, %v14537_v19  ;;  %v14540_v19 = vld [vmem:[#allocation132_spill] sm:$0xff] }
 0x4e8   :  { %7123 = vperm.xlu1 %8560, %v6836_v43   ;;  %v6203_v43 = vmul.f32 %v5876_v47, %v14534_v49  ;;  %v6841_v22 = vunpack.c.l.b16 %v8466_v46  ;;  %v6842_v49 = vunpack.c.l.b16 %v8467_v17  ;;  %v5888_v47 = vrot.slane %v13210_v26, %v13095_v32 }
 0x4e9   :  { %v5892_v46 = vrot.slane %v13210_v26, %v13101_v24  ;;  %v6207_v62 = vmul.f32 %v5884_v44, %v14538_v33  ;;  %v6844_v17 = vunpack.c.l.b16 %v8469_v11  ;;  %v8471_v36 = vpack.c.bf16 %v6206_v29, %v6206_v29 }
 0x4ea   :  { %7126 = vperm.xlu0 %8559, %v6837_v20   ;;  %v8468_v56 = vpack.c.bf16 %v6203_v43, %v6203_v43  ;;  %v6210_v50 = vmul.f32 %v5888_v47, %v14540_v19  ;;  %v6209_v26 = vmul.f32 %v5888_v47, %v14541_v3  ;;  %v5709_v3 = vmax.f32 %v13217_v38, 1e-24 }
 0x4eb   :  { %v13239_v30 = vpop.permute.xlu1 %6940  ;;  %v6212_v31 = vmul.f32 %v5892_v46, %v12260_v1  ;;  %v6846_v57 = vunpack.c.l.b16 %v8471_v36  ;;  %v6211_v1 = vmul.f32 %v5892_v46, %v14542_v45  ;;  %v7416_v46 = vrot.slane %v13231_v23, %v14166_v35 }
 0x4ec   :  { %7129 = vperm.xlu1 %8560, %v6838_v63   ;;  %v6205_v63 = vmul.f32 %v5880_v5, %v14536_v15  ;;  %v6843_v43 = vunpack.c.l.b16 %v8468_v56  ;;  %v8475_v29 = vpack.c.bf16 %v6210_v50, %v6210_v50  ;;  %8733 = vrsqrt.f32 %v5709_v3  ;;  %v14548_v3 = vld [vmem:[#allocation16_spill] sm:$0xff] }
 0x4ed   :  { %v13244_v2 = vpop.permute.xlu0 %6937 }
 0x4ee   :  { %7132 = vperm.xlu0 %8559, %v6839_v58   ;;  %v13260_v15 = vpop.eup %8731  ;;  %v6850_v36 = vunpack.c.l.b16 %v8475_v29 }
 0x4ef   :  { %v13247_v20 = vpop.permute.xlu1 %6943  ;;  %v5896_v33 = vrot.slane %v13260_v15, %v14459_v27  ;;  %v5900_v45 = vrot.slane %v13260_v15, %v14460_v8  ;;  %v5904_v29 = vrot.slane %v13260_v15, %v14159_v4 }
 0x4f0   :  { %7135 = vperm.xlu1 %8560, %v6840_v54   ;;  %v8470_v54 = vpack.c.bf16 %v6205_v63, %v6205_v63  ;;  %v8472_v63 = vpack.c.bf16 %v6207_v62, %v6207_v62 }
 0x4f1   :  { %v13252_v53 = vpop.permute.xlu0 %6946  ;;  %v6214_v50 = vmul.f32 %v5896_v33, %v12244_v25 }
 0x4f2   :  { %7138 = vperm.xlu0 %8559, %v6841_v22   ;;  %v14539_v22 = vld [vmem:[#allocation126_spill] sm:$0xff]  ;;  %v6845_v56 = vunpack.c.l.b16 %v8470_v54  ;;  %v6847_v19 = vunpack.c.l.b16 %v8472_v63  ;;  %v14543_v54 = vld [vmem:[#allocation128_spill] sm:$0xff]  ;;  %v8476_v63 = vpack.c.bf16 %v6211_v1, %v6211_v1 }
 0x4f3   :  { %v6950_v58 = vpop.permute.xlu1 %6949  ;;  %v6208_v5 = vmul.f32 %v5884_v44, %v14539_v22  ;;  %v8477_v44 = vpack.c.bf16 %v6212_v31, %v6212_v31  ;;  %v8474_v22 = vpack.c.bf16 %v6209_v26, %v6209_v26  ;;  %v6213_v62 = vmul.f32 %v5896_v33, %v14543_v54 }
 0x4f4   :  { %7141 = vperm.xlu1 %8560, %v6842_v49   ;;  %v7434_v31 = vrot.slane %v13252_v53, %v14166_v35  ;;  %v7438_v25 = vrot.slane %v6950_v58, %v14164_v9 }
 0x4f5   :  { %v6953_v42 = vpop.permute.xlu0 %6952  ;;  %v8473_v11 = vpack.c.bf16 %v6208_v5, %v6208_v5  ;;  %v6852_v5 = vunpack.c.l.b16 %v8477_v44  ;;  %v6849_v26 = vunpack.c.l.b16 %v8474_v22  ;;  %v7425_v44 = vrot.slane %v13239_v30, %v14166_v35 }
 0x4f6   :  { %7144 = vperm.xlu0 %8559, %v6843_v43  }
 0x4f7   :  { %v6956_v40 = vpop.permute.xlu1 %6955  ;;  %v6848_v52 = vunpack.c.l.b16 %v8473_v11  ;;  %v8478_v11 = vpack.c.bf16 %v6213_v62, %v6213_v62 }
 0x4f8   :  { %7147 = vperm.xlu1 %8560, %v6844_v17   ;;  %v7420_v17 = vrot.slane %v13244_v2, %v14164_v9  ;;  %v7429_v2 = vrot.slane %v13247_v20, %v14164_v9  ;;  %v7447_v20 = vrot.slane %v6956_v40, %v14164_v9  ;;  %v6851_v40 = vunpack.c.l.b16 %v8476_v63 }
 0x4f9   :  { %v6959_v49 = vpop.permute.xlu0 %6958 }
 0x4fa   :  { %7150 = vperm.xlu0 %8559, %v6845_v56   ;;  %v7443_v56 = vrot.slane %v6953_v42, %v14166_v35  ;;  %v7452_v53 = vrot.slane %v6959_v49, %v14166_v35  ;;  %v7421_v23 = vsel %vm4872_vm1, %v7420_v17, %v7416_v46  ;;  %v7430_v54 = vsel %vm4872_vm1, %v7429_v2, %v7425_v44  ;;  %v14546_v44 = vld [vmem:[#allocation138_spill] sm:$0xff] }
 0x4fb   :  { %v6962_v43 = vpop.permute.xlu1 %6961 }
 0x4fc   :  { %7153 = vperm.xlu1 %8560, %v6846_v57   ;;  %v7456_v58 = vrot.slane %v6962_v43, %v14164_v9  ;;  %v7448_v30 = vsel %vm4872_vm1, %v7447_v20, %v7443_v56  ;;  %v8479_v43 = vpack.c.bf16 %v6214_v50, %v6214_v50  ;;  %v14545_v56 = vld [vmem:[#allocation139_spill] sm:$0xff]  ;;  %v6217_v50 = vmul.f32 %v5904_v29, %v14546_v44 }
 0x4fd   :  { %v6965_v47 = vpop.permute.xlu0 %6964 }
 0x4fe   :  { %7156 = vperm.xlu0 %8559, %v6847_v19   ;;  %v7461_v42 = vrot.slane %v6965_v47, %v14166_v35  ;;  %v14544_v19 = vld [vmem:[#allocation135_spill] sm:$0xff]  ;;  %v8133_v47 = vsel %vm5585_vm2, %v7430_v54, %v7421_v23  ;;  %v7457_v17 = vsel %vm4872_vm1, %v7456_v58, %v7452_v53  ;;  %v5908_v53 = vrot.slane %v13260_v15, %v14156_v7 }
 0x4ff   :  { %v6968_v57 = vpop.permute.xlu1 %6967  ;;  %v6215_v1 = vmul.f32 %v5900_v45, %v14544_v19 }
 0x500   :  { %7159 = vperm.xlu1 %8560, %v6848_v52   ;;  %v7439_v52 = vsel %vm4872_vm1, %v7438_v25, %v7434_v31  ;;  %v7465_v62 = vrot.slane %v6968_v57, %v14164_v9 }
 0x501   :  { %v6971_v33 = vpop.permute.xlu0 %6970  ;;  %v8134_v46 = vsel %vm5587_vm3, %v7439_v52, %v8133_v47  ;;  %v8480_v52 = vpack.c.bf16 %v6215_v1, %v6215_v1  ;;  %v5912_v47 = vrot.slane %v13260_v15, %v13085_v51 }
 0x502   :  { %7162 = vperm.xlu0 %8559, %v6849_v26   ;;  %v7470_v22 = vrot.slane %v6971_v33, %v14166_v35  ;;  %v7466_v25 = vsel %vm4872_vm1, %v7465_v62, %v7461_v42  ;;  %v6216_v33 = vmul.f32 %v5900_v45, %v14545_v56  ;;  %v6853_v42 = vunpack.c.l.b16 %v8478_v11  ;;  %v14549_v56 = vld [vmem:[#allocation112_spill] sm:$0xff] }
 0x503   :  { %v6974_v49 = vpop.permute.xlu1 %6973  ;;  %v6854_v45 = vunpack.c.l.b16 %v8479_v43  ;;  %v8482_v11 = vpack.c.bf16 %v6217_v50, %v6217_v50  ;;  %v6222_v44 = vmul.f32 %v5912_v47, %v12449_v48 }
 0x504   :  { %7165 = vperm.xlu1 %8560, %v6850_v36   ;;  %v7474_v31 = vrot.slane %v6974_v49, %v14164_v9  ;;  %v8135_v36 = vsel %vm5589_vm4, %v7448_v30, %v8134_v46  ;;  %v8481_v54 = vpack.c.bf16 %v6216_v33, %v6216_v33  ;;  %v6218_v30 = vmul.f32 %v5904_v29, %v12301_v39 }
 0x505   :  { %v6977_v26 = vpop.permute.xlu0 %6976  ;;  %v8136_v23 = vsel %vm5591_vm5, %v7457_v17, %v8135_v36  ;;  %v14547_v17 = vld [vmem:[#allocation140_spill] sm:$0xff]  ;;  %v6220_v29 = vmul.f32 %v5908_v53, %v14548_v3  ;;  %v6857_v46 = vunpack.c.l.b16 %v8482_v11  ;;  %v6221_v33 = vmul.f32 %v5912_v47, %v14549_v56 }
 0x506   :  { %v7479_v2 = vrot.slane %v6977_v26, %v14166_v35  ;;  %7168 = vperm.xlu0 %8559, %v6851_v40   ;;  %v7475_v63 = vsel %vm4872_vm1, %v7474_v31, %v7470_v22  ;;  %v8137_v58 = vsel %vm5593_vm6, %v7466_v25, %v8136_v23  ;;  %v6855_v40 = vunpack.c.l.b16 %v8480_v52  ;;  %v14550_v11 = vld [vmem:[#allocation28_spill] sm:$0xff] }
 0x507   :  { %v6980_v57 = vpop.permute.xlu1 %6979  ;;  %v8138_v19 = vsel %vm5595_vm7, %v7475_v63, %v8137_v58  ;;  %v6219_v31 = vmul.f32 %v5908_v53, %v14547_v17  ;;  %v6856_v39 = vunpack.c.l.b16 %v8481_v54  ;;  %v8483_v38 = vpack.c.bf16 %v6218_v30, %v6218_v30  ;;  %v13347_v58 = vpop.eup %8733 }
 0x508   :  { %v7483_v20 = vrot.slane %v6980_v57, %v14164_v9  ;;  %7171 = vperm.xlu1 %8560, %v6852_v5   ;;  %v8485_v63 = vpack.c.bf16 %v6220_v29, %v6220_v29  ;;  %v5920_v53 = vrot.slane %v13260_v15, %v13095_v32  ;;  %v5924_v23 = vrot.slane %v13260_v15, %v13101_v24  ;;  %v14551_v29 = vld [vmem:[#allocation25_spill] sm:$0xff] }
 0x509   :  { %v13314_v49 = vpop.permute.xlu0 %6982  ;;  %v8484_v25 = vpack.c.bf16 %v6219_v31, %v6219_v31  ;;  %v6858_v57 = vunpack.c.l.b16 %v8483_v38 }
 0x50a   :  { %v7484_v22 = vsel %vm4872_vm1, %v7483_v20, %v7479_v2  ;;  %7174 = vperm.xlu0 %8559, %v6853_v42   ;;  %v5916_v2 = vrot.slane %v13260_v15, %v13089_v37  ;;  %v8486_v42 = vpack.c.bf16 %v6221_v33, %v6221_v33  ;;  %v6226_v54 = vmul.f32 %v5920_v53, %v12576_v18 }
 0x50b   :  { %v13321_v62 = vpop.permute.xlu1 %6985  ;;  %v8139_v5 = vsel %vm5597_vm8, %v7484_v22, %v8138_v19  ;;  %v6859_v20 = vunpack.c.l.b16 %v8484_v25  ;;  %v6860_v19 = vunpack.c.l.b16 %v8485_v63  ;;  %v8487_v22 = vpack.c.bf16 %v6222_v44, %v6222_v44  ;;  %v14553_v44 = vld [vmem:[#allocation37_spill] sm:$0xff] }
 0x50c   :  { %7177 = vperm.xlu1 %8560, %v6854_v45   ;;  %v8203_v1 = vpack.c.b16 %v8139_v5, %v8139_v5  ;;  %v6223_v52 = vmul.f32 %v5916_v2, %v12396_v61  ;;  %v6224_v48 = vmul.f32 %v5916_v2, %v12544_v60  ;;  %v6228_v5 = vmul.f32 %v5924_v23, %v12592_v10  ;;  %v14552_v2 = vld [vmem:[#allocation31_spill] sm:$0xff] }
 0x50d   :  { %v13327_v43 = vpop.permute.xlu0 %6988  ;;  %v6225_v15 = vmul.f32 %v5920_v53, %v14550_v11  ;;  %v5928_v61 = vrot.slane %v13347_v58, %v14459_v27  ;;  %v6862_v17 = vunpack.c.l.b16 %v8487_v22  ;;  %v6227_v10 = vmul.f32 %v5924_v23, %v14551_v29 }
 0x50e   :  { %8224 = vst.msk [vmem:[%s13875_s2] sm:$0xf] %vm8223_vm10, %v8203_v1  ;;  %7180 = vperm.xlu0 %8559, %v6855_v40   ;;  %v6861_v1 = vunpack.c.l.b16 %v8486_v42  ;;  %v8488_v40 = vpack.c.bf16 %v6223_v52, %v6223_v52  ;;  %v8489_v31 = vpack.c.bf16 %v6224_v48, %v6224_v48  ;;  %v8493_v60 = vpack.c.bf16 %v6228_v5, %v6228_v5 }
 0x50f   :  { %v13334_v26 = vpop.permute.xlu1 %6991  ;;  %v8490_v3 = vpack.c.bf16 %v6225_v15, %v6225_v15  ;;  %v6229_v56 = vmul.f32 %v5928_v61, %v14552_v2  ;;  %v7497_v33 = vrot.slane %v13327_v43, %v14166_v35  ;;  %v6230_v53 = vmul.f32 %v5928_v61, %v14553_v44 }
 0x510   :  { %7183 = vperm.xlu1 %8560, %v6856_v39   ;;  %v8491_v39 = vpack.c.bf16 %v6226_v54, %v6226_v54  ;;  %v6863_v18 = vunpack.c.l.b16 %v8488_v40  ;;  %v6868_v52 = vunpack.c.l.b16 %v8493_v60  ;;  %v5932_v23 = vrot.slane %v13347_v58, %v14460_v8 }
 0x511   :  { %v13339_v36 = vpop.permute.xlu0 %6994  ;;  %v7501_v22 = vrot.slane %v13334_v26, %v14164_v9  ;;  %v7488_v43 = vrot.slane %v13314_v49, %v14166_v35  ;;  %v8492_v54 = vpack.c.bf16 %v6227_v10, %v6227_v10  ;;  %v8494_v15 = vpack.c.bf16 %v6229_v56, %v6229_v56 }
 0x512   :  { %7186 = vperm.xlu0 %8559, %v6857_v46   ;;  %v5710_v46 = vmax.f32 %v13228_v0, 1e-24  ;;  %v6866_v63 = vunpack.c.l.b16 %v8491_v39  ;;  %v7492_v40 = vrot.slane %v13321_v62, %v14164_v9 }
 0x513   :  { %v6998_v50 = vpop.permute.xlu1 %6997  ;;  %v7502_v26 = vsel %vm4872_vm1, %v7501_v22, %v7497_v33  ;;  %v5940_v22 = vrot.slane %v13347_v58, %v14156_v7 }
 0x514   :  { %7189 = vperm.xlu1 %8560, %v6858_v57   ;;  %v6864_v57 = vunpack.c.l.b16 %v8489_v31  ;;  %v7510_v5 = vrot.slane %v6998_v50, %v14164_v9  ;;  %v14554_v31 = vld [vmem:[#allocation27_spill] sm:$0xff]  ;;  %v7493_v60 = vsel %vm4872_vm1, %v7492_v40, %v7488_v43  ;;  %8735 = vrsqrt.f32 %v5710_v46 }
 0x515   :  { %v7001_v45 = vpop.permute.xlu0 %7000  ;;  %v6231_v39 = vmul.f32 %v5932_v23, %v14554_v31  ;;  %v6235_v31 = vmul.f32 %v5940_v22, %v12649_v34  ;;  %v6236_v46 = vmul.f32 %v5940_v22, %v12681_v55  ;;  %v5948_v34 = vrot.slane %v13347_v58, %v13089_v37 }
 0x516   :  { %7192 = vperm.xlu0 %8559, %v6859_v20   ;;  %v7506_v20 = vrot.slane %v13339_v36, %v14166_v35  ;;  %v7515_v48 = vrot.slane %v7001_v45, %v14166_v35  ;;  %v5952_v55 = vrot.slane %v13347_v58, %v13095_v32 }
 0x517   :  { %v7004_v30 = vpop.permute.xlu1 %7003 }
 0x518   :  { %7195 = vperm.xlu1 %8560, %v6860_v19   ;;  %v6865_v19 = vunpack.c.l.b16 %v8490_v3  ;;  %v7519_v49 = vrot.slane %v7004_v30, %v14164_v9  ;;  %v7511_v61 = vsel %vm4872_vm1, %v7510_v5, %v7506_v20  ;;  %v6867_v30 = vunpack.c.l.b16 %v8492_v54  ;;  %v14556_v54 = vld [vmem:[#allocation15_spill] sm:$0xff] }
 0x519   :  { %v7007_v47 = vpop.permute.xlu0 %7006 }
 0x51a   :  { %7198 = vperm.xlu0 %8559, %v6861_v1   ;;  %v7524_v36 = vrot.slane %v7007_v47, %v14166_v35  ;;  %v5936_v1 = vrot.slane %v13347_v58, %v14159_v4  ;;  %v7520_v62 = vsel %vm4872_vm1, %v7519_v49, %v7515_v48  ;;  %v6869_v48 = vunpack.c.l.b16 %v8494_v15 }
 0x51b   :  { %v7010_v38 = vpop.permute.xlu1 %7009 }
 0x51c   :  { %7201 = vperm.xlu1 %8560, %v6862_v17   ;;  %v7528_v50 = vrot.slane %v7010_v38, %v14164_v9  ;;  %v8495_v38 = vpack.c.bf16 %v6230_v53, %v6230_v53  ;;  %v6233_v5 = vmul.f32 %v5936_v1, %v14556_v54 }
 0x51d   :  { %v7013_v25 = vpop.permute.xlu0 %7012 }
 0x51e   :  { %7204 = vperm.xlu0 %8559, %v6863_v18   ;;  %v7533_v45 = vrot.slane %v7013_v25, %v14166_v35  ;;  %v8140_v18 = vsel %vm5585_vm2, %v7502_v26, %v7493_v60  ;;  %v7529_v29 = vsel %vm4872_vm1, %v7528_v50, %v7524_v36 }
 0x51f   :  { %v7016_v42 = vpop.permute.xlu1 %7015  ;;  %v8141_v2 = vsel %vm5587_vm3, %v7511_v61, %v8140_v18 }
 0x520   :  { %7207 = vperm.xlu1 %8560, %v6864_v57   ;;  %v7537_v3 = vrot.slane %v7016_v42, %v14164_v9  ;;  %v14555_v57 = vld [vmem:[#allocation20_spill] sm:$0xff] }
 0x521   :  { %v7019_v11 = vpop.permute.xlu0 %7018  ;;  %v6232_v44 = vmul.f32 %v5932_v23, %v14555_v57  ;;  %v6870_v23 = vunpack.c.l.b16 %v8495_v38 }
 0x522   :  { %7210 = vperm.xlu0 %8559, %v6865_v19   ;;  %v7542_v17 = vrot.slane %v7019_v11, %v14166_v35  ;;  %v7538_v56 = vsel %vm4872_vm1, %v7537_v3, %v7533_v45  ;;  %v8496_v19 = vpack.c.bf16 %v6231_v39, %v6231_v39  ;;  %v6234_v45 = vmul.f32 %v5936_v1, %v12652_v41 }
 0x523   :  { %v7022_v47 = vpop.permute.xlu1 %7021  ;;  %v8497_v49 = vpack.c.bf16 %v6232_v44, %v6232_v44 }
 0x524   :  { %7213 = vperm.xlu1 %8560, %v6866_v63   ;;  %v7546_v10 = vrot.slane %v7022_v47, %v14164_v9  ;;  %v8142_v63 = vsel %vm5589_vm4, %v7520_v62, %v8141_v2  ;;  %v6871_v61 = vunpack.c.l.b16 %v8496_v19  ;;  %v8498_v47 = vpack.c.bf16 %v6233_v5, %v6233_v5 }
 0x525   :  { %v7025_v25 = vpop.permute.xlu0 %7024  ;;  %v8143_v53 = vsel %vm5591_vm5, %v7529_v29, %v8142_v63  ;;  %v6872_v41 = vunpack.c.l.b16 %v8497_v49  ;;  %v8499_v0 = vpack.c.bf16 %v6234_v45, %v6234_v45  ;;  %v8500_v62 = vpack.c.bf16 %v6235_v31, %v6235_v31  ;;  %v14558_v45 = vld [vmem:[#allocation3_spill] sm:$0xff] }
 0x526   :  { %v7551_v33 = vrot.slane %v7025_v25, %v14166_v35  ;;  %7216 = vperm.xlu0 %8559, %v6867_v30   ;;  %v7547_v42 = vsel %vm4872_vm1, %v7546_v10, %v7542_v17  ;;  %v8144_v36 = vsel %vm5593_vm6, %v7538_v56, %v8143_v53  ;;  %v5944_v17 = vrot.slane %v13347_v58, %v13085_v51 }
 0x527   :  { %v7028_v20 = vpop.permute.xlu1 %7027  ;;  %v8145_v40 = vsel %vm5595_vm7, %v7547_v42, %v8144_v36  ;;  %v6873_v60 = vunpack.c.l.b16 %v8498_v47  ;;  %v6874_v18 = vunpack.c.l.b16 %v8499_v0  ;;  %v8501_v29 = vpack.c.bf16 %v6236_v46, %v6236_v46 }
 0x528   :  { %v7555_v43 = vrot.slane %v7028_v20, %v14164_v9  ;;  %7219 = vperm.xlu1 %8560, %v6868_v52   ;;  %v6237_v3 = vmul.f32 %v5944_v17, %v12658_v16  ;;  %v6238_v10 = vmul.f32 %v5944_v17, %v12698_v14  ;;  %v5956_v25 = vrot.slane %v13347_v58, %v13101_v24  ;;  %v13434_v16 = vpop.eup %8735 }
 0x529   :  { %v13401_v11 = vpop.permute.xlu0 %7030  ;;  %v6875_v2 = vunpack.c.l.b16 %v8500_v62  ;;  %v6876_v44 = vunpack.c.l.b16 %v8501_v29  ;;  %v6240_v14 = vmul.f32 %v5948_v34, %v12701_v28  ;;  %v6242_v20 = vmul.f32 %v5952_v55, %v12716_v59  ;;  %v14559_v62 = vld [vmem:[#allocation76_spill] sm:$0xff] }
 0x52a   :  { %v7556_v26 = vsel %vm4872_vm1, %v7555_v43, %v7551_v33  ;;  %7222 = vperm.xlu0 %8559, %v6869_v48   ;;  %v8502_v56 = vpack.c.bf16 %v6237_v3, %v6237_v3  ;;  %v6239_v33 = vmul.f32 %v5948_v34, %v12678_v21  ;;  %v8503_v63 = vpack.c.bf16 %v6238_v10, %v6238_v10 }
 0x52b   :  { %v13408_v52 = vpop.permute.xlu1 %7033  ;;  %v8146_v15 = vsel %vm5597_vm8, %v7556_v26, %v8145_v40  ;;  %v6244_v19 = vmul.f32 %v5956_v25, %v12737_v6  ;;  %v6241_v58 = vmul.f32 %v5952_v55, %v12695_v12  ;;  %v5960_v21 = vrot.slane %v13434_v16, %v14459_v27  ;;  %v14557_v26 = vld [vmem:[#allocation24_spill] sm:$0xff] }
 0x52c   :  { %7225 = vperm.xlu1 %8560, %v6870_v23   ;;  %v8204_v50 = vpack.c.b16 %v8146_v15, %v8146_v15  ;;  %v6877_v22 = vunpack.c.l.b16 %v8502_v56  ;;  %v8504_v53 = vpack.c.bf16 %v6239_v33, %v6239_v33  ;;  %v6243_v48 = vmul.f32 %v5956_v25, %v12713_v13 }
 0x52d   :  { %v13414_v39 = vpop.permute.xlu0 %7036  ;;  %v6878_v54 = vunpack.c.l.b16 %v8503_v63  ;;  %v8505_v5 = vpack.c.bf16 %v6240_v14, %v6240_v14  ;;  %v8507_v28 = vpack.c.bf16 %v6242_v20, %v6242_v20  ;;  %v8509_v59 = vpack.c.bf16 %v6244_v19, %v6244_v19 }
 0x52e   :  { %8225 = vst.msk [vmem:[%s13875_s2 + $0x4] sm:$0xf] %vm8223_vm10, %v8204_v50  ;;  %7228 = vperm.xlu0 %8559, %v6871_v61   ;;  %v8506_v23 = vpack.c.bf16 %v6241_v58, %v6241_v58  ;;  %v6879_v6 = vunpack.c.l.b16 %v8504_v53  ;;  %v8508_v12 = vpack.c.bf16 %v6243_v48, %v6243_v48  ;;  %v6245_v49 = vmul.f32 %v5960_v21, %v14557_v26 }
 0x52f   :  { %v13421_v1 = vpop.permute.xlu1 %7039  ;;  %v5711_v15 = vmax.f32 %v14558_v45, 1e-24  ;;  %v7569_v61 = vrot.slane %v13414_v39, %v14166_v35  ;;  %v6880_v50 = vunpack.c.l.b16 %v8505_v5  ;;  %v6882_v13 = vunpack.c.l.b16 %v8507_v28 }
 0x530   :  { %7231 = vperm.xlu1 %8560, %v6872_v41   ;;  %v6884_v31 = vunpack.c.l.b16 %v8509_v59  ;;  %v6881_v41 = vunpack.c.l.b16 %v8506_v23  ;;  %v5964_v0 = vrot.slane %v13434_v16, %v14460_v8  ;;  %v7573_v46 = vrot.slane %v13421_v1, %v14164_v9 }
 0x531   :  { %v13426_v30 = vpop.permute.xlu0 %7042  ;;  %v6246_v34 = vmul.f32 %v5960_v21, %v14559_v62  ;;  %v6883_v29 = vunpack.c.l.b16 %v8508_v12  ;;  %v8510_v10 = vpack.c.bf16 %v6245_v49, %v6245_v49  ;;  %v7564_v55 = vrot.slane %v13408_v52, %v14164_v9  ;;  %v14562_v49 = vld [vmem:[#allocation70_spill] sm:$0xff] }
 0x532   :  { %7234 = vperm.xlu0 %8559, %v6873_v60   ;;  %v7578_v47 = vrot.slane %v13426_v30, %v14166_v35  ;;  %v7560_v60 = vrot.slane %v13401_v11, %v14166_v35  ;;  %v7574_v1 = vsel %vm4872_vm1, %v7573_v46, %v7569_v61  ;;  %v5968_v20 = vrot.slane %v13434_v16, %v14159_v4  ;;  %v14563_v46 = vld [vmem:[#allocation75_spill] sm:$0xff] }
 0x533   :  { %v7046_v38 = vpop.permute.xlu1 %7045  ;;  %v6885_v23 = vunpack.c.l.b16 %v8510_v10  ;;  %v5972_v26 = vrot.slane %v13434_v16, %v14156_v7  ;;  %8737 = vrsqrt.f32 %v5711_v15 }
 0x534   :  { %7237 = vperm.xlu1 %8560, %v6874_v18   ;;  %v7582_v3 = vrot.slane %v7046_v38, %v14164_v9  ;;  %v7565_v63 = vsel %vm4872_vm1, %v7564_v55, %v7560_v60  ;;  %v6249_v61 = vmul.f32 %v5968_v20, %v14562_v49  ;;  %v6250_v60 = vmul.f32 %v5968_v20, %v14563_v46  ;;  %v14565_v55 = vld [vmem:[#allocation66_spill] sm:$0xff] }
 0x535   :  { %v7049_v57 = vpop.permute.xlu0 %7048  ;;  %v5984_v20 = vrot.slane %v13434_v16, %v13095_v32 }
 0x536   :  { %7240 = vperm.xlu0 %8559, %v6875_v2   ;;  %v7587_v39 = vrot.slane %v7049_v57, %v14166_v35  ;;  %v7583_v2 = vsel %vm4872_vm1, %v7582_v3, %v7578_v47  ;;  %v14560_v57 = vld [vmem:[#allocation113_spill] sm:$0xff]  ;;  %v8514_v3 = vpack.c.bf16 %v6249_v61, %v6249_v61  ;;  %v8515_v15 = vpack.c.bf16 %v6250_v60, %v6250_v60  ;;  %v14572_v61 = vld [vmem:[#allocation8_spill] sm:$0xff] }
 0x537   :  { %v7052_v42 = vpop.permute.xlu1 %7051 }
 0x538   :  { %7243 = vperm.xlu1 %8560, %v6876_v44   ;;  %v7591_v25 = vrot.slane %v7052_v42, %v14164_v9  ;;  %v6247_v44 = vmul.f32 %v5964_v0, %v14560_v57  ;;  %v8147_v42 = vsel %vm5585_vm2, %v7574_v1, %v7565_v63  ;;  %v6252_v1 = vmul.f32 %v5972_v26, %v14565_v55 }
 0x539   :  { %v7055_v43 = vpop.permute.xlu0 %7054 }
 0x53a   :  { %7246 = vperm.xlu0 %8559, %v6877_v22   ;;  %v7596_v30 = vrot.slane %v7055_v43, %v14166_v35  ;;  %v7592_v52 = vsel %vm4872_vm1, %v7591_v25, %v7587_v39  ;;  %v8511_v22 = vpack.c.bf16 %v6246_v34, %v6246_v34  ;;  %v8148_v43 = vsel %vm5587_vm3, %v7583_v2, %v8147_v42 }
 0x53b   :  { %v7058_v36 = vpop.permute.xlu1 %7057  ;;  %v8149_v28 = vsel %vm5589_vm4, %v7592_v52, %v8148_v43  ;;  %v8517_v63 = vpack.c.bf16 %v6252_v1, %v6252_v1  ;;  %v14567_v52 = vld [vmem:[#allocation41_spill] sm:$0xff]  ;;  %v5988_v43 = vrot.slane %v13434_v16, %v13101_v24 }
 0x53c   :  { %7249 = vperm.xlu1 %8560, %v6878_v54   ;;  %v7600_v56 = vrot.slane %v7058_v36, %v14164_v9  ;;  %v14561_v54 = vld [vmem:[#allocation65_spill] sm:$0xff] }
 0x53d   :  { %v7061_v40 = vpop.permute.xlu0 %7060  ;;  %v6248_v5 = vmul.f32 %v5964_v0, %v14561_v54  ;;  %v6892_v54 = vunpack.c.l.b16 %v8517_v63 }
 0x53e   :  { %7252 = vperm.xlu0 %8559, %v6879_v6   ;;  %v7605_v11 = vrot.slane %v7061_v40, %v14166_v35  ;;  %v7601_v19 = vsel %vm4872_vm1, %v7600_v56, %v7596_v30  ;;  %v8512_v6 = vpack.c.bf16 %v6247_v44, %v6247_v44  ;;  %v5976_v30 = vrot.slane %v13434_v16, %v13085_v51 }
 0x53f   :  { %v7064_v17 = vpop.permute.xlu1 %7063  ;;  %v8150_v40 = vsel %vm5591_vm5, %v7601_v19, %v8149_v28  ;;  %v8513_v0 = vpack.c.bf16 %v6248_v5, %v6248_v5  ;;  %v5980_v56 = vrot.slane %v13434_v16, %v13089_v37  ;;  %v6890_v44 = vunpack.c.l.b16 %v8515_v15  ;;  %v14569_v28 = vld [vmem:[#allocation45_spill] sm:$0xff]  ;;  %v14575_v15 = vld [vmem:[#allocation103_spill] sm:$0xff] }
 0x540   :  { %7255 = vperm.xlu1 %8560, %v6880_v50   ;;  %v7609_v14 = vrot.slane %v7064_v17, %v14164_v9  ;;  %v6887_v62 = vunpack.c.l.b16 %v8512_v6 }
 0x541   :  { %v7067_v18 = vpop.permute.xlu0 %7066  ;;  %v6888_v45 = vunpack.c.l.b16 %v8513_v0  ;;  %v14574_v0 = vld [vmem:[#allocation4_spill] sm:$0xff] }
 0x542   :  { %7258 = vperm.xlu0 %8559, %v6881_v41   ;;  %v7614_v33 = vrot.slane %v7067_v18, %v14166_v35  ;;  %v7610_v21 = vsel %vm4872_vm1, %v7609_v14, %v7605_v11  ;;  %v14564_v18 = vld [vmem:[#allocation78_spill] sm:$0xff]  ;;  %v6889_v11 = vunpack.c.l.b16 %v8514_v3  ;;  %v6254_v14 = vmul.f32 %v5976_v30, %v14567_v52 }
 0x543   :  { %v7070_v38 = vpop.permute.xlu1 %7069  ;;  %v8151_v50 = vsel %vm5593_vm6, %v7610_v21, %v8150_v40  ;;  %v13521_v21 = vpop.eup %8737  ;;  %v14571_v40 = vld [vmem:[#allocation74_spill] sm:$0xff]  ;;  %v5712_v46 = vmax.f32 %v14574_v0, 1e-24 }
 0x544   :  { %7261 = vperm.xlu1 %8560, %v6882_v13   ;;  %v7618_v58 = vrot.slane %v7070_v38, %v14164_v9  ;;  %v6886_v13 = vunpack.c.l.b16 %v8511_v22  ;;  %v14566_v38 = vld [vmem:[#allocation82_spill] sm:$0xff]  ;;  %v14568_v22 = vld [vmem:[#allocation68_spill] sm:$0xff]  ;;  %v8519_v5 = vpack.c.bf16 %v6254_v14, %v6254_v14  ;;  %v5992_v16 = vrot.slane %v13521_v21, %v14459_v27 }
 0x545   :  { %v7073_v53 = vpop.permute.xlu0 %7072  ;;  %8739 = vrsqrt.f32 %v5712_v46  ;;  %v5996_v52 = vrot.slane %v13521_v21, %v14460_v8  ;;  %v14578_v0 = vld [vmem:[#allocation42_spill] sm:$0xff] }
 0x546   :  { %v7623_v48 = vrot.slane %v7073_v53, %v14166_v35  ;;  %7264 = vperm.xlu0 %8559, %v6883_v29   ;;  %v7619_v59 = vsel %vm4872_vm1, %v7618_v58, %v7614_v33  ;;  %v6251_v29 = vmul.f32 %v5972_v26, %v14564_v18  ;;  %v6253_v33 = vmul.f32 %v5976_v30, %v14566_v38 }
 0x547   :  { %v7076_v36 = vpop.permute.xlu1 %7075  ;;  %v8152_v17 = vsel %vm5595_vm7, %v7619_v59, %v8151_v50  ;;  %v6255_v53 = vmul.f32 %v5980_v56, %v14568_v22  ;;  %v14570_v59 = vld [vmem:[#allocation53_spill] sm:$0xff]  ;;  %v6260_v50 = vmul.f32 %v5988_v43, %v14572_v61  ;;  %v6894_v60 = vunpack.c.l.b16 %v8519_v5 }
 0x548   :  { %v7627_v12 = vrot.slane %v7076_v36, %v14164_v9  ;;  %7267 = vperm.xlu1 %8560, %v6884_v31   ;;  %v8516_v2 = vpack.c.bf16 %v6251_v29, %v6251_v29  ;;  %v8518_v58 = vpack.c.bf16 %v6253_v33, %v6253_v33  ;;  %v6256_v36 = vmul.f32 %v5980_v56, %v14569_v28 }
 0x549   :  { %v13488_v47 = vpop.permute.xlu0 %7078  ;;  %v8520_v49 = vpack.c.bf16 %v6255_v53, %v6255_v53  ;;  %v8525_v18 = vpack.c.bf16 %v6260_v50, %v6260_v50  ;;  %v6261_v55 = vmul.f32 %v5992_v16, %v14575_v15  ;;  %v6264_v46 = vmul.f32 %v5996_v52, %v14578_v0  ;;  %v14579_v15 = vld [vmem:[#allocation93_spill] sm:$0xff] }
 0x54a   :  { %v7628_v41 = vsel %vm4872_vm1, %v7627_v12, %v7623_v48  ;;  %7270 = vperm.xlu0 %8559, %v6885_v23   ;;  %v6891_v19 = vunpack.c.l.b16 %v8516_v2  ;;  %v6258_v23 = vmul.f32 %v5984_v20, %v14570_v59  ;;  %v6257_v12 = vmul.f32 %v5984_v20, %v14571_v40  ;;  %v14577_v59 = vld [vmem:[#allocation48_spill] sm:$0xff] }
 0x54b   :  { %v13495_v31 = vpop.permute.xlu1 %7081  ;;  %v8153_v39 = vsel %vm5597_vm8, %v7628_v41, %v8152_v17  ;;  %v6893_v26 = vunpack.c.l.b16 %v8518_v58  ;;  %v14573_v17 = vld [vmem:[#allocation50_spill] sm:$0xff]  ;;  %v6895_v30 = vunpack.c.l.b16 %v8520_v49  ;;  %v7632_v20 = vrot.slane %v13488_v47, %v14166_v35 }
 0x54c   :  { %7273 = vperm.xlu1 %8560, %v6886_v13   ;;  %v8205_v34 = vpack.c.b16 %v8153_v39, %v8153_v39  ;;  %v6259_v41 = vmul.f32 %v5988_v43, %v14573_v17  ;;  %v8521_v39 = vpack.c.bf16 %v6256_v36, %v6256_v36  ;;  %v8522_v3 = vpack.c.bf16 %v6257_v12, %v6257_v12 }
 0x54d   :  { %v13501_v10 = vpop.permute.xlu0 %7084  ;;  %v8526_v43 = vpack.c.bf16 %v6261_v55, %v6261_v55 }
 0x54e   :  { %8226 = vst.msk [vmem:[%s13875_s2 + $0x8] sm:$0xf] %vm8223_vm10, %v8205_v34  ;;  %7276 = vperm.xlu0 %8559, %v6887_v62   ;;  %v8523_v62 = vpack.c.bf16 %v6258_v23, %v6258_v23  ;;  %v7641_v1 = vrot.slane %v13501_v10, %v14166_v35  ;;  %v6897_v33 = vunpack.c.l.b16 %v8522_v3  ;;  %v6263_v23 = vmul.f32 %v5996_v52, %v14577_v59 }
 0x54f   :  { %v13508_v25 = vpop.permute.xlu1 %7087 }
 0x550   :  { %7279 = vperm.xlu1 %8560, %v6888_v45   ;;  %v8524_v45 = vpack.c.bf16 %v6259_v41, %v6259_v41  ;;  %v6898_v2 = vunpack.c.l.b16 %v8523_v62  ;;  %v7645_v14 = vrot.slane %v13508_v25, %v14164_v9  ;;  %v8528_v3 = vpack.c.bf16 %v6263_v23, %v6263_v23 }
 0x551   :  { %v13513_v57 = vpop.permute.xlu0 %7090 }
 0x552   :  { %7282 = vperm.xlu0 %8559, %v6889_v11   ;;  %v6896_v11 = vunpack.c.l.b16 %v8521_v39  ;;  %v7650_v56 = vrot.slane %v13513_v57, %v14166_v35  ;;  %v6899_v53 = vunpack.c.l.b16 %v8524_v45  ;;  %v7646_v5 = vsel %vm4872_vm1, %v7645_v14, %v7641_v1 }
 0x553   :  { %v7094_v42 = vpop.permute.xlu1 %7093  ;;  %v6004_v45 = vrot.slane %v13521_v21, %v14156_v7 }
 0x554   :  { %7285 = vperm.xlu1 %8560, %v6890_v44   ;;  %v14576_v44 = vld [vmem:[#allocation49_spill] sm:$0xff]  ;;  %v7654_v58 = vrot.slane %v7094_v42, %v14164_v9 }
 0x555   :  { %v7097_v48 = vpop.permute.xlu0 %7096  ;;  %v6262_v63 = vmul.f32 %v5992_v16, %v14576_v44  ;;  %v14580_v44 = vld [vmem:[#allocation56_spill] sm:$0xff] }
 0x556   :  { %7288 = vperm.xlu0 %8559, %v6891_v19   ;;  %v7659_v10 = vrot.slane %v7097_v48, %v14166_v35  ;;  %v6900_v19 = vunpack.c.l.b16 %v8525_v18  ;;  %v7655_v48 = vsel %vm4872_vm1, %v7654_v58, %v7650_v56  ;;  %v6008_v58 = vrot.slane %v13521_v21, %v13085_v51 }
 0x557   :  { %v7100_v6 = vpop.permute.xlu1 %7099  ;;  %v8527_v50 = vpack.c.bf16 %v6262_v63, %v6262_v63 }
 0x558   :  { %7291 = vperm.xlu1 %8560, %v6892_v54   ;;  %v7636_v54 = vrot.slane %v13495_v31, %v14164_v9  ;;  %v7663_v25 = vrot.slane %v7100_v6, %v14164_v9  ;;  %v6000_v6 = vrot.slane %v13521_v21, %v14159_v4 }
 0x559   :  { %v7103_v13 = vpop.permute.xlu0 %7102 }
 0x55a   :  { %7294 = vperm.xlu0 %8559, %v6893_v26   ;;  %v7668_v57 = vrot.slane %v7103_v13, %v14166_v35  ;;  %v7637_v40 = vsel %vm4872_vm1, %v7636_v54, %v7632_v20  ;;  %v7664_v31 = vsel %vm4872_vm1, %v7663_v25, %v7659_v10  ;;  %v6265_v55 = vmul.f32 %v6000_v6, %v14579_v15 }
 0x55b   :  { %v7106_v34 = vpop.permute.xlu1 %7105  ;;  %v8154_v26 = vsel %vm5585_vm2, %v7646_v5, %v7637_v40  ;;  %v6266_v63 = vmul.f32 %v6000_v6, %v14580_v44  ;;  %v6903_v20 = vunpack.c.l.b16 %v8528_v3  ;;  %v14582_v5 = vld [vmem:[#allocation90_spill] sm:$0xff] }
 0x55c   :  { %7297 = vperm.xlu1 %8560, %v6894_v60   ;;  %v7672_v28 = vrot.slane %v7106_v34, %v14164_v9  ;;  %v8155_v16 = vsel %vm5587_vm3, %v7655_v48, %v8154_v26  ;;  %v6901_v34 = vunpack.c.l.b16 %v8526_v43  ;;  %v6268_v25 = vmul.f32 %v6004_v45, %v14582_v5 }
 0x55d   :  { %v7109_v29 = vpop.permute.xlu0 %7108  ;;  %v8156_v60 = vsel %vm5589_vm4, %v7664_v31, %v8155_v16  ;;  %v8531_v54 = vpack.c.bf16 %v6266_v63, %v6266_v63 }
 0x55e   :  { %7300 = vperm.xlu0 %8559, %v6895_v30   ;;  %v7677_v47 = vrot.slane %v7109_v29, %v14166_v35  ;;  %v7673_v49 = vsel %vm4872_vm1, %v7672_v28, %v7668_v57  ;;  %v13569_v30 = vpop.eup %8739  ;;  %v14581_v57 = vld [vmem:[#allocation122_spill] sm:$0xff]  ;;  %v8533_v31 = vpack.c.bf16 %v6268_v25, %v6268_v25 }
 0x55f   :  { %v7112_v38 = vpop.permute.xlu1 %7111  ;;  %v8157_v18 = vsel %vm5591_vm5, %v7673_v49, %v8156_v60  ;;  %v6906_v40 = vunpack.c.l.b16 %v8531_v54  ;;  %v6024_v26 = vrot.slane %v13569_v30, %v14459_v27  ;;  %v14587_v27 = vld [vmem:[#allocation127_spill] sm:$0xff] }
 0x560   :  { %7303 = vperm.xlu1 %8560, %v6896_v11   ;;  %v7681_v12 = vrot.slane %v7112_v38, %v14164_v9  ;;  %v6902_v11 = vunpack.c.l.b16 %v8527_v50  ;;  %v13609_v50 = vrot.slane %v13521_v21, %v13095_v32 }
 0x561   :  { %v7115_v22 = vpop.permute.xlu0 %7114 }
 0x562   :  { %7306 = vperm.xlu0 %8559, %v6897_v33   ;;  %v7686_v36 = vrot.slane %v7115_v22, %v14166_v35  ;;  %v7682_v17 = vsel %vm4872_vm1, %v7681_v12, %v7677_v47  ;;  %v8529_v33 = vpack.c.bf16 %v6264_v46, %v6264_v46  ;;  %v6267_v22 = vmul.f32 %v6004_v45, %v14581_v57  ;;  %v14584_v12 = vld [vmem:[#allocation104_spill] sm:$0xff] }
 0x563   :  { %v7118_v42 = vpop.permute.xlu1 %7117  ;;  %v8158_v1 = vsel %vm5593_vm6, %v7682_v17, %v8157_v18  ;;  %v6270_v6 = vmul.f32 %v6008_v58, %v14584_v12  ;;  %v14585_v17 = vld [vmem:[#allocation98_spill] sm:$0xff]  ;;  %v6908_v46 = vunpack.c.l.b16 %v8533_v31  ;;  %v14588_v18 = vld [vmem:[#allocation124_spill] sm:$0xff] }
 0x564   :  { %7309 = vperm.xlu1 %8560, %v6898_v2   ;;  %v7690_v61 = vrot.slane %v7118_v42, %v14164_v9  ;;  %v6904_v43 = vunpack.c.l.b16 %v8529_v33  ;;  %v8532_v28 = vpack.c.bf16 %v6267_v22, %v6267_v22  ;;  %v6012_v42 = vrot.slane %v13521_v21, %v13089_v37 }
 0x565   :  { %v7121_v13 = vpop.permute.xlu0 %7120  ;;  %v8535_v60 = vpack.c.bf16 %v6270_v6, %v6270_v6 }
 0x566   :  { %v7695_v41 = vrot.slane %v7121_v13, %v14166_v35  ;;  %7312 = vperm.xlu0 %8559, %v6899_v53   ;;  %v7691_v62 = vsel %vm4872_vm1, %v7690_v61, %v7686_v36  ;;  %v14583_v36 = vld [vmem:[#allocation95_spill] sm:$0xff]  ;;  %v6028_v61 = vrot.slane %v13569_v30, %v14460_v8  ;;  %v6907_v13 = vunpack.c.l.b16 %v8532_v28 }
 0x567   :  { %v7124_v39 = vpop.permute.xlu1 %7123  ;;  %v8159_v56 = vsel %vm5595_vm7, %v7691_v62, %v8158_v1  ;;  %v6269_v59 = vmul.f32 %v6008_v58, %v14583_v36  ;;  %v6032_v1 = vrot.slane %v13569_v30, %v14159_v4  ;;  %v6910_v33 = vunpack.c.l.b16 %v8535_v60  ;;  %v14591_v58 = vld [vmem:[#allocation134_spill] sm:$0xff]  ;;  %v14592_v36 = vld [vmem:[#allocation125_spill] sm:$0xff] }
 0x568   :  { %v7699_v29 = vrot.slane %v7124_v39, %v14164_v9  ;;  %7315 = vperm.xlu1 %8560, %v6900_v19   ;;  %v8530_v19 = vpack.c.bf16 %v6265_v55, %v6265_v55  ;;  %v14586_v39 = vld [vmem:[#allocation94_spill] sm:$0xff]  ;;  %v6279_v8 = vmul.f32 %v6028_v61, %v14588_v18 }
 0x569   :  { %v13577_v2 = vpop.permute.xlu0 %7126  ;;  %v8534_v16 = vpack.c.bf16 %v6269_v59, %v6269_v59  ;;  %v6272_v62 = vmul.f32 %v6012_v42, %v14586_v39  ;;  %v6281_v57 = vmul.f32 %v6032_v1, %v14591_v58  ;;  %v6280_v59 = vmul.f32 %v6028_v61, %v14592_v36 }
 0x56a   :  { %v7700_v38 = vsel %vm4872_vm1, %v7699_v29, %v7695_v41  ;;  %7318 = vperm.xlu0 %8559, %v6901_v34   ;;  %v6905_v48 = vunpack.c.l.b16 %v8530_v19  ;;  %v6271_v41 = vmul.f32 %v6012_v42, %v14585_v17  ;;  %v6277_v34 = vmul.f32 %v6024_v26, %v14587_v27  ;;  %v14589_v29 = vld [vmem:[#allocation106_spill] sm:$0xff] }
 0x56b   :  { %v13582_v52 = vpop.permute.xlu1 %7129  ;;  %v8160_v14 = vsel %vm5597_vm8, %v7700_v38, %v8159_v56  ;;  %v6273_v45 = vmul.f32 %v13609_v50, %v14589_v29  ;;  %v6909_v15 = vunpack.c.l.b16 %v8534_v16  ;;  %v14590_v56 = vld [vmem:[#allocation121_spill] sm:$0xff]  ;;  %v8537_v44 = vpack.c.bf16 %v6272_v62, %v6272_v62  ;;  %v14594_v29 = vld [vmem:[#allocation130_spill] sm:$0xff] }
 0x56c   :  { %7321 = vperm.xlu1 %8560, %v6902_v11   ;;  %v8206_v10 = vpack.c.b16 %v8160_v14, %v8160_v14  ;;  %v8536_v55 = vpack.c.bf16 %v6271_v41, %v6271_v41  ;;  %v6278_v38 = vmul.f32 %v6024_v26, %v14590_v56  ;;  %v8542_v63 = vpack.c.bf16 %v6277_v34, %v6277_v34  ;;  %v14593_v62 = vld [vmem:[#allocation129_spill] sm:$0xff] }
 0x56d   :  { %v13588_v53 = vpop.permute.xlu0 %7132  ;;  %v6912_v4 = vunpack.c.l.b16 %v8537_v44  ;;  %v7704_v31 = vrot.slane %v13577_v2, %v14166_v35  ;;  %v6036_v16 = vrot.slane %v13569_v30, %v14156_v7  ;;  %v7708_v61 = vrot.slane %v13582_v52, %v14164_v9 }
 0x56e   :  { %8227 = vst.msk [vmem:[%s13875_s2 + $0xc] sm:$0xf] %vm8223_vm10, %v8206_v10  ;;  %7324 = vperm.xlu0 %8559, %v6903_v20   ;;  %v8544_v20 = vpack.c.bf16 %v6279_v8, %v6279_v8  ;;  %v8538_v10 = vpack.c.bf16 %v6273_v45, %v6273_v45  ;;  %v6911_v19 = vunpack.c.l.b16 %v8536_v55  ;;  %v7713_v54 = vrot.slane %v13588_v53, %v14166_v35 }
 0x56f   :  { %v13595_v47 = vpop.permute.xlu1 %7135  ;;  %v6917_v5 = vunpack.c.l.b16 %v8542_v63  ;;  %v8546_v53 = vpack.c.bf16 %v6281_v57, %v6281_v57  ;;  %v8545_v60 = vpack.c.bf16 %v6280_v59, %v6280_v59  ;;  %v7709_v7 = vsel %vm4872_vm1, %v7708_v61, %v7704_v31 }
 0x570   :  { %7327 = vperm.xlu1 %8560, %v6904_v43   ;;  %v8543_v43 = vpack.c.bf16 %v6278_v38, %v6278_v38  ;;  %v6919_v28 = vunpack.c.l.b16 %v8544_v20  ;;  %v6913_v42 = vunpack.c.l.b16 %v8538_v10  ;;  %v6282_v27 = vmul.f32 %v6032_v1, %v14593_v62  ;;  %v14595_v10 = vld [vmem:[#allocation131_spill] sm:$0xff] }
 0x571   :  { %v13600_v23 = vpop.permute.xlu0 %7138  ;;  %v6283_v45 = vmul.f32 %v6036_v16, %v14594_v29  ;;  %v6040_v56 = vrot.slane %v13569_v30, %v13085_v51  ;;  %v6920_v44 = vunpack.c.l.b16 %v8545_v60  ;;  %v6921_v57 = vunpack.c.l.b16 %v8546_v53  ;;  %v14601_v62 = vld [vmem:[#allocation143_spill] sm:$0xff] }
 0x572   :  { %7330 = vperm.xlu0 %8559, %v6905_v48   ;;  %v7722_v25 = vrot.slane %v13600_v23, %v14166_v35  ;;  %v8547_v20 = vpack.c.bf16 %v6282_v27, %v6282_v27  ;;  %v6048_v61 = vrot.slane %v13569_v30, %v13095_v32 }
 0x573   :  { %v7142_v49 = vpop.permute.xlu1 %7141 }
 0x574   :  { %7333 = vperm.xlu1 %8560, %v6906_v40   ;;  %v7717_v40 = vrot.slane %v13595_v47, %v14164_v9  ;;  %v7726_v6 = vrot.slane %v7142_v49, %v14164_v9  ;;  %v6922_v36 = vunpack.c.l.b16 %v8547_v20  ;;  %v6289_v27 = vmul.f32 %v6048_v61, %v14601_v62  ;;  %v14605_v20 = vld [vmem:[#allocation144_spill] sm:$0xff] }
 0x575   :  { %v7145_v0 = vpop.permute.xlu0 %7144 }
 0x576   :  { %7336 = vperm.xlu0 %8559, %v6907_v13   ;;  %v7731_v12 = vrot.slane %v7145_v0, %v14166_v35  ;;  %v6918_v13 = vunpack.c.l.b16 %v8543_v43  ;;  %v7718_v47 = vsel %vm4872_vm1, %v7717_v40, %v7713_v54  ;;  %v7727_v41 = vsel %vm4872_vm1, %v7726_v6, %v7722_v25  ;;  %v14597_v40 = vld [vmem:[#allocation137_spill] sm:$0xff] }
 0x577   :  { %v7148_v3 = vpop.permute.xlu1 %7147  ;;  %v8161_v34 = vsel %vm5585_vm2, %v7718_v47, %v7709_v7  ;;  %v6044_v25 = vrot.slane %v13569_v30, %v13089_v37  ;;  %v6286_v31 = vmul.f32 %v6040_v56, %v14597_v40  ;;  %v14598_v37 = vld [vmem:[#allocation142_spill] sm:$0xff]  ;;  %v14599_v47 = vld [vmem:[#allocation133_spill] sm:$0xff]  ;;  %v6020_v7 = vrot.slane %v13521_v21, %v13101_v24 }
 0x578   :  { %7339 = vperm.xlu1 %8560, %v6908_v46   ;;  %v7735_v2 = vrot.slane %v7148_v3, %v14164_v9  ;;  %v6052_v21 = vrot.slane %v13569_v30, %v13101_v24 }
 0x579   :  { %v7151_v11 = vpop.permute.xlu0 %7150 }
 0x57a   :  { %7342 = vperm.xlu0 %8559, %v6909_v15   ;;  %v7740_v26 = vrot.slane %v7151_v11, %v14166_v35  ;;  %v7736_v39 = vsel %vm4872_vm1, %v7735_v2, %v7731_v12  ;;  %v8162_v15 = vsel %vm5587_vm3, %v7727_v41, %v8161_v34  ;;  %v6288_v2 = vmul.f32 %v6044_v25, %v14599_v47 }
 0x57b   :  { %v7154_v14 = vpop.permute.xlu1 %7153  ;;  %v8163_v1 = vsel %vm5589_vm4, %v7736_v39, %v8162_v15 }
 0x57c   :  { %7345 = vperm.xlu1 %8560, %v6910_v33   ;;  %v7744_v49 = vrot.slane %v7154_v14, %v14164_v9 }
 0x57d   :  { %v7157_v22 = vpop.permute.xlu0 %7156 }
 0x57e   :  { %7348 = vperm.xlu0 %8559, %v6911_v19   ;;  %v7749_v17 = vrot.slane %v7157_v22, %v14166_v35  ;;  %v7745_v3 = vsel %vm4872_vm1, %v7744_v49, %v7740_v26  ;;  %v6284_v19 = vmul.f32 %v6036_v16, %v14595_v10  ;;  %v8548_v22 = vpack.c.bf16 %v6283_v45, %v6283_v45  ;;  %v14603_v45 = vld [vmem:[#allocation97_spill] sm:$0xff] }
 0x57f   :  { %v7160_v48 = vpop.permute.xlu1 %7159  ;;  %v8164_v63 = vsel %vm5591_vm5, %v7745_v3, %v8163_v1  ;;  %v6287_v26 = vmul.f32 %v6044_v25, %v14598_v37  ;;  %v8551_v16 = vpack.c.bf16 %v6286_v31, %v6286_v31  ;;  %v6275_v15 = vmul.f32 %v6020_v7, %v14603_v45 }
 0x580   :  { %7351 = vperm.xlu1 %8560, %v6912_v4   ;;  %v7753_v52 = vrot.slane %v7160_v48, %v14164_v9  ;;  %v14596_v4 = vld [vmem:[#allocation136_spill] sm:$0xff]  ;;  %v8549_v59 = vpack.c.bf16 %v6284_v19, %v6284_v19  ;;  %v6923_v53 = vunpack.c.l.b16 %v8548_v22  ;;  %v6291_v10 = vmul.f32 %v6052_v21, %v14605_v20 }
 0x581   :  { %v7163_v23 = vpop.permute.xlu0 %7162  ;;  %v8552_v49 = vpack.c.bf16 %v6287_v26, %v6287_v26  ;;  %v6926_v39 = vunpack.c.l.b16 %v8551_v16 }
 0x582   :  { %7354 = vperm.xlu0 %8559, %v6913_v42   ;;  %v7758_v46 = vrot.slane %v7163_v23, %v14166_v35  ;;  %v7754_v55 = vsel %vm4872_vm1, %v7753_v52, %v7749_v17  ;;  %v8553_v52 = vpack.c.bf16 %v6288_v2, %v6288_v2 }
 0x583   :  { %v7166_v0 = vpop.permute.xlu1 %7165  ;;  %v8165_v58 = vsel %vm5593_vm6, %v7754_v55, %v8164_v63  ;;  %v6927_v32 = vunpack.c.l.b16 %v8552_v49  ;;  %v8554_v55 = vpack.c.bf16 %v6289_v27, %v6289_v27  ;;  %v8540_v63 = vpack.c.bf16 %v6275_v15, %v6275_v15 }
 0x584   :  { %7366 = vperm.xlu1 %8560, %v6917_v5   ;;  %v7762_v18 = vrot.slane %v7166_v0, %v14164_v9  ;;  %v6285_v5 = vmul.f32 %v6040_v56, %v14596_v4  ;;  %v14600_v0 = vld [vmem:[#allocation117_spill] sm:$0xff]  ;;  %v14604_v56 = vld [vmem:[#allocation120_spill] sm:$0xff] }
 0x585   :  { %v7169_v8 = vpop.permute.xlu0 %7168  ;;  %v6276_v1 = vmul.f32 %v6020_v7, %v14604_v56  ;;  %v6915_v4 = vunpack.c.l.b16 %v8540_v63 }
 0x586   :  { %v7767_v11 = vrot.slane %v7169_v8, %v14166_v35  ;;  %7369 = vperm.xlu0 %8559, %v6918_v13   ;;  %v7763_v33 = vsel %vm4872_vm1, %v7762_v18, %v7758_v46  ;;  %v8550_v6 = vpack.c.bf16 %v6285_v5, %v6285_v5  ;;  %v6924_v13 = vunpack.c.l.b16 %v8549_v59  ;;  %v14602_v18 = vld [vmem:[#allocation141_spill] sm:$0xff] }
 0x587   :  { %v7172_v38 = vpop.permute.xlu1 %7171  ;;  %v8166_v51 = vsel %vm5595_vm7, %v7763_v33, %v8165_v58  ;;  %v6274_v46 = vmul.f32 %v13609_v50, %v14600_v0  ;;  %v6290_v8 = vmul.f32 %v6048_v61, %v14602_v18  ;;  %v6928_v50 = vunpack.c.l.b16 %v8553_v52 }
 0x588   :  { %v7771_v14 = vrot.slane %v7172_v38, %v14164_v9  ;;  %7372 = vperm.xlu1 %8560, %v6919_v28   ;;  %v6925_v41 = vunpack.c.l.b16 %v8550_v6  ;;  %v8541_v19 = vpack.c.bf16 %v6276_v1, %v6276_v1 }
 0x589   :  { %v13662_v43 = vpop.permute.xlu0 %7174  ;;  %v8539_v3 = vpack.c.bf16 %v6274_v46, %v6274_v46  ;;  %v8555_v33 = vpack.c.bf16 %v6290_v8, %v6290_v8 }
 0x58a   :  { %v7772_v54 = vsel %vm4872_vm1, %v7771_v14, %v7767_v11  ;;  %7375 = vperm.xlu0 %8559, %v6920_v44   ;;  %v6929_v14 = vunpack.c.l.b16 %v8554_v55  ;;  %v7776_v25 = vrot.slane %v13662_v43, %v14166_v35  ;;  %v6916_v40 = vunpack.c.l.b16 %v8541_v19 }
 0x58b   :  { %v13669_v48 = vpop.permute.xlu1 %7177  ;;  %v8167_v28 = vsel %vm5597_vm8, %v7772_v54, %v8166_v51  ;;  %v6914_v38 = vunpack.c.l.b16 %v8539_v3  ;;  %v6930_v24 = vunpack.c.l.b16 %v8555_v33 }
 0x58c   :  { %7378 = vperm.xlu1 %8560, %v6921_v57   ;;  %v8207_v42 = vpack.c.b16 %v8167_v28, %v8167_v28  ;;  %v14606_v57 = vld [vmem:[#allocation145_spill] sm:$0xff] }
 0x58d   :  { %v13673_v12 = vpop.permute.xlu0 %7180  ;;  %v6292_v22 = vmul.f32 %v6052_v21, %v14606_v57 }
 0x58e   :  { %8228 = vst.msk [vmem:[%s13875_s2 + $0x10] sm:$0xf] %vm8223_vm10, %v8207_v42  ;;  %7381 = vperm.xlu0 %8559, %v6922_v36   ;;  %v7785_v51 = vrot.slane %v13673_v12, %v14166_v35  ;;  %v8556_v42 = vpack.c.bf16 %v6291_v10, %v6291_v10 }
 0x58f   :  { %v7184_v23 = vpop.permute.xlu1 %7183  ;;  %v8557_v31 = vpack.c.bf16 %v6292_v22, %v6292_v22 }
 0x590   :  { %7384 = vperm.xlu1 %8560, %v6923_v53   ;;  %v7789_v5 = vrot.slane %v7184_v23, %v14164_v9  ;;  %v7780_v53 = vrot.slane %v13669_v48, %v14164_v9  ;;  %v6931_v2 = vunpack.c.l.b16 %v8556_v42 }
 0x591   :  { %v7187_v17 = vpop.permute.xlu0 %7186  ;;  %v6932_v7 = vunpack.c.l.b16 %v8557_v31 }
 0x592   :  { %7387 = vperm.xlu0 %8559, %v6924_v13   ;;  %v7794_v30 = vrot.slane %v7187_v17, %v14166_v35  ;;  %v7790_v6 = vsel %vm4872_vm1, %v7789_v5, %v7785_v51  ;;  %v7781_v61 = vsel %vm4872_vm1, %v7780_v53, %v7776_v25 }
 0x593   :  { %v7190_v60 = vpop.permute.xlu1 %7189  ;;  %v8168_v17 = vsel %vm5585_vm2, %v7790_v6, %v7781_v61 }
 0x594   :  { %7390 = vperm.xlu1 %8560, %v6925_v41   ;;  %v7798_v36 = vrot.slane %v7190_v60, %v14164_v9 }
 0x595   :  { %v7193_v34 = vpop.permute.xlu0 %7192 }
 0x596   :  { %7393 = vperm.xlu0 %8559, %v6926_v39   ;;  %v7803_v28 = vrot.slane %v7193_v34, %v14166_v35  ;;  %v7799_v26 = vsel %vm4872_vm1, %v7798_v36, %v7794_v30 }
 0x597   :  { %v7196_v29 = vpop.permute.xlu1 %7195  ;;  %v8169_v46 = vsel %vm5587_vm3, %v7799_v26, %v8168_v17 }
 0x598   :  { %7396 = vperm.xlu1 %8560, %v6927_v32   ;;  %v7807_v37 = vrot.slane %v7196_v29, %v14164_v9 }
 0x599   :  { %v7199_v11 = vpop.permute.xlu0 %7198 }
 0x59a   :  { %7399 = vperm.xlu0 %8559, %v6928_v50   ;;  %v7812_v59 = vrot.slane %v7199_v11, %v14166_v35  ;;  %v7808_v47 = vsel %vm4872_vm1, %v7807_v37, %v7803_v28 }
 0x59b   :  { %v7202_v44 = vpop.permute.xlu1 %7201  ;;  %v8170_v52 = vsel %vm5589_vm4, %v7808_v47, %v8169_v46 }
 0x59c   :  { %7357 = vperm.xlu1 %8560, %v6914_v38   ;;  %v7816_v23 = vrot.slane %v7202_v44, %v14164_v9 }
 0x59d   :  { %v7205_v58 = vpop.permute.xlu0 %7204 }
 0x59e   :  { %7402 = vperm.xlu0 %8559, %v6929_v14   ;;  %v7821_v43 = vrot.slane %v7205_v58, %v14166_v35  ;;  %v7817_v41 = vsel %vm4872_vm1, %v7816_v23, %v7812_v59 }
 0x59f   :  { %v7208_v54 = vpop.permute.xlu1 %7207  ;;  %v8171_v34 = vsel %vm5591_vm5, %v7817_v41, %v8170_v52 }
 0x5a0   :  { %7405 = vperm.xlu1 %8560, %v6930_v24   ;;  %v7825_v48 = vrot.slane %v7208_v54, %v14164_v9 }
 0x5a1   :  { %v7211_v12 = vpop.permute.xlu0 %7210 }
 0x5a2   :  { %7360 = vperm.xlu0 %8559, %v6915_v4   ;;  %v7830_v16 = vrot.slane %v7211_v12, %v14166_v35  ;;  %v7826_v60 = vsel %vm4872_vm1, %v7825_v48, %v7821_v43 }
 0x5a3   :  { %v7214_v13 = vpop.permute.xlu1 %7213  ;;  %v8172_v3 = vsel %vm5593_vm6, %v7826_v60, %v8171_v34 }
 0x5a4   :  { %7363 = vperm.xlu1 %8560, %v6916_v40   ;;  %v7834_v49 = vrot.slane %v7214_v13, %v14164_v9 }
 0x5a5   :  { %v7217_v0 = vpop.permute.xlu0 %7216 }
 0x5a6   :  { %v7839_v39 = vrot.slane %v7217_v0, %v14166_v35  ;;  %7408 = vperm.xlu0 %8559, %v6931_v2   ;;  %v7835_v27 = vsel %vm4872_vm1, %v7834_v49, %v7830_v16 }
 0x5a7   :  { %v7220_v62 = vpop.permute.xlu1 %7219  ;;  %v8173_v8 = vsel %vm5595_vm7, %v7835_v27, %v8172_v3 }
 0x5a8   :  { %v7843_v32 = vrot.slane %v7220_v62, %v14164_v9  ;;  %7411 = vperm.xlu1 %8560, %v6932_v7  }
 0x5a9   :  { %v7223_v18 = vpop.permute.xlu0 %7222 }
 0x5aa   :  { %v7844_v29 = vsel %vm4872_vm1, %v7843_v32, %v7839_v39  ;;  %v7848_v58 = vrot.slane %v7223_v18, %v14166_v35 }
 0x5ab   :  { %v7226_v45 = vpop.permute.xlu1 %7225  ;;  %v8174_v15 = vsel %vm5597_vm8, %v7844_v29, %v8173_v8 }
 0x5ac   :  { %v8208_v50 = vpack.c.b16 %v8174_v15, %v8174_v15  ;;  %v7852_v30 = vrot.slane %v7226_v45, %v14164_v9 }
 0x5ad   :  { %v7229_v55 = vpop.permute.xlu0 %7228 }
 0x5ae   :  { %8229 = vst.msk [vmem:[%s13875_s2 + $0x14] sm:$0xf] %vm8223_vm10, %v8208_v50  ;;  %v7857_v14 = vrot.slane %v7229_v55, %v14166_v35  ;;  %v7853_v59 = vsel %vm4872_vm1, %v7852_v30, %v7848_v58 }
 0x5af   :  { %v7232_v21 = vpop.permute.xlu1 %7231 }
 0x5b0   :  { %v7861_v19 = vrot.slane %v7232_v21, %v14164_v9 }
 0x5b1   :  { %v7235_v11 = vpop.permute.xlu0 %7234 }
 0x5b2   :  { %v7866_v20 = vrot.slane %v7235_v11, %v14166_v35  ;;  %v7862_v54 = vsel %vm4872_vm1, %v7861_v19, %v7857_v14 }
 0x5b3   :  { %v7238_v56 = vpop.permute.xlu1 %7237  ;;  %v8175_v12 = vsel %vm5585_vm2, %v7862_v54, %v7853_v59 }
 0x5b4   :  { %v7870_v22 = vrot.slane %v7238_v56, %v14164_v9 }
 0x5b5   :  { %v7241_v1 = vpop.permute.xlu0 %7240 }
 0x5b6   :  { %v7875_v57 = vrot.slane %v7241_v1, %v14166_v35  ;;  %v7871_v25 = vsel %vm4872_vm1, %v7870_v22, %v7866_v20 }
 0x5b7   :  { %v7244_v38 = vpop.permute.xlu1 %7243  ;;  %v8176_v43 = vsel %vm5587_vm3, %v7871_v25, %v8175_v12 }
 0x5b8   :  { %v7879_v4 = vrot.slane %v7244_v38, %v14164_v9 }
 0x5b9   :  { %v7247_v33 = vpop.permute.xlu0 %7246 }
 0x5ba   :  { %v7884_v51 = vrot.slane %v7247_v33, %v14166_v35  ;;  %v7880_v40 = vsel %vm4872_vm1, %v7879_v4, %v7875_v57 }
 0x5bb   :  { %v7250_v44 = vpop.permute.xlu1 %7249  ;;  %v8177_v13 = vsel %vm5589_vm4, %v7880_v40, %v8176_v43 }
 0x5bc   :  { %v7888_v28 = vrot.slane %v7250_v44, %v14164_v9 }
 0x5bd   :  { %v7253_v63 = vpop.permute.xlu0 %7252 }
 0x5be   :  { %v7893_v5 = vrot.slane %v7253_v63, %v14166_v35  ;;  %v7889_v53 = vsel %vm4872_vm1, %v7888_v28, %v7884_v51 }
 0x5bf   :  { %v7256_v10 = vpop.permute.xlu1 %7255  ;;  %v8178_v47 = vsel %vm5591_vm5, %v7889_v53, %v8177_v13 }
 0x5c0   :  { %v7897_v31 = vrot.slane %v7256_v10, %v14164_v9 }
 0x5c1   :  { %v7259_v24 = vpop.permute.xlu0 %7258 }
 0x5c2   :  { %v7902_v36 = vrot.slane %v7259_v24, %v14166_v35  ;;  %v7898_v26 = vsel %vm4872_vm1, %v7897_v31, %v7893_v5 }
 0x5c3   :  { %v7262_v42 = vpop.permute.xlu1 %7261  ;;  %v8179_v2 = vsel %vm5593_vm6, %v7898_v26, %v8178_v47 }
 0x5c4   :  { %v7906_v6 = vrot.slane %v7262_v42, %v14164_v9 }
 0x5c5   :  { %v7265_v37 = vpop.permute.xlu0 %7264 }
 0x5c6   :  { %v7911_v23 = vrot.slane %v7265_v37, %v14166_v35  ;;  %v7907_v61 = vsel %vm4872_vm1, %v7906_v6, %v7902_v36 }
 0x5c7   :  { %v7268_v16 = vpop.permute.xlu1 %7267  ;;  %v8180_v41 = vsel %vm5595_vm7, %v7907_v61, %v8179_v2 }
 0x5c8   :  { %v7915_v48 = vrot.slane %v7268_v16, %v14164_v9 }
 0x5c9   :  { %v7271_v17 = vpop.permute.xlu0 %7270 }
 0x5ca   :  { %v7916_v49 = vsel %vm4872_vm1, %v7915_v48, %v7911_v23  ;;  %v7920_v50 = vrot.slane %v7271_v17, %v14166_v35 }
 0x5cb   :  { %v7274_v0 = vpop.permute.xlu1 %7273  ;;  %v8181_v46 = vsel %vm5597_vm8, %v7916_v49, %v8180_v41 }
 0x5cc   :  { %v8209_v60 = vpack.c.b16 %v8181_v46, %v8181_v46  ;;  %v7924_v1 = vrot.slane %v7274_v0, %v14164_v9 }
 0x5cd   :  { %v7277_v7 = vpop.permute.xlu0 %7276 }
 0x5ce   :  { %8230 = vst.msk [vmem:[%s13875_s2 + $0x18] sm:$0xf] %vm8223_vm10, %v8209_v60  ;;  %v7929_v8 = vrot.slane %v7277_v7, %v14166_v35  ;;  %v7925_v19 = vsel %vm4872_vm1, %v7924_v1, %v7920_v50 }
 0x5cf   :  { %v7280_v39 = vpop.permute.xlu1 %7279 }
 0x5d0   :  { %v7933_v15 = vrot.slane %v7280_v39, %v14164_v9 }
 0x5d1   :  { %v7283_v52 = vpop.permute.xlu0 %7282 }
 0x5d2   :  { %v7938_v29 = vrot.slane %v7283_v52, %v14166_v35  ;;  %v7934_v38 = vsel %vm4872_vm1, %v7933_v15, %v7929_v8 }
 0x5d3   :  { %v7286_v62 = vpop.permute.xlu1 %7285  ;;  %v8182_v22 = vsel %vm5585_vm2, %v7934_v38, %v7925_v19 }
 0x5d4   :  { %v7942_v21 = vrot.slane %v7286_v62, %v14164_v9 }
 0x5d5   :  { %v7289_v27 = vpop.permute.xlu0 %7288 }
 0x5d6   :  { %v7947_v55 = vrot.slane %v7289_v27, %v14166_v35  ;;  %v7943_v63 = vsel %vm4872_vm1, %v7942_v21, %v7938_v29 }
 0x5d7   :  { %v7292_v34 = vpop.permute.xlu1 %7291  ;;  %v8183_v54 = vsel %vm5587_vm3, %v7943_v63, %v8182_v22 }
 0x5d8   :  { %v7951_v33 = vrot.slane %v7292_v34, %v14164_v9 }
 0x5d9   :  { %v7295_v32 = vpop.permute.xlu0 %7294 }
 0x5da   :  { %v7956_v11 = vrot.slane %v7295_v32, %v14166_v35  ;;  %v7952_v58 = vsel %vm4872_vm1, %v7951_v33, %v7947_v55 }
 0x5db   :  { %v7298_v3 = vpop.permute.xlu1 %7297  ;;  %v8184_v25 = vsel %vm5589_vm4, %v7952_v58, %v8183_v54 }
 0x5dc   :  { %v7960_v14 = vrot.slane %v7298_v3, %v14164_v9 }
 0x5dd   :  { %v7301_v18 = vpop.permute.xlu0 %7300 }
 0x5de   :  { %v7965_v44 = vrot.slane %v7301_v18, %v14166_v35  ;;  %v7961_v51 = vsel %vm4872_vm1, %v7960_v14, %v7956_v11 }
 0x5df   :  { %v7304_v45 = vpop.permute.xlu1 %7303  ;;  %v8185_v36 = vsel %vm5591_vm5, %v7961_v51, %v8184_v25 }
 0x5e0   :  { %v7969_v57 = vrot.slane %v7304_v45, %v14164_v9 }
 0x5e1   :  { %v7307_v56 = vpop.permute.xlu0 %7306 }
 0x5e2   :  { %v7974_v10 = vrot.slane %v7307_v56, %v14166_v35  ;;  %v7970_v4 = vsel %vm4872_vm1, %v7969_v57, %v7965_v44 }
 0x5e3   :  { %v7310_v20 = vpop.permute.xlu1 %7309  ;;  %v8186_v40 = vsel %vm5593_vm6, %v7970_v4, %v8185_v36 }
 0x5e4   :  { %v7978_v24 = vrot.slane %v7310_v20, %v14164_v9 }
 0x5e5   :  { %v7313_v30 = vpop.permute.xlu0 %7312 }
 0x5e6   :  { %v7983_v5 = vrot.slane %v7313_v30, %v14166_v35  ;;  %v7979_v42 = vsel %vm4872_vm1, %v7978_v24, %v7974_v10 }
 0x5e7   :  { %v7316_v28 = vpop.permute.xlu1 %7315  ;;  %v8187_v12 = vsel %vm5595_vm7, %v7979_v42, %v8186_v40 }
 0x5e8   :  { %v7987_v59 = vrot.slane %v7316_v28, %v14164_v9 }
 0x5e9   :  { %v7319_v31 = vpop.permute.xlu0 %7318 }
 0x5ea   :  { %v7988_v53 = vsel %vm4872_vm1, %v7987_v59, %v7983_v5  ;;  %v7992_v45 = vrot.slane %v7319_v31, %v14166_v35 }
 0x5eb   :  { %v7322_v6 = vpop.permute.xlu1 %7321  ;;  %v8188_v37 = vsel %vm5597_vm8, %v7988_v53, %v8187_v12 }
 0x5ec   :  { %v8210_v43 = vpack.c.b16 %v8188_v37, %v8188_v37  ;;  %v7996_v11 = vrot.slane %v7322_v6, %v14164_v9 }
 0x5ed   :  { %v7325_v26 = vpop.permute.xlu0 %7324 }
 0x5ee   :  { %8231 = vst.msk [vmem:[%s13875_s2 + $0x1c] sm:$0xf] %vm8223_vm10, %v8210_v43  ;;  %v8001_v3 = vrot.slane %v7325_v26, %v14166_v35  ;;  %v7997_v63 = vsel %vm4872_vm1, %v7996_v11, %v7992_v45 }
 0x5ef   :  { %v7328_v23 = vpop.permute.xlu1 %7327 }
 0x5f0   :  { %v8005_v29 = vrot.slane %v7328_v23, %v14164_v9 }
 0x5f1   :  { %v7331_v13 = vpop.permute.xlu0 %7330 }
 0x5f2   :  { %v8010_v18 = vrot.slane %v7331_v13, %v14166_v35  ;;  %v8006_v56 = vsel %vm4872_vm1, %v8005_v29, %v8001_v3 }
 0x5f3   :  { %v7334_v16 = vpop.permute.xlu1 %7333  ;;  %v8189_v10 = vsel %vm5585_vm2, %v8006_v56, %v7997_v63 }
 0x5f4   :  { %v8014_v50 = vrot.slane %v7334_v16, %v14164_v9 }
 0x5f5   :  { %v7337_v61 = vpop.permute.xlu0 %7336 }
 0x5f6   :  { %v8019_v15 = vrot.slane %v7337_v61, %v14166_v35  ;;  %v8015_v38 = vsel %vm4872_vm1, %v8014_v50, %v8010_v18 }
 0x5f7   :  { %v7340_v47 = vpop.permute.xlu1 %7339  ;;  %v8190_v22 = vsel %vm5587_vm3, %v8015_v38, %v8189_v10 }
 0x5f8   :  { %v8023_v1 = vrot.slane %v7340_v47, %v14164_v9 }
 0x5f9   :  { %v7343_v48 = vpop.permute.xlu0 %7342 }
 0x5fa   :  { %v8028_v55 = vrot.slane %v7343_v48, %v14166_v35  ;;  %v8024_v14 = vsel %vm4872_vm1, %v8023_v1, %v8019_v15 }
 0x5fb   :  { %v7346_v2 = vpop.permute.xlu1 %7345  ;;  %v8191_v30 = vsel %vm5589_vm4, %v8024_v14, %v8190_v22 }
 0x5fc   :  { %v8032_v33 = vrot.slane %v7346_v2, %v14164_v9 }
 0x5fd   :  { %v7349_v17 = vpop.permute.xlu0 %7348 }
 0x5fe   :  { %v8037_v20 = vrot.slane %v7349_v17, %v14166_v35  ;;  %v8033_v19 = vsel %vm4872_vm1, %v8032_v33, %v8028_v55 }
 0x5ff   :  { %v7352_v41 = vpop.permute.xlu1 %7351  ;;  %v8192_v28 = vsel %vm5591_vm5, %v8033_v19, %v8191_v30 }
 0x600   :  { %v8041_v51 = vrot.slane %v7352_v41, %v14164_v9 }
 0x601   :  { %v7355_v49 = vpop.permute.xlu0 %7354 }
 0x602   :  { %v8042_v42 = vsel %vm4872_vm1, %v8041_v51, %v8037_v20  ;;  %v8046_v31 = vrot.slane %v7355_v49, %v14166_v35 }
 0x603   :  { %v7367_v0 = vpop.permute.xlu1 %7366 }
 0x604   :  { %v8064_v40 = vrot.slane %v7367_v0, %v14166_v35  ;;  %v8193_v0 = vsel %vm5593_vm6, %v8042_v42, %v8192_v28 }
 0x605   :  { %v7370_v46 = vpop.permute.xlu0 %7369 }
 0x606   :  { %v8068_v4 = vrot.slane %v7370_v46, %v14164_v9 }
 0x607   :  { %v7373_v60 = vpop.permute.xlu1 %7372 }
 0x608   :  { %v8073_v54 = vrot.slane %v7373_v60, %v14166_v35  ;;  %v8069_v13 = vsel %vm4872_vm1, %v8068_v4, %v8064_v40 }
 0x609   :  { %v7376_v7 = vpop.permute.xlu0 %7375 }
 0x60a   :  { %v8077_v58 = vrot.slane %v7376_v7, %v14164_v9 }
 0x60b   :  { %v7379_v39 = vpop.permute.xlu1 %7378 }
 0x60c   :  { %v8082_v36 = vrot.slane %v7379_v39, %v14166_v35  ;;  %v8078_v12 = vsel %vm4872_vm1, %v8077_v58, %v8073_v54 }
 0x60d   :  { %v7382_v52 = vpop.permute.xlu0 %7381  ;;  %v8196_v2 = vsel %vm5585_vm2, %v8078_v12, %v8069_v13 }
 0x60e   :  { %v8086_v24 = vrot.slane %v7382_v52, %v14164_v9 }
 0x60f   :  { %v7385_v62 = vpop.permute.xlu1 %7384 }
 0x610   :  { %v8091_v37 = vrot.slane %v7385_v62, %v14166_v35  ;;  %v8087_v43 = vsel %vm4872_vm1, %v8086_v24, %v8082_v36 }
 0x611   :  { %v7388_v27 = vpop.permute.xlu0 %7387  ;;  %v8197_v46 = vsel %vm5587_vm3, %v8087_v43, %v8196_v2 }
 0x612   :  { %v8095_v59 = vrot.slane %v7388_v27, %v14164_v9 }
 0x613   :  { %v7391_v34 = vpop.permute.xlu1 %7390 }
 0x614   :  { %v8100_v16 = vrot.slane %v7391_v34, %v14166_v35  ;;  %v8096_v41 = vsel %vm4872_vm1, %v8095_v59, %v8091_v37 }
 0x615   :  { %v7394_v32 = vpop.permute.xlu0 %7393 }
 0x616   :  { %v8104_v53 = vrot.slane %v7394_v32, %v14164_v9  ;;  %v8198_v32 = vsel %vm5589_vm4, %v8096_v41, %v8197_v46 }
 0x617   :  { %v7397_v8 = vpop.permute.xlu1 %7396 }
 0x618   :  { %v8109_v17 = vrot.slane %v7397_v8, %v14166_v35  ;;  %v8105_v60 = vsel %vm4872_vm1, %v8104_v53, %v8100_v16 }
 0x619   :  { %v7400_v21 = vpop.permute.xlu0 %7399  ;;  %v8199_v29 = vsel %vm5591_vm5, %v8105_v60, %v8198_v32 }
 0x61a   :  { %v8113_v26 = vrot.slane %v7400_v21, %v14164_v9 }
 0x61b   :  { %v7358_v44 = vpop.permute.xlu1 %7357 }
 0x61c   :  { %v8050_v5 = vrot.slane %v7358_v44, %v14164_v9  ;;  %v8114_v62 = vsel %vm4872_vm1, %v8113_v26, %v8109_v17 }
 0x61d   :  { %v7403_v57 = vpop.permute.xlu0 %7402  ;;  %v8200_v50 = vsel %vm5593_vm6, %v8114_v62, %v8199_v29 }
 0x61e   :  { %v8051_v61 = vsel %vm4872_vm1, %v8050_v5, %v8046_v31  ;;  %v8118_v48 = vrot.slane %v7403_v57, %v14166_v35 }
 0x61f   :  { %v7406_v25 = vpop.permute.xlu1 %7405  ;;  %v8194_v52 = vsel %vm5595_vm7, %v8051_v61, %v8193_v0 }
 0x620   :  { %v8122_v7 = vrot.slane %v7406_v25, %v14164_v9 }
 0x621   :  { %v7361_v6 = vpop.permute.xlu0 %7360 }
 0x622   :  { %v8055_v23 = vrot.slane %v7361_v6, %v14166_v35  ;;  %v8123_v3 = vsel %vm4872_vm1, %v8122_v7, %v8118_v48 }
 0x623   :  { %v7364_v47 = vpop.permute.xlu1 %7363  ;;  %v8201_v55 = vsel %vm5595_vm7, %v8123_v3, %v8200_v50 }
 0x624   :  { %v8059_v49 = vrot.slane %v7364_v47, %v14164_v9 }
 0x625   :  { %v7409_v39 = vpop.permute.xlu0 %7408 }
 0x626   :  { %v8060_v27 = vsel %vm4872_vm1, %v8059_v49, %v8055_v23  ;;  %v8127_v34 = vrot.slane %v7409_v39, %v14166_v35 }
 0x627   :  { %v7412_v18 = vpop.permute.xlu1 %7411  ;;  %v8195_v8 = vsel %vm5597_vm8, %v8060_v27, %v8194_v52 }
 0x628   :  { %v8131_v45 = vrot.slane %v7412_v18, %v14164_v9  ;;  %v8211_v15 = vpack.c.b16 %v8195_v8, %v8195_v8 }
 0x62a   :  { %8232 = vst.msk [vmem:[%s13875_s2 + $0x20] sm:$0xf] %vm8223_vm10, %v8211_v15  ;;  %v8132_v35 = vsel %vm4872_vm1, %v8131_v45, %v8127_v34 }
 0x62b   :  { %v8202_v21 = vsel %vm5597_vm8, %v8132_v35, %v8201_v55 }
 0x62c   :  { %v8212_v11 = vpack.c.b16 %v8202_v21, %v8202_v21 }
 0x62e   :  { %8233 = vst.msk [vmem:[%s13875_s2 + $0x24] sm:$0xf] %vm8223_vm10, %v8212_v11 }

</bundles_post_ra>
